<compile_context>
chip_gen: v6e
topology: v6e:2x2x1
jax: 0.10.0
libtpu: 0.0.40
codegen_flags: <defaults>
</compile_context>

<pallas_src>
import functools
import math

import jax
import jax.numpy as jnp
from jax.experimental import pallas as pl
from jax.experimental.pallas import tpu as pltpu


# ---------------------------------------------------------------------------
# Kernel
# ---------------------------------------------------------------------------
def _conv3x3_kernel(xp_ref, w_ref, b_ref, o_ref, slab_ref, acc_ref, *,
                    apply_relu):
    """One (batch-block, Cout-tile, Cin-tile) grid step of a 3x3 SAME conv.

    xp_ref  : (B, H+2, W8+2, TK)  spatially pre-padded input tile (bf16)
    w_ref   : (3, 3, TK, TN)      HWIO weight tile (bf16)
    b_ref   : (1, TN)             bias tile (f32)
    o_ref   : (B, H, W8, TN)      output tile
    slab_ref: (B, H+2, W8, TK)    contiguous kw-shifted input slab (bf16)
    acc_ref : (B*H*W8, TN)        f32 accumulator, persists across Cin steps
    """
    k = pl.program_id(2)                     # Cin reduction axis (innermost)
    nk = pl.num_programs(2)

    B, Hp, _, TK = xp_ref.shape
    H = Hp - 2
    W8 = slab_ref.shape[2]
    TN = o_ref.shape[3]
    M = B * H * W8

    @pl.when(k == 0)
    def _init():
        acc_ref[...] = jnp.zeros_like(acc_ref)

    for kw in range(3):
        # One sublane-offset relayout per kw: materialize the shifted slab
        # contiguously so the three kh taps below are tile-aligned loads.
        slab_ref[...] = xp_ref[:, :, kw:kw + W8, :]
        for kh in range(3):
            patch = slab_ref[:, kh:kh + H, :, :].reshape(M, TK)
            # Accumulate straight into VMEM scratch (no giant live vreg acc).
            acc_ref[...] += jnp.dot(patch, w_ref[kh, kw],
                                    preferred_element_type=jnp.float32)

    @pl.when(k == nk - 1)
    def _finalize():
        out = acc_ref[...] + b_ref[...]            # (M,TN) + (1,TN) broadcast
        if apply_relu:
            out = jnp.maximum(out, 0.0)
        o_ref[...] = out.reshape(B, H, W8, TN).astype(o_ref.dtype)


# ---------------------------------------------------------------------------
# Tiling helpers
# ---------------------------------------------------------------------------
def _round_up(x, m):
    return (x + m - 1) // m * m


def _channel_tile(c, cap=512):
    """Largest divisor of c that is <= cap (512 feeds the dual 256-wide MXUs
    and halves the input refetch vs. a 256-wide Cout tile)."""
    if c <= cap:
        return c
    for t in range(cap, 0, -1):
        if c % t == 0:
            return t
    return 1


def _divisors(n):
    return [d for d in range(1, n + 1) if n % d == 0]


def _vmem_capacity_bytes():
    try:
        info = pltpu.get_tpu_info()
        for name in ("vmem_capacity_bytes", "vmem_size_bytes", "vmem_bytes"):
            v = getattr(info, name, None)
            if v:
                return int(v)
    except Exception:
        pass
    return 64 * 1024 * 1024            # conservative default (v7x per-TC)


def _vmem_estimate(b_blk, h, w8, tk, tn, out_itemsize, n_wbuf):
    hp, wp = h + 2, w8 + 2
    in_b = 2 * b_blk * hp * wp * tk * 2            # double-buffered bf16 input
    w_b = n_wbuf * 9 * tk * tn * 2                 # n-buffered bf16 weights
    out_b = 2 * b_blk * h * w8 * tn * out_itemsize
    slab_b = b_blk * hp * w8 * tk * 2
    acc_b = b_blk * h * w8 * tn * 4
    return in_b + w_b + out_b + slab_b + acc_b + (1 << 20)   # +1 MiB slack


# ---------------------------------------------------------------------------
# Wrapper
# ---------------------------------------------------------------------------
def conv3x3_same(x_nhwc, w_hwio, b, *, apply_relu=False, out_dtype=None,
                 compute_dtype=jnp.bfloat16, m_target=1024):
    """3x3 / stride 1 / pad 1 convolution (+ optional fused ReLU) via Pallas."""
    N, H, W, Cin = x_nhwc.shape
    Cout = w_hwio.shape[-1]
    out_dtype = x_nhwc.dtype if out_dtype is None else jnp.dtype(out_dtype)
    out_itemsize = jnp.dtype(out_dtype).itemsize

    # Width padded to a multiple of 8 so the in-kernel flatten is tile
    # aligned; padded columns are zero and sliced off again below.
    W8 = _round_up(W, 8)

    TK = _channel_tile(Cin)
    TN = _channel_tile(Cout)

    # --- M sizing: pick a batch block so M = B_blk*H*W8 sits above the
    # weight-DMA roofline crossover (~240 / ~575 / ~620 rows on v5e/v6e/v7x).
    m_per_img = H * W8
    divs = _divisors(N)
    want = max(1, -(-m_target // m_per_img))                 # ceil
    b_blk = max([d for d in divs if d <= want] or [1])
    if b_blk == N and N > 1:
        # Keep >= 2 batch blocks (v7x has two TensorCores) if M stays large.
        smaller = [d for d in divs if d < N and d * m_per_img >= 512]
        if smaller:
            b_blk = max(smaller)

    # --- Per-generation VMEM budget: ~110 MiB on 128-MiB parts (v5e/v6e),
    # ~54 MiB on 64-MiB parts (v7x per-TC).  Shrink tiles until they fit.
    cap = _vmem_capacity_bytes()
    budget = max(32 * 1024 * 1024, min(int(cap * 0.85), 110 * 1024 * 1024))
    n_wbuf = 3                                               # triple-buffer W

    def fits():
        return _vmem_estimate(b_blk, H, W8, TK, TN, out_itemsize,
                              n_wbuf) <= budget

    while not fits():
        smaller = [d for d in divs if d < b_blk]
        if n_wbuf > 2:
            n_wbuf = 2
        elif smaller and max(smaller) * m_per_img >= 256:
            b_blk = max(smaller)
        elif TK > 128 and TK % 2 == 0:
            TK //= 2
        elif TN > 128 and TN % 2 == 0:
            TN //= 2
        elif smaller:
            b_blk = max(smaller)
        else:
            break

    # Pad once (halo + width alignment) and quantize operands once.
    # TODO(synk): fuse the halo/width pad + cast into the kernel (zero-filled
    # VMEM slab + interior DMA) to remove this per-layer HBM round trip.
    xp = jnp.pad(x_nhwc,
                 ((0, 0), (1, 1), (1, 1 + (W8 - W)), (0, 0))
                 ).astype(compute_dtype)
    w = w_hwio.astype(compute_dtype)
    b2 = b.reshape(1, Cout).astype(jnp.float32)

    grid = (N // b_blk, Cout // TN, Cin // TK)

    # Triple-buffer the weight stream when there is VMEM headroom and the
    # grid is long enough for it to matter (hides the per-step weight DMA).
    w_shape = (3, 3, TK, TN)
    w_map = lambda n, j, k: (0, 0, k, j)
    w_spec = pl.BlockSpec(w_shape, w_map)
    if n_wbuf > 2 and grid[1] * grid[2] >= n_wbuf and hasattr(pl, "Buffered"):
        try:
            w_spec = pl.BlockSpec(w_shape, w_map,
                                  pipeline_mode=pl.Buffered(n_wbuf))
        except TypeError:            # BlockSpec without pipeline_mode support
            w_spec = pl.BlockSpec(w_shape, w_map)

    kernel = functools.partial(_conv3x3_kernel, apply_relu=apply_relu)
    y = pl.pallas_call(
        kernel,
        out_shape=jax.ShapeDtypeStruct((N, H, W8, Cout), out_dtype),
        grid_spec=pltpu.PrefetchScalarGridSpec(
            num_scalar_prefetch=0,
            grid=grid,
            in_specs=[
                pl.BlockSpec((b_blk, H + 2, W8 + 2, TK),
                             lambda n, j, k: (n, 0, 0, k)),
                w_spec,
                pl.BlockSpec((1, TN), lambda n, j, k: (0, j)),
            ],
            out_specs=pl.BlockSpec((b_blk, H, W8, TN),
                                   lambda n, j, k: (n, 0, 0, j)),
            scratch_shapes=[
                pltpu.VMEM((b_blk, H + 2, W8, TK), compute_dtype),   # kw slab
                pltpu.VMEM((b_blk * H * W8, TN), jnp.float32),       # f32 acc
            ],
        ),
        compiler_params=pltpu.CompilerParams(
            dimension_semantics=("parallel", "parallel", "arbitrary"),
            vmem_limit_bytes=budget,
        ),
    )(xp, w, b2)

    if W8 != W:
        y = y[:, :, :W, :]
    return y


# ---------------------------------------------------------------------------
# Module forward + reference
# ---------------------------------------------------------------------------
def init_conv_params(key, cin, cout, k=3):
    """PyTorch nn.Conv2d default init bounds, HWIO layout, f32."""
    kw_key, kb_key = jax.random.split(key)
    bound = 1.0 / math.sqrt(cin * k * k)
    w = jax.random.uniform(kw_key, (k, k, cin, cout), jnp.float32, -bound, bound)
    b = jax.random.uniform(kb_key, (cout,), jnp.float32, -bound, bound)
    return w, b


def resnet_conv5_forward(x_nchw, params):
    """Matches resnet_conv5.forward: conv11 -> conv12 -> relu -> conv21 -> conv22 -> relu."""
    (w11, b11), (w12, b12), (w21, b21), (w22, b22) = params
    x = jnp.transpose(x_nchw, (0, 2, 3, 1))                       # NCHW->NHWC
    # Intermediate layers emit bf16 (halves HBM writeback + next-layer read).
    x = conv3x3_same(x, w11, b11, apply_relu=False, out_dtype=jnp.bfloat16)
    x = conv3x3_same(x, w12, b12, apply_relu=True, out_dtype=jnp.bfloat16)
    x = conv3x3_same(x, w21, b21, apply_relu=False, out_dtype=jnp.bfloat16)
    x = conv3x3_same(x, w22, b22, apply_relu=True, out_dtype=jnp.float32)
    return jnp.transpose(x, (0, 3, 1, 2))                         # NHWC->NCHW


def _reference_forward(x_nchw, params, compute_dtype=jnp.bfloat16):
    """Pure-JAX reference with the same bf16-operand / f32-accum recipe and
    the same bf16 intermediate activations as the Pallas pipeline."""
    dn = ("NHWC", "HWIO", "NHWC")

    def conv(x, w, b, relu, out_dtype):
        y = jax.lax.conv_general_dilated(
            x.astype(compute_dtype), w.astype(compute_dtype), (1, 1), "SAME",
            dimension_numbers=dn, preferred_element_type=jnp.float32)
        y = y + b[None, None, None, :].astype(jnp.float32)
        if relu:
            y = jnp.maximum(y, 0.0)
        return y.astype(out_dtype)

    (w11, b11), (w12, b12), (w21, b21), (w22, b22) = params
    x = jnp.transpose(x_nchw, (0, 2, 3, 1))
    x = conv(x, w11, b11, False, jnp.bfloat16)
    x = conv(x, w12, b12, True, jnp.bfloat16)
    x = conv(x, w21, b21, False, jnp.bfloat16)
    x = conv(x, w22, b22, True, jnp.float32)
    return jnp.transpose(x, (0, 3, 1, 2))


if __name__ == "__main__":
    # Small shapes consistent with the module's forward
    # (real module: Cin=4096, Cmid=2048; scaled down so the demo runs fast).
    N, C_IN, C_MID, H, W = 2, 8, 4, 8, 8

    key = jax.random.PRNGKey(0)
    kx, k11, k12, k21, k22 = jax.random.split(key, 5)

    x = jax.random.normal(kx, (N, C_IN, H, W), jnp.float32)   # NCHW like torch
    params = (
        init_conv_params(k11, C_IN, C_MID),    # conv11 (4096 -> 2048 scaled)
        init_conv_params(k12, C_MID, C_MID),   # conv12
        init_conv_params(k21, C_MID, C_MID),   # conv21
        init_conv_params(k22, C_MID, C_MID),   # conv22
    )

    fwd = jax.jit(resnet_conv5_forward)
    out = jax.block_until_ready(fwd(x, params))
    ref = jax.block_until_ready(_reference_forward(x, params))

    assert out.shape == (N, C_MID, H, W), out.shape
    assert jnp.allclose(out, ref, atol=3e-3, rtol=3e-3), "mismatch vs reference"
    print("KERNEL_OK")
</pallas_src>

<mosaic_0001>
module attributes {stable_mosaic.version = 11 : i64} {
  func.func @_conv3x3_kernel(%arg0: i32, %arg1: i32, %arg2: i32, %arg3: memref<2x10x10x8xbf16, #tpu.memory_space<vmem>>, %arg4: memref<3x3x8x4xbf16, #tpu.memory_space<vmem>>, %arg5: memref<1x4xf32, #tpu.memory_space<vmem>>, %arg6: memref<2x8x8x4xbf16, #tpu.memory_space<vmem>>, %arg7: memref<2x10x8x8xbf16, #tpu.memory_space<vmem>>, %arg8: memref<128x4xf32, #tpu.memory_space<vmem>>) attributes {dimension_semantics = [#tpu.dimension_semantics<parallel>, #tpu.dimension_semantics<parallel>, #tpu.dimension_semantics<arbitrary>], iteration_bounds = array<i64: 1, 1, 1>, scalar_prefetch = 0 : i64, scratch_operands = 2 : i64, tpu.core_type = #tpu.core_type<tc>, window_params = [{transform_indices = @transform_0, window_bounds = array<i64: 2, 10, 10, 8>}, {transform_indices = @transform_1, window_bounds = array<i64: 3, 3, 8, 4>}, {transform_indices = @transform_2, window_bounds = array<i64: 1, 4>}, {transform_indices = @transform_3, window_bounds = array<i64: 2, 8, 8, 4>}]} {
    %c0_i32 = arith.constant 0 : i32
    %0 = arith.cmpi eq, %arg2, %c0_i32 : i32
    %1 = arith.extui %0 : i1 to i32
    %c0_i32_0 = arith.constant 0 : i32
    %2 = arith.cmpi ne, %1, %c0_i32_0 : i32
    scf.if %2 {
      %cst_140 = arith.constant 0.000000e+00 : f32
      %84 = vector.broadcast %cst_140 : f32 to vector<128x4xf32>
      %c0_141 = arith.constant 0 : index
      %c0_142 = arith.constant 0 : index
      %85 = vector.load %arg8[%c0_141, %c0_142] : memref<128x4xf32, #tpu.memory_space<vmem>>, vector<128x4xf32>
      tpu.vector_store %arg8[%c0_141, %c0_142], %84 {strides = array<i32>} : memref<128x4xf32, #tpu.memory_space<vmem>>, vector<128x4xf32>,
    } else {
    }
    %c0 = arith.constant 0 : index
    %c0_1 = arith.constant 0 : index
    %c0_2 = arith.constant 0 : index
    %c0_3 = arith.constant 0 : index
    %3 = vector.load %arg3[%c0, %c0_1, %c0_2, %c0_3] : memref<2x10x10x8xbf16, #tpu.memory_space<vmem>>, vector<2x10x8x8xbf16>
    %c0_4 = arith.constant 0 : index
    %c0_5 = arith.constant 0 : index
    %c0_6 = arith.constant 0 : index
    %c0_7 = arith.constant 0 : index
    %4 = vector.load %arg7[%c0_4, %c0_5, %c0_6, %c0_7] : memref<2x10x8x8xbf16, #tpu.memory_space<vmem>>, vector<2x10x8x8xbf16>
    tpu.vector_store %arg7[%c0_4, %c0_5, %c0_6, %c0_7], %3 {strides = array<i32>} : memref<2x10x8x8xbf16, #tpu.memory_space<vmem>>, vector<2x10x8x8xbf16>,
    %c0_8 = arith.constant 0 : index
    %c0_9 = arith.constant 0 : index
    %c0_10 = arith.constant 0 : index
    %c0_11 = arith.constant 0 : index
    %5 = vector.load %arg7[%c0_8, %c0_9, %c0_10, %c0_11] : memref<2x10x8x8xbf16, #tpu.memory_space<vmem>>, vector<2x8x8x8xbf16>
    %6 = vector.shape_cast %5 : vector<2x8x8x8xbf16> to vector<128x8xbf16>
    %c0_12 = arith.constant 0 : index
    %c0_13 = arith.constant 0 : index
    %7 = vector.load %arg8[%c0_12, %c0_13] : memref<128x4xf32, #tpu.memory_space<vmem>>, vector<128x4xf32>
    %c0_14 = arith.constant 0 : index
    %c0_15 = arith.constant 0 : index
    %c0_16 = arith.constant 0 : index
    %c0_17 = arith.constant 0 : index
    %8 = vector.load %arg4[%c0_14, %c0_15, %c0_16, %c0_17] : memref<3x3x8x4xbf16, #tpu.memory_space<vmem>>, vector<1x1x8x4xbf16>
    %9 = vector.shape_cast %8 : vector<1x1x8x4xbf16> to vector<8x4xbf16>
    %cst = arith.constant dense<0.000000e+00> : vector<128x4xf32>
    %10 = tpu.matmul %6, %9, %cst {dimension_numbers = #tpu.dot_dimension_numbers<[1], [0], [0], [1], [0, 0, 1, 1], [], []>} : vector<128x8xbf16>, vector<8x4xbf16>, vector<128x4xf32> -> vector<128x4xf32>
    %11 = arith.addf %7, %10 : vector<128x4xf32>
    %c0_18 = arith.constant 0 : index
    %c0_19 = arith.constant 0 : index
    %12 = vector.load %arg8[%c0_18, %c0_19] : memref<128x4xf32, #tpu.memory_space<vmem>>, vector<128x4xf32>
    tpu.vector_store %arg8[%c0_18, %c0_19], %11 {strides = array<i32>} : memref<128x4xf32, #tpu.memory_space<vmem>>, vector<128x4xf32>,
    %c0_20 = arith.constant 0 : index
    %c1 = arith.constant 1 : index
    %c0_21 = arith.constant 0 : index
    %c0_22 = arith.constant 0 : index
    %13 = vector.load %arg7[%c0_20, %c1, %c0_21, %c0_22] : memref<2x10x8x8xbf16, #tpu.memory_space<vmem>>, vector<2x8x8x8xbf16>
    %14 = vector.shape_cast %13 : vector<2x8x8x8xbf16> to vector<128x8xbf16>
    %c0_23 = arith.constant 0 : index
    %c0_24 = arith.constant 0 : index
    %15 = vector.load %arg8[%c0_23, %c0_24] : memref<128x4xf32, #tpu.memory_space<vmem>>, vector<128x4xf32>
    %c1_25 = arith.constant 1 : index
    %c0_26 = arith.constant 0 : index
    %c0_27 = arith.constant 0 : index
    %c0_28 = arith.constant 0 : index
    %16 = vector.load %arg4[%c1_25, %c0_26, %c0_27, %c0_28] : memref<3x3x8x4xbf16, #tpu.memory_space<vmem>>, vector<1x1x8x4xbf16>
    %17 = vector.shape_cast %16 : vector<1x1x8x4xbf16> to vector<8x4xbf16>
    %cst_29 = arith.constant dense<0.000000e+00> : vector<128x4xf32>
    %18 = tpu.matmul %14, %17, %cst_29 {dimension_numbers = #tpu.dot_dimension_numbers<[1], [0], [0], [1], [0, 0, 1, 1], [], []>} : vector<128x8xbf16>, vector<8x4xbf16>, vector<128x4xf32> -> vector<128x4xf32>
    %19 = arith.addf %15, %18 : vector<128x4xf32>
    %c0_30 = arith.constant 0 : index
    %c0_31 = arith.constant 0 : index
    %20 = vector.load %arg8[%c0_30, %c0_31] : memref<128x4xf32, #tpu.memory_space<vmem>>, vector<128x4xf32>
    tpu.vector_store %arg8[%c0_30, %c0_31], %19 {strides = array<i32>} : memref<128x4xf32, #tpu.memory_space<vmem>>, vector<128x4xf32>,
    %c0_32 = arith.constant 0 : index
    %c2 = arith.constant 2 : index
    %c0_33 = arith.constant 0 : index
    %c0_34 = arith.constant 0 : index
    %21 = vector.load %arg7[%c0_32, %c2, %c0_33, %c0_34] : memref<2x10x8x8xbf16, #tpu.memory_space<vmem>>, vector<2x8x8x8xbf16>
    %22 = vector.shape_cast %21 : vector<2x8x8x8xbf16> to vector<128x8xbf16>
    %c0_35 = arith.constant 0 : index
    %c0_36 = arith.constant 0 : index
    %23 = vector.load %arg8[%c0_35, %c0_36] : memref<128x4xf32, #tpu.memory_space<vmem>>, vector<128x4xf32>
    %c2_37 = arith.constant 2 : index
    %c0_38 = arith.constant 0 : index
    %c0_39 = arith.constant 0 : index
    %c0_40 = arith.constant 0 : index
    %24 = vector.load %arg4[%c2_37, %c0_38, %c0_39, %c0_40] : memref<3x3x8x4xbf16, #tpu.memory_space<vmem>>, vector<1x1x8x4xbf16>
    %25 = vector.shape_cast %24 : vector<1x1x8x4xbf16> to vector<8x4xbf16>
    %cst_41 = arith.constant dense<0.000000e+00> : vector<128x4xf32>
    %26 = tpu.matmul %22, %25, %cst_41 {dimension_numbers = #tpu.dot_dimension_numbers<[1], [0], [0], [1], [0, 0, 1, 1], [], []>} : vector<128x8xbf16>, vector<8x4xbf16>, vector<128x4xf32> -> vector<128x4xf32>
    %27 = arith.addf %23, %26 : vector<128x4xf32>
    %c0_42 = arith.constant 0 : index
    %c0_43 = arith.constant 0 : index
    %28 = vector.load %arg8[%c0_42, %c0_43] : memref<128x4xf32, #tpu.memory_space<vmem>>, vector<128x4xf32>
    tpu.vector_store %arg8[%c0_42, %c0_43], %27 {strides = array<i32>} : memref<128x4xf32, #tpu.memory_space<vmem>>, vector<128x4xf32>,
    %c0_44 = arith.constant 0 : index
    %c0_45 = arith.constant 0 : index
    %c1_46 = arith.constant 1 : index
    %c0_47 = arith.constant 0 : index
    %29 = vector.load %arg3[%c0_44, %c0_45, %c1_46, %c0_47] : memref<2x10x10x8xbf16, #tpu.memory_space<vmem>>, vector<2x10x8x8xbf16>
    %c0_48 = arith.constant 0 : index
    %c0_49 = arith.constant 0 : index
    %c0_50 = arith.constant 0 : index
    %c0_51 = arith.constant 0 : index
    %30 = vector.load %arg7[%c0_48, %c0_49, %c0_50, %c0_51] : memref<2x10x8x8xbf16, #tpu.memory_space<vmem>>, vector<2x10x8x8xbf16>
    tpu.vector_store %arg7[%c0_48, %c0_49, %c0_50, %c0_51], %29 {strides = array<i32>} : memref<2x10x8x8xbf16, #tpu.memory_space<vmem>>, vector<2x10x8x8xbf16>,
    %c0_52 = arith.constant 0 : index
    %c0_53 = arith.constant 0 : index
    %c0_54 = arith.constant 0 : index
    %c0_55 = arith.constant 0 : index
    %31 = vector.load %arg7[%c0_52, %c0_53, %c0_54, %c0_55] : memref<2x10x8x8xbf16, #tpu.memory_space<vmem>>, vector<2x8x8x8xbf16>
    %32 = vector.shape_cast %31 : vector<2x8x8x8xbf16> to vector<128x8xbf16>
    %c0_56 = arith.constant 0 : index
    %c0_57 = arith.constant 0 : index
    %33 = vector.load %arg8[%c0_56, %c0_57] : memref<128x4xf32, #tpu.memory_space<vmem>>, vector<128x4xf32>
    %c0_58 = arith.constant 0 : index
    %c1_59 = arith.constant 1 : index
    %c0_60 = arith.constant 0 : index
    %c0_61 = arith.constant 0 : index
    %34 = vector.load %arg4[%c0_58, %c1_59, %c0_60, %c0_61] : memref<3x3x8x4xbf16, #tpu.memory_space<vmem>>, vector<1x1x8x4xbf16>
    %35 = vector.shape_cast %34 : vector<1x1x8x4xbf16> to vector<8x4xbf16>
    %cst_62 = arith.constant dense<0.000000e+00> : vector<128x4xf32>
    %36 = tpu.matmul %32, %35, %cst_62 {dimension_numbers = #tpu.dot_dimension_numbers<[1], [0], [0], [1], [0, 0, 1, 1], [], []>} : vector<128x8xbf16>, vector<8x4xbf16>, vector<128x4xf32> -> vector<128x4xf32>
    %37 = arith.addf %33, %36 : vector<128x4xf32>
    %c0_63 = arith.constant 0 : index
    %c0_64 = arith.constant 0 : index
    %38 = vector.load %arg8[%c0_63, %c0_64] : memref<128x4xf32, #tpu.memory_space<vmem>>, vector<128x4xf32>
    tpu.vector_store %arg8[%c0_63, %c0_64], %37 {strides = array<i32>} : memref<128x4xf32, #tpu.memory_space<vmem>>, vector<128x4xf32>,
    %c0_65 = arith.constant 0 : index
    %c1_66 = arith.constant 1 : index
    %c0_67 = arith.constant 0 : index
    %c0_68 = arith.constant 0 : index
    %39 = vector.load %arg7[%c0_65, %c1_66, %c0_67, %c0_68] : memref<2x10x8x8xbf16, #tpu.memory_space<vmem>>, vector<2x8x8x8xbf16>
    %40 = vector.shape_cast %39 : vector<2x8x8x8xbf16> to vector<128x8xbf16>
    %c0_69 = arith.constant 0 : index
    %c0_70 = arith.constant 0 : index
    %41 = vector.load %arg8[%c0_69, %c0_70] : memref<128x4xf32, #tpu.memory_space<vmem>>, vector<128x4xf32>
    %c1_71 = arith.constant 1 : index
    %c1_72 = arith.constant 1 : index
    %c0_73 = arith.constant 0 : index
    %c0_74 = arith.constant 0 : index
    %42 = vector.load %arg4[%c1_71, %c1_72, %c0_73, %c0_74] : memref<3x3x8x4xbf16, #tpu.memory_space<vmem>>, vector<1x1x8x4xbf16>
    %43 = vector.shape_cast %42 : vector<1x1x8x4xbf16> to vector<8x4xbf16>
    %cst_75 = arith.constant dense<0.000000e+00> : vector<128x4xf32>
    %44 = tpu.matmul %40, %43, %cst_75 {dimension_numbers = #tpu.dot_dimension_numbers<[1], [0], [0], [1], [0, 0, 1, 1], [], []>} : vector<128x8xbf16>, vector<8x4xbf16>, vector<128x4xf32> -> vector<128x4xf32>
    %45 = arith.addf %41, %44 : vector<128x4xf32>
    %c0_76 = arith.constant 0 : index
    %c0_77 = arith.constant 0 : index
    %46 = vector.load %arg8[%c0_76, %c0_77] : memref<128x4xf32, #tpu.memory_space<vmem>>, vector<128x4xf32>
    tpu.vector_store %arg8[%c0_76, %c0_77], %45 {strides = array<i32>} : memref<128x4xf32, #tpu.memory_space<vmem>>, vector<128x4xf32>,
    %c0_78 = arith.constant 0 : index
    %c2_79 = arith.constant 2 : index
    %c0_80 = arith.constant 0 : index
    %c0_81 = arith.constant 0 : index
    %47 = vector.load %arg7[%c0_78, %c2_79, %c0_80, %c0_81] : memref<2x10x8x8xbf16, #tpu.memory_space<vmem>>, vector<2x8x8x8xbf16>
    %48 = vector.shape_cast %47 : vector<2x8x8x8xbf16> to vector<128x8xbf16>
    %c0_82 = arith.constant 0 : index
    %c0_83 = arith.constant 0 : index
    %49 = vector.load %arg8[%c0_82, %c0_83] : memref<128x4xf32, #tpu.memory_space<vmem>>, vector<128x4xf32>
    %c2_84 = arith.constant 2 : index
    %c1_85 = arith.constant 1 : index
    %c0_86 = arith.constant 0 : index
    %c0_87 = arith.constant 0 : index
    %50 = vector.load %arg4[%c2_84, %c1_85, %c0_86, %c0_87] : memref<3x3x8x4xbf16, #tpu.memory_space<vmem>>, vector<1x1x8x4xbf16>
    %51 = vector.shape_cast %50 : vector<1x1x8x4xbf16> to vector<8x4xbf16>
    %cst_88 = arith.constant dense<0.000000e+00> : vector<128x4xf32>
    %52 = tpu.matmul %48, %51, %cst_88 {dimension_numbers = #tpu.dot_dimension_numbers<[1], [0], [0], [1], [0, 0, 1, 1], [], []>} : vector<128x8xbf16>, vector<8x4xbf16>, vector<128x4xf32> -> vector<128x4xf32>
    %53 = arith.addf %49, %52 : vector<128x4xf32>
    %c0_89 = arith.constant 0 : index
    %c0_90 = arith.constant 0 : index
    %54 = vector.load %arg8[%c0_89, %c0_90] : memref<128x4xf32, #tpu.memory_space<vmem>>, vector<128x4xf32>
    tpu.vector_store %arg8[%c0_89, %c0_90], %53 {strides = array<i32>} : memref<128x4xf32, #tpu.memory_space<vmem>>, vector<128x4xf32>,
    %c0_91 = arith.constant 0 : index
    %c0_92 = arith.constant 0 : index
    %c2_93 = arith.constant 2 : index
    %c0_94 = arith.constant 0 : index
    %55 = vector.load %arg3[%c0_91, %c0_92, %c2_93, %c0_94] : memref<2x10x10x8xbf16, #tpu.memory_space<vmem>>, vector<2x10x8x8xbf16>
    %c0_95 = arith.constant 0 : index
    %c0_96 = arith.constant 0 : index
    %c0_97 = arith.constant 0 : index
    %c0_98 = arith.constant 0 : index
    %56 = vector.load %arg7[%c0_95, %c0_96, %c0_97, %c0_98] : memref<2x10x8x8xbf16, #tpu.memory_space<vmem>>, vector<2x10x8x8xbf16>
    tpu.vector_store %arg7[%c0_95, %c0_96, %c0_97, %c0_98], %55 {strides = array<i32>} : memref<2x10x8x8xbf16, #tpu.memory_space<vmem>>, vector<2x10x8x8xbf16>,
    %c0_99 = arith.constant 0 : index
    %c0_100 = arith.constant 0 : index
    %c0_101 = arith.constant 0 : index
    %c0_102 = arith.constant 0 : index
    %57 = vector.load %arg7[%c0_99, %c0_100, %c0_101, %c0_102] : memref<2x10x8x8xbf16, #tpu.memory_space<vmem>>, vector<2x8x8x8xbf16>
    %58 = vector.shape_cast %57 : vector<2x8x8x8xbf16> to vector<128x8xbf16>
    %c0_103 = arith.constant 0 : index
    %c0_104 = arith.constant 0 : index
    %59 = vector.load %arg8[%c0_103, %c0_104] : memref<128x4xf32, #tpu.memory_space<vmem>>, vector<128x4xf32>
    %c0_105 = arith.constant 0 : index
    %c2_106 = arith.constant 2 : index
    %c0_107 = arith.constant 0 : index
    %c0_108 = arith.constant 0 : index
    %60 = vector.load %arg4[%c0_105, %c2_106, %c0_107, %c0_108] : memref<3x3x8x4xbf16, #tpu.memory_space<vmem>>, vector<1x1x8x4xbf16>
    %61 = vector.shape_cast %60 : vector<1x1x8x4xbf16> to vector<8x4xbf16>
    %cst_109 = arith.constant dense<0.000000e+00> : vector<128x4xf32>
    %62 = tpu.matmul %58, %61, %cst_109 {dimension_numbers = #tpu.dot_dimension_numbers<[1], [0], [0], [1], [0, 0, 1, 1], [], []>} : vector<128x8xbf16>, vector<8x4xbf16>, vector<128x4xf32> -> vector<128x4xf32>
    %63 = arith.addf %59, %62 : vector<128x4xf32>
    %c0_110 = arith.constant 0 : index
    %c0_111 = arith.constant 0 : index
    %64 = vector.load %arg8[%c0_110, %c0_111] : memref<128x4xf32, #tpu.memory_space<vmem>>, vector<128x4xf32>
    tpu.vector_store %arg8[%c0_110, %c0_111], %63 {strides = array<i32>} : memref<128x4xf32, #tpu.memory_space<vmem>>, vector<128x4xf32>,
    %c0_112 = arith.constant 0 : index
    %c1_113 = arith.constant 1 : index
    %c0_114 = arith.constant 0 : index
    %c0_115 = arith.constant 0 : index
    %65 = vector.load %arg7[%c0_112, %c1_113, %c0_114, %c0_115] : memref<2x10x8x8xbf16, #tpu.memory_space<vmem>>, vector<2x8x8x8xbf16>
    %66 = vector.shape_cast %65 : vector<2x8x8x8xbf16> to vector<128x8xbf16>
    %c0_116 = arith.constant 0 : index
    %c0_117 = arith.constant 0 : index
    %67 = vector.load %arg8[%c0_116, %c0_117] : memref<128x4xf32, #tpu.memory_space<vmem>>, vector<128x4xf32>
    %c1_118 = arith.constant 1 : index
    %c2_119 = arith.constant 2 : index
    %c0_120 = arith.constant 0 : index
    %c0_121 = arith.constant 0 : index
    %68 = vector.load %arg4[%c1_118, %c2_119, %c0_120, %c0_121] : memref<3x3x8x4xbf16, #tpu.memory_space<vmem>>, vector<1x1x8x4xbf16>
    %69 = vector.shape_cast %68 : vector<1x1x8x4xbf16> to vector<8x4xbf16>
    %cst_122 = arith.constant dense<0.000000e+00> : vector<128x4xf32>
    %70 = tpu.matmul %66, %69, %cst_122 {dimension_numbers = #tpu.dot_dimension_numbers<[1], [0], [0], [1], [0, 0, 1, 1], [], []>} : vector<128x8xbf16>, vector<8x4xbf16>, vector<128x4xf32> -> vector<128x4xf32>
    %71 = arith.addf %67, %70 : vector<128x4xf32>
    %c0_123 = arith.constant 0 : index
    %c0_124 = arith.constant 0 : index
    %72 = vector.load %arg8[%c0_123, %c0_124] : memref<128x4xf32, #tpu.memory_space<vmem>>, vector<128x4xf32>
    tpu.vector_store %arg8[%c0_123, %c0_124], %71 {strides = array<i32>} : memref<128x4xf32, #tpu.memory_space<vmem>>, vector<128x4xf32>,
    %c0_125 = arith.constant 0 : index
    %c2_126 = arith.constant 2 : index
    %c0_127 = arith.constant 0 : index
    %c0_128 = arith.constant 0 : index
    %73 = vector.load %arg7[%c0_125, %c2_126, %c0_127, %c0_128] : memref<2x10x8x8xbf16, #tpu.memory_space<vmem>>, vector<2x8x8x8xbf16>
    %74 = vector.shape_cast %73 : vector<2x8x8x8xbf16> to vector<128x8xbf16>
    %c0_129 = arith.constant 0 : index
    %c0_130 = arith.constant 0 : index
    %75 = vector.load %arg8[%c0_129, %c0_130] : memref<128x4xf32, #tpu.memory_space<vmem>>, vector<128x4xf32>
    %c2_131 = arith.constant 2 : index
    %c2_132 = arith.constant 2 : index
    %c0_133 = arith.constant 0 : index
    %c0_134 = arith.constant 0 : index
    %76 = vector.load %arg4[%c2_131, %c2_132, %c0_133, %c0_134] : memref<3x3x8x4xbf16, #tpu.memory_space<vmem>>, vector<1x1x8x4xbf16>
    %77 = vector.shape_cast %76 : vector<1x1x8x4xbf16> to vector<8x4xbf16>
    %cst_135 = arith.constant dense<0.000000e+00> : vector<128x4xf32>
    %78 = tpu.matmul %74, %77, %cst_135 {dimension_numbers = #tpu.dot_dimension_numbers<[1], [0], [0], [1], [0, 0, 1, 1], [], []>} : vector<128x8xbf16>, vector<8x4xbf16>, vector<128x4xf32> -> vector<128x4xf32>
    %79 = arith.addf %75, %78 : vector<128x4xf32>
    %c0_136 = arith.constant 0 : index
    %c0_137 = arith.constant 0 : index
    %80 = vector.load %arg8[%c0_136, %c0_137] : memref<128x4xf32, #tpu.memory_space<vmem>>, vector<128x4xf32>
    tpu.vector_store %arg8[%c0_136, %c0_137], %79 {strides = array<i32>} : memref<128x4xf32, #tpu.memory_space<vmem>>, vector<128x4xf32>,
    %c0_i32_138 = arith.constant 0 : i32
    %81 = arith.cmpi eq, %arg2, %c0_i32_138 : i32
    %82 = arith.extui %81 : i1 to i32
    %c0_i32_139 = arith.constant 0 : i32
    %83 = arith.cmpi ne, %82, %c0_i32_139 : i32
    scf.if %83 {
      %c0_140 = arith.constant 0 : index
      %c0_141 = arith.constant 0 : index
      %84 = vector.load %arg8[%c0_140, %c0_141] : memref<128x4xf32, #tpu.memory_space<vmem>>, vector<128x4xf32>
      %c0_142 = arith.constant 0 : index
      %c0_143 = arith.constant 0 : index
      %85 = vector.load %arg5[%c0_142, %c0_143] : memref<1x4xf32, #tpu.memory_space<vmem>>, vector<1x4xf32>
      %86 = vector.broadcast %85 : vector<1x4xf32> to vector<128x4xf32>
      %87 = arith.addf %84, %86 : vector<128x4xf32>
      %88 = vector.shape_cast %87 : vector<128x4xf32> to vector<2x8x8x4xf32>
      %89 = arith.truncf %88 : vector<2x8x8x4xf32> to vector<2x8x8x4xbf16>
      %c0_144 = arith.constant 0 : index
      %c0_145 = arith.constant 0 : index
      %c0_146 = arith.constant 0 : index
      %c0_147 = arith.constant 0 : index
      %90 = vector.load %arg6[%c0_144, %c0_145, %c0_146, %c0_147] : memref<2x8x8x4xbf16, #tpu.memory_space<vmem>>, vector<2x8x8x4xbf16>
      tpu.vector_store %arg6[%c0_144, %c0_145, %c0_146, %c0_147], %89 {strides = array<i32>} : memref<2x8x8x4xbf16, #tpu.memory_space<vmem>>, vector<2x8x8x4xbf16>,
    } else {
    }
    return
  }
  func.func @transform_0(%arg0: i32, %arg1: i32, %arg2: i32) -> (i32, i32, i32, i32) {
    %c0_i32 = arith.constant 0 : i32
    %c0_i32_0 = arith.constant 0 : i32
    %c0_i32_1 = arith.constant 0 : i32
    return %arg0, %c0_i32, %c0_i32_0, %arg2 : i32, i32, i32, i32
  }
  func.func @transform_1(%arg0: i32, %arg1: i32, %arg2: i32) -> (i32, i32, i32, i32) {
    %c0_i32 = arith.constant 0 : i32
    %c0_i32_0 = arith.constant 0 : i32
    %c0_i32_1 = arith.constant 0 : i32
    return %c0_i32, %c0_i32_0, %arg2, %arg1 : i32, i32, i32, i32
  }
  func.func @transform_2(%arg0: i32, %arg1: i32, %arg2: i32) -> (i32, i32) {
    %c0_i32 = arith.constant 0 : i32
    %c0_i32_0 = arith.constant 0 : i32
    return %c0_i32, %arg1 : i32, i32
  }
  func.func @transform_3(%arg0: i32, %arg1: i32, %arg2: i32) -> (i32, i32, i32, i32) {
    %c0_i32 = arith.constant 0 : i32
    %c0_i32_0 = arith.constant 0 : i32
    %c0_i32_1 = arith.constant 0 : i32
    return %arg0, %c0_i32, %c0_i32_0, %arg1 : i32, i32, i32, i32
  }
}

module attributes {stable_mosaic.version = 11 : i64} {
  func.func @_conv3x3_kernel(%arg0: i32, %arg1: i32, %arg2: i32, %arg3: memref<2x10x10x4xbf16, #tpu.memory_space<vmem>>, %arg4: memref<3x3x4x4xbf16, #tpu.memory_space<vmem>>, %arg5: memref<1x4xf32, #tpu.memory_space<vmem>>, %arg6: memref<2x8x8x4xbf16, #tpu.memory_space<vmem>>, %arg7: memref<2x10x8x4xbf16, #tpu.memory_space<vmem>>, %arg8: memref<128x4xf32, #tpu.memory_space<vmem>>) attributes {dimension_semantics = [#tpu.dimension_semantics<parallel>, #tpu.dimension_semantics<parallel>, #tpu.dimension_semantics<arbitrary>], iteration_bounds = array<i64: 1, 1, 1>, scalar_prefetch = 0 : i64, scratch_operands = 2 : i64, tpu.core_type = #tpu.core_type<tc>, window_params = [{transform_indices = @transform_0, window_bounds = array<i64: 2, 10, 10, 4>}, {transform_indices = @transform_1, window_bounds = array<i64: 3, 3, 4, 4>}, {transform_indices = @transform_2, window_bounds = array<i64: 1, 4>}, {transform_indices = @transform_3, window_bounds = array<i64: 2, 8, 8, 4>}]} {
    %c0_i32 = arith.constant 0 : i32
    %0 = arith.cmpi eq, %arg2, %c0_i32 : i32
    %1 = arith.extui %0 : i1 to i32
    %c0_i32_0 = arith.constant 0 : i32
    %2 = arith.cmpi ne, %1, %c0_i32_0 : i32
    scf.if %2 {
      %cst_140 = arith.constant 0.000000e+00 : f32
      %84 = vector.broadcast %cst_140 : f32 to vector<128x4xf32>
      %c0_141 = arith.constant 0 : index
      %c0_142 = arith.constant 0 : index
      %85 = vector.load %arg8[%c0_141, %c0_142] : memref<128x4xf32, #tpu.memory_space<vmem>>, vector<128x4xf32>
      tpu.vector_store %arg8[%c0_141, %c0_142], %84 {strides = array<i32>} : memref<128x4xf32, #tpu.memory_space<vmem>>, vector<128x4xf32>,
    } else {
    }
    %c0 = arith.constant 0 : index
    %c0_1 = arith.constant 0 : index
    %c0_2 = arith.constant 0 : index
    %c0_3 = arith.constant 0 : index
    %3 = vector.load %arg3[%c0, %c0_1, %c0_2, %c0_3] : memref<2x10x10x4xbf16, #tpu.memory_space<vmem>>, vector<2x10x8x4xbf16>
    %c0_4 = arith.constant 0 : index
    %c0_5 = arith.constant 0 : index
    %c0_6 = arith.constant 0 : index
    %c0_7 = arith.constant 0 : index
    %4 = vector.load %arg7[%c0_4, %c0_5, %c0_6, %c0_7] : memref<2x10x8x4xbf16, #tpu.memory_space<vmem>>, vector<2x10x8x4xbf16>
    tpu.vector_store %arg7[%c0_4, %c0_5, %c0_6, %c0_7], %3 {strides = array<i32>} : memref<2x10x8x4xbf16, #tpu.memory_space<vmem>>, vector<2x10x8x4xbf16>,
    %c0_8 = arith.constant 0 : index
    %c0_9 = arith.constant 0 : index
    %c0_10 = arith.constant 0 : index
    %c0_11 = arith.constant 0 : index
    %5 = vector.load %arg7[%c0_8, %c0_9, %c0_10, %c0_11] : memref<2x10x8x4xbf16, #tpu.memory_space<vmem>>, vector<2x8x8x4xbf16>
    %6 = vector.shape_cast %5 : vector<2x8x8x4xbf16> to vector<128x4xbf16>
    %c0_12 = arith.constant 0 : index
    %c0_13 = arith.constant 0 : index
    %7 = vector.load %arg8[%c0_12, %c0_13] : memref<128x4xf32, #tpu.memory_space<vmem>>, vector<128x4xf32>
    %c0_14 = arith.constant 0 : index
    %c0_15 = arith.constant 0 : index
    %c0_16 = arith.constant 0 : index
    %c0_17 = arith.constant 0 : index
    %8 = vector.load %arg4[%c0_14, %c0_15, %c0_16, %c0_17] : memref<3x3x4x4xbf16, #tpu.memory_space<vmem>>, vector<1x1x4x4xbf16>
    %9 = vector.shape_cast %8 : vector<1x1x4x4xbf16> to vector<4x4xbf16>
    %cst = arith.constant dense<0.000000e+00> : vector<128x4xf32>
    %10 = tpu.matmul %6, %9, %cst {dimension_numbers = #tpu.dot_dimension_numbers<[1], [0], [0], [1], [0, 0, 1, 1], [], []>} : vector<128x4xbf16>, vector<4x4xbf16>, vector<128x4xf32> -> vector<128x4xf32>
    %11 = arith.addf %7, %10 : vector<128x4xf32>
    %c0_18 = arith.constant 0 : index
    %c0_19 = arith.constant 0 : index
    %12 = vector.load %arg8[%c0_18, %c0_19] : memref<128x4xf32, #tpu.memory_space<vmem>>, vector<128x4xf32>
    tpu.vector_store %arg8[%c0_18, %c0_19], %11 {strides = array<i32>} : memref<128x4xf32, #tpu.memory_space<vmem>>, vector<128x4xf32>,
    %c0_20 = arith.constant 0 : index
    %c1 = arith.constant 1 : index
    %c0_21 = arith.constant 0 : index
    %c0_22 = arith.constant 0 : index
    %13 = vector.load %arg7[%c0_20, %c1, %c0_21, %c0_22] : memref<2x10x8x4xbf16, #tpu.memory_space<vmem>>, vector<2x8x8x4xbf16>
    %14 = vector.shape_cast %13 : vector<2x8x8x4xbf16> to vector<128x4xbf16>
    %c0_23 = arith.constant 0 : index
    %c0_24 = arith.constant 0 : index
    %15 = vector.load %arg8[%c0_23, %c0_24] : memref<128x4xf32, #tpu.memory_space<vmem>>, vector<128x4xf32>
    %c1_25 = arith.constant 1 : index
    %c0_26 = arith.constant 0 : index
    %c0_27 = arith.constant 0 : index
    %c0_28 = arith.constant 0 : index
    %16 = vector.load %arg4[%c1_25, %c0_26, %c0_27, %c0_28] : memref<3x3x4x4xbf16, #tpu.memory_space<vmem>>, vector<1x1x4x4xbf16>
    %17 = vector.shape_cast %16 : vector<1x1x4x4xbf16> to vector<4x4xbf16>
    %cst_29 = arith.constant dense<0.000000e+00> : vector<128x4xf32>
    %18 = tpu.matmul %14, %17, %cst_29 {dimension_numbers = #tpu.dot_dimension_numbers<[1], [0], [0], [1], [0, 0, 1, 1], [], []>} : vector<128x4xbf16>, vector<4x4xbf16>, vector<128x4xf32> -> vector<128x4xf32>
    %19 = arith.addf %15, %18 : vector<128x4xf32>
    %c0_30 = arith.constant 0 : index
    %c0_31 = arith.constant 0 : index
    %20 = vector.load %arg8[%c0_30, %c0_31] : memref<128x4xf32, #tpu.memory_space<vmem>>, vector<128x4xf32>
    tpu.vector_store %arg8[%c0_30, %c0_31], %19 {strides = array<i32>} : memref<128x4xf32, #tpu.memory_space<vmem>>, vector<128x4xf32>,
    %c0_32 = arith.constant 0 : index
    %c2 = arith.constant 2 : index
    %c0_33 = arith.constant 0 : index
    %c0_34 = arith.constant 0 : index
    %21 = vector.load %arg7[%c0_32, %c2, %c0_33, %c0_34] : memref<2x10x8x4xbf16, #tpu.memory_space<vmem>>, vector<2x8x8x4xbf16>
    %22 = vector.shape_cast %21 : vector<2x8x8x4xbf16> to vector<128x4xbf16>
    %c0_35 = arith.constant 0 : index
    %c0_36 = arith.constant 0 : index
    %23 = vector.load %arg8[%c0_35, %c0_36] : memref<128x4xf32, #tpu.memory_space<vmem>>, vector<128x4xf32>
    %c2_37 = arith.constant 2 : index
    %c0_38 = arith.constant 0 : index
    %c0_39 = arith.constant 0 : index
    %c0_40 = arith.constant 0 : index
    %24 = vector.load %arg4[%c2_37, %c0_38, %c0_39, %c0_40] : memref<3x3x4x4xbf16, #tpu.memory_space<vmem>>, vector<1x1x4x4xbf16>
    %25 = vector.shape_cast %24 : vector<1x1x4x4xbf16> to vector<4x4xbf16>
    %cst_41 = arith.constant dense<0.000000e+00> : vector<128x4xf32>
    %26 = tpu.matmul %22, %25, %cst_41 {dimension_numbers = #tpu.dot_dimension_numbers<[1], [0], [0], [1], [0, 0, 1, 1], [], []>} : vector<128x4xbf16>, vector<4x4xbf16>, vector<128x4xf32> -> vector<128x4xf32>
    %27 = arith.addf %23, %26 : vector<128x4xf32>
    %c0_42 = arith.constant 0 : index
    %c0_43 = arith.constant 0 : index
    %28 = vector.load %arg8[%c0_42, %c0_43] : memref<128x4xf32, #tpu.memory_space<vmem>>, vector<128x4xf32>
    tpu.vector_store %arg8[%c0_42, %c0_43], %27 {strides = array<i32>} : memref<128x4xf32, #tpu.memory_space<vmem>>, vector<128x4xf32>,
    %c0_44 = arith.constant 0 : index
    %c0_45 = arith.constant 0 : index
    %c1_46 = arith.constant 1 : index
    %c0_47 = arith.constant 0 : index
    %29 = vector.load %arg3[%c0_44, %c0_45, %c1_46, %c0_47] : memref<2x10x10x4xbf16, #tpu.memory_space<vmem>>, vector<2x10x8x4xbf16>
    %c0_48 = arith.constant 0 : index
    %c0_49 = arith.constant 0 : index
    %c0_50 = arith.constant 0 : index
    %c0_51 = arith.constant 0 : index
    %30 = vector.load %arg7[%c0_48, %c0_49, %c0_50, %c0_51] : memref<2x10x8x4xbf16, #tpu.memory_space<vmem>>, vector<2x10x8x4xbf16>
    tpu.vector_store %arg7[%c0_48, %c0_49, %c0_50, %c0_51], %29 {strides = array<i32>} : memref<2x10x8x4xbf16, #tpu.memory_space<vmem>>, vector<2x10x8x4xbf16>,
    %c0_52 = arith.constant 0 : index
    %c0_53 = arith.constant 0 : index
    %c0_54 = arith.constant 0 : index
    %c0_55 = arith.constant 0 : index
    %31 = vector.load %arg7[%c0_52, %c0_53, %c0_54, %c0_55] : memref<2x10x8x4xbf16, #tpu.memory_space<vmem>>, vector<2x8x8x4xbf16>
    %32 = vector.shape_cast %31 : vector<2x8x8x4xbf16> to vector<128x4xbf16>
    %c0_56 = arith.constant 0 : index
    %c0_57 = arith.constant 0 : index
    %33 = vector.load %arg8[%c0_56, %c0_57] : memref<128x4xf32, #tpu.memory_space<vmem>>, vector<128x4xf32>
    %c0_58 = arith.constant 0 : index
    %c1_59 = arith.constant 1 : index
    %c0_60 = arith.constant 0 : index
    %c0_61 = arith.constant 0 : index
    %34 = vector.load %arg4[%c0_58, %c1_59, %c0_60, %c0_61] : memref<3x3x4x4xbf16, #tpu.memory_space<vmem>>, vector<1x1x4x4xbf16>
    %35 = vector.shape_cast %34 : vector<1x1x4x4xbf16> to vector<4x4xbf16>
    %cst_62 = arith.constant dense<0.000000e+00> : vector<128x4xf32>
    %36 = tpu.matmul %32, %35, %cst_62 {dimension_numbers = #tpu.dot_dimension_numbers<[1], [0], [0], [1], [0, 0, 1, 1], [], []>} : vector<128x4xbf16>, vector<4x4xbf16>, vector<128x4xf32> -> vector<128x4xf32>
    %37 = arith.addf %33, %36 : vector<128x4xf32>
    %c0_63 = arith.constant 0 : index
    %c0_64 = arith.constant 0 : index
    %38 = vector.load %arg8[%c0_63, %c0_64] : memref<128x4xf32, #tpu.memory_space<vmem>>, vector<128x4xf32>
    tpu.vector_store %arg8[%c0_63, %c0_64], %37 {strides = array<i32>} : memref<128x4xf32, #tpu.memory_space<vmem>>, vector<128x4xf32>,
    %c0_65 = arith.constant 0 : index
    %c1_66 = arith.constant 1 : index
    %c0_67 = arith.constant 0 : index
    %c0_68 = arith.constant 0 : index
    %39 = vector.load %arg7[%c0_65, %c1_66, %c0_67, %c0_68] : memref<2x10x8x4xbf16, #tpu.memory_space<vmem>>, vector<2x8x8x4xbf16>
    %40 = vector.shape_cast %39 : vector<2x8x8x4xbf16> to vector<128x4xbf16>
    %c0_69 = arith.constant 0 : index
    %c0_70 = arith.constant 0 : index
    %41 = vector.load %arg8[%c0_69, %c0_70] : memref<128x4xf32, #tpu.memory_space<vmem>>, vector<128x4xf32>
    %c1_71 = arith.constant 1 : index
    %c1_72 = arith.constant 1 : index
    %c0_73 = arith.constant 0 : index
    %c0_74 = arith.constant 0 : index
    %42 = vector.load %arg4[%c1_71, %c1_72, %c0_73, %c0_74] : memref<3x3x4x4xbf16, #tpu.memory_space<vmem>>, vector<1x1x4x4xbf16>
    %43 = vector.shape_cast %42 : vector<1x1x4x4xbf16> to vector<4x4xbf16>
    %cst_75 = arith.constant dense<0.000000e+00> : vector<128x4xf32>
    %44 = tpu.matmul %40, %43, %cst_75 {dimension_numbers = #tpu.dot_dimension_numbers<[1], [0], [0], [1], [0, 0, 1, 1], [], []>} : vector<128x4xbf16>, vector<4x4xbf16>, vector<128x4xf32> -> vector<128x4xf32>
    %45 = arith.addf %41, %44 : vector<128x4xf32>
    %c0_76 = arith.constant 0 : index
    %c0_77 = arith.constant 0 : index
    %46 = vector.load %arg8[%c0_76, %c0_77] : memref<128x4xf32, #tpu.memory_space<vmem>>, vector<128x4xf32>
    tpu.vector_store %arg8[%c0_76, %c0_77], %45 {strides = array<i32>} : memref<128x4xf32, #tpu.memory_space<vmem>>, vector<128x4xf32>,
    %c0_78 = arith.constant 0 : index
    %c2_79 = arith.constant 2 : index
    %c0_80 = arith.constant 0 : index
    %c0_81 = arith.constant 0 : index
    %47 = vector.load %arg7[%c0_78, %c2_79, %c0_80, %c0_81] : memref<2x10x8x4xbf16, #tpu.memory_space<vmem>>, vector<2x8x8x4xbf16>
    %48 = vector.shape_cast %47 : vector<2x8x8x4xbf16> to vector<128x4xbf16>
    %c0_82 = arith.constant 0 : index
    %c0_83 = arith.constant 0 : index
    %49 = vector.load %arg8[%c0_82, %c0_83] : memref<128x4xf32, #tpu.memory_space<vmem>>, vector<128x4xf32>
    %c2_84 = arith.constant 2 : index
    %c1_85 = arith.constant 1 : index
    %c0_86 = arith.constant 0 : index
    %c0_87 = arith.constant 0 : index
    %50 = vector.load %arg4[%c2_84, %c1_85, %c0_86, %c0_87] : memref<3x3x4x4xbf16, #tpu.memory_space<vmem>>, vector<1x1x4x4xbf16>
    %51 = vector.shape_cast %50 : vector<1x1x4x4xbf16> to vector<4x4xbf16>
    %cst_88 = arith.constant dense<0.000000e+00> : vector<128x4xf32>
    %52 = tpu.matmul %48, %51, %cst_88 {dimension_numbers = #tpu.dot_dimension_numbers<[1], [0], [0], [1], [0, 0, 1, 1], [], []>} : vector<128x4xbf16>, vector<4x4xbf16>, vector<128x4xf32> -> vector<128x4xf32>
    %53 = arith.addf %49, %52 : vector<128x4xf32>
    %c0_89 = arith.constant 0 : index
    %c0_90 = arith.constant 0 : index
    %54 = vector.load %arg8[%c0_89, %c0_90] : memref<128x4xf32, #tpu.memory_space<vmem>>, vector<128x4xf32>
    tpu.vector_store %arg8[%c0_89, %c0_90], %53 {strides = array<i32>} : memref<128x4xf32, #tpu.memory_space<vmem>>, vector<128x4xf32>,
    %c0_91 = arith.constant 0 : index
    %c0_92 = arith.constant 0 : index
    %c2_93 = arith.constant 2 : index
    %c0_94 = arith.constant 0 : index
    %55 = vector.load %arg3[%c0_91, %c0_92, %c2_93, %c0_94] : memref<2x10x10x4xbf16, #tpu.memory_space<vmem>>, vector<2x10x8x4xbf16>
    %c0_95 = arith.constant 0 : index
    %c0_96 = arith.constant 0 : index
    %c0_97 = arith.constant 0 : index
    %c0_98 = arith.constant 0 : index
    %56 = vector.load %arg7[%c0_95, %c0_96, %c0_97, %c0_98] : memref<2x10x8x4xbf16, #tpu.memory_space<vmem>>, vector<2x10x8x4xbf16>
    tpu.vector_store %arg7[%c0_95, %c0_96, %c0_97, %c0_98], %55 {strides = array<i32>} : memref<2x10x8x4xbf16, #tpu.memory_space<vmem>>, vector<2x10x8x4xbf16>,
    %c0_99 = arith.constant 0 : index
    %c0_100 = arith.constant 0 : index
    %c0_101 = arith.constant 0 : index
    %c0_102 = arith.constant 0 : index
    %57 = vector.load %arg7[%c0_99, %c0_100, %c0_101, %c0_102] : memref<2x10x8x4xbf16, #tpu.memory_space<vmem>>, vector<2x8x8x4xbf16>
    %58 = vector.shape_cast %57 : vector<2x8x8x4xbf16> to vector<128x4xbf16>
    %c0_103 = arith.constant 0 : index
    %c0_104 = arith.constant 0 : index
    %59 = vector.load %arg8[%c0_103, %c0_104] : memref<128x4xf32, #tpu.memory_space<vmem>>, vector<128x4xf32>
    %c0_105 = arith.constant 0 : index
    %c2_106 = arith.constant 2 : index
    %c0_107 = arith.constant 0 : index
    %c0_108 = arith.constant 0 : index
    %60 = vector.load %arg4[%c0_105, %c2_106, %c0_107, %c0_108] : memref<3x3x4x4xbf16, #tpu.memory_space<vmem>>, vector<1x1x4x4xbf16>
    %61 = vector.shape_cast %60 : vector<1x1x4x4xbf16> to vector<4x4xbf16>
    %cst_109 = arith.constant dense<0.000000e+00> : vector<128x4xf32>
    %62 = tpu.matmul %58, %61, %cst_109 {dimension_numbers = #tpu.dot_dimension_numbers<[1], [0], [0], [1], [0, 0, 1, 1], [], []>} : vector<128x4xbf16>, vector<4x4xbf16>, vector<128x4xf32> -> vector<128x4xf32>
    %63 = arith.addf %59, %62 : vector<128x4xf32>
    %c0_110 = arith.constant 0 : index
    %c0_111 = arith.constant 0 : index
    %64 = vector.load %arg8[%c0_110, %c0_111] : memref<128x4xf32, #tpu.memory_space<vmem>>, vector<128x4xf32>
    tpu.vector_store %arg8[%c0_110, %c0_111], %63 {strides = array<i32>} : memref<128x4xf32, #tpu.memory_space<vmem>>, vector<128x4xf32>,
    %c0_112 = arith.constant 0 : index
    %c1_113 = arith.constant 1 : index
    %c0_114 = arith.constant 0 : index
    %c0_115 = arith.constant 0 : index
    %65 = vector.load %arg7[%c0_112, %c1_113, %c0_114, %c0_115] : memref<2x10x8x4xbf16, #tpu.memory_space<vmem>>, vector<2x8x8x4xbf16>
    %66 = vector.shape_cast %65 : vector<2x8x8x4xbf16> to vector<128x4xbf16>
    %c0_116 = arith.constant 0 : index
    %c0_117 = arith.constant 0 : index
    %67 = vector.load %arg8[%c0_116, %c0_117] : memref<128x4xf32, #tpu.memory_space<vmem>>, vector<128x4xf32>
    %c1_118 = arith.constant 1 : index
    %c2_119 = arith.constant 2 : index
    %c0_120 = arith.constant 0 : index
    %c0_121 = arith.constant 0 : index
    %68 = vector.load %arg4[%c1_118, %c2_119, %c0_120, %c0_121] : memref<3x3x4x4xbf16, #tpu.memory_space<vmem>>, vector<1x1x4x4xbf16>
    %69 = vector.shape_cast %68 : vector<1x1x4x4xbf16> to vector<4x4xbf16>
    %cst_122 = arith.constant dense<0.000000e+00> : vector<128x4xf32>
    %70 = tpu.matmul %66, %69, %cst_122 {dimension_numbers = #tpu.dot_dimension_numbers<[1], [0], [0], [1], [0, 0, 1, 1], [], []>} : vector<128x4xbf16>, vector<4x4xbf16>, vector<128x4xf32> -> vector<128x4xf32>
    %71 = arith.addf %67, %70 : vector<128x4xf32>
    %c0_123 = arith.constant 0 : index
    %c0_124 = arith.constant 0 : index
    %72 = vector.load %arg8[%c0_123, %c0_124] : memref<128x4xf32, #tpu.memory_space<vmem>>, vector<128x4xf32>
    tpu.vector_store %arg8[%c0_123, %c0_124], %71 {strides = array<i32>} : memref<128x4xf32, #tpu.memory_space<vmem>>, vector<128x4xf32>,
    %c0_125 = arith.constant 0 : index
    %c2_126 = arith.constant 2 : index
    %c0_127 = arith.constant 0 : index
    %c0_128 = arith.constant 0 : index
    %73 = vector.load %arg7[%c0_125, %c2_126, %c0_127, %c0_128] : memref<2x10x8x4xbf16, #tpu.memory_space<vmem>>, vector<2x8x8x4xbf16>
    %74 = vector.shape_cast %73 : vector<2x8x8x4xbf16> to vector<128x4xbf16>
    %c0_129 = arith.constant 0 : index
    %c0_130 = arith.constant 0 : index
    %75 = vector.load %arg8[%c0_129, %c0_130] : memref<128x4xf32, #tpu.memory_space<vmem>>, vector<128x4xf32>
    %c2_131 = arith.constant 2 : index
    %c2_132 = arith.constant 2 : index
    %c0_133 = arith.constant 0 : index
    %c0_134 = arith.constant 0 : index
    %76 = vector.load %arg4[%c2_131, %c2_132, %c0_133, %c0_134] : memref<3x3x4x4xbf16, #tpu.memory_space<vmem>>, vector<1x1x4x4xbf16>
    %77 = vector.shape_cast %76 : vector<1x1x4x4xbf16> to vector<4x4xbf16>
    %cst_135 = arith.constant dense<0.000000e+00> : vector<128x4xf32>
    %78 = tpu.matmul %74, %77, %cst_135 {dimension_numbers = #tpu.dot_dimension_numbers<[1], [0], [0], [1], [0, 0, 1, 1], [], []>} : vector<128x4xbf16>, vector<4x4xbf16>, vector<128x4xf32> -> vector<128x4xf32>
    %79 = arith.addf %75, %78 : vector<128x4xf32>
    %c0_136 = arith.constant 0 : index
    %c0_137 = arith.constant 0 : index
    %80 = vector.load %arg8[%c0_136, %c0_137] : memref<128x4xf32, #tpu.memory_space<vmem>>, vector<128x4xf32>
    tpu.vector_store %arg8[%c0_136, %c0_137], %79 {strides = array<i32>} : memref<128x4xf32, #tpu.memory_space<vmem>>, vector<128x4xf32>,
    %c0_i32_138 = arith.constant 0 : i32
    %81 = arith.cmpi eq, %arg2, %c0_i32_138 : i32
    %82 = arith.extui %81 : i1 to i32
    %c0_i32_139 = arith.constant 0 : i32
    %83 = arith.cmpi ne, %82, %c0_i32_139 : i32
    scf.if %83 {
      %c0_140 = arith.constant 0 : index
      %c0_141 = arith.constant 0 : index
      %84 = vector.load %arg8[%c0_140, %c0_141] : memref<128x4xf32, #tpu.memory_space<vmem>>, vector<128x4xf32>
      %c0_142 = arith.constant 0 : index
      %c0_143 = arith.constant 0 : index
      %85 = vector.load %arg5[%c0_142, %c0_143] : memref<1x4xf32, #tpu.memory_space<vmem>>, vector<1x4xf32>
      %86 = vector.broadcast %85 : vector<1x4xf32> to vector<128x4xf32>
      %87 = arith.addf %84, %86 : vector<128x4xf32>
      %cst_144 = arith.constant 0.000000e+00 : f32
      %88 = vector.broadcast %cst_144 : f32 to vector<128x4xf32>
      %89 = arith.maximumf %87, %88 : vector<128x4xf32>
      %90 = vector.shape_cast %89 : vector<128x4xf32> to vector<2x8x8x4xf32>
      %91 = arith.truncf %90 : vector<2x8x8x4xf32> to vector<2x8x8x4xbf16>
      %c0_145 = arith.constant 0 : index
      %c0_146 = arith.constant 0 : index
      %c0_147 = arith.constant 0 : index
      %c0_148 = arith.constant 0 : index
      %92 = vector.load %arg6[%c0_145, %c0_146, %c0_147, %c0_148] : memref<2x8x8x4xbf16, #tpu.memory_space<vmem>>, vector<2x8x8x4xbf16>
      tpu.vector_store %arg6[%c0_145, %c0_146, %c0_147, %c0_148], %91 {strides = array<i32>} : memref<2x8x8x4xbf16, #tpu.memory_space<vmem>>, vector<2x8x8x4xbf16>,
    } else {
    }
    return
  }
  func.func @transform_0(%arg0: i32, %arg1: i32, %arg2: i32) -> (i32, i32, i32, i32) {
    %c0_i32 = arith.constant 0 : i32
    %c0_i32_0 = arith.constant 0 : i32
    %c0_i32_1 = arith.constant 0 : i32
    return %arg0, %c0_i32, %c0_i32_0, %arg2 : i32, i32, i32, i32
  }
  func.func @transform_1(%arg0: i32, %arg1: i32, %arg2: i32) -> (i32, i32, i32, i32) {
    %c0_i32 = arith.constant 0 : i32
    %c0_i32_0 = arith.constant 0 : i32
    %c0_i32_1 = arith.constant 0 : i32
    return %c0_i32, %c0_i32_0, %arg2, %arg1 : i32, i32, i32, i32
  }
  func.func @transform_2(%arg0: i32, %arg1: i32, %arg2: i32) -> (i32, i32) {
    %c0_i32 = arith.constant 0 : i32
    %c0_i32_0 = arith.constant 0 : i32
    return %c0_i32, %arg1 : i32, i32
  }
  func.func @transform_3(%arg0: i32, %arg1: i32, %arg2: i32) -> (i32, i32, i32, i32) {
    %c0_i32 = arith.constant 0 : i32
    %c0_i32_0 = arith.constant 0 : i32
    %c0_i32_1 = arith.constant 0 : i32
    return %arg0, %c0_i32, %c0_i32_0, %arg1 : i32, i32, i32, i32
  }
}

module attributes {stable_mosaic.version = 11 : i64} {
  func.func @_conv3x3_kernel(%arg0: i32, %arg1: i32, %arg2: i32, %arg3: memref<2x10x10x4xbf16, #tpu.memory_space<vmem>>, %arg4: memref<3x3x4x4xbf16, #tpu.memory_space<vmem>>, %arg5: memref<1x4xf32, #tpu.memory_space<vmem>>, %arg6: memref<2x8x8x4xbf16, #tpu.memory_space<vmem>>, %arg7: memref<2x10x8x4xbf16, #tpu.memory_space<vmem>>, %arg8: memref<128x4xf32, #tpu.memory_space<vmem>>) attributes {dimension_semantics = [#tpu.dimension_semantics<parallel>, #tpu.dimension_semantics<parallel>, #tpu.dimension_semantics<arbitrary>], iteration_bounds = array<i64: 1, 1, 1>, scalar_prefetch = 0 : i64, scratch_operands = 2 : i64, tpu.core_type = #tpu.core_type<tc>, window_params = [{transform_indices = @transform_0, window_bounds = array<i64: 2, 10, 10, 4>}, {transform_indices = @transform_1, window_bounds = array<i64: 3, 3, 4, 4>}, {transform_indices = @transform_2, window_bounds = array<i64: 1, 4>}, {transform_indices = @transform_3, window_bounds = array<i64: 2, 8, 8, 4>}]} {
    %c0_i32 = arith.constant 0 : i32
    %0 = arith.cmpi eq, %arg2, %c0_i32 : i32
    %1 = arith.extui %0 : i1 to i32
    %c0_i32_0 = arith.constant 0 : i32
    %2 = arith.cmpi ne, %1, %c0_i32_0 : i32
    scf.if %2 {
      %cst_140 = arith.constant 0.000000e+00 : f32
      %84 = vector.broadcast %cst_140 : f32 to vector<128x4xf32>
      %c0_141 = arith.constant 0 : index
      %c0_142 = arith.constant 0 : index
      %85 = vector.load %arg8[%c0_141, %c0_142] : memref<128x4xf32, #tpu.memory_space<vmem>>, vector<128x4xf32>
      tpu.vector_store %arg8[%c0_141, %c0_142], %84 {strides = array<i32>} : memref<128x4xf32, #tpu.memory_space<vmem>>, vector<128x4xf32>,
    } else {
    }
    %c0 = arith.constant 0 : index
    %c0_1 = arith.constant 0 : index
    %c0_2 = arith.constant 0 : index
    %c0_3 = arith.constant 0 : index
    %3 = vector.load %arg3[%c0, %c0_1, %c0_2, %c0_3] : memref<2x10x10x4xbf16, #tpu.memory_space<vmem>>, vector<2x10x8x4xbf16>
    %c0_4 = arith.constant 0 : index
    %c0_5 = arith.constant 0 : index
    %c0_6 = arith.constant 0 : index
    %c0_7 = arith.constant 0 : index
    %4 = vector.load %arg7[%c0_4, %c0_5, %c0_6, %c0_7] : memref<2x10x8x4xbf16, #tpu.memory_space<vmem>>, vector<2x10x8x4xbf16>
    tpu.vector_store %arg7[%c0_4, %c0_5, %c0_6, %c0_7], %3 {strides = array<i32>} : memref<2x10x8x4xbf16, #tpu.memory_space<vmem>>, vector<2x10x8x4xbf16>,
    %c0_8 = arith.constant 0 : index
    %c0_9 = arith.constant 0 : index
    %c0_10 = arith.constant 0 : index
    %c0_11 = arith.constant 0 : index
    %5 = vector.load %arg7[%c0_8, %c0_9, %c0_10, %c0_11] : memref<2x10x8x4xbf16, #tpu.memory_space<vmem>>, vector<2x8x8x4xbf16>
    %6 = vector.shape_cast %5 : vector<2x8x8x4xbf16> to vector<128x4xbf16>
    %c0_12 = arith.constant 0 : index
    %c0_13 = arith.constant 0 : index
    %7 = vector.load %arg8[%c0_12, %c0_13] : memref<128x4xf32, #tpu.memory_space<vmem>>, vector<128x4xf32>
    %c0_14 = arith.constant 0 : index
    %c0_15 = arith.constant 0 : index
    %c0_16 = arith.constant 0 : index
    %c0_17 = arith.constant 0 : index
    %8 = vector.load %arg4[%c0_14, %c0_15, %c0_16, %c0_17] : memref<3x3x4x4xbf16, #tpu.memory_space<vmem>>, vector<1x1x4x4xbf16>
    %9 = vector.shape_cast %8 : vector<1x1x4x4xbf16> to vector<4x4xbf16>
    %cst = arith.constant dense<0.000000e+00> : vector<128x4xf32>
    %10 = tpu.matmul %6, %9, %cst {dimension_numbers = #tpu.dot_dimension_numbers<[1], [0], [0], [1], [0, 0, 1, 1], [], []>} : vector<128x4xbf16>, vector<4x4xbf16>, vector<128x4xf32> -> vector<128x4xf32>
    %11 = arith.addf %7, %10 : vector<128x4xf32>
    %c0_18 = arith.constant 0 : index
    %c0_19 = arith.constant 0 : index
    %12 = vector.load %arg8[%c0_18, %c0_19] : memref<128x4xf32, #tpu.memory_space<vmem>>, vector<128x4xf32>
    tpu.vector_store %arg8[%c0_18, %c0_19], %11 {strides = array<i32>} : memref<128x4xf32, #tpu.memory_space<vmem>>, vector<128x4xf32>,
    %c0_20 = arith.constant 0 : index
    %c1 = arith.constant 1 : index
    %c0_21 = arith.constant 0 : index
    %c0_22 = arith.constant 0 : index
    %13 = vector.load %arg7[%c0_20, %c1, %c0_21, %c0_22] : memref<2x10x8x4xbf16, #tpu.memory_space<vmem>>, vector<2x8x8x4xbf16>
    %14 = vector.shape_cast %13 : vector<2x8x8x4xbf16> to vector<128x4xbf16>
    %c0_23 = arith.constant 0 : index
    %c0_24 = arith.constant 0 : index
    %15 = vector.load %arg8[%c0_23, %c0_24] : memref<128x4xf32, #tpu.memory_space<vmem>>, vector<128x4xf32>
    %c1_25 = arith.constant 1 : index
    %c0_26 = arith.constant 0 : index
    %c0_27 = arith.constant 0 : index
    %c0_28 = arith.constant 0 : index
    %16 = vector.load %arg4[%c1_25, %c0_26, %c0_27, %c0_28] : memref<3x3x4x4xbf16, #tpu.memory_space<vmem>>, vector<1x1x4x4xbf16>
    %17 = vector.shape_cast %16 : vector<1x1x4x4xbf16> to vector<4x4xbf16>
    %cst_29 = arith.constant dense<0.000000e+00> : vector<128x4xf32>
    %18 = tpu.matmul %14, %17, %cst_29 {dimension_numbers = #tpu.dot_dimension_numbers<[1], [0], [0], [1], [0, 0, 1, 1], [], []>} : vector<128x4xbf16>, vector<4x4xbf16>, vector<128x4xf32> -> vector<128x4xf32>
    %19 = arith.addf %15, %18 : vector<128x4xf32>
    %c0_30 = arith.constant 0 : index
    %c0_31 = arith.constant 0 : index
    %20 = vector.load %arg8[%c0_30, %c0_31] : memref<128x4xf32, #tpu.memory_space<vmem>>, vector<128x4xf32>
    tpu.vector_store %arg8[%c0_30, %c0_31], %19 {strides = array<i32>} : memref<128x4xf32, #tpu.memory_space<vmem>>, vector<128x4xf32>,
    %c0_32 = arith.constant 0 : index
    %c2 = arith.constant 2 : index
    %c0_33 = arith.constant 0 : index
    %c0_34 = arith.constant 0 : index
    %21 = vector.load %arg7[%c0_32, %c2, %c0_33, %c0_34] : memref<2x10x8x4xbf16, #tpu.memory_space<vmem>>, vector<2x8x8x4xbf16>
    %22 = vector.shape_cast %21 : vector<2x8x8x4xbf16> to vector<128x4xbf16>
    %c0_35 = arith.constant 0 : index
    %c0_36 = arith.constant 0 : index
    %23 = vector.load %arg8[%c0_35, %c0_36] : memref<128x4xf32, #tpu.memory_space<vmem>>, vector<128x4xf32>
    %c2_37 = arith.constant 2 : index
    %c0_38 = arith.constant 0 : index
    %c0_39 = arith.constant 0 : index
    %c0_40 = arith.constant 0 : index
    %24 = vector.load %arg4[%c2_37, %c0_38, %c0_39, %c0_40] : memref<3x3x4x4xbf16, #tpu.memory_space<vmem>>, vector<1x1x4x4xbf16>
    %25 = vector.shape_cast %24 : vector<1x1x4x4xbf16> to vector<4x4xbf16>
    %cst_41 = arith.constant dense<0.000000e+00> : vector<128x4xf32>
    %26 = tpu.matmul %22, %25, %cst_41 {dimension_numbers = #tpu.dot_dimension_numbers<[1], [0], [0], [1], [0, 0, 1, 1], [], []>} : vector<128x4xbf16>, vector<4x4xbf16>, vector<128x4xf32> -> vector<128x4xf32>
    %27 = arith.addf %23, %26 : vector<128x4xf32>
    %c0_42 = arith.constant 0 : index
    %c0_43 = arith.constant 0 : index
    %28 = vector.load %arg8[%c0_42, %c0_43] : memref<128x4xf32, #tpu.memory_space<vmem>>, vector<128x4xf32>
    tpu.vector_store %arg8[%c0_42, %c0_43], %27 {strides = array<i32>} : memref<128x4xf32, #tpu.memory_space<vmem>>, vector<128x4xf32>,
    %c0_44 = arith.constant 0 : index
    %c0_45 = arith.constant 0 : index
    %c1_46 = arith.constant 1 : index
    %c0_47 = arith.constant 0 : index
    %29 = vector.load %arg3[%c0_44, %c0_45, %c1_46, %c0_47] : memref<2x10x10x4xbf16, #tpu.memory_space<vmem>>, vector<2x10x8x4xbf16>
    %c0_48 = arith.constant 0 : index
    %c0_49 = arith.constant 0 : index
    %c0_50 = arith.constant 0 : index
    %c0_51 = arith.constant 0 : index
    %30 = vector.load %arg7[%c0_48, %c0_49, %c0_50, %c0_51] : memref<2x10x8x4xbf16, #tpu.memory_space<vmem>>, vector<2x10x8x4xbf16>
    tpu.vector_store %arg7[%c0_48, %c0_49, %c0_50, %c0_51], %29 {strides = array<i32>} : memref<2x10x8x4xbf16, #tpu.memory_space<vmem>>, vector<2x10x8x4xbf16>,
    %c0_52 = arith.constant 0 : index
    %c0_53 = arith.constant 0 : index
    %c0_54 = arith.constant 0 : index
    %c0_55 = arith.constant 0 : index
    %31 = vector.load %arg7[%c0_52, %c0_53, %c0_54, %c0_55] : memref<2x10x8x4xbf16, #tpu.memory_space<vmem>>, vector<2x8x8x4xbf16>
    %32 = vector.shape_cast %31 : vector<2x8x8x4xbf16> to vector<128x4xbf16>
    %c0_56 = arith.constant 0 : index
    %c0_57 = arith.constant 0 : index
    %33 = vector.load %arg8[%c0_56, %c0_57] : memref<128x4xf32, #tpu.memory_space<vmem>>, vector<128x4xf32>
    %c0_58 = arith.constant 0 : index
    %c1_59 = arith.constant 1 : index
    %c0_60 = arith.constant 0 : index
    %c0_61 = arith.constant 0 : index
    %34 = vector.load %arg4[%c0_58, %c1_59, %c0_60, %c0_61] : memref<3x3x4x4xbf16, #tpu.memory_space<vmem>>, vector<1x1x4x4xbf16>
    %35 = vector.shape_cast %34 : vector<1x1x4x4xbf16> to vector<4x4xbf16>
    %cst_62 = arith.constant dense<0.000000e+00> : vector<128x4xf32>
    %36 = tpu.matmul %32, %35, %cst_62 {dimension_numbers = #tpu.dot_dimension_numbers<[1], [0], [0], [1], [0, 0, 1, 1], [], []>} : vector<128x4xbf16>, vector<4x4xbf16>, vector<128x4xf32> -> vector<128x4xf32>
    %37 = arith.addf %33, %36 : vector<128x4xf32>
    %c0_63 = arith.constant 0 : index
    %c0_64 = arith.constant 0 : index
    %38 = vector.load %arg8[%c0_63, %c0_64] : memref<128x4xf32, #tpu.memory_space<vmem>>, vector<128x4xf32>
    tpu.vector_store %arg8[%c0_63, %c0_64], %37 {strides = array<i32>} : memref<128x4xf32, #tpu.memory_space<vmem>>, vector<128x4xf32>,
    %c0_65 = arith.constant 0 : index
    %c1_66 = arith.constant 1 : index
    %c0_67 = arith.constant 0 : index
    %c0_68 = arith.constant 0 : index
    %39 = vector.load %arg7[%c0_65, %c1_66, %c0_67, %c0_68] : memref<2x10x8x4xbf16, #tpu.memory_space<vmem>>, vector<2x8x8x4xbf16>
    %40 = vector.shape_cast %39 : vector<2x8x8x4xbf16> to vector<128x4xbf16>
    %c0_69 = arith.constant 0 : index
    %c0_70 = arith.constant 0 : index
    %41 = vector.load %arg8[%c0_69, %c0_70] : memref<128x4xf32, #tpu.memory_space<vmem>>, vector<128x4xf32>
    %c1_71 = arith.constant 1 : index
    %c1_72 = arith.constant 1 : index
    %c0_73 = arith.constant 0 : index
    %c0_74 = arith.constant 0 : index
    %42 = vector.load %arg4[%c1_71, %c1_72, %c0_73, %c0_74] : memref<3x3x4x4xbf16, #tpu.memory_space<vmem>>, vector<1x1x4x4xbf16>
    %43 = vector.shape_cast %42 : vector<1x1x4x4xbf16> to vector<4x4xbf16>
    %cst_75 = arith.constant dense<0.000000e+00> : vector<128x4xf32>
    %44 = tpu.matmul %40, %43, %cst_75 {dimension_numbers = #tpu.dot_dimension_numbers<[1], [0], [0], [1], [0, 0, 1, 1], [], []>} : vector<128x4xbf16>, vector<4x4xbf16>, vector<128x4xf32> -> vector<128x4xf32>
    %45 = arith.addf %41, %44 : vector<128x4xf32>
    %c0_76 = arith.constant 0 : index
    %c0_77 = arith.constant 0 : index
    %46 = vector.load %arg8[%c0_76, %c0_77] : memref<128x4xf32, #tpu.memory_space<vmem>>, vector<128x4xf32>
    tpu.vector_store %arg8[%c0_76, %c0_77], %45 {strides = array<i32>} : memref<128x4xf32, #tpu.memory_space<vmem>>, vector<128x4xf32>,
    %c0_78 = arith.constant 0 : index
    %c2_79 = arith.constant 2 : index
    %c0_80 = arith.constant 0 : index
    %c0_81 = arith.constant 0 : index
    %47 = vector.load %arg7[%c0_78, %c2_79, %c0_80, %c0_81] : memref<2x10x8x4xbf16, #tpu.memory_space<vmem>>, vector<2x8x8x4xbf16>
    %48 = vector.shape_cast %47 : vector<2x8x8x4xbf16> to vector<128x4xbf16>
    %c0_82 = arith.constant 0 : index
    %c0_83 = arith.constant 0 : index
    %49 = vector.load %arg8[%c0_82, %c0_83] : memref<128x4xf32, #tpu.memory_space<vmem>>, vector<128x4xf32>
    %c2_84 = arith.constant 2 : index
    %c1_85 = arith.constant 1 : index
    %c0_86 = arith.constant 0 : index
    %c0_87 = arith.constant 0 : index
    %50 = vector.load %arg4[%c2_84, %c1_85, %c0_86, %c0_87] : memref<3x3x4x4xbf16, #tpu.memory_space<vmem>>, vector<1x1x4x4xbf16>
    %51 = vector.shape_cast %50 : vector<1x1x4x4xbf16> to vector<4x4xbf16>
    %cst_88 = arith.constant dense<0.000000e+00> : vector<128x4xf32>
    %52 = tpu.matmul %48, %51, %cst_88 {dimension_numbers = #tpu.dot_dimension_numbers<[1], [0], [0], [1], [0, 0, 1, 1], [], []>} : vector<128x4xbf16>, vector<4x4xbf16>, vector<128x4xf32> -> vector<128x4xf32>
    %53 = arith.addf %49, %52 : vector<128x4xf32>
    %c0_89 = arith.constant 0 : index
    %c0_90 = arith.constant 0 : index
    %54 = vector.load %arg8[%c0_89, %c0_90] : memref<128x4xf32, #tpu.memory_space<vmem>>, vector<128x4xf32>
    tpu.vector_store %arg8[%c0_89, %c0_90], %53 {strides = array<i32>} : memref<128x4xf32, #tpu.memory_space<vmem>>, vector<128x4xf32>,
    %c0_91 = arith.constant 0 : index
    %c0_92 = arith.constant 0 : index
    %c2_93 = arith.constant 2 : index
    %c0_94 = arith.constant 0 : index
    %55 = vector.load %arg3[%c0_91, %c0_92, %c2_93, %c0_94] : memref<2x10x10x4xbf16, #tpu.memory_space<vmem>>, vector<2x10x8x4xbf16>
    %c0_95 = arith.constant 0 : index
    %c0_96 = arith.constant 0 : index
    %c0_97 = arith.constant 0 : index
    %c0_98 = arith.constant 0 : index
    %56 = vector.load %arg7[%c0_95, %c0_96, %c0_97, %c0_98] : memref<2x10x8x4xbf16, #tpu.memory_space<vmem>>, vector<2x10x8x4xbf16>
    tpu.vector_store %arg7[%c0_95, %c0_96, %c0_97, %c0_98], %55 {strides = array<i32>} : memref<2x10x8x4xbf16, #tpu.memory_space<vmem>>, vector<2x10x8x4xbf16>,
    %c0_99 = arith.constant 0 : index
    %c0_100 = arith.constant 0 : index
    %c0_101 = arith.constant 0 : index
    %c0_102 = arith.constant 0 : index
    %57 = vector.load %arg7[%c0_99, %c0_100, %c0_101, %c0_102] : memref<2x10x8x4xbf16, #tpu.memory_space<vmem>>, vector<2x8x8x4xbf16>
    %58 = vector.shape_cast %57 : vector<2x8x8x4xbf16> to vector<128x4xbf16>
    %c0_103 = arith.constant 0 : index
    %c0_104 = arith.constant 0 : index
    %59 = vector.load %arg8[%c0_103, %c0_104] : memref<128x4xf32, #tpu.memory_space<vmem>>, vector<128x4xf32>
    %c0_105 = arith.constant 0 : index
    %c2_106 = arith.constant 2 : index
    %c0_107 = arith.constant 0 : index
    %c0_108 = arith.constant 0 : index
    %60 = vector.load %arg4[%c0_105, %c2_106, %c0_107, %c0_108] : memref<3x3x4x4xbf16, #tpu.memory_space<vmem>>, vector<1x1x4x4xbf16>
    %61 = vector.shape_cast %60 : vector<1x1x4x4xbf16> to vector<4x4xbf16>
    %cst_109 = arith.constant dense<0.000000e+00> : vector<128x4xf32>
    %62 = tpu.matmul %58, %61, %cst_109 {dimension_numbers = #tpu.dot_dimension_numbers<[1], [0], [0], [1], [0, 0, 1, 1], [], []>} : vector<128x4xbf16>, vector<4x4xbf16>, vector<128x4xf32> -> vector<128x4xf32>
    %63 = arith.addf %59, %62 : vector<128x4xf32>
    %c0_110 = arith.constant 0 : index
    %c0_111 = arith.constant 0 : index
    %64 = vector.load %arg8[%c0_110, %c0_111] : memref<128x4xf32, #tpu.memory_space<vmem>>, vector<128x4xf32>
    tpu.vector_store %arg8[%c0_110, %c0_111], %63 {strides = array<i32>} : memref<128x4xf32, #tpu.memory_space<vmem>>, vector<128x4xf32>,
    %c0_112 = arith.constant 0 : index
    %c1_113 = arith.constant 1 : index
    %c0_114 = arith.constant 0 : index
    %c0_115 = arith.constant 0 : index
    %65 = vector.load %arg7[%c0_112, %c1_113, %c0_114, %c0_115] : memref<2x10x8x4xbf16, #tpu.memory_space<vmem>>, vector<2x8x8x4xbf16>
    %66 = vector.shape_cast %65 : vector<2x8x8x4xbf16> to vector<128x4xbf16>
    %c0_116 = arith.constant 0 : index
    %c0_117 = arith.constant 0 : index
    %67 = vector.load %arg8[%c0_116, %c0_117] : memref<128x4xf32, #tpu.memory_space<vmem>>, vector<128x4xf32>
    %c1_118 = arith.constant 1 : index
    %c2_119 = arith.constant 2 : index
    %c0_120 = arith.constant 0 : index
    %c0_121 = arith.constant 0 : index
    %68 = vector.load %arg4[%c1_118, %c2_119, %c0_120, %c0_121] : memref<3x3x4x4xbf16, #tpu.memory_space<vmem>>, vector<1x1x4x4xbf16>
    %69 = vector.shape_cast %68 : vector<1x1x4x4xbf16> to vector<4x4xbf16>
    %cst_122 = arith.constant dense<0.000000e+00> : vector<128x4xf32>
    %70 = tpu.matmul %66, %69, %cst_122 {dimension_numbers = #tpu.dot_dimension_numbers<[1], [0], [0], [1], [0, 0, 1, 1], [], []>} : vector<128x4xbf16>, vector<4x4xbf16>, vector<128x4xf32> -> vector<128x4xf32>
    %71 = arith.addf %67, %70 : vector<128x4xf32>
    %c0_123 = arith.constant 0 : index
    %c0_124 = arith.constant 0 : index
    %72 = vector.load %arg8[%c0_123, %c0_124] : memref<128x4xf32, #tpu.memory_space<vmem>>, vector<128x4xf32>
    tpu.vector_store %arg8[%c0_123, %c0_124], %71 {strides = array<i32>} : memref<128x4xf32, #tpu.memory_space<vmem>>, vector<128x4xf32>,
    %c0_125 = arith.constant 0 : index
    %c2_126 = arith.constant 2 : index
    %c0_127 = arith.constant 0 : index
    %c0_128 = arith.constant 0 : index
    %73 = vector.load %arg7[%c0_125, %c2_126, %c0_127, %c0_128] : memref<2x10x8x4xbf16, #tpu.memory_space<vmem>>, vector<2x8x8x4xbf16>
    %74 = vector.shape_cast %73 : vector<2x8x8x4xbf16> to vector<128x4xbf16>
    %c0_129 = arith.constant 0 : index
    %c0_130 = arith.constant 0 : index
    %75 = vector.load %arg8[%c0_129, %c0_130] : memref<128x4xf32, #tpu.memory_space<vmem>>, vector<128x4xf32>
    %c2_131 = arith.constant 2 : index
    %c2_132 = arith.constant 2 : index
    %c0_133 = arith.constant 0 : index
    %c0_134 = arith.constant 0 : index
    %76 = vector.load %arg4[%c2_131, %c2_132, %c0_133, %c0_134] : memref<3x3x4x4xbf16, #tpu.memory_space<vmem>>, vector<1x1x4x4xbf16>
    %77 = vector.shape_cast %76 : vector<1x1x4x4xbf16> to vector<4x4xbf16>
    %cst_135 = arith.constant dense<0.000000e+00> : vector<128x4xf32>
    %78 = tpu.matmul %74, %77, %cst_135 {dimension_numbers = #tpu.dot_dimension_numbers<[1], [0], [0], [1], [0, 0, 1, 1], [], []>} : vector<128x4xbf16>, vector<4x4xbf16>, vector<128x4xf32> -> vector<128x4xf32>
    %79 = arith.addf %75, %78 : vector<128x4xf32>
    %c0_136 = arith.constant 0 : index
    %c0_137 = arith.constant 0 : index
    %80 = vector.load %arg8[%c0_136, %c0_137] : memref<128x4xf32, #tpu.memory_space<vmem>>, vector<128x4xf32>
    tpu.vector_store %arg8[%c0_136, %c0_137], %79 {strides = array<i32>} : memref<128x4xf32, #tpu.memory_space<vmem>>, vector<128x4xf32>,
    %c0_i32_138 = arith.constant 0 : i32
    %81 = arith.cmpi eq, %arg2, %c0_i32_138 : i32
    %82 = arith.extui %81 : i1 to i32
    %c0_i32_139 = arith.constant 0 : i32
    %83 = arith.cmpi ne, %82, %c0_i32_139 : i32
    scf.if %83 {
      %c0_140 = arith.constant 0 : index
      %c0_141 = arith.constant 0 : index
      %84 = vector.load %arg8[%c0_140, %c0_141] : memref<128x4xf32, #tpu.memory_space<vmem>>, vector<128x4xf32>
      %c0_142 = arith.constant 0 : index
      %c0_143 = arith.constant 0 : index
      %85 = vector.load %arg5[%c0_142, %c0_143] : memref<1x4xf32, #tpu.memory_space<vmem>>, vector<1x4xf32>
      %86 = vector.broadcast %85 : vector<1x4xf32> to vector<128x4xf32>
      %87 = arith.addf %84, %86 : vector<128x4xf32>
      %88 = vector.shape_cast %87 : vector<128x4xf32> to vector<2x8x8x4xf32>
      %89 = arith.truncf %88 : vector<2x8x8x4xf32> to vector<2x8x8x4xbf16>
      %c0_144 = arith.constant 0 : index
      %c0_145 = arith.constant 0 : index
      %c0_146 = arith.constant 0 : index
      %c0_147 = arith.constant 0 : index
      %90 = vector.load %arg6[%c0_144, %c0_145, %c0_146, %c0_147] : memref<2x8x8x4xbf16, #tpu.memory_space<vmem>>, vector<2x8x8x4xbf16>
      tpu.vector_store %arg6[%c0_144, %c0_145, %c0_146, %c0_147], %89 {strides = array<i32>} : memref<2x8x8x4xbf16, #tpu.memory_space<vmem>>, vector<2x8x8x4xbf16>,
    } else {
    }
    return
  }
  func.func @transform_0(%arg0: i32, %arg1: i32, %arg2: i32) -> (i32, i32, i32, i32) {
    %c0_i32 = arith.constant 0 : i32
    %c0_i32_0 = arith.constant 0 : i32
    %c0_i32_1 = arith.constant 0 : i32
    return %arg0, %c0_i32, %c0_i32_0, %arg2 : i32, i32, i32, i32
  }
  func.func @transform_1(%arg0: i32, %arg1: i32, %arg2: i32) -> (i32, i32, i32, i32) {
    %c0_i32 = arith.constant 0 : i32
    %c0_i32_0 = arith.constant 0 : i32
    %c0_i32_1 = arith.constant 0 : i32
    return %c0_i32, %c0_i32_0, %arg2, %arg1 : i32, i32, i32, i32
  }
  func.func @transform_2(%arg0: i32, %arg1: i32, %arg2: i32) -> (i32, i32) {
    %c0_i32 = arith.constant 0 : i32
    %c0_i32_0 = arith.constant 0 : i32
    return %c0_i32, %arg1 : i32, i32
  }
  func.func @transform_3(%arg0: i32, %arg1: i32, %arg2: i32) -> (i32, i32, i32, i32) {
    %c0_i32 = arith.constant 0 : i32
    %c0_i32_0 = arith.constant 0 : i32
    %c0_i32_1 = arith.constant 0 : i32
    return %arg0, %c0_i32, %c0_i32_0, %arg1 : i32, i32, i32, i32
  }
}

module attributes {stable_mosaic.version = 11 : i64} {
  func.func @_conv3x3_kernel(%arg0: i32, %arg1: i32, %arg2: i32, %arg3: memref<2x10x10x4xbf16, #tpu.memory_space<vmem>>, %arg4: memref<3x3x4x4xbf16, #tpu.memory_space<vmem>>, %arg5: memref<1x4xf32, #tpu.memory_space<vmem>>, %arg6: memref<2x8x8x4xf32, #tpu.memory_space<vmem>>, %arg7: memref<2x10x8x4xbf16, #tpu.memory_space<vmem>>, %arg8: memref<128x4xf32, #tpu.memory_space<vmem>>) attributes {dimension_semantics = [#tpu.dimension_semantics<parallel>, #tpu.dimension_semantics<parallel>, #tpu.dimension_semantics<arbitrary>], iteration_bounds = array<i64: 1, 1, 1>, scalar_prefetch = 0 : i64, scratch_operands = 2 : i64, tpu.core_type = #tpu.core_type<tc>, window_params = [{transform_indices = @transform_0, window_bounds = array<i64: 2, 10, 10, 4>}, {transform_indices = @transform_1, window_bounds = array<i64: 3, 3, 4, 4>}, {transform_indices = @transform_2, window_bounds = array<i64: 1, 4>}, {transform_indices = @transform_3, window_bounds = array<i64: 2, 8, 8, 4>}]} {
    %c0_i32 = arith.constant 0 : i32
    %0 = arith.cmpi eq, %arg2, %c0_i32 : i32
    %1 = arith.extui %0 : i1 to i32
    %c0_i32_0 = arith.constant 0 : i32
    %2 = arith.cmpi ne, %1, %c0_i32_0 : i32
    scf.if %2 {
      %cst_140 = arith.constant 0.000000e+00 : f32
      %84 = vector.broadcast %cst_140 : f32 to vector<128x4xf32>
      %c0_141 = arith.constant 0 : index
      %c0_142 = arith.constant 0 : index
      %85 = vector.load %arg8[%c0_141, %c0_142] : memref<128x4xf32, #tpu.memory_space<vmem>>, vector<128x4xf32>
      tpu.vector_store %arg8[%c0_141, %c0_142], %84 {strides = array<i32>} : memref<128x4xf32, #tpu.memory_space<vmem>>, vector<128x4xf32>,
    } else {
    }
    %c0 = arith.constant 0 : index
    %c0_1 = arith.constant 0 : index
    %c0_2 = arith.constant 0 : index
    %c0_3 = arith.constant 0 : index
    %3 = vector.load %arg3[%c0, %c0_1, %c0_2, %c0_3] : memref<2x10x10x4xbf16, #tpu.memory_space<vmem>>, vector<2x10x8x4xbf16>
    %c0_4 = arith.constant 0 : index
    %c0_5 = arith.constant 0 : index
    %c0_6 = arith.constant 0 : index
    %c0_7 = arith.constant 0 : index
    %4 = vector.load %arg7[%c0_4, %c0_5, %c0_6, %c0_7] : memref<2x10x8x4xbf16, #tpu.memory_space<vmem>>, vector<2x10x8x4xbf16>
    tpu.vector_store %arg7[%c0_4, %c0_5, %c0_6, %c0_7], %3 {strides = array<i32>} : memref<2x10x8x4xbf16, #tpu.memory_space<vmem>>, vector<2x10x8x4xbf16>,
    %c0_8 = arith.constant 0 : index
    %c0_9 = arith.constant 0 : index
    %c0_10 = arith.constant 0 : index
    %c0_11 = arith.constant 0 : index
    %5 = vector.load %arg7[%c0_8, %c0_9, %c0_10, %c0_11] : memref<2x10x8x4xbf16, #tpu.memory_space<vmem>>, vector<2x8x8x4xbf16>
    %6 = vector.shape_cast %5 : vector<2x8x8x4xbf16> to vector<128x4xbf16>
    %c0_12 = arith.constant 0 : index
    %c0_13 = arith.constant 0 : index
    %7 = vector.load %arg8[%c0_12, %c0_13] : memref<128x4xf32, #tpu.memory_space<vmem>>, vector<128x4xf32>
    %c0_14 = arith.constant 0 : index
    %c0_15 = arith.constant 0 : index
    %c0_16 = arith.constant 0 : index
    %c0_17 = arith.constant 0 : index
    %8 = vector.load %arg4[%c0_14, %c0_15, %c0_16, %c0_17] : memref<3x3x4x4xbf16, #tpu.memory_space<vmem>>, vector<1x1x4x4xbf16>
    %9 = vector.shape_cast %8 : vector<1x1x4x4xbf16> to vector<4x4xbf16>
    %cst = arith.constant dense<0.000000e+00> : vector<128x4xf32>
    %10 = tpu.matmul %6, %9, %cst {dimension_numbers = #tpu.dot_dimension_numbers<[1], [0], [0], [1], [0, 0, 1, 1], [], []>} : vector<128x4xbf16>, vector<4x4xbf16>, vector<128x4xf32> -> vector<128x4xf32>
    %11 = arith.addf %7, %10 : vector<128x4xf32>
    %c0_18 = arith.constant 0 : index
    %c0_19 = arith.constant 0 : index
    %12 = vector.load %arg8[%c0_18, %c0_19] : memref<128x4xf32, #tpu.memory_space<vmem>>, vector<128x4xf32>
    tpu.vector_store %arg8[%c0_18, %c0_19], %11 {strides = array<i32>} : memref<128x4xf32, #tpu.memory_space<vmem>>, vector<128x4xf32>,
    %c0_20 = arith.constant 0 : index
    %c1 = arith.constant 1 : index
    %c0_21 = arith.constant 0 : index
    %c0_22 = arith.constant 0 : index
    %13 = vector.load %arg7[%c0_20, %c1, %c0_21, %c0_22] : memref<2x10x8x4xbf16, #tpu.memory_space<vmem>>, vector<2x8x8x4xbf16>
    %14 = vector.shape_cast %13 : vector<2x8x8x4xbf16> to vector<128x4xbf16>
    %c0_23 = arith.constant 0 : index
    %c0_24 = arith.constant 0 : index
    %15 = vector.load %arg8[%c0_23, %c0_24] : memref<128x4xf32, #tpu.memory_space<vmem>>, vector<128x4xf32>
    %c1_25 = arith.constant 1 : index
    %c0_26 = arith.constant 0 : index
    %c0_27 = arith.constant 0 : index
    %c0_28 = arith.constant 0 : index
    %16 = vector.load %arg4[%c1_25, %c0_26, %c0_27, %c0_28] : memref<3x3x4x4xbf16, #tpu.memory_space<vmem>>, vector<1x1x4x4xbf16>
    %17 = vector.shape_cast %16 : vector<1x1x4x4xbf16> to vector<4x4xbf16>
    %cst_29 = arith.constant dense<0.000000e+00> : vector<128x4xf32>
    %18 = tpu.matmul %14, %17, %cst_29 {dimension_numbers = #tpu.dot_dimension_numbers<[1], [0], [0], [1], [0, 0, 1, 1], [], []>} : vector<128x4xbf16>, vector<4x4xbf16>, vector<128x4xf32> -> vector<128x4xf32>
    %19 = arith.addf %15, %18 : vector<128x4xf32>
    %c0_30 = arith.constant 0 : index
    %c0_31 = arith.constant 0 : index
    %20 = vector.load %arg8[%c0_30, %c0_31] : memref<128x4xf32, #tpu.memory_space<vmem>>, vector<128x4xf32>
    tpu.vector_store %arg8[%c0_30, %c0_31], %19 {strides = array<i32>} : memref<128x4xf32, #tpu.memory_space<vmem>>, vector<128x4xf32>,
    %c0_32 = arith.constant 0 : index
    %c2 = arith.constant 2 : index
    %c0_33 = arith.constant 0 : index
    %c0_34 = arith.constant 0 : index
    %21 = vector.load %arg7[%c0_32, %c2, %c0_33, %c0_34] : memref<2x10x8x4xbf16, #tpu.memory_space<vmem>>, vector<2x8x8x4xbf16>
    %22 = vector.shape_cast %21 : vector<2x8x8x4xbf16> to vector<128x4xbf16>
    %c0_35 = arith.constant 0 : index
    %c0_36 = arith.constant 0 : index
    %23 = vector.load %arg8[%c0_35, %c0_36] : memref<128x4xf32, #tpu.memory_space<vmem>>, vector<128x4xf32>
    %c2_37 = arith.constant 2 : index
    %c0_38 = arith.constant 0 : index
    %c0_39 = arith.constant 0 : index
    %c0_40 = arith.constant 0 : index
    %24 = vector.load %arg4[%c2_37, %c0_38, %c0_39, %c0_40] : memref<3x3x4x4xbf16, #tpu.memory_space<vmem>>, vector<1x1x4x4xbf16>
    %25 = vector.shape_cast %24 : vector<1x1x4x4xbf16> to vector<4x4xbf16>
    %cst_41 = arith.constant dense<0.000000e+00> : vector<128x4xf32>
    %26 = tpu.matmul %22, %25, %cst_41 {dimension_numbers = #tpu.dot_dimension_numbers<[1], [0], [0], [1], [0, 0, 1, 1], [], []>} : vector<128x4xbf16>, vector<4x4xbf16>, vector<128x4xf32> -> vector<128x4xf32>
    %27 = arith.addf %23, %26 : vector<128x4xf32>
    %c0_42 = arith.constant 0 : index
    %c0_43 = arith.constant 0 : index
    %28 = vector.load %arg8[%c0_42, %c0_43] : memref<128x4xf32, #tpu.memory_space<vmem>>, vector<128x4xf32>
    tpu.vector_store %arg8[%c0_42, %c0_43], %27 {strides = array<i32>} : memref<128x4xf32, #tpu.memory_space<vmem>>, vector<128x4xf32>,
    %c0_44 = arith.constant 0 : index
    %c0_45 = arith.constant 0 : index
    %c1_46 = arith.constant 1 : index
    %c0_47 = arith.constant 0 : index
    %29 = vector.load %arg3[%c0_44, %c0_45, %c1_46, %c0_47] : memref<2x10x10x4xbf16, #tpu.memory_space<vmem>>, vector<2x10x8x4xbf16>
    %c0_48 = arith.constant 0 : index
    %c0_49 = arith.constant 0 : index
    %c0_50 = arith.constant 0 : index
    %c0_51 = arith.constant 0 : index
    %30 = vector.load %arg7[%c0_48, %c0_49, %c0_50, %c0_51] : memref<2x10x8x4xbf16, #tpu.memory_space<vmem>>, vector<2x10x8x4xbf16>
    tpu.vector_store %arg7[%c0_48, %c0_49, %c0_50, %c0_51], %29 {strides = array<i32>} : memref<2x10x8x4xbf16, #tpu.memory_space<vmem>>, vector<2x10x8x4xbf16>,
    %c0_52 = arith.constant 0 : index
    %c0_53 = arith.constant 0 : index
    %c0_54 = arith.constant 0 : index
    %c0_55 = arith.constant 0 : index
    %31 = vector.load %arg7[%c0_52, %c0_53, %c0_54, %c0_55] : memref<2x10x8x4xbf16, #tpu.memory_space<vmem>>, vector<2x8x8x4xbf16>
    %32 = vector.shape_cast %31 : vector<2x8x8x4xbf16> to vector<128x4xbf16>
    %c0_56 = arith.constant 0 : index
    %c0_57 = arith.constant 0 : index
    %33 = vector.load %arg8[%c0_56, %c0_57] : memref<128x4xf32, #tpu.memory_space<vmem>>, vector<128x4xf32>
    %c0_58 = arith.constant 0 : index
    %c1_59 = arith.constant 1 : index
    %c0_60 = arith.constant 0 : index
    %c0_61 = arith.constant 0 : index
    %34 = vector.load %arg4[%c0_58, %c1_59, %c0_60, %c0_61] : memref<3x3x4x4xbf16, #tpu.memory_space<vmem>>, vector<1x1x4x4xbf16>
    %35 = vector.shape_cast %34 : vector<1x1x4x4xbf16> to vector<4x4xbf16>
    %cst_62 = arith.constant dense<0.000000e+00> : vector<128x4xf32>
    %36 = tpu.matmul %32, %35, %cst_62 {dimension_numbers = #tpu.dot_dimension_numbers<[1], [0], [0], [1], [0, 0, 1, 1], [], []>} : vector<128x4xbf16>, vector<4x4xbf16>, vector<128x4xf32> -> vector<128x4xf32>
    %37 = arith.addf %33, %36 : vector<128x4xf32>
    %c0_63 = arith.constant 0 : index
    %c0_64 = arith.constant 0 : index
    %38 = vector.load %arg8[%c0_63, %c0_64] : memref<128x4xf32, #tpu.memory_space<vmem>>, vector<128x4xf32>
    tpu.vector_store %arg8[%c0_63, %c0_64], %37 {strides = array<i32>} : memref<128x4xf32, #tpu.memory_space<vmem>>, vector<128x4xf32>,
    %c0_65 = arith.constant 0 : index
    %c1_66 = arith.constant 1 : index
    %c0_67 = arith.constant 0 : index
    %c0_68 = arith.constant 0 : index
    %39 = vector.load %arg7[%c0_65, %c1_66, %c0_67, %c0_68] : memref<2x10x8x4xbf16, #tpu.memory_space<vmem>>, vector<2x8x8x4xbf16>
    %40 = vector.shape_cast %39 : vector<2x8x8x4xbf16> to vector<128x4xbf16>
    %c0_69 = arith.constant 0 : index
    %c0_70 = arith.constant 0 : index
    %41 = vector.load %arg8[%c0_69, %c0_70] : memref<128x4xf32, #tpu.memory_space<vmem>>, vector<128x4xf32>
    %c1_71 = arith.constant 1 : index
    %c1_72 = arith.constant 1 : index
    %c0_73 = arith.constant 0 : index
    %c0_74 = arith.constant 0 : index
    %42 = vector.load %arg4[%c1_71, %c1_72, %c0_73, %c0_74] : memref<3x3x4x4xbf16, #tpu.memory_space<vmem>>, vector<1x1x4x4xbf16>
    %43 = vector.shape_cast %42 : vector<1x1x4x4xbf16> to vector<4x4xbf16>
    %cst_75 = arith.constant dense<0.000000e+00> : vector<128x4xf32>
    %44 = tpu.matmul %40, %43, %cst_75 {dimension_numbers = #tpu.dot_dimension_numbers<[1], [0], [0], [1], [0, 0, 1, 1], [], []>} : vector<128x4xbf16>, vector<4x4xbf16>, vector<128x4xf32> -> vector<128x4xf32>
    %45 = arith.addf %41, %44 : vector<128x4xf32>
    %c0_76 = arith.constant 0 : index
    %c0_77 = arith.constant 0 : index
    %46 = vector.load %arg8[%c0_76, %c0_77] : memref<128x4xf32, #tpu.memory_space<vmem>>, vector<128x4xf32>
    tpu.vector_store %arg8[%c0_76, %c0_77], %45 {strides = array<i32>} : memref<128x4xf32, #tpu.memory_space<vmem>>, vector<128x4xf32>,
    %c0_78 = arith.constant 0 : index
    %c2_79 = arith.constant 2 : index
    %c0_80 = arith.constant 0 : index
    %c0_81 = arith.constant 0 : index
    %47 = vector.load %arg7[%c0_78, %c2_79, %c0_80, %c0_81] : memref<2x10x8x4xbf16, #tpu.memory_space<vmem>>, vector<2x8x8x4xbf16>
    %48 = vector.shape_cast %47 : vector<2x8x8x4xbf16> to vector<128x4xbf16>
    %c0_82 = arith.constant 0 : index
    %c0_83 = arith.constant 0 : index
    %49 = vector.load %arg8[%c0_82, %c0_83] : memref<128x4xf32, #tpu.memory_space<vmem>>, vector<128x4xf32>
    %c2_84 = arith.constant 2 : index
    %c1_85 = arith.constant 1 : index
    %c0_86 = arith.constant 0 : index
    %c0_87 = arith.constant 0 : index
    %50 = vector.load %arg4[%c2_84, %c1_85, %c0_86, %c0_87] : memref<3x3x4x4xbf16, #tpu.memory_space<vmem>>, vector<1x1x4x4xbf16>
    %51 = vector.shape_cast %50 : vector<1x1x4x4xbf16> to vector<4x4xbf16>
    %cst_88 = arith.constant dense<0.000000e+00> : vector<128x4xf32>
    %52 = tpu.matmul %48, %51, %cst_88 {dimension_numbers = #tpu.dot_dimension_numbers<[1], [0], [0], [1], [0, 0, 1, 1], [], []>} : vector<128x4xbf16>, vector<4x4xbf16>, vector<128x4xf32> -> vector<128x4xf32>
    %53 = arith.addf %49, %52 : vector<128x4xf32>
    %c0_89 = arith.constant 0 : index
    %c0_90 = arith.constant 0 : index
    %54 = vector.load %arg8[%c0_89, %c0_90] : memref<128x4xf32, #tpu.memory_space<vmem>>, vector<128x4xf32>
    tpu.vector_store %arg8[%c0_89, %c0_90], %53 {strides = array<i32>} : memref<128x4xf32, #tpu.memory_space<vmem>>, vector<128x4xf32>,
    %c0_91 = arith.constant 0 : index
    %c0_92 = arith.constant 0 : index
    %c2_93 = arith.constant 2 : index
    %c0_94 = arith.constant 0 : index
    %55 = vector.load %arg3[%c0_91, %c0_92, %c2_93, %c0_94] : memref<2x10x10x4xbf16, #tpu.memory_space<vmem>>, vector<2x10x8x4xbf16>
    %c0_95 = arith.constant 0 : index
    %c0_96 = arith.constant 0 : index
    %c0_97 = arith.constant 0 : index
    %c0_98 = arith.constant 0 : index
    %56 = vector.load %arg7[%c0_95, %c0_96, %c0_97, %c0_98] : memref<2x10x8x4xbf16, #tpu.memory_space<vmem>>, vector<2x10x8x4xbf16>
    tpu.vector_store %arg7[%c0_95, %c0_96, %c0_97, %c0_98], %55 {strides = array<i32>} : memref<2x10x8x4xbf16, #tpu.memory_space<vmem>>, vector<2x10x8x4xbf16>,
    %c0_99 = arith.constant 0 : index
    %c0_100 = arith.constant 0 : index
    %c0_101 = arith.constant 0 : index
    %c0_102 = arith.constant 0 : index
    %57 = vector.load %arg7[%c0_99, %c0_100, %c0_101, %c0_102] : memref<2x10x8x4xbf16, #tpu.memory_space<vmem>>, vector<2x8x8x4xbf16>
    %58 = vector.shape_cast %57 : vector<2x8x8x4xbf16> to vector<128x4xbf16>
    %c0_103 = arith.constant 0 : index
    %c0_104 = arith.constant 0 : index
    %59 = vector.load %arg8[%c0_103, %c0_104] : memref<128x4xf32, #tpu.memory_space<vmem>>, vector<128x4xf32>
    %c0_105 = arith.constant 0 : index
    %c2_106 = arith.constant 2 : index
    %c0_107 = arith.constant 0 : index
    %c0_108 = arith.constant 0 : index
    %60 = vector.load %arg4[%c0_105, %c2_106, %c0_107, %c0_108] : memref<3x3x4x4xbf16, #tpu.memory_space<vmem>>, vector<1x1x4x4xbf16>
    %61 = vector.shape_cast %60 : vector<1x1x4x4xbf16> to vector<4x4xbf16>
    %cst_109 = arith.constant dense<0.000000e+00> : vector<128x4xf32>
    %62 = tpu.matmul %58, %61, %cst_109 {dimension_numbers = #tpu.dot_dimension_numbers<[1], [0], [0], [1], [0, 0, 1, 1], [], []>} : vector<128x4xbf16>, vector<4x4xbf16>, vector<128x4xf32> -> vector<128x4xf32>
    %63 = arith.addf %59, %62 : vector<128x4xf32>
    %c0_110 = arith.constant 0 : index
    %c0_111 = arith.constant 0 : index
    %64 = vector.load %arg8[%c0_110, %c0_111] : memref<128x4xf32, #tpu.memory_space<vmem>>, vector<128x4xf32>
    tpu.vector_store %arg8[%c0_110, %c0_111], %63 {strides = array<i32>} : memref<128x4xf32, #tpu.memory_space<vmem>>, vector<128x4xf32>,
    %c0_112 = arith.constant 0 : index
    %c1_113 = arith.constant 1 : index
    %c0_114 = arith.constant 0 : index
    %c0_115 = arith.constant 0 : index
    %65 = vector.load %arg7[%c0_112, %c1_113, %c0_114, %c0_115] : memref<2x10x8x4xbf16, #tpu.memory_space<vmem>>, vector<2x8x8x4xbf16>
    %66 = vector.shape_cast %65 : vector<2x8x8x4xbf16> to vector<128x4xbf16>
    %c0_116 = arith.constant 0 : index
    %c0_117 = arith.constant 0 : index
    %67 = vector.load %arg8[%c0_116, %c0_117] : memref<128x4xf32, #tpu.memory_space<vmem>>, vector<128x4xf32>
    %c1_118 = arith.constant 1 : index
    %c2_119 = arith.constant 2 : index
    %c0_120 = arith.constant 0 : index
    %c0_121 = arith.constant 0 : index
    %68 = vector.load %arg4[%c1_118, %c2_119, %c0_120, %c0_121] : memref<3x3x4x4xbf16, #tpu.memory_space<vmem>>, vector<1x1x4x4xbf16>
    %69 = vector.shape_cast %68 : vector<1x1x4x4xbf16> to vector<4x4xbf16>
    %cst_122 = arith.constant dense<0.000000e+00> : vector<128x4xf32>
    %70 = tpu.matmul %66, %69, %cst_122 {dimension_numbers = #tpu.dot_dimension_numbers<[1], [0], [0], [1], [0, 0, 1, 1], [], []>} : vector<128x4xbf16>, vector<4x4xbf16>, vector<128x4xf32> -> vector<128x4xf32>
    %71 = arith.addf %67, %70 : vector<128x4xf32>
    %c0_123 = arith.constant 0 : index
    %c0_124 = arith.constant 0 : index
    %72 = vector.load %arg8[%c0_123, %c0_124] : memref<128x4xf32, #tpu.memory_space<vmem>>, vector<128x4xf32>
    tpu.vector_store %arg8[%c0_123, %c0_124], %71 {strides = array<i32>} : memref<128x4xf32, #tpu.memory_space<vmem>>, vector<128x4xf32>,
    %c0_125 = arith.constant 0 : index
    %c2_126 = arith.constant 2 : index
    %c0_127 = arith.constant 0 : index
    %c0_128 = arith.constant 0 : index
    %73 = vector.load %arg7[%c0_125, %c2_126, %c0_127, %c0_128] : memref<2x10x8x4xbf16, #tpu.memory_space<vmem>>, vector<2x8x8x4xbf16>
    %74 = vector.shape_cast %73 : vector<2x8x8x4xbf16> to vector<128x4xbf16>
    %c0_129 = arith.constant 0 : index
    %c0_130 = arith.constant 0 : index
    %75 = vector.load %arg8[%c0_129, %c0_130] : memref<128x4xf32, #tpu.memory_space<vmem>>, vector<128x4xf32>
    %c2_131 = arith.constant 2 : index
    %c2_132 = arith.constant 2 : index
    %c0_133 = arith.constant 0 : index
    %c0_134 = arith.constant 0 : index
    %76 = vector.load %arg4[%c2_131, %c2_132, %c0_133, %c0_134] : memref<3x3x4x4xbf16, #tpu.memory_space<vmem>>, vector<1x1x4x4xbf16>
    %77 = vector.shape_cast %76 : vector<1x1x4x4xbf16> to vector<4x4xbf16>
    %cst_135 = arith.constant dense<0.000000e+00> : vector<128x4xf32>
    %78 = tpu.matmul %74, %77, %cst_135 {dimension_numbers = #tpu.dot_dimension_numbers<[1], [0], [0], [1], [0, 0, 1, 1], [], []>} : vector<128x4xbf16>, vector<4x4xbf16>, vector<128x4xf32> -> vector<128x4xf32>
    %79 = arith.addf %75, %78 : vector<128x4xf32>
    %c0_136 = arith.constant 0 : index
    %c0_137 = arith.constant 0 : index
    %80 = vector.load %arg8[%c0_136, %c0_137] : memref<128x4xf32, #tpu.memory_space<vmem>>, vector<128x4xf32>
    tpu.vector_store %arg8[%c0_136, %c0_137], %79 {strides = array<i32>} : memref<128x4xf32, #tpu.memory_space<vmem>>, vector<128x4xf32>,
    %c0_i32_138 = arith.constant 0 : i32
    %81 = arith.cmpi eq, %arg2, %c0_i32_138 : i32
    %82 = arith.extui %81 : i1 to i32
    %c0_i32_139 = arith.constant 0 : i32
    %83 = arith.cmpi ne, %82, %c0_i32_139 : i32
    scf.if %83 {
      %c0_140 = arith.constant 0 : index
      %c0_141 = arith.constant 0 : index
      %84 = vector.load %arg8[%c0_140, %c0_141] : memref<128x4xf32, #tpu.memory_space<vmem>>, vector<128x4xf32>
      %c0_142 = arith.constant 0 : index
      %c0_143 = arith.constant 0 : index
      %85 = vector.load %arg5[%c0_142, %c0_143] : memref<1x4xf32, #tpu.memory_space<vmem>>, vector<1x4xf32>
      %86 = vector.broadcast %85 : vector<1x4xf32> to vector<128x4xf32>
      %87 = arith.addf %84, %86 : vector<128x4xf32>
      %cst_144 = arith.constant 0.000000e+00 : f32
      %88 = vector.broadcast %cst_144 : f32 to vector<128x4xf32>
      %89 = arith.maximumf %87, %88 : vector<128x4xf32>
      %90 = vector.shape_cast %89 : vector<128x4xf32> to vector<2x8x8x4xf32>
      %c0_145 = arith.constant 0 : index
      %c0_146 = arith.constant 0 : index
      %c0_147 = arith.constant 0 : index
      %c0_148 = arith.constant 0 : index
      %91 = vector.load %arg6[%c0_145, %c0_146, %c0_147, %c0_148] : memref<2x8x8x4xf32, #tpu.memory_space<vmem>>, vector<2x8x8x4xf32>
      tpu.vector_store %arg6[%c0_145, %c0_146, %c0_147, %c0_148], %90 {strides = array<i32>} : memref<2x8x8x4xf32, #tpu.memory_space<vmem>>, vector<2x8x8x4xf32>,
    } else {
    }
    return
  }
  func.func @transform_0(%arg0: i32, %arg1: i32, %arg2: i32) -> (i32, i32, i32, i32) {
    %c0_i32 = arith.constant 0 : i32
    %c0_i32_0 = arith.constant 0 : i32
    %c0_i32_1 = arith.constant 0 : i32
    return %arg0, %c0_i32, %c0_i32_0, %arg2 : i32, i32, i32, i32
  }
  func.func @transform_1(%arg0: i32, %arg1: i32, %arg2: i32) -> (i32, i32, i32, i32) {
    %c0_i32 = arith.constant 0 : i32
    %c0_i32_0 = arith.constant 0 : i32
    %c0_i32_1 = arith.constant 0 : i32
    return %c0_i32, %c0_i32_0, %arg2, %arg1 : i32, i32, i32, i32
  }
  func.func @transform_2(%arg0: i32, %arg1: i32, %arg2: i32) -> (i32, i32) {
    %c0_i32 = arith.constant 0 : i32
    %c0_i32_0 = arith.constant 0 : i32
    return %c0_i32, %arg1 : i32, i32
  }
  func.func @transform_3(%arg0: i32, %arg1: i32, %arg2: i32) -> (i32, i32, i32, i32) {
    %c0_i32 = arith.constant 0 : i32
    %c0_i32_0 = arith.constant 0 : i32
    %c0_i32_1 = arith.constant 0 : i32
    return %arg0, %c0_i32, %c0_i32_0, %arg1 : i32, i32, i32, i32
  }
}

</mosaic_0001>

<bundles_post_ra>
// kernel: resnet_conv5_forward.6
= control target key start
LH: loop header
LB: loop body
LE: loop exit
PB: predicated region body
PF: predicated region fallthrough
CT: control target
= control target key end

     0   :  { %vm175_vm0 = vcmask 1041408   ;;  %vm56_vm1 = vcmask 27648   ;;  %vm810_vm2 = vsmask.f32 3328  ;;  %vm811_vm3 = vsmask.f32 7440  ;;  %s4131_s1 = inlined_call_operand.vmem [shape: bf16[3,3,4,4], index: 1, kind: input, shape index: {}]   ;;  %s4132_s0 = inlined_call_operand.vmem [shape: bf16[2,10,10,4], index: 0, kind: input, shape index: {}]   ;;  %s4133_s2 = inlined_call_operand.vmem [shape: f32[1,4], index: 2, kind: input, shape index: {}]   ;;  %s4134_s3 = inlined_call_operand.vmem [shape: bf16[2,8,8,4], index: 3, kind: output, shape index: {}]  }
   0x1   :  { %v109_v0 = vld [vmem:[%s4131_s1] sm:$0x3]  ;;  %v46_v1 = vld [vmem:[%s4132_s0 + $0x50] sm:$0xf]  ;;  %v47_v2 = vld [vmem:[%s4132_s0 + $0x58] sm:$0xf] }
   0x2   :  { %3213 = vmatprep.subr.msk.bf16.mxu1 %vm175_vm0, %v109_v0  ;;  %v177_v3 = vsel %vm175_vm0, %v109_v0, 0  ;;  %67 = vst.msk [vmem:[#allocation2 + $0x28] sm:$0xf] %vm56_vm1, %v46_v1  ;;  %68 = vst.msk [vmem:[#allocation2 + $0x2c] sm:$0xf] %vm56_vm1, %v47_v2  ;;  %3212 = vmatprep.subr.msk.bf16.mxu0 %vm175_vm0, %v109_v0  ;;  %vm19_vm4 = vcmask 31744  }
   0x3   :  { %v790_v4 = vld [vmem:[%s4132_s0 + $0x50] sm:$0xf]  ;;  %v791_v5 = vld [vmem:[%s4132_s0 + $0x54] sm:$0x1]  ;;  %3211 = vmatpush3.bf16.msra.mxu1 %v177_v3  ;;  %3049 = vmatpush3.bf16.msra.mxu0 %v177_v3  ;;  %v2810_v9 = vld [vmem:[%s4131_s1 + $0x6] sm:$0x3] }
   0x4   :  { %v954_v6 = vshrl.u32 %v790_v4, 16  ;;  %v957_v7 = vshll.u32 %v790_v4, 16  ;;  %v963_v8 = vshll.u32 %v791_v5, 16  ;;  %v48_v10 = vld [vmem:[%s4132_s0 + $0x60] sm:$0xf]  ;;  %3214 = vmatprep.subr.msk.bf16.mxu1 %vm175_vm0, %v2810_v9  ;;  %vm3376_vm5 = vmor %vm810_vm2, %vm811_vm3  ;;  %v408_v36 = vsel %vm175_vm0, %v2810_v9, 0 }
   0x5   :  { %v49_v14 = vld [vmem:[%s4132_s0 + $0x68] sm:$0xf]  ;;  %69 = vst.msk [vmem:[#allocation2 + $0x30] sm:$0xf] %vm56_vm1, %v48_v10  ;;  %v36_v15 = vld [vmem:[%s4132_s0] sm:$0xf] }
   0x6   :  { %v956_v11 = vrot.slane %v954_v6, 4  ;;  %v959_v12 = vrot.slane %v957_v7, 5  ;;  %v965_v13 = vrot.slane %v963_v8, 5  ;;  %70 = vst.msk [vmem:[#allocation2 + $0x34] sm:$0xf] %vm56_vm1, %v49_v14  ;;  %vm1903_vm6 = vcmask 1042432  }
   0x7   :  { %v37_v16 = vld [vmem:[%s4132_s0 + $0x8] sm:$0xf]  ;;  %v770_v17 = vld [vmem:[%s4132_s0] sm:$0xf]  ;;  %57 = vst.msk [vmem:[#allocation2] sm:$0xf] %vm56_vm1, %v36_v15 }
   0x8   :  { %v960_v18 = vor.u32 %v959_v12, %v956_v11  ;;  %58 = vst.msk [vmem:[#allocation2 + $0x4] sm:$0xf] %vm56_vm1, %v37_v16  ;;  %v771_v19 = vld [vmem:[%s4132_s0 + $0x4] sm:$0x1]  ;;  %v814_v20 = vshrl.u32 %v770_v17, 16  ;;  %v817_v21 = vshll.u32 %v770_v17, 16 }
   0x9   :  { %v38_v22 = vld [vmem:[%s4132_s0 + $0x10] sm:$0xf]  ;;  %v823_v23 = vshll.u32 %v771_v19, 16  ;;  %v39_v24 = vld [vmem:[%s4132_s0 + $0x18] sm:$0xf]  ;;  %v3223_v26 = vld [vmem:[#allocation2 + $0x28] sm:$0xff]  }
   0xa   :  { %59 = vst.msk [vmem:[#allocation2 + $0x8] sm:$0xf] %vm56_vm1, %v38_v22  ;;  %v50_v25 = vld [vmem:[%s4132_s0 + $0x70] sm:$0xf]  ;;  %v961_v27 = vrot.slane %v960_v18, 4  ;;  %v816_v29 = vrot.slane %v814_v20, 4  ;;  %3058 = vmatprep.mubr.msk.bf16.mxu1 %vm19_vm4, %v3223_v26 }
   0xb   :  { %60 = vst.msk [vmem:[#allocation2 + $0xc] sm:$0xf] %vm56_vm1, %v39_v24  ;;  %71 = vst.msk [vmem:[#allocation2 + $0x38] sm:$0xf] %vm56_vm1, %v50_v25  ;;  %v819_v30 = vrot.slane %v817_v21, 5  ;;  %v825_v38 = vrot.slane %v823_v23, 5 }
   0xc   :  { %v51_v31 = vld [vmem:[%s4132_s0 + $0x78] sm:$0xf]  ;;  %v966_v32 = vsel %vm3376_vm5, %v961_v27, %v965_v13  ;;  %v52_v33 = vld [vmem:[%s4132_s0 + $0x80] sm:$0xf]  ;;  %v53_v34 = vld [vmem:[%s4132_s0 + $0x88] sm:$0xf] }
   0xd   :  { %72 = vst.msk [vmem:[#allocation2 + $0x3c] sm:$0xf] %vm56_vm1, %v51_v31  ;;  %v2827_v35 = vld [vmem:[%s4131_s1 + $0xc] sm:$0x3]  ;;  %1123 = vst.msk [vmem:[#allocation2 + $0x28] sm:$0xf] %vm56_vm1, %v966_v32  ;;  %v820_v37 = vor.u32 %v819_v30, %v816_v29 }
   0xe   :  { %73 = vst.msk [vmem:[#allocation2 + $0x40] sm:$0xf] %vm56_vm1, %v52_v33  ;;  %74 = vst.msk [vmem:[#allocation2 + $0x44] sm:$0xf] %vm56_vm1, %v53_v34  ;;  %3215 = vmatprep.subr.msk.bf16.mxu0 %vm175_vm0, %v2827_v35  ;;  %v40_v39 = vld [vmem:[%s4132_s0 + $0x20] sm:$0xf] }
   0xf   :  { %v3224_v40 = vld [vmem:[#allocation2 + $0x30] sm:$0xff]   ;;  %v639_v41 = vsel %vm175_vm0, %v2827_v35, 0  ;;  %v41_v42 = vld [vmem:[%s4132_s0 + $0x28] sm:$0xf]  ;;  %61 = vst.msk [vmem:[#allocation2 + $0x10] sm:$0xf] %vm56_vm1, %v40_v39 }
  0x10   :  { %v3225_v43 = vld [vmem:[#allocation2] sm:$0xff]   ;;  %v821_v44 = vrot.slane %v820_v37, 4  ;;  %62 = vst.msk [vmem:[#allocation2 + $0x14] sm:$0xf] %vm56_vm1, %v41_v42  ;;  %3059 = vmatmul.mubr.msk.bf16.vlgmr.msra.gmra.mxu1 %vm19_vm4, %v3224_v40  ;;  %v42_v52 = vld [vmem:[%s4132_s0 + $0x30] sm:$0xf] }
  0x11   :  { %v778_v45 = vld [vmem:[%s4132_s0 + $0x20] sm:$0xf]  ;;  %v779_v46 = vld [vmem:[%s4132_s0 + $0x24] sm:$0x1]  ;;  %3067 = vmatpush3.bf16.msra.mxu1 %v408_v36  ;;  %3050 = vmatprep.mubr.msk.bf16.mxu0 %vm19_vm4, %v3225_v43  ;;  %v43_v53 = vld [vmem:[%s4132_s0 + $0x38] sm:$0xf] }
  0x12   :  { %v826_v47 = vsel %vm3376_vm5, %v821_v44, %v825_v38  ;;  %v3226_v48 = vld [vmem:[#allocation2 + $0x8] sm:$0xff]   ;;  %v870_v49 = vshrl.u32 %v778_v45, 16  ;;  %v873_v50 = vshll.u32 %v778_v45, 16  ;;  %v879_v51 = vshll.u32 %v779_v46, 16  ;;  %63 = vst.msk [vmem:[#allocation2 + $0x18] sm:$0xf] %vm56_vm1, %v42_v52 }
  0x13   :  { %1113 = vst.msk [vmem:[#allocation2] sm:$0xf] %vm56_vm1, %v826_v47  ;;  %3051 = vmatmul.mubr.msk.bf16.vlgmr.msra.gmra.mxu0 %vm19_vm4, %v3226_v48  ;;  %64 = vst.msk [vmem:[#allocation2 + $0x1c] sm:$0xf] %vm56_vm1, %v43_v53  ;;  %v3231_v62 = vld [vmem:[#allocation2 + $0x4] sm:$0xff]   ;;  %vm1904_vm7 = vcmask 1046532  }
  0x14   :  { %v3227_v54 = vld [vmem:[#allocation2 + $0x38] sm:$0xff]   ;;  %v872_v55 = vrot.slane %v870_v49, 4  ;;  %3085 = vmatpush3.bf16.msra.mxu0 %v639_v41  ;;  %v875_v57 = vrot.slane %v873_v50, 5  ;;  %v881_v60 = vrot.slane %v879_v51, 5  ;;  %v772_v63 = vld [vmem:[%s4132_s0 + $0x8] sm:$0xf]  ;;  %vm3633_vm8 = vmor %vm1903_vm6, %vm1904_vm7 }
  0x15   :  { %v3228_v56 = vld [vmem:[#allocation2 + $0x40] sm:$0xff]   ;;  %3062 = vmatprep.mubr.msk.bf16.mxu1 %vm19_vm4, %v3227_v54  ;;  %v773_v0 = vld [vmem:[%s4132_s0 + $0xc] sm:$0x1]  ;;  %v828_v3 = vshrl.u32 %v772_v63, 16  ;;  %v831_v4 = vshll.u32 %v772_v63, 16 }
  0x16   :  { %v876_v59 = vor.u32 %v875_v57, %v872_v55  ;;  %v312_v61 = vld [vmem:[#allocation2 + $0xc] sm:$0xff]   ;;  %v837_v5 = vshll.u32 %v773_v0, 16  ;;  %v2844_v6 = vld [vmem:[%s4131_s1 + $0x2] sm:$0x3]  ;;  %v775_v14 = vld [vmem:[%s4132_s0 + $0x14] sm:$0x1] }
  0x17   :  { %v3229_v58 = vld [vmem:[#allocation2 + $0x10] sm:$0xff]   ;;  %3216 = vmatprep.subr.msk.bf16.mxu1 %vm175_vm0, %v2844_v6  ;;  %v3232_v7 = vld [vmem:[#allocation2 + $0x8] sm:$0xff]   ;;  %v830_v10 = vrot.slane %v828_v3, 4  ;;  %v833_v11 = vrot.slane %v831_v4, 5  ;;  %v776_v15 = vld [vmem:[%s4132_s0 + $0x18] sm:$0xf] }
  0x18   :  { %3063 = vmatmul.mubr.msk.bf16.gmra.mxu1 %vm19_vm4, %v3228_v56  ;;  %3054 = vmatprep.mubr.msk.bf16.mxu0 %vm19_vm4, %v3229_v58  ;;  %v542_v1 = vld [vmem:[#allocation2 + $0x10] sm:$0xff]   ;;  %v877_v2 = vrot.slane %v876_v59, 4  ;;  %v839_v12 = vrot.slane %v837_v5, 5  ;;  %v777_v16 = vld [vmem:[%s4132_s0 + $0x1c] sm:$0x1]  ;;  %v851_v20 = vshll.u32 %v775_v14, 16 }
  0x19   :  { %3068 = vmatprep.mubr.msk.bf16.mxu1 %vm19_vm4, %v3231_v62  ;;  %v774_v13 = vld [vmem:[%s4132_s0 + $0x10] sm:$0xf]  ;;  %v834_v19 = vor.u32 %v833_v11, %v830_v10  ;;  %v856_v21 = vshrl.u32 %v776_v15, 16  ;;  %v859_v22 = vshll.u32 %v776_v15, 16  ;;  %v3233_v23 = vld [vmem:[#allocation2 + $0x14] sm:$0xff]   ;;  %v1232_v24 = vsel %vm175_vm0, %v2844_v6, 0 }
  0x1a   :  { %v882_v8 = vsel %vm3376_vm5, %v877_v2, %v881_v60  ;;  %v3230_v9 = vld [vmem:[#allocation2 + $0x18] sm:$0xff]   ;;  %v842_v17 = vshrl.u32 %v774_v13, 16  ;;  %v845_v18 = vshll.u32 %v774_v13, 16  ;;  %v865_v27 = vshll.u32 %v777_v16, 16  ;;  %v780_v32 = vld [vmem:[%s4132_s0 + $0x28] sm:$0xf] }
  0x1b   :  { %1117 = vst.msk [vmem:[#allocation2 + $0x10] sm:$0xf] %vm56_vm1, %v882_v8  ;;  %3055 = vmatmul.mubr.msk.bf16.gmra.mxu0 %vm19_vm4, %v3230_v9  ;;  %v835_v29 = vrot.slane %v834_v19, 4  ;;  %v858_v30 = vrot.slane %v856_v21, 4  ;;  %v861_v31 = vrot.slane %v859_v22, 5  ;;  %v853_v34 = vrot.slane %v851_v20, 5 }
  0x1c   :  { %3086 = vmatprep.mubr.msk.bf16.mxu0 %vm19_vm4, %v3232_v7  ;;  %v844_v25 = vrot.slane %v842_v17, 4  ;;  %v847_v26 = vrot.slane %v845_v18, 5  ;;  %v781_v35 = vld [vmem:[%s4132_s0 + $0x2c] sm:$0x1]  ;;  %v884_v36 = vshrl.u32 %v780_v32, 16  ;;  %v887_v37 = vshll.u32 %v780_v32, 16 }
  0x1d   :  { %v3235_v38 = vld [vmem:[#allocation2 + $0x18] sm:$0xff]   ;;  %v840_v39 = vsel %vm3376_vm5, %v835_v29, %v839_v12  ;;  %v862_v40 = vor.u32 %v861_v31, %v858_v30  ;;  %v867_v41 = vrot.slane %v865_v27, 5  ;;  %v893_v42 = vshll.u32 %v781_v35, 16  ;;  %v44_v43 = vld [vmem:[%s4132_s0 + $0x40] sm:$0xf]  ;;  %v3237_v10 = vld [vmem:[#allocation2 + $0x2c] sm:$0xff]  }
  0x1e   :  { %v848_v33 = vor.u32 %v847_v26, %v844_v25  ;;  %1114 = vst.msk [vmem:[#allocation2 + $0x4] sm:$0xf] %vm56_vm1, %v840_v39  ;;  %v886_v45 = vrot.slane %v884_v36, 4  ;;  %v889_v46 = vrot.slane %v887_v37, 5  ;;  %65 = vst.msk [vmem:[#allocation2 + $0x20] sm:$0xf] %vm56_vm1, %v44_v43 }
  0x1f   :  { %v2861_v47 = vld [vmem:[%s4131_s1 + $0x8] sm:$0x3]  ;;  %v863_v48 = vrot.slane %v862_v40, 4  ;;  %v895_v49 = vrot.slane %v893_v42, 5  ;;  %v782_v53 = vld [vmem:[%s4132_s0 + $0x30] sm:$0xf] }
  0x20   :  { %3069 = vmatmul.mubr.msk.bf16.vlgmr.msra.gmra.mxu1 %vm19_vm4, %v312_v61  ;;  %v849_v44 = vrot.slane %v848_v33, 4  ;;  %3217 = vmatprep.subr.msk.bf16.mxu0 %vm175_vm0, %v2861_v47  ;;  %v1462_v50 = vsel %vm175_vm0, %v2861_v47, 0  ;;  %v890_v52 = vor.u32 %v889_v46, %v886_v45  ;;  %v783_v54 = vld [vmem:[%s4132_s0 + $0x34] sm:$0x1]  ;;  %v784_v56 = vld [vmem:[%s4132_s0 + $0x38] sm:$0xf] }
  0x21   :  { %3103 = vmatpush3.bf16.msra.mxu1 %v1232_v24  ;;  %3072 = vmatprep.mubr.msk.bf16.mxu1 %vm19_vm4, %v3233_v23  ;;  %v868_v55 = vsel %vm3376_vm5, %v863_v48, %v867_v41  ;;  %v785_v57 = vld [vmem:[%s4132_s0 + $0x3c] sm:$0x1]  ;;  %v898_v58 = vshrl.u32 %v782_v53, 16  ;;  %v901_v59 = vshll.u32 %v782_v53, 16  ;;  %v907_v61 = vshll.u32 %v783_v54, 16  ;;  %v3239_v33 = vld [vmem:[#allocation2 + $0x30] sm:$0xff]  }
  0x22   :  { %v854_v51 = vsel %vm3376_vm5, %v849_v44, %v853_v34  ;;  %1116 = vst.msk [vmem:[#allocation2 + $0xc] sm:$0xf] %vm56_vm1, %v868_v55  ;;  %v891_v60 = vrot.slane %v890_v52, 4  ;;  %v912_v62 = vshrl.u32 %v784_v56, 16  ;;  %v915_v63 = vshll.u32 %v784_v56, 16  ;;  %v3238_v43 = vld [vmem:[#allocation2 + $0x34] sm:$0xff]  }
  0x23   :  { %3087 = vmatmul.mubr.msk.bf16.vlgmr.msra.gmra.mxu0 %vm19_vm4, %v542_v1  ;;  %1115 = vst.msk [vmem:[#allocation2 + $0x8] sm:$0xf] %vm56_vm1, %v854_v51  ;;  %v45_v0 = vld [vmem:[%s4132_s0 + $0x48] sm:$0xf]  ;;  %v900_v1 = vrot.slane %v898_v58, 4  ;;  %v903_v2 = vrot.slane %v901_v59, 5 }
  0x24   :  { %3121 = vmatpush3.bf16.msra.mxu0 %v1462_v50  ;;  %3090 = vmatprep.mubr.msk.bf16.mxu0 %vm19_vm4, %v3235_v38  ;;  %v921_v3 = vshll.u32 %v785_v57, 16  ;;  %66 = vst.msk [vmem:[#allocation2 + $0x24] sm:$0xf] %vm56_vm1, %v45_v0  ;;  %v786_v4 = vld [vmem:[%s4132_s0 + $0x40] sm:$0xf]  ;;  %v896_v5 = vsel %vm3376_vm5, %v891_v60, %v895_v49  ;;  %v909_v6 = vrot.slane %v907_v61, 5 }
  0x25   :  { %v914_v7 = vrot.slane %v912_v62, 4  ;;  %v917_v8 = vrot.slane %v915_v63, 5  ;;  %v787_v9 = vld [vmem:[%s4132_s0 + $0x44] sm:$0x1]  ;;  %1118 = vst.msk [vmem:[#allocation2 + $0x14] sm:$0xf] %vm56_vm1, %v896_v5  ;;  %v904_v12 = vor.u32 %v903_v2, %v900_v1 }
  0x26   :  { %v3234_v11 = vld [vmem:[#allocation2 + $0x1c] sm:$0xff]   ;;  %v923_v13 = vrot.slane %v921_v3, 5  ;;  %v788_v15 = vld [vmem:[%s4132_s0 + $0x48] sm:$0xf]  ;;  %v789_v16 = vld [vmem:[%s4132_s0 + $0x4c] sm:$0x1] }
  0x27   :  { %v918_v14 = vor.u32 %v917_v8, %v914_v7  ;;  %v926_v17 = vshrl.u32 %v786_v4, 16  ;;  %v929_v18 = vshll.u32 %v786_v4, 16  ;;  %v905_v19 = vrot.slane %v904_v12, 4  ;;  %v792_v32 = vld [vmem:[%s4132_s0 + $0x58] sm:$0xf]  ;;  %v3241_v45 = vld [vmem:[#allocation2 + $0x3c] sm:$0xff]  }
  0x28   :  { %3073 = vmatmul.mubr.msk.bf16.gmra.mxu1 %vm19_vm4, %v3234_v11  ;;  %v935_v20 = vshll.u32 %v787_v9, 16  ;;  %v940_v21 = vshrl.u32 %v788_v15, 16  ;;  %v943_v22 = vshll.u32 %v788_v15, 16  ;;  %v949_v26 = vshll.u32 %v789_v16, 16  ;;  %v793_v38 = vld [vmem:[%s4132_s0 + $0x5c] sm:$0x1] }
  0x29   :  { %v919_v23 = vrot.slane %v918_v14, 4  ;;  %v928_v24 = vrot.slane %v926_v17, 4  ;;  %v931_v25 = vrot.slane %v929_v18, 5  ;;  %3076 = vmatprep.mubr.msk.bf16.mxu1 %vm19_vm4, %v3237_v10  ;;  %v910_v27 = vsel %vm3376_vm5, %v905_v19, %v909_v6  ;;  %v794_v51 = vld [vmem:[%s4132_s0 + $0x60] sm:$0xf]  ;;  %v3240_v54 = vld [vmem:[#allocation2 + $0x38] sm:$0xff]  }
  0x2a   :  { %v937_v29 = vrot.slane %v935_v20, 5  ;;  %v942_v30 = vrot.slane %v940_v21, 4  ;;  %v945_v31 = vrot.slane %v943_v22, 5  ;;  %1119 = vst.msk [vmem:[#allocation2 + $0x18] sm:$0xf] %vm56_vm1, %v910_v27  ;;  %v951_v37 = vrot.slane %v949_v26, 5 }
  0x2b   :  { %v924_v34 = vsel %vm3376_vm5, %v919_v23, %v923_v13  ;;  %v3236_v35 = vld [vmem:[#allocation2 + $0x20] sm:$0xff]   ;;  %v932_v36 = vor.u32 %v931_v25, %v928_v24  ;;  %v968_v40 = vshrl.u32 %v792_v32, 16  ;;  %v971_v41 = vshll.u32 %v792_v32, 16  ;;  %v796_v53 = vld [vmem:[%s4132_s0 + $0x68] sm:$0xf] }
  0x2c   :  { %1120 = vst.msk [vmem:[#allocation2 + $0x1c] sm:$0xf] %vm56_vm1, %v924_v34  ;;  %v946_v39 = vor.u32 %v945_v31, %v942_v30  ;;  %v977_v42 = vshll.u32 %v793_v38, 16  ;;  %3091 = vmatmul.mubr.msk.bf16.gmra.mxu0 %vm19_vm4, %v3236_v35  ;;  %v795_v52 = vld [vmem:[%s4132_s0 + $0x64] sm:$0x1]  ;;  %v982_v58 = vshrl.u32 %v794_v51, 16 }
  0x2d   :  { %v933_v44 = vrot.slane %v932_v36, 4  ;;  %v970_v47 = vrot.slane %v968_v40, 4  ;;  %v973_v48 = vrot.slane %v971_v41, 5  ;;  %3094 = vmatprep.mubr.msk.bf16.mxu0 %vm19_vm4, %v3239_v33  ;;  %v797_v57 = vld [vmem:[%s4132_s0 + $0x6c] sm:$0x1]  ;;  %v985_v59 = vshll.u32 %v794_v51, 16 }
  0x2e   :  { %v947_v46 = vrot.slane %v946_v39, 4  ;;  %v979_v49 = vrot.slane %v977_v42, 5  ;;  %v991_v60 = vshll.u32 %v795_v52, 16  ;;  %v996_v61 = vshrl.u32 %v796_v53, 16  ;;  %v798_v3 = vld [vmem:[%s4132_s0 + $0x70] sm:$0xf] }
  0x2f   :  { %v938_v50 = vsel %vm3376_vm5, %v933_v44, %v937_v29  ;;  %v974_v56 = vor.u32 %v973_v48, %v970_v47  ;;  %v999_v62 = vshll.u32 %v796_v53, 16  ;;  %v1005_v63 = vshll.u32 %v797_v57, 16  ;;  %v3243_v4 = vld [vmem:[#allocation2 + $0x40] sm:$0xff]   ;;  %v799_v8 = vld [vmem:[%s4132_s0 + $0x74] sm:$0x1] }
  0x30   :  { %v952_v55 = vsel %vm3376_vm5, %v947_v46, %v951_v37  ;;  %1121 = vst.msk [vmem:[#allocation2 + $0x20] sm:$0xf] %vm56_vm1, %v938_v50  ;;  %3077 = vmatmul.mubr.msk.bf16.gmra.mxu1 %vm19_vm4, %v3238_v43  ;;  %v984_v1 = vrot.slane %v982_v58, 4  ;;  %v987_v2 = vrot.slane %v985_v59, 5  ;;  %v993_v5 = vrot.slane %v991_v60, 5  ;;  %v3245_v50 = vld [vmem:[#allocation2] sm:$0xff]  }
  0x31   :  { %1122 = vst.msk [vmem:[#allocation2 + $0x24] sm:$0xf] %vm56_vm1, %v952_v55  ;;  %3080 = vmatprep.mubr.msk.bf16.mxu1 %vm19_vm4, %v3241_v45  ;;  %v975_v0 = vrot.slane %v974_v56, 4  ;;  %v998_v6 = vrot.slane %v996_v61, 4  ;;  %v1001_v7 = vrot.slane %v999_v62, 5  ;;  %v1010_v11 = vshrl.u32 %v798_v3, 16 }
  0x32   :  { %v988_v10 = vor.u32 %v987_v2, %v984_v1  ;;  %v1013_v12 = vshll.u32 %v798_v3, 16  ;;  %v1007_v14 = vrot.slane %v1005_v63, 5  ;;  %v1019_v15 = vshll.u32 %v799_v8, 16  ;;  %v800_v16 = vld [vmem:[%s4132_s0 + $0x78] sm:$0xf] }
  0x33   :  { %v980_v9 = vsel %vm3376_vm5, %v975_v0, %v979_v49  ;;  %v1002_v13 = vor.u32 %v1001_v7, %v998_v6  ;;  %v801_v17 = vld [vmem:[%s4132_s0 + $0x7c] sm:$0x1]  ;;  %v1012_v19 = vrot.slane %v1010_v11, 4  ;;  %v1024_v21 = vshrl.u32 %v800_v16, 16  ;;  %v54_v22 = vld [vmem:[%s4132_s0 + $0x90] sm:$0xf] }
  0x34   :  { %1124 = vst.msk [vmem:[#allocation2 + $0x2c] sm:$0xf] %vm56_vm1, %v980_v9  ;;  %3095 = vmatmul.mubr.msk.bf16.gmra.mxu0 %vm19_vm4, %v3240_v54  ;;  %v989_v18 = vrot.slane %v988_v10, 4  ;;  %v1015_v20 = vrot.slane %v1013_v12, 5  ;;  %v1027_v24 = vshll.u32 %v800_v16, 16  ;;  %v1033_v25 = vshll.u32 %v801_v17, 16 }
  0x35   :  { %3098 = vmatprep.mubr.msk.bf16.mxu0 %vm19_vm4, %v3243_v4  ;;  %v1003_v23 = vrot.slane %v1002_v13, 4  ;;  %75 = vst.msk [vmem:[#allocation2 + $0x48] sm:$0xf] %vm56_vm1, %v54_v22  ;;  %v1021_v29 = vrot.slane %v1019_v15, 5  ;;  %v1026_v30 = vrot.slane %v1024_v21, 4  ;;  %v3246_v11 = vld [vmem:[#allocation2 + $0x8] sm:$0xff]  }
  0x36   :  { %v994_v26 = vsel %vm3376_vm5, %v989_v18, %v993_v5  ;;  %v1016_v27 = vor.u32 %v1015_v20, %v1012_v19  ;;  %v1029_v32 = vrot.slane %v1027_v24, 5  ;;  %v1035_v33 = vrot.slane %v1033_v25, 5  ;;  %v802_v34 = vld [vmem:[%s4132_s0 + $0x80] sm:$0xf]  ;;  %v803_v35 = vld [vmem:[%s4132_s0 + $0x84] sm:$0x1] }
  0x37   :  { %v1008_v31 = vsel %vm3376_vm5, %v1003_v23, %v1007_v14  ;;  %1125 = vst.msk [vmem:[#allocation2 + $0x30] sm:$0xf] %vm56_vm1, %v994_v26  ;;  %v804_v37 = vld [vmem:[%s4132_s0 + $0x88] sm:$0xf]  ;;  %v805_v38 = vld [vmem:[%s4132_s0 + $0x8c] sm:$0x1] }
  0x38   :  { %1126 = vst.msk [vmem:[#allocation2 + $0x34] sm:$0xf] %vm56_vm1, %v1008_v31  ;;  %v1017_v36 = vrot.slane %v1016_v27, 4  ;;  %v1038_v39 = vshrl.u32 %v802_v34, 16  ;;  %v1030_v40 = vor.u32 %v1029_v32, %v1026_v30  ;;  %v1041_v41 = vshll.u32 %v802_v34, 16  ;;  %v3247_v12 = vld [vmem:[#allocation2 + $0x4] sm:$0xff]  }
  0x39   :  { %v1047_v42 = vshll.u32 %v803_v35, 16  ;;  %v1052_v43 = vshrl.u32 %v804_v37, 16  ;;  %v55_v44 = vld [vmem:[%s4132_s0 + $0x98] sm:$0xf]  ;;  %v1055_v47 = vshll.u32 %v804_v37, 16  ;;  %v1061_v48 = vshll.u32 %v805_v38, 16 }
  0x3a   :  { %v1022_v45 = vsel %vm3376_vm5, %v1017_v36, %v1021_v29  ;;  %v1040_v46 = vrot.slane %v1038_v39, 4  ;;  %76 = vst.msk [vmem:[#allocation2 + $0x4c] sm:$0xf] %vm56_vm1, %v55_v44  ;;  %v806_v49 = vld [vmem:[%s4132_s0 + $0x90] sm:$0xf]  ;;  %v1031_v51 = vrot.slane %v1030_v40, 4 }
  0x3b   :  { %1127 = vst.msk [vmem:[#allocation2 + $0x38] sm:$0xf] %vm56_vm1, %v1022_v45  ;;  %v1043_v52 = vrot.slane %v1041_v41, 5  ;;  %v1049_v53 = vrot.slane %v1047_v42, 5  ;;  %v1054_v54 = vrot.slane %v1052_v43, 4  ;;  %v1057_v57 = vrot.slane %v1055_v47, 5 }
  0x3c   :  { %v807_v55 = vld [vmem:[%s4132_s0 + $0x94] sm:$0x1]  ;;  %v3242_v56 = vld [vmem:[#allocation2 + $0x44] sm:$0xff]   ;;  %v1063_v58 = vrot.slane %v1061_v48, 5  ;;  %v1066_v59 = vshrl.u32 %v806_v49, 16  ;;  %v1036_v60 = vsel %vm3376_vm5, %v1031_v51, %v1035_v33  ;;  %v1069_v2 = vshll.u32 %v806_v49, 16 }
  0x3d   :  { %v1044_v61 = vor.u32 %v1043_v52, %v1040_v46  ;;  %v808_v62 = vld [vmem:[%s4132_s0 + $0x98] sm:$0xf]  ;;  %v809_v63 = vld [vmem:[%s4132_s0 + $0x9c] sm:$0x1]  ;;  %1128 = vst.msk [vmem:[#allocation2 + $0x3c] sm:$0xf] %vm56_vm1, %v1036_v60  ;;  %3081 = vmatmul.mubr.msk.bf16.gmra.mxu1 %vm19_vm4, %v3242_v56  ;;  %v1058_v0 = vor.u32 %v1057_v57, %v1054_v54 }
  0x3e   :  { %v1068_v1 = vrot.slane %v1066_v59, 4  ;;  %v1075_v3 = vshll.u32 %v807_v55, 16  ;;  %v1080_v5 = vshrl.u32 %v808_v62, 16  ;;  %v1083_v6 = vshll.u32 %v808_v62, 16  ;;  %3104 = vmatprep.mubr.msk.bf16.mxu1 %vm19_vm4, %v3245_v50  ;;  %v1823_v10 = vld [vmem:[%s4132_s0] sm:$0xe] }
  0x3f   :  { %v1045_v4 = vrot.slane %v1044_v61, 4  ;;  %v1089_v7 = vshll.u32 %v809_v63, 16  ;;  %v1059_v8 = vrot.slane %v1058_v0, 4  ;;  %v1071_v9 = vrot.slane %v1069_v2, 5  ;;  %v3249_v17 = vld [vmem:[#allocation2 + $0x10] sm:$0xff]   ;;  %v3250_v42 = vld [vmem:[#allocation2 + $0x18] sm:$0xff]  }
  0x40   :  { %v1082_v15 = vrot.slane %v1080_v5, 4  ;;  %v1085_v16 = vrot.slane %v1083_v6, 5  ;;  %v1077_v20 = vrot.slane %v1075_v3, 5  ;;  %v1824_v21 = vld [vmem:[%s4132_s0 + $0x4] sm:$0x1]  ;;  %v2895_v23 = vrot.slane %v1823_v10, 9 }
  0x41   :  { %v1050_v13 = vsel %vm3376_vm5, %v1045_v4, %v1049_v53  ;;  %v3244_v14 = vld [vmem:[#allocation2 + $0x48] sm:$0xff]   ;;  %v1064_v18 = vsel %vm3376_vm5, %v1059_v8, %v1063_v58  ;;  %v1072_v19 = vor.u32 %v1071_v9, %v1068_v1  ;;  %v1091_v26 = vrot.slane %v1089_v7, 5  ;;  %v3251_v39 = vld [vmem:[#allocation2 + $0x14] sm:$0xff]   ;;  %v2915_v43 = vld [vmem:[%s4131_s1 + $0x4] sm:$0x3] }
  0x42   :  { %1129 = vst.msk [vmem:[#allocation2 + $0x40] sm:$0xf] %vm56_vm1, %v1050_v13  ;;  %v2878_v24 = vld [vmem:[%s4131_s1 + $0xe] sm:$0x3]  ;;  %1130 = vst.msk [vmem:[#allocation2 + $0x44] sm:$0xf] %vm56_vm1, %v1064_v18  ;;  %3099 = vmatmul.mubr.msk.bf16.gmra.mxu0 %vm19_vm4, %v3244_v14  ;;  %v1086_v25 = vor.u32 %v1085_v16, %v1082_v15  ;;  %3219 = vmatprep.subr.msk.bf16.mxu0 %vm175_vm0, %v2915_v43 }
  0x43   :  { %v1908_v27 = vrot.slane %v1824_v21, 5  ;;  %3218 = vmatprep.subr.msk.bf16.mxu1 %vm175_vm0, %v2878_v24  ;;  %v1073_v29 = vrot.slane %v1072_v19, 4  ;;  %v1692_v30 = vsel %vm175_vm0, %v2878_v24, 0  ;;  %3122 = vmatprep.mubr.msk.bf16.mxu0 %vm19_vm4, %v3247_v12  ;;  %v1825_v33 = vld [vmem:[%s4132_s0 + $0x8] sm:$0xe]  ;;  %v3248_v35 = vld [vmem:[#allocation2 + $0xc] sm:$0xff]  }
  0x44   :  { %v1087_v31 = vrot.slane %v1086_v25, 4  ;;  %v1826_v34 = vld [vmem:[%s4132_s0 + $0xc] sm:$0x1]  ;;  %v2896_v37 = vrot.slane %v1825_v33, 9  ;;  %v2125_v28 = vsel %vm175_vm0, %v2915_v43, 0  ;;  %v3252_v49 = vld [vmem:[#allocation2 + $0x1c] sm:$0xff]  }
  0x45   :  { %v1909_v32 = vsel %vm3633_vm8, %v2895_v23, %v1908_v27  ;;  %v1078_v36 = vsel %vm3376_vm5, %v1073_v29, %v1077_v20  ;;  %3105 = vmatmul.mubr.msk.bf16.vlgmr.msra.gmra.mxu1 %vm19_vm4, %v3246_v11  ;;  %v1912_v38 = vrot.slane %v1826_v34, 5  ;;  %v3253_v44 = vld [vmem:[#allocation2 + $0x28] sm:$0xff]   ;;  %v1843_v45 = vld [vmem:[%s4132_s0 + $0x50] sm:$0xe]  ;;  %v1844_v46 = vld [vmem:[%s4132_s0 + $0x54] sm:$0x1] }
  0x46   :  { %2006 = vst.msk [vmem:[#allocation2] sm:$0xf] %vm56_vm1, %v1909_v32  ;;  %v1092_v40 = vsel %vm3376_vm5, %v1087_v31, %v1091_v26  ;;  %1131 = vst.msk [vmem:[#allocation2 + $0x48] sm:$0xf] %vm56_vm1, %v1078_v36  ;;  %3139 = vmatpush3.bf16.msra.mxu1 %v1692_v30  ;;  %3108 = vmatprep.mubr.msk.bf16.mxu1 %vm19_vm4, %v3249_v17  ;;  %v2905_v47 = vrot.slane %v1843_v45, 9  ;;  %v1948_v48 = vrot.slane %v1844_v46, 5 }
  0x47   :  { %1132 = vst.msk [vmem:[#allocation2 + $0x4c] sm:$0xf] %vm56_vm1, %v1092_v40  ;;  %v1913_v41 = vsel %vm3633_vm8, %v2896_v37, %v1912_v38  ;;  %v1845_v50 = vld [vmem:[%s4132_s0 + $0x58] sm:$0xe]  ;;  %v1846_v51 = vld [vmem:[%s4132_s0 + $0x5c] sm:$0x1] }
  0x48   :  { %2007 = vst.msk [vmem:[#allocation2 + $0x4] sm:$0xf] %vm56_vm1, %v1913_v41  ;;  %v1949_v52 = vsel %vm3633_vm8, %v2905_v47, %v1948_v48  ;;  %v2906_v53 = vrot.slane %v1845_v50, 9  ;;  %v1952_v54 = vrot.slane %v1846_v51, 5  ;;  %v3254_v55 = vld [vmem:[#allocation2 + $0x30] sm:$0xff]   ;;  %v3295_v58 = vmov 0.0  }
  0x49   :  { %2016 = vst.msk [vmem:[#allocation2 + $0x28] sm:$0xf] %vm56_vm1, %v1949_v52  ;;  %v3255_v56 = vld [vmem:[#allocation2 + $0x2c] sm:$0xff]   ;;  %v3257_v59 = vld [vmem:[#allocation2 + $0x38] sm:$0xff]   ;;  %v1828_v62 = vld [vmem:[%s4132_s0 + $0x14] sm:$0x1] }
  0x4a   :  { %3123 = vmatmul.mubr.msk.bf16.vlgmr.msra.gmra.mxu0 %vm19_vm4, %v3248_v35  ;;  %v1953_v57 = vsel %vm3633_vm8, %v2906_v53, %v1952_v54  ;;  %30 = vst.msk [vmem:[#allocation3 + $0x50] sm:$0xff] %vm19_vm4, %v3295_v58  ;;  %20 = vst.msk [vmem:[#allocation3] sm:$0xff] %vm19_vm4, %v3295_v58  ;;  %v3261_v60 = vld [vmem:[#allocation2 + $0x8] sm:$0xff]   ;;  %v1827_v61 = vld [vmem:[%s4132_s0 + $0x10] sm:$0xe]  ;;  %v1916_v2 = vrot.slane %v1828_v62, 5 }
  0x4b   :  { %3157 = vmatpush3.bf16.msra.mxu0 %v2125_v28  ;;  %3126 = vmatprep.mubr.msk.bf16.mxu0 %vm19_vm4, %v3251_v39  ;;  %2017 = vst.msk [vmem:[#allocation2 + $0x2c] sm:$0xf] %vm56_vm1, %v1953_v57  ;;  %v1829_v63 = vld [vmem:[%s4132_s0 + $0x18] sm:$0xe]  ;;  %v1830_v0 = vld [vmem:[%s4132_s0 + $0x1c] sm:$0x1] }
  0x4c   :  { %21 = vst.msk [vmem:[#allocation3 + $0x8] sm:$0xff] %vm19_vm4, %v3295_v58  ;;  %22 = vst.msk [vmem:[#allocation3 + $0x10] sm:$0xff] %vm19_vm4, %v3295_v58  ;;  %v2897_v1 = vrot.slane %v1827_v61, 9  ;;  %v3256_v3 = vld [vmem:[#allocation2 + $0x34] sm:$0xff]   ;;  %v2898_v4 = vrot.slane %v1829_v63, 9  ;;  %v1920_v5 = vrot.slane %v1830_v0, 5 }
  0x4d   :  { %3109 = vmatmul.mubr.msk.bf16.gmra.mxu1 %vm19_vm4, %v3250_v42  ;;  %23 = vst.msk [vmem:[#allocation3 + $0x18] sm:$0xff] %vm19_vm4, %v3295_v58  ;;  %24 = vst.msk [vmem:[#allocation3 + $0x20] sm:$0xff] %vm19_vm4, %v3295_v58  ;;  %v2932_v6 = vld [vmem:[%s4131_s1 + $0xa] sm:$0x3]  ;;  %v3259_v7 = vld [vmem:[#allocation2 + $0x3c] sm:$0xff]  }
  0x4e   :  { %3112 = vmatprep.mubr.msk.bf16.mxu1 %vm19_vm4, %v3253_v44  ;;  %25 = vst.msk [vmem:[#allocation3 + $0x28] sm:$0xff] %vm19_vm4, %v3295_v58  ;;  %26 = vst.msk [vmem:[#allocation3 + $0x30] sm:$0xff] %vm19_vm4, %v3295_v58  ;;  %v1917_v8 = vsel %vm3633_vm8, %v2897_v1, %v1916_v2  ;;  %3220 = vmatprep.subr.msk.bf16.mxu1 %vm175_vm0, %v2932_v6  ;;  %v1831_v9 = vld [vmem:[%s4132_s0 + $0x20] sm:$0xe]  ;;  %v1921_v10 = vsel %vm3633_vm8, %v2898_v4, %v1920_v5  ;;  %v1832_v11 = vld [vmem:[%s4132_s0 + $0x24] sm:$0x1] }
  0x4f   :  { %27 = vst.msk [vmem:[#allocation3 + $0x38] sm:$0xff] %vm19_vm4, %v3295_v58  ;;  %28 = vst.msk [vmem:[#allocation3 + $0x40] sm:$0xff] %vm19_vm4, %v3295_v58  ;;  %v1833_v12 = vld [vmem:[%s4132_s0 + $0x28] sm:$0xe]  ;;  %v1834_v13 = vld [vmem:[%s4132_s0 + $0x2c] sm:$0x1] }
  0x50   :  { %29 = vst.msk [vmem:[#allocation3 + $0x48] sm:$0xff] %vm19_vm4, %v3295_v58  ;;  %31 = vst.msk [vmem:[#allocation3 + $0x58] sm:$0xff] %vm19_vm4, %v3295_v58  ;;  %v3258_v14 = vld [vmem:[#allocation2 + $0x40] sm:$0xff]   ;;  %v2899_v15 = vrot.slane %v1831_v9, 9  ;;  %v1924_v16 = vrot.slane %v1832_v11, 5  ;;  %v2900_v17 = vrot.slane %v1833_v12, 9 }
  0x51   :  { %32 = vst.msk [vmem:[#allocation3 + $0x60] sm:$0xff] %vm19_vm4, %v3295_v58  ;;  %33 = vst.msk [vmem:[#allocation3 + $0x68] sm:$0xff] %vm19_vm4, %v3295_v58  ;;  %v1928_v18 = vrot.slane %v1834_v13, 5  ;;  %v3262_v19 = vld [vmem:[#allocation2 + $0x10] sm:$0xff]   ;;  %v3265_v23 = vld [vmem:[#allocation2 + $0x18] sm:$0xff]   ;;  %v2355_v45 = vsel %vm175_vm0, %v2932_v6, 0 }
  0x52   :  { %34 = vst.msk [vmem:[#allocation3 + $0x70] sm:$0xff] %vm19_vm4, %v3295_v58  ;;  %35 = vst.msk [vmem:[#allocation3 + $0x78] sm:$0xff] %vm19_vm4, %v3295_v58  ;;  %3127 = vmatmul.mubr.msk.bf16.gmra.mxu0 %vm19_vm4, %v3252_v49  ;;  %v1925_v20 = vsel %vm3633_vm8, %v2899_v15, %v1924_v16  ;;  %v1835_v24 = vld [vmem:[%s4132_s0 + $0x30] sm:$0xe]  ;;  %v1836_v25 = vld [vmem:[%s4132_s0 + $0x34] sm:$0x1] }
  0x53   :  { %3130 = vmatprep.mubr.msk.bf16.mxu0 %vm19_vm4, %v3255_v56  ;;  %2008 = vst.msk [vmem:[#allocation2 + $0x8] sm:$0xf] %vm56_vm1, %v1917_v8  ;;  %2009 = vst.msk [vmem:[#allocation2 + $0xc] sm:$0xf] %vm56_vm1, %v1921_v10  ;;  %v1929_v21 = vsel %vm3633_vm8, %v2900_v17, %v1928_v18  ;;  %v1837_v26 = vld [vmem:[%s4132_s0 + $0x38] sm:$0xe] }
  0x54   :  { %2010 = vst.msk [vmem:[#allocation2 + $0x10] sm:$0xf] %vm56_vm1, %v1925_v20  ;;  %2011 = vst.msk [vmem:[#allocation2 + $0x14] sm:$0xf] %vm56_vm1, %v1929_v21  ;;  %v1838_v27 = vld [vmem:[%s4132_s0 + $0x3c] sm:$0x1] }
  0x55   :  { %3113 = vmatmul.mubr.msk.bf16.gmra.mxu1 %vm19_vm4, %v3254_v55  ;;  %v2901_v29 = vrot.slane %v1835_v24, 9  ;;  %v1932_v30 = vrot.slane %v1836_v25, 5  ;;  %v2902_v31 = vrot.slane %v1837_v26, 9  ;;  %v1936_v32 = vrot.slane %v1838_v27, 5  ;;  %v1839_v33 = vld [vmem:[%s4132_s0 + $0x40] sm:$0xe] }
  0x56   :  { %3116 = vmatprep.mubr.msk.bf16.mxu1 %vm19_vm4, %v3257_v59  ;;  %v1840_v36 = vld [vmem:[%s4132_s0 + $0x44] sm:$0x1]  ;;  %v1841_v37 = vld [vmem:[%s4132_s0 + $0x48] sm:$0xe]  ;;  %v1842_v39 = vld [vmem:[%s4132_s0 + $0x4c] sm:$0x1] }
  0x57   :  { %v1933_v34 = vsel %vm3633_vm8, %v2901_v29, %v1932_v30  ;;  %v1937_v35 = vsel %vm3633_vm8, %v2902_v31, %v1936_v32  ;;  %v3260_v38 = vld [vmem:[#allocation2 + $0x44] sm:$0xff]   ;;  %v2903_v40 = vrot.slane %v1839_v33, 9  ;;  %v1940_v42 = vrot.slane %v1840_v36, 5  ;;  %v2949_v44 = vld [vmem:[%s4131_s1 + $0x10] sm:$0x3]  ;;  %v3270_v6 = vld [vmem:[#allocation2 + $0x38] sm:$0xff]  }
  0x58   :  { %2012 = vst.msk [vmem:[#allocation2 + $0x18] sm:$0xf] %vm56_vm1, %v1933_v34  ;;  %2013 = vst.msk [vmem:[#allocation2 + $0x1c] sm:$0xf] %vm56_vm1, %v1937_v35  ;;  %v3263_v41 = vld [vmem:[#allocation2] sm:$0xff]   ;;  %v2904_v43 = vrot.slane %v1841_v37, 9  ;;  %3221 = vmatprep.subr.msk.bf16.mxu0 %vm175_vm0, %v2949_v44 }
  0x59   :  { %v1944_v28 = vrot.slane %v1842_v39, 5  ;;  %v3266_v46 = vld [vmem:[#allocation2 + $0x20] sm:$0xff]   ;;  %v1941_v47 = vsel %vm3633_vm8, %v2903_v40, %v1940_v42  ;;  %v1849_v51 = vld [vmem:[%s4132_s0 + $0x68] sm:$0xe]  ;;  %v3269_v52 = vld [vmem:[#allocation2 + $0x30] sm:$0xff]   ;;  %v2585_v59 = vsel %vm175_vm0, %v2949_v44, 0 }
  0x5a   :  { %3131 = vmatmul.mubr.msk.bf16.gmra.mxu0 %vm19_vm4, %v3256_v3  ;;  %2014 = vst.msk [vmem:[#allocation2 + $0x20] sm:$0xf] %vm56_vm1, %v1941_v47  ;;  %v1847_v49 = vld [vmem:[%s4132_s0 + $0x60] sm:$0xe]  ;;  %v1848_v50 = vld [vmem:[%s4132_s0 + $0x64] sm:$0x1] }
  0x5b   :  { %3134 = vmatprep.mubr.msk.bf16.mxu0 %vm19_vm4, %v3259_v7  ;;  %v1945_v48 = vsel %vm3633_vm8, %v2904_v43, %v1944_v28  ;;  %v1850_v53 = vld [vmem:[%s4132_s0 + $0x6c] sm:$0x1]  ;;  %v2907_v54 = vrot.slane %v1847_v49, 9  ;;  %v1956_v55 = vrot.slane %v1848_v50, 5  ;;  %v2908_v56 = vrot.slane %v1849_v51, 9  ;;  %v3267_v1 = vld [vmem:[#allocation2 + $0x10] sm:$0xff]  }
  0x5c   :  { %2015 = vst.msk [vmem:[#allocation2 + $0x24] sm:$0xf] %vm56_vm1, %v1945_v48  ;;  %v1960_v57 = vrot.slane %v1850_v53, 5  ;;  %v3264_v58 = vld [vmem:[#allocation2 + $0x8] sm:$0xff]   ;;  %v1851_v62 = vld [vmem:[%s4132_s0 + $0x70] sm:$0xe] }
  0x5d   :  { %3117 = vmatmul.mubr.msk.bf16.gmra.mxu1 %vm19_vm4, %v3258_v14  ;;  %v1852_v63 = vld [vmem:[%s4132_s0 + $0x74] sm:$0x1]  ;;  %v1853_v0 = vld [vmem:[%s4132_s0 + $0x78] sm:$0xe]  ;;  %v1854_v2 = vld [vmem:[%s4132_s0 + $0x7c] sm:$0x1] }
  0x5e   :  { %3140 = vmatprep.mubr.msk.bf16.mxu1 %vm19_vm4, %v3261_v60  ;;  %v1957_v60 = vsel %vm3633_vm8, %v2907_v54, %v1956_v55  ;;  %v1961_v61 = vsel %vm3633_vm8, %v2908_v56, %v1960_v57  ;;  %v2909_v3 = vrot.slane %v1851_v62, 9  ;;  %v1964_v4 = vrot.slane %v1852_v63, 5  ;;  %v3273_v9 = vld [vmem:[#allocation2 + $0x40] sm:$0xff]   ;;  %v1857_v13 = vld [vmem:[%s4132_s0 + $0x88] sm:$0xe]  ;;  %v3278_v40 = vld [vmem:[#allocation2 + $0xc] sm:$0xff]  }
  0x5f   :  { %2018 = vst.msk [vmem:[#allocation2 + $0x30] sm:$0xf] %vm56_vm1, %v1957_v60  ;;  %2019 = vst.msk [vmem:[#allocation2 + $0x34] sm:$0xf] %vm56_vm1, %v1961_v61  ;;  %v2910_v5 = vrot.slane %v1853_v0, 9  ;;  %v1968_v7 = vrot.slane %v1854_v2, 5 }
  0x60   :  { %v1965_v8 = vsel %vm3633_vm8, %v2909_v3, %v1964_v4  ;;  %v1855_v10 = vld [vmem:[%s4132_s0 + $0x80] sm:$0xe]  ;;  %v1856_v12 = vld [vmem:[%s4132_s0 + $0x84] sm:$0x1]  ;;  %v1858_v14 = vld [vmem:[%s4132_s0 + $0x8c] sm:$0x1] }
  0x61   :  { %v1969_v11 = vsel %vm3633_vm8, %v2910_v5, %v1968_v7  ;;  %2020 = vst.msk [vmem:[#allocation2 + $0x38] sm:$0xf] %vm56_vm1, %v1965_v8  ;;  %v2911_v15 = vrot.slane %v1855_v10, 9  ;;  %v1972_v16 = vrot.slane %v1856_v12, 5  ;;  %v2912_v17 = vrot.slane %v1857_v13, 9  ;;  %v3271_v21 = vld [vmem:[#allocation2 + $0x28] sm:$0xff]  }
  0x62   :  { %3135 = vmatmul.mubr.msk.bf16.gmra.mxu0 %vm19_vm4, %v3260_v38  ;;  %2021 = vst.msk [vmem:[#allocation2 + $0x3c] sm:$0xf] %vm56_vm1, %v1969_v11  ;;  %v1976_v18 = vrot.slane %v1858_v14, 5  ;;  %v1860_v20 = vld [vmem:[%s4132_s0 + $0x94] sm:$0x1]  ;;  %v3268_v27 = vld [vmem:[#allocation2 + $0x18] sm:$0xff]  }
  0x63   :  { %3158 = vmatprep.mubr.msk.bf16.mxu0 %vm19_vm4, %v3263_v41  ;;  %v1861_v25 = vld [vmem:[%s4132_s0 + $0x98] sm:$0xe]  ;;  %v1862_v26 = vld [vmem:[%s4132_s0 + $0x9c] sm:$0x1]  ;;  %v1980_v30 = vrot.slane %v1860_v20, 5  ;;  %v3274_v32 = vld [vmem:[#allocation2 + $0x48] sm:$0xff]  }
  0x64   :  { %v1977_v24 = vsel %vm3633_vm8, %v2912_v17, %v1976_v18  ;;  %v2914_v31 = vrot.slane %v1861_v25, 9  ;;  %v1984_v33 = vrot.slane %v1862_v26, 5  ;;  %v3277_v38 = vld [vmem:[#allocation2 + $0x4] sm:$0xff]   ;;  %v3281_v41 = vld [vmem:[#allocation2 + $0x14] sm:$0xff]   ;;  %v3282_v28 = vld [vmem:[#allocation2 + $0x1c] sm:$0xff]  }
  0x65   :  { %3141 = vmatmul.mubr.msk.bf16.vlgmr.msra.gmra.mxu1 %vm19_vm4, %v3262_v19  ;;  %v1859_v19 = vld [vmem:[%s4132_s0 + $0x90] sm:$0xe]  ;;  %2023 = vst.msk [vmem:[#allocation2 + $0x44] sm:$0xf] %vm56_vm1, %v1977_v24  ;;  %v3279_v39 = vld [vmem:[#allocation2 + $0x8] sm:$0xff]   ;;  %v3283_v43 = vld [vmem:[#allocation2 + $0x18] sm:$0xff]  }
  0x66   :  { %3175 = vmatpush3.bf16.msra.mxu1 %v2355_v45  ;;  %3144 = vmatprep.mubr.msk.bf16.mxu1 %vm19_vm4, %v3265_v23  ;;  %v1973_v23 = vsel %vm3633_vm8, %v2911_v15, %v1972_v16  ;;  %v2913_v29 = vrot.slane %v1859_v19, 9  ;;  %v1985_v35 = vsel %vm3633_vm8, %v2914_v31, %v1984_v33  ;;  %v3272_v36 = vld [vmem:[#allocation2 + $0x30] sm:$0xff]   ;;  %v3284_v45 = vld [vmem:[#allocation2 + $0x20] sm:$0xff]   ;;  %v96_v4 = vld [vmem:[#allocation3 + $0x18] sm:$0xff] }
  0x67   :  { %2022 = vst.msk [vmem:[#allocation2 + $0x40] sm:$0xf] %vm56_vm1, %v1973_v23  ;;  %2025 = vst.msk [vmem:[#allocation2 + $0x4c] sm:$0xf] %vm56_vm1, %v1985_v35  ;;  %v3280_v42 = vld [vmem:[#allocation2 + $0x10] sm:$0xff]   ;;  %v103_v53 = vld [vmem:[#allocation3 + $0x50] sm:$0xff] }
  0x68   :  { %v1981_v34 = vsel %vm3633_vm8, %v2913_v29, %v1980_v30  ;;  %v3285_v44 = vld [vmem:[#allocation2 + $0x2c] sm:$0xff]   ;;  %v3286_v47 = vld [vmem:[#allocation2 + $0x34] sm:$0xff]   ;;  %v95_v57 = vld [vmem:[#allocation3 + $0x10] sm:$0xff] }
  0x69   :  { %2024 = vst.msk [vmem:[#allocation2 + $0x48] sm:$0xf] %vm56_vm1, %v1981_v34  ;;  %v3275_v37 = vld [vmem:[#allocation2 + $0x38] sm:$0xff]   ;;  %v101_v55 = vld [vmem:[#allocation3 + $0x40] sm:$0xff]  ;;  %v107_v7 = vld [vmem:[#allocation3 + $0x70] sm:$0xff] }
  0x6a   :  { %3159 = vmatmul.mubr.msk.bf16.vlgmr.msra.gmra.mxu0 %vm19_vm4, %v3264_v58  ;;  %v3288_v49 = vld [vmem:[#allocation2 + $0x38] sm:$0xff]   ;;  %v93_v62 = vld [vmem:[#allocation3] sm:$0xff]  ;;  %v99_v18 = vld [vmem:[#allocation3 + $0x30] sm:$0xff] }
  0x6b   :  { %3193 = vmatpush3.bf16.msra.mxu0 %v2585_v59  ;;  %3162 = vmatprep.mubr.msk.bf16.mxu0 %vm19_vm4, %v3267_v1  ;;  %v104_v59 = vld [vmem:[#allocation3 + $0x58] sm:$0xff]  ;;  %v102_v1 = vld [vmem:[#allocation3 + $0x48] sm:$0xff]  ;;  %v105_v13 = vld [vmem:[#allocation3 + $0x60] sm:$0xff] }
  0x6c   :  { %v94_v10 = vld [vmem:[#allocation3 + $0x8] sm:$0xff]  ;;  %v108_v19 = vld [vmem:[#allocation3 + $0x78] sm:$0xff]  ;;  %v97_v24 = vld [vmem:[#allocation3 + $0x20] sm:$0xff] }
  0x6d   :  { %3145 = vmatmul.mubr.msk.bf16.gmra.mxu1 %vm19_vm4, %v3266_v46  ;;  %v3287_v46 = vld [vmem:[#allocation2 + $0x30] sm:$0xff]   ;;  %v106_v25 = vld [vmem:[#allocation3 + $0x68] sm:$0xff]  ;;  %v100_v31 = vld [vmem:[#allocation3 + $0x38] sm:$0xff] }
  0x6e   :  { %3148 = vmatprep.mubr.msk.bf16.mxu1 %vm19_vm4, %v3269_v52  ;;  %v3276_v22 = vld [vmem:[#allocation2 + $0x40] sm:$0xff]  }
  0x6f   :  { %v3289_v48 = vld [vmem:[#allocation2 + $0x3c] sm:$0xff]  }
  0x70   :  { %v3291_v50 = vld [vmem:[#allocation2 + $0x40] sm:$0xff]   ;;  %v3292_v52 = vld [vmem:[#allocation2 + $0x48] sm:$0xff]  }
  0x71   :  { %v3290_v51 = vld [vmem:[#allocation2 + $0x44] sm:$0xff]  }
  0x72   :  { %3163 = vmatmul.mubr.msk.bf16.gmra.mxu0 %vm19_vm4, %v3268_v27 }
  0x73   :  { %3166 = vmatprep.mubr.msk.bf16.mxu0 %vm19_vm4, %v3271_v21 }
  0x75   :  { %3149 = vmatmul.mubr.msk.bf16.gmra.mxu1 %vm19_vm4, %v3270_v6 }
  0x76   :  { %3152 = vmatprep.mubr.msk.bf16.mxu1 %vm19_vm4, %v3273_v9 }
  0x7a   :  { %3167 = vmatmul.mubr.msk.bf16.gmra.mxu0 %vm19_vm4, %v3272_v36 }
  0x7b   :  { %3170 = vmatprep.mubr.msk.bf16.mxu0 %vm19_vm4, %v3275_v37  ;;  %v98_v37 = vld [vmem:[#allocation3 + $0x28] sm:$0xff] }
  0x7d   :  { %3153 = vmatmul.mubr.msk.bf16.gmra.mxu1 %vm19_vm4, %v3274_v32 }
  0x7e   :  { %3176 = vmatprep.mubr.msk.bf16.mxu1 %vm19_vm4, %v3277_v38 }
  0x82   :  { %3171 = vmatmul.mubr.msk.bf16.gmra.mxu0 %vm19_vm4, %v3276_v22 }
  0x83   :  { %3194 = vmatprep.mubr.msk.bf16.mxu0 %vm19_vm4, %v3279_v39 }
  0x85   :  { %3177 = vmatmul.mubr.msk.bf16.vlgmr.msra.gmra.mxu1 %vm19_vm4, %v3278_v40 }
  0x86   :  { %3180 = vmatprep.mubr.msk.bf16.mxu1 %vm19_vm4, %v3281_v41 }
  0x8a   :  { %3195 = vmatmul.mubr.msk.bf16.vlgmr.msra.gmra.mxu0 %vm19_vm4, %v3280_v42 }
  0x8b   :  { %3198 = vmatprep.mubr.msk.bf16.mxu0 %vm19_vm4, %v3283_v43 }
  0x8d   :  { %3181 = vmatmul.mubr.msk.bf16.gmra.mxu1 %vm19_vm4, %v3282_v28 }
  0x8e   :  { %3184 = vmatprep.mubr.msk.bf16.mxu1 %vm19_vm4, %v3285_v44 }
  0x92   :  { %3199 = vmatmul.mubr.msk.bf16.gmra.mxu0 %vm19_vm4, %v3284_v45 }
  0x93   :  { %3202 = vmatprep.mubr.msk.bf16.mxu0 %vm19_vm4, %v3287_v46 }
  0x95   :  { %3185 = vmatmul.mubr.msk.bf16.gmra.mxu1 %vm19_vm4, %v3286_v47 }
  0x96   :  { %3188 = vmatprep.mubr.msk.bf16.mxu1 %vm19_vm4, %v3289_v48 }
  0x9a   :  { %3203 = vmatmul.mubr.msk.bf16.gmra.mxu0 %vm19_vm4, %v3288_v49 }
  0x9b   :  { %3206 = vmatprep.mubr.msk.bf16.mxu0 %vm19_vm4, %v3291_v50 }
  0x9d   :  { %3189 = vmatmul.mubr.msk.bf16.gmra.mxu1 %vm19_vm4, %v3290_v51 }
  0xa2   :  { %3207 = vmatmul.mubr.msk.bf16.gmra.mxu0 %vm19_vm4, %v3292_v52 }
  0xd0   :  { %v3060_v54 = vpop.f32.mrf.mxu1 }
  0xd1   :  { %v286_v56 = vadd.f32 %v3060_v54, %v103_v53 }
  0xd2   :  { %v245_v58 = vpop.f32.mrf.mxu1 }
  0xd3   :  { %302 = vst.msk [vmem:[#allocation3 + $0x50] sm:$0xff] %vm19_vm4, %v286_v56  ;;  %v284_v60 = vadd.f32 %v245_v58, %v101_v55  ;;  %v3052_v61 = vpop.f32.mrf.mxu0 }
  0xd4   :  { %v278_v63 = vadd.f32 %v3052_v61, %v95_v57  ;;  %v3061_v0 = vpop.f32.mrf.mxu1 }
  0xd5   :  { %300 = vst.msk [vmem:[#allocation3 + $0x40] sm:$0xff] %vm19_vm4, %v284_v60  ;;  %v287_v2 = vadd.f32 %v3061_v0, %v104_v59  ;;  %v213_v3 = vpop.f32.mrf.mxu0 }
  0xd6   :  { %294 = vst.msk [vmem:[#allocation3 + $0x10] sm:$0xff] %vm19_vm4, %v278_v63  ;;  %v276_v5 = vadd.f32 %v213_v3, %v93_v62  ;;  %v248_v6 = vpop.f32.mrf.mxu1 }
  0xd7   :  { %303 = vst.msk [vmem:[#allocation3 + $0x58] sm:$0xff] %vm19_vm4, %v287_v2  ;;  %v285_v8 = vadd.f32 %v248_v6, %v102_v1  ;;  %v3053_v9 = vpop.f32.mrf.mxu0 }
  0xd8   :  { %292 = vst.msk [vmem:[#allocation3] sm:$0xff] %vm19_vm4, %v276_v5  ;;  %v279_v11 = vadd.f32 %v3053_v9, %v96_v4  ;;  %v3064_v12 = vpop.f32.mrf.mxu1 }
  0xd9   :  { %301 = vst.msk [vmem:[#allocation3 + $0x48] sm:$0xff] %vm19_vm4, %v285_v8  ;;  %v290_v14 = vadd.f32 %v3064_v12, %v107_v7  ;;  %v216_v15 = vpop.f32.mrf.mxu0 }
  0xda   :  { %295 = vst.msk [vmem:[#allocation3 + $0x18] sm:$0xff] %vm19_vm4, %v279_v11  ;;  %v277_v16 = vadd.f32 %v216_v15, %v94_v10  ;;  %v261_v17 = vpop.f32.mrf.mxu1  ;;  %v335_v11 = vld [vmem:[#allocation3 + $0x50] sm:$0xff] }
  0xdb   :  { %306 = vst.msk [vmem:[#allocation3 + $0x70] sm:$0xff] %vm19_vm4, %v290_v14  ;;  %v288_v20 = vadd.f32 %v261_v17, %v105_v13  ;;  %v3056_v21 = vpop.f32.mrf.mxu0 }
  0xdc   :  { %293 = vst.msk [vmem:[#allocation3 + $0x8] sm:$0xff] %vm19_vm4, %v277_v16  ;;  %v3065_v23 = vpop.f32.mrf.mxu1  ;;  %v282_v26 = vadd.f32 %v3056_v21, %v99_v18  ;;  %v333_v16 = vld [vmem:[#allocation3 + $0x40] sm:$0xff] }
  0xdd   :  { %304 = vst.msk [vmem:[#allocation3 + $0x60] sm:$0xff] %vm19_vm4, %v288_v20  ;;  %v291_v27 = vadd.f32 %v3065_v23, %v108_v19  ;;  %v229_v29 = vpop.f32.mrf.mxu0  ;;  %v327_v32 = vld [vmem:[#allocation3 + $0x10] sm:$0xff] }
  0xde   :  { %v264_v30 = vpop.f32.mrf.mxu1  ;;  %298 = vst.msk [vmem:[#allocation3 + $0x30] sm:$0xff] %vm19_vm4, %v282_v26  ;;  %v280_v33 = vadd.f32 %v229_v29, %v97_v24  ;;  %v336_v23 = vld [vmem:[#allocation3 + $0x58] sm:$0xff] }
  0xdf   :  { %307 = vst.msk [vmem:[#allocation3 + $0x78] sm:$0xff] %vm19_vm4, %v291_v27  ;;  %v289_v34 = vadd.f32 %v264_v30, %v106_v25  ;;  %v3057_v35 = vpop.f32.mrf.mxu0  ;;  %v325_v38 = vld [vmem:[#allocation3] sm:$0xff] }
  0xe0   :  { %v3070_v36 = vpop.f32.mrf.mxu1  ;;  %296 = vst.msk [vmem:[#allocation3 + $0x20] sm:$0xff] %vm19_vm4, %v280_v33  ;;  %v283_v22 = vadd.f32 %v3057_v35, %v100_v31  ;;  %v334_v30 = vld [vmem:[#allocation3 + $0x48] sm:$0xff] }
  0xe1   :  { %305 = vst.msk [vmem:[#allocation3 + $0x68] sm:$0xff] %vm19_vm4, %v289_v34  ;;  %v509_v39 = vadd.f32 %v3070_v36, %v327_v32  ;;  %v232_v40 = vpop.f32.mrf.mxu0  ;;  %v328_v42 = vld [vmem:[#allocation3 + $0x18] sm:$0xff] }
  0xe2   :  { %v444_v41 = vpop.f32.mrf.mxu1  ;;  %299 = vst.msk [vmem:[#allocation3 + $0x38] sm:$0xff] %vm19_vm4, %v283_v22  ;;  %v281_v43 = vadd.f32 %v232_v40, %v98_v37 }
  0xe3   :  { %525 = vst.msk [vmem:[#allocation3 + $0x10] sm:$0xff] %vm19_vm4, %v509_v39  ;;  %v507_v28 = vadd.f32 %v444_v41, %v325_v38  ;;  %v3088_v45 = vpop.f32.mrf.mxu0  ;;  %v326_v47 = vld [vmem:[#allocation3 + $0x8] sm:$0xff] }
  0xe4   :  { %v3071_v44 = vpop.f32.mrf.mxu1  ;;  %297 = vst.msk [vmem:[#allocation3 + $0x28] sm:$0xff] %vm19_vm4, %v281_v43  ;;  %v339_v43 = vld [vmem:[#allocation3 + $0x70] sm:$0xff] }
  0xe5   :  { %523 = vst.msk [vmem:[#allocation3] sm:$0xff] %vm19_vm4, %v507_v28  ;;  %v510_v46 = vadd.f32 %v3071_v44, %v328_v42  ;;  %v675_v49 = vpop.f32.mrf.mxu0  ;;  %v331_v52 = vld [vmem:[#allocation3 + $0x30] sm:$0xff] }
  0xe6   :  { %v447_v48 = vpop.f32.mrf.mxu1 }
  0xe7   :  { %526 = vst.msk [vmem:[#allocation3 + $0x18] sm:$0xff] %vm19_vm4, %v510_v46  ;;  %v508_v50 = vadd.f32 %v447_v48, %v326_v47  ;;  %v3089_v51 = vpop.f32.mrf.mxu0  ;;  %v329_v56 = vld [vmem:[#allocation3 + $0x20] sm:$0xff] }
  0xe8   :  { %v3074_v55 = vpop.f32.mrf.mxu1  ;;  %v337_v48 = vld [vmem:[#allocation3 + $0x60] sm:$0xff] }
  0xe9   :  { %524 = vst.msk [vmem:[#allocation3 + $0x8] sm:$0xff] %vm19_vm4, %v508_v50  ;;  %v513_v58 = vadd.f32 %v3074_v55, %v331_v52  ;;  %v678_v59 = vpop.f32.mrf.mxu0  ;;  %v332_v62 = vld [vmem:[#allocation3 + $0x38] sm:$0xff]  ;;  %v338_v55 = vld [vmem:[#allocation3 + $0x68] sm:$0xff] }
  0xea   :  { %v558_v53 = vld [vmem:[#allocation3 + $0x10] sm:$0xff]  ;;  %v460_v61 = vpop.f32.mrf.mxu1 }
  0xeb   :  { %v740_v54 = vadd.f32 %v3088_v45, %v558_v53  ;;  %529 = vst.msk [vmem:[#allocation3 + $0x30] sm:$0xff] %vm19_vm4, %v513_v58  ;;  %v511_v0 = vadd.f32 %v460_v61, %v329_v56  ;;  %v330_v7 = vld [vmem:[#allocation3 + $0x28] sm:$0xff] }
  0xec   :  { %v556_v57 = vld [vmem:[#allocation3] sm:$0xff]  ;;  %v3075_v2 = vpop.f32.mrf.mxu1  ;;  %v3092_v5 = vpop.f32.mrf.mxu0 }
  0xed   :  { %756 = vst.msk [vmem:[#allocation3 + $0x10] sm:$0xff] %vm19_vm4, %v740_v54  ;;  %v738_v60 = vadd.f32 %v675_v49, %v556_v57  ;;  %527 = vst.msk [vmem:[#allocation3 + $0x20] sm:$0xff] %vm19_vm4, %v511_v0  ;;  %v514_v4 = vadd.f32 %v3075_v2, %v332_v62 }
  0xee   :  { %v559_v63 = vld [vmem:[#allocation3 + $0x18] sm:$0xff]  ;;  %v463_v8 = vpop.f32.mrf.mxu1  ;;  %v691_v10 = vpop.f32.mrf.mxu0 }
  0xef   :  { %754 = vst.msk [vmem:[#allocation3] sm:$0xff] %vm19_vm4, %v738_v60  ;;  %v741_v1 = vadd.f32 %v3089_v51, %v559_v63  ;;  %530 = vst.msk [vmem:[#allocation3 + $0x38] sm:$0xff] %vm19_vm4, %v514_v4  ;;  %v512_v9 = vadd.f32 %v463_v8, %v330_v7  ;;  %v340_v51 = vld [vmem:[#allocation3 + $0x78] sm:$0xff] }
  0xf0   :  { %v557_v3 = vld [vmem:[#allocation3 + $0x8] sm:$0xff]  ;;  %v3078_v12 = vpop.f32.mrf.mxu1  ;;  %v3093_v14 = vpop.f32.mrf.mxu0 }
  0xf1   :  { %757 = vst.msk [vmem:[#allocation3 + $0x18] sm:$0xff] %vm19_vm4, %v741_v1  ;;  %v739_v6 = vadd.f32 %v678_v59, %v557_v3  ;;  %528 = vst.msk [vmem:[#allocation3 + $0x28] sm:$0xff] %vm19_vm4, %v512_v9  ;;  %v517_v13 = vadd.f32 %v3078_v12, %v335_v11 }
  0xf2   :  { %v562_v15 = vld [vmem:[#allocation3 + $0x30] sm:$0xff]  ;;  %v476_v17 = vpop.f32.mrf.mxu1  ;;  %v694_v20 = vpop.f32.mrf.mxu0 }
  0xf3   :  { %755 = vst.msk [vmem:[#allocation3 + $0x8] sm:$0xff] %vm19_vm4, %v739_v6  ;;  %v744_v18 = vadd.f32 %v3092_v5, %v562_v15  ;;  %533 = vst.msk [vmem:[#allocation3 + $0x50] sm:$0xff] %vm19_vm4, %v517_v13  ;;  %v515_v19 = vadd.f32 %v476_v17, %v333_v16 }
  0xf4   :  { %v560_v21 = vld [vmem:[#allocation3 + $0x20] sm:$0xff]  ;;  %v3079_v24 = vpop.f32.mrf.mxu1  ;;  %v3096_v27 = vpop.f32.mrf.mxu0  ;;  %v1151_v59 = vld [vmem:[#allocation3 + $0x10] sm:$0xff] }
  0xf5   :  { %760 = vst.msk [vmem:[#allocation3 + $0x30] sm:$0xff] %vm19_vm4, %v744_v18  ;;  %v742_v25 = vadd.f32 %v691_v10, %v560_v21  ;;  %531 = vst.msk [vmem:[#allocation3 + $0x40] sm:$0xff] %vm19_vm4, %v515_v19  ;;  %v518_v26 = vadd.f32 %v3079_v24, %v336_v23 }
  0xf6   :  { %v563_v29 = vld [vmem:[#allocation3 + $0x38] sm:$0xff]  ;;  %v479_v31 = vpop.f32.mrf.mxu1  ;;  %v707_v35 = vpop.f32.mrf.mxu0  ;;  %v1149_v0 = vld [vmem:[#allocation3] sm:$0xff] }
  0xf7   :  { %758 = vst.msk [vmem:[#allocation3 + $0x20] sm:$0xff] %vm19_vm4, %v742_v25  ;;  %v745_v32 = vadd.f32 %v3093_v14, %v563_v29  ;;  %534 = vst.msk [vmem:[#allocation3 + $0x58] sm:$0xff] %vm19_vm4, %v518_v26  ;;  %v516_v33 = vadd.f32 %v479_v31, %v334_v30 }
  0xf8   :  { %v561_v34 = vld [vmem:[#allocation3 + $0x28] sm:$0xff]  ;;  %v3097_v39 = vpop.f32.mrf.mxu0  ;;  %v1152_v6 = vld [vmem:[#allocation3 + $0x18] sm:$0xff] }
  0xf9   :  { %761 = vst.msk [vmem:[#allocation3 + $0x38] sm:$0xff] %vm19_vm4, %v745_v32  ;;  %v743_v36 = vadd.f32 %v694_v20, %v561_v34  ;;  %532 = vst.msk [vmem:[#allocation3 + $0x48] sm:$0xff] %vm19_vm4, %v516_v33 }
  0xfa   :  { %v566_v37 = vld [vmem:[#allocation3 + $0x50] sm:$0xff]  ;;  %v710_v45 = vpop.f32.mrf.mxu0  ;;  %v1150_v12 = vld [vmem:[#allocation3 + $0x8] sm:$0xff] }
  0xfb   :  { %759 = vst.msk [vmem:[#allocation3 + $0x28] sm:$0xff] %vm19_vm4, %v743_v36  ;;  %v748_v38 = vadd.f32 %v3096_v27, %v566_v37 }
  0xfc   :  { %v564_v22 = vld [vmem:[#allocation3 + $0x40] sm:$0xff]  ;;  %v1155_v18 = vld [vmem:[#allocation3 + $0x30] sm:$0xff] }
  0xfd   :  { %764 = vst.msk [vmem:[#allocation3 + $0x50] sm:$0xff] %vm19_vm4, %v748_v38  ;;  %v746_v40 = vadd.f32 %v707_v35, %v564_v22  ;;  %v3082_v28 = vpop.f32.mrf.mxu1 }
  0xfe   :  { %v567_v41 = vld [vmem:[#allocation3 + $0x58] sm:$0xff]  ;;  %v521_v46 = vadd.f32 %v3082_v28, %v339_v43  ;;  %v1153_v25 = vld [vmem:[#allocation3 + $0x20] sm:$0xff] }
  0xff   :  { %762 = vst.msk [vmem:[#allocation3 + $0x40] sm:$0xff] %vm19_vm4, %v746_v40  ;;  %v749_v42 = vadd.f32 %v3097_v39, %v567_v41  ;;  %v492_v49 = vpop.f32.mrf.mxu1 }
 0x100   :  { %v565_v44 = vld [vmem:[#allocation3 + $0x48] sm:$0xff]  ;;  %537 = vst.msk [vmem:[#allocation3 + $0x70] sm:$0xff] %vm19_vm4, %v521_v46  ;;  %v519_v50 = vadd.f32 %v492_v49, %v337_v48  ;;  %v1156_v32 = vld [vmem:[#allocation3 + $0x38] sm:$0xff] }
 0x101   :  { %765 = vst.msk [vmem:[#allocation3 + $0x58] sm:$0xff] %vm19_vm4, %v749_v42  ;;  %v747_v47 = vadd.f32 %v710_v45, %v565_v44  ;;  %v3083_v52 = vpop.f32.mrf.mxu1 }
 0x102   :  { %535 = vst.msk [vmem:[#allocation3 + $0x60] sm:$0xff] %vm19_vm4, %v519_v50  ;;  %v522_v53 = vadd.f32 %v3083_v52, %v340_v51  ;;  %v3100_v54 = vpop.f32.mrf.mxu0  ;;  %v1154_v38 = vld [vmem:[#allocation3 + $0x28] sm:$0xff] }
 0x103   :  { %763 = vst.msk [vmem:[#allocation3 + $0x48] sm:$0xff] %vm19_vm4, %v747_v47  ;;  %v495_v56 = vpop.f32.mrf.mxu1 }
 0x104   :  { %538 = vst.msk [vmem:[#allocation3 + $0x78] sm:$0xff] %vm19_vm4, %v522_v53  ;;  %v520_v57 = vadd.f32 %v495_v56, %v338_v55  ;;  %v723_v58 = vpop.f32.mrf.mxu0  ;;  %v1159_v43 = vld [vmem:[#allocation3 + $0x50] sm:$0xff] }
 0x105   :  { %v3106_v60 = vpop.f32.mrf.mxu1 }
 0x106   :  { %536 = vst.msk [vmem:[#allocation3 + $0x68] sm:$0xff] %vm19_vm4, %v520_v57  ;;  %v3101_v61 = vpop.f32.mrf.mxu0  ;;  %v1333_v62 = vadd.f32 %v3106_v60, %v1151_v59  ;;  %v1157_v48 = vld [vmem:[#allocation3 + $0x40] sm:$0xff] }
 0x107   :  { %v570_v63 = vld [vmem:[#allocation3 + $0x70] sm:$0xff]  ;;  %v1268_v1 = vpop.f32.mrf.mxu1 }
 0x108   :  { %v752_v2 = vadd.f32 %v3100_v54, %v570_v63  ;;  %1349 = vst.msk [vmem:[#allocation3 + $0x10] sm:$0xff] %vm19_vm4, %v1333_v62  ;;  %v726_v3 = vpop.f32.mrf.mxu0  ;;  %v1331_v4 = vadd.f32 %v1268_v1, %v1149_v0  ;;  %v1160_v54 = vld [vmem:[#allocation3 + $0x58] sm:$0xff] }
 0x109   :  { %v568_v5 = vld [vmem:[#allocation3 + $0x60] sm:$0xff]  ;;  %v3107_v7 = vpop.f32.mrf.mxu1 }
 0x10a   :  { %768 = vst.msk [vmem:[#allocation3 + $0x70] sm:$0xff] %vm19_vm4, %v752_v2  ;;  %v750_v8 = vadd.f32 %v723_v58, %v568_v5  ;;  %1347 = vst.msk [vmem:[#allocation3] sm:$0xff] %vm19_vm4, %v1331_v4  ;;  %v1334_v9 = vadd.f32 %v3107_v7, %v1152_v6  ;;  %v3124_v10 = vpop.f32.mrf.mxu0  ;;  %v1158_v60 = vld [vmem:[#allocation3 + $0x48] sm:$0xff] }
 0x10b   :  { %v571_v11 = vld [vmem:[#allocation3 + $0x78] sm:$0xff]  ;;  %v1271_v13 = vpop.f32.mrf.mxu1 }
 0x10c   :  { %766 = vst.msk [vmem:[#allocation3 + $0x60] sm:$0xff] %vm19_vm4, %v750_v8  ;;  %v753_v14 = vadd.f32 %v3101_v61, %v571_v11  ;;  %1350 = vst.msk [vmem:[#allocation3 + $0x18] sm:$0xff] %vm19_vm4, %v1334_v9  ;;  %v1332_v15 = vadd.f32 %v1271_v13, %v1150_v12  ;;  %v1498_v16 = vpop.f32.mrf.mxu0 }
 0x10d   :  { %v569_v17 = vld [vmem:[#allocation3 + $0x68] sm:$0xff]  ;;  %v3110_v19 = vpop.f32.mrf.mxu1 }
 0x10e   :  { %769 = vst.msk [vmem:[#allocation3 + $0x78] sm:$0xff] %vm19_vm4, %v753_v14  ;;  %v751_v20 = vadd.f32 %v726_v3, %v569_v17  ;;  %1348 = vst.msk [vmem:[#allocation3 + $0x8] sm:$0xff] %vm19_vm4, %v1332_v15  ;;  %v1337_v21 = vadd.f32 %v3110_v19, %v1155_v18  ;;  %v3125_v23 = vpop.f32.mrf.mxu0 }
 0x10f   :  { %v1381_v24 = vld [vmem:[#allocation3 + $0x10] sm:$0xff]  ;;  %v1284_v26 = vpop.f32.mrf.mxu1 }
 0x110   :  { %767 = vst.msk [vmem:[#allocation3 + $0x68] sm:$0xff] %vm19_vm4, %v751_v20  ;;  %v1563_v27 = vadd.f32 %v3124_v10, %v1381_v24  ;;  %1353 = vst.msk [vmem:[#allocation3 + $0x30] sm:$0xff] %vm19_vm4, %v1337_v21  ;;  %v1335_v29 = vadd.f32 %v1284_v26, %v1153_v25  ;;  %v1501_v30 = vpop.f32.mrf.mxu0 }
 0x111   :  { %v1379_v31 = vld [vmem:[#allocation3] sm:$0xff]  ;;  %v3111_v33 = vpop.f32.mrf.mxu1  ;;  %v1163_v2 = vld [vmem:[#allocation3 + $0x70] sm:$0xff] }
 0x112   :  { %1579 = vst.msk [vmem:[#allocation3 + $0x10] sm:$0xff] %vm19_vm4, %v1563_v27  ;;  %v1561_v34 = vadd.f32 %v1498_v16, %v1379_v31  ;;  %1351 = vst.msk [vmem:[#allocation3 + $0x20] sm:$0xff] %vm19_vm4, %v1335_v29  ;;  %v1338_v35 = vadd.f32 %v3111_v33, %v1156_v32  ;;  %v3128_v36 = vpop.f32.mrf.mxu0 }
 0x113   :  { %v1382_v37 = vld [vmem:[#allocation3 + $0x18] sm:$0xff]  ;;  %v1287_v22 = vpop.f32.mrf.mxu1  ;;  %v1161_v8 = vld [vmem:[#allocation3 + $0x60] sm:$0xff] }
 0x114   :  { %1577 = vst.msk [vmem:[#allocation3] sm:$0xff] %vm19_vm4, %v1561_v34  ;;  %v1564_v39 = vadd.f32 %v3125_v23, %v1382_v37  ;;  %1354 = vst.msk [vmem:[#allocation3 + $0x38] sm:$0xff] %vm19_vm4, %v1338_v35  ;;  %v1336_v40 = vadd.f32 %v1287_v22, %v1154_v38  ;;  %v1514_v41 = vpop.f32.mrf.mxu0 }
 0x115   :  { %v1380_v42 = vld [vmem:[#allocation3 + $0x8] sm:$0xff]  ;;  %v3114_v28 = vpop.f32.mrf.mxu1  ;;  %v1164_v14 = vld [vmem:[#allocation3 + $0x78] sm:$0xff] }
 0x116   :  { %1580 = vst.msk [vmem:[#allocation3 + $0x18] sm:$0xff] %vm19_vm4, %v1564_v39  ;;  %v1562_v44 = vadd.f32 %v1501_v30, %v1380_v42  ;;  %1352 = vst.msk [vmem:[#allocation3 + $0x28] sm:$0xff] %vm19_vm4, %v1336_v40  ;;  %v1341_v45 = vadd.f32 %v3114_v28, %v1159_v43  ;;  %v3129_v46 = vpop.f32.mrf.mxu0 }
 0x117   :  { %v1385_v47 = vld [vmem:[#allocation3 + $0x30] sm:$0xff]  ;;  %v1300_v49 = vpop.f32.mrf.mxu1  ;;  %v1162_v20 = vld [vmem:[#allocation3 + $0x68] sm:$0xff] }
 0x118   :  { %1578 = vst.msk [vmem:[#allocation3 + $0x8] sm:$0xff] %vm19_vm4, %v1562_v44  ;;  %v1567_v50 = vadd.f32 %v3128_v36, %v1385_v47  ;;  %1357 = vst.msk [vmem:[#allocation3 + $0x50] sm:$0xff] %vm19_vm4, %v1341_v45  ;;  %v1339_v51 = vadd.f32 %v1300_v49, %v1157_v48  ;;  %v1517_v52 = vpop.f32.mrf.mxu0 }
 0x119   :  { %v1383_v53 = vld [vmem:[#allocation3 + $0x20] sm:$0xff]  ;;  %v3115_v55 = vpop.f32.mrf.mxu1  ;;  %v1611_v27 = vld [vmem:[#allocation3 + $0x10] sm:$0xff] }
 0x11a   :  { %1583 = vst.msk [vmem:[#allocation3 + $0x30] sm:$0xff] %vm19_vm4, %v1567_v50  ;;  %v1565_v56 = vadd.f32 %v1514_v41, %v1383_v53  ;;  %1355 = vst.msk [vmem:[#allocation3 + $0x40] sm:$0xff] %vm19_vm4, %v1339_v51  ;;  %v1342_v57 = vadd.f32 %v3115_v55, %v1160_v54  ;;  %v3132_v58 = vpop.f32.mrf.mxu0 }
 0x11b   :  { %v1386_v59 = vld [vmem:[#allocation3 + $0x38] sm:$0xff]  ;;  %v1303_v61 = vpop.f32.mrf.mxu1  ;;  %v1609_v34 = vld [vmem:[#allocation3] sm:$0xff] }
 0x11c   :  { %1581 = vst.msk [vmem:[#allocation3 + $0x20] sm:$0xff] %vm19_vm4, %v1565_v56  ;;  %v1568_v62 = vadd.f32 %v3129_v46, %v1386_v59  ;;  %1358 = vst.msk [vmem:[#allocation3 + $0x58] sm:$0xff] %vm19_vm4, %v1342_v57  ;;  %v1340_v63 = vadd.f32 %v1303_v61, %v1158_v60  ;;  %v1530_v0 = vpop.f32.mrf.mxu0 }
 0x11d   :  { %v1384_v1 = vld [vmem:[#allocation3 + $0x28] sm:$0xff]  ;;  %v3118_v3 = vpop.f32.mrf.mxu1  ;;  %v1612_v39 = vld [vmem:[#allocation3 + $0x18] sm:$0xff] }
 0x11e   :  { %1584 = vst.msk [vmem:[#allocation3 + $0x38] sm:$0xff] %vm19_vm4, %v1568_v62  ;;  %v1566_v4 = vadd.f32 %v1517_v52, %v1384_v1  ;;  %1356 = vst.msk [vmem:[#allocation3 + $0x48] sm:$0xff] %vm19_vm4, %v1340_v63  ;;  %v1345_v5 = vadd.f32 %v3118_v3, %v1163_v2  ;;  %v3133_v6 = vpop.f32.mrf.mxu0 }
 0x11f   :  { %v1389_v7 = vld [vmem:[#allocation3 + $0x50] sm:$0xff]  ;;  %v1316_v9 = vpop.f32.mrf.mxu1  ;;  %v1610_v44 = vld [vmem:[#allocation3 + $0x8] sm:$0xff] }
 0x120   :  { %1582 = vst.msk [vmem:[#allocation3 + $0x28] sm:$0xff] %vm19_vm4, %v1566_v4  ;;  %v1571_v10 = vadd.f32 %v3132_v58, %v1389_v7  ;;  %1361 = vst.msk [vmem:[#allocation3 + $0x70] sm:$0xff] %vm19_vm4, %v1345_v5  ;;  %v1343_v11 = vadd.f32 %v1316_v9, %v1161_v8  ;;  %v1533_v12 = vpop.f32.mrf.mxu0 }
 0x121   :  { %v1387_v13 = vld [vmem:[#allocation3 + $0x40] sm:$0xff]  ;;  %v3119_v15 = vpop.f32.mrf.mxu1  ;;  %v1615_v50 = vld [vmem:[#allocation3 + $0x30] sm:$0xff] }
 0x122   :  { %1587 = vst.msk [vmem:[#allocation3 + $0x50] sm:$0xff] %vm19_vm4, %v1571_v10  ;;  %v1569_v16 = vadd.f32 %v1530_v0, %v1387_v13  ;;  %1359 = vst.msk [vmem:[#allocation3 + $0x60] sm:$0xff] %vm19_vm4, %v1343_v11  ;;  %v1346_v17 = vadd.f32 %v3119_v15, %v1164_v14  ;;  %v3136_v18 = vpop.f32.mrf.mxu0 }
 0x123   :  { %v1390_v19 = vld [vmem:[#allocation3 + $0x58] sm:$0xff]  ;;  %v1319_v21 = vpop.f32.mrf.mxu1  ;;  %v1613_v56 = vld [vmem:[#allocation3 + $0x20] sm:$0xff] }
 0x124   :  { %1585 = vst.msk [vmem:[#allocation3 + $0x40] sm:$0xff] %vm19_vm4, %v1569_v16  ;;  %v1572_v23 = vadd.f32 %v3133_v6, %v1390_v19  ;;  %1362 = vst.msk [vmem:[#allocation3 + $0x78] sm:$0xff] %vm19_vm4, %v1346_v17  ;;  %v1344_v24 = vadd.f32 %v1319_v21, %v1162_v20  ;;  %v1546_v25 = vpop.f32.mrf.mxu0 }
 0x125   :  { %v1388_v26 = vld [vmem:[#allocation3 + $0x48] sm:$0xff]  ;;  %v3142_v29 = vpop.f32.mrf.mxu1  ;;  %v1616_v62 = vld [vmem:[#allocation3 + $0x38] sm:$0xff] }
 0x126   :  { %1588 = vst.msk [vmem:[#allocation3 + $0x58] sm:$0xff] %vm19_vm4, %v1572_v23  ;;  %v1570_v30 = vadd.f32 %v1533_v12, %v1388_v26  ;;  %1360 = vst.msk [vmem:[#allocation3 + $0x68] sm:$0xff] %vm19_vm4, %v1344_v24  ;;  %v3137_v31 = vpop.f32.mrf.mxu0  ;;  %v1793_v32 = vadd.f32 %v3142_v29, %v1611_v27 }
 0x127   :  { %v1393_v33 = vld [vmem:[#allocation3 + $0x70] sm:$0xff]  ;;  %v1728_v35 = vpop.f32.mrf.mxu1  ;;  %v1614_v4 = vld [vmem:[#allocation3 + $0x28] sm:$0xff] }
 0x128   :  { %1586 = vst.msk [vmem:[#allocation3 + $0x48] sm:$0xff] %vm19_vm4, %v1570_v30  ;;  %v1575_v36 = vadd.f32 %v3136_v18, %v1393_v33  ;;  %1809 = vst.msk [vmem:[#allocation3 + $0x10] sm:$0xff] %vm19_vm4, %v1793_v32  ;;  %v1549_v37 = vpop.f32.mrf.mxu0  ;;  %v1791_v38 = vadd.f32 %v1728_v35, %v1609_v34 }
 0x129   :  { %v1391_v22 = vld [vmem:[#allocation3 + $0x60] sm:$0xff]  ;;  %v3143_v40 = vpop.f32.mrf.mxu1  ;;  %v1619_v10 = vld [vmem:[#allocation3 + $0x50] sm:$0xff] }
 0x12a   :  { %1591 = vst.msk [vmem:[#allocation3 + $0x70] sm:$0xff] %vm19_vm4, %v1575_v36  ;;  %v1573_v41 = vadd.f32 %v1546_v25, %v1391_v22  ;;  %1807 = vst.msk [vmem:[#allocation3] sm:$0xff] %vm19_vm4, %v1791_v38  ;;  %v1794_v42 = vadd.f32 %v3143_v40, %v1612_v39  ;;  %v3160_v43 = vpop.f32.mrf.mxu0 }
 0x12b   :  { %v1394_v28 = vld [vmem:[#allocation3 + $0x78] sm:$0xff]  ;;  %v1731_v45 = vpop.f32.mrf.mxu1  ;;  %v1617_v16 = vld [vmem:[#allocation3 + $0x40] sm:$0xff] }
 0x12c   :  { %1589 = vst.msk [vmem:[#allocation3 + $0x60] sm:$0xff] %vm19_vm4, %v1573_v41  ;;  %v1576_v46 = vadd.f32 %v3137_v31, %v1394_v28  ;;  %1810 = vst.msk [vmem:[#allocation3 + $0x18] sm:$0xff] %vm19_vm4, %v1794_v42  ;;  %v1792_v47 = vadd.f32 %v1731_v45, %v1610_v44  ;;  %v2161_v48 = vpop.f32.mrf.mxu0 }
 0x12d   :  { %v1392_v49 = vld [vmem:[#allocation3 + $0x68] sm:$0xff]  ;;  %v3146_v51 = vpop.f32.mrf.mxu1  ;;  %v1620_v23 = vld [vmem:[#allocation3 + $0x58] sm:$0xff] }
 0x12e   :  { %1592 = vst.msk [vmem:[#allocation3 + $0x78] sm:$0xff] %vm19_vm4, %v1576_v46  ;;  %v1574_v52 = vadd.f32 %v1549_v37, %v1392_v49  ;;  %1808 = vst.msk [vmem:[#allocation3 + $0x8] sm:$0xff] %vm19_vm4, %v1792_v47  ;;  %v1797_v53 = vadd.f32 %v3146_v51, %v1615_v50  ;;  %v3161_v54 = vpop.f32.mrf.mxu0 }
 0x12f   :  { %v2044_v55 = vld [vmem:[#allocation3 + $0x10] sm:$0xff]  ;;  %v1744_v57 = vpop.f32.mrf.mxu1  ;;  %v1618_v30 = vld [vmem:[#allocation3 + $0x48] sm:$0xff] }
 0x130   :  { %1590 = vst.msk [vmem:[#allocation3 + $0x68] sm:$0xff] %vm19_vm4, %v1574_v52  ;;  %v2226_v58 = vadd.f32 %v3160_v43, %v2044_v55  ;;  %1813 = vst.msk [vmem:[#allocation3 + $0x30] sm:$0xff] %vm19_vm4, %v1797_v53  ;;  %v1795_v59 = vadd.f32 %v1744_v57, %v1613_v56  ;;  %v2164_v60 = vpop.f32.mrf.mxu0 }
 0x131   :  { %v2042_v61 = vld [vmem:[#allocation3] sm:$0xff]  ;;  %v3147_v63 = vpop.f32.mrf.mxu1  ;;  %v1623_v36 = vld [vmem:[#allocation3 + $0x70] sm:$0xff] }
 0x132   :  { %2242 = vst.msk [vmem:[#allocation3 + $0x10] sm:$0xff] %vm19_vm4, %v2226_v58  ;;  %v2224_v0 = vadd.f32 %v2161_v48, %v2042_v61  ;;  %1811 = vst.msk [vmem:[#allocation3 + $0x20] sm:$0xff] %vm19_vm4, %v1795_v59  ;;  %v1798_v1 = vadd.f32 %v3147_v63, %v1616_v62  ;;  %v3164_v2 = vpop.f32.mrf.mxu0 }
 0x133   :  { %v2045_v3 = vld [vmem:[#allocation3 + $0x18] sm:$0xff]  ;;  %v1747_v5 = vpop.f32.mrf.mxu1  ;;  %v1621_v41 = vld [vmem:[#allocation3 + $0x60] sm:$0xff] }
 0x134   :  { %2240 = vst.msk [vmem:[#allocation3] sm:$0xff] %vm19_vm4, %v2224_v0  ;;  %v2227_v6 = vadd.f32 %v3161_v54, %v2045_v3  ;;  %1814 = vst.msk [vmem:[#allocation3 + $0x38] sm:$0xff] %vm19_vm4, %v1798_v1  ;;  %v1796_v7 = vadd.f32 %v1747_v5, %v1614_v4  ;;  %v2177_v8 = vpop.f32.mrf.mxu0 }
 0x135   :  { %v2043_v9 = vld [vmem:[#allocation3 + $0x8] sm:$0xff]  ;;  %v3150_v11 = vpop.f32.mrf.mxu1  ;;  %v1624_v46 = vld [vmem:[#allocation3 + $0x78] sm:$0xff] }
 0x136   :  { %2243 = vst.msk [vmem:[#allocation3 + $0x18] sm:$0xff] %vm19_vm4, %v2227_v6  ;;  %v2225_v12 = vadd.f32 %v2164_v60, %v2043_v9  ;;  %1812 = vst.msk [vmem:[#allocation3 + $0x28] sm:$0xff] %vm19_vm4, %v1796_v7  ;;  %v1801_v13 = vadd.f32 %v3150_v11, %v1619_v10  ;;  %v3165_v14 = vpop.f32.mrf.mxu0 }
 0x137   :  { %v2048_v15 = vld [vmem:[#allocation3 + $0x30] sm:$0xff]  ;;  %v1760_v17 = vpop.f32.mrf.mxu1  ;;  %v1622_v52 = vld [vmem:[#allocation3 + $0x68] sm:$0xff] }
 0x138   :  { %2241 = vst.msk [vmem:[#allocation3 + $0x8] sm:$0xff] %vm19_vm4, %v2225_v12  ;;  %v2230_v18 = vadd.f32 %v3164_v2, %v2048_v15  ;;  %1817 = vst.msk [vmem:[#allocation3 + $0x50] sm:$0xff] %vm19_vm4, %v1801_v13  ;;  %v1799_v19 = vadd.f32 %v1760_v17, %v1617_v16  ;;  %v2180_v20 = vpop.f32.mrf.mxu0 }
 0x139   :  { %v2046_v21 = vld [vmem:[#allocation3 + $0x20] sm:$0xff]  ;;  %v3151_v24 = vpop.f32.mrf.mxu1  ;;  %v2274_v58 = vld [vmem:[#allocation3 + $0x10] sm:$0xff] }
 0x13a   :  { %2246 = vst.msk [vmem:[#allocation3 + $0x30] sm:$0xff] %vm19_vm4, %v2230_v18  ;;  %v2228_v25 = vadd.f32 %v2177_v8, %v2046_v21  ;;  %1815 = vst.msk [vmem:[#allocation3 + $0x40] sm:$0xff] %vm19_vm4, %v1799_v19  ;;  %v1802_v26 = vadd.f32 %v3151_v24, %v1620_v23  ;;  %v3168_v27 = vpop.f32.mrf.mxu0 }
 0x13b   :  { %v2049_v29 = vld [vmem:[#allocation3 + $0x38] sm:$0xff]  ;;  %v1763_v31 = vpop.f32.mrf.mxu1  ;;  %v2272_v0 = vld [vmem:[#allocation3] sm:$0xff] }
 0x13c   :  { %2244 = vst.msk [vmem:[#allocation3 + $0x20] sm:$0xff] %vm19_vm4, %v2228_v25  ;;  %v2231_v32 = vadd.f32 %v3165_v14, %v2049_v29  ;;  %1818 = vst.msk [vmem:[#allocation3 + $0x58] sm:$0xff] %vm19_vm4, %v1802_v26  ;;  %v1800_v33 = vadd.f32 %v1763_v31, %v1618_v30  ;;  %v2193_v34 = vpop.f32.mrf.mxu0 }
 0x13d   :  { %v2047_v35 = vld [vmem:[#allocation3 + $0x28] sm:$0xff]  ;;  %v3154_v37 = vpop.f32.mrf.mxu1  ;;  %v2275_v6 = vld [vmem:[#allocation3 + $0x18] sm:$0xff] }
 0x13e   :  { %2247 = vst.msk [vmem:[#allocation3 + $0x38] sm:$0xff] %vm19_vm4, %v2231_v32  ;;  %v2229_v38 = vadd.f32 %v2180_v20, %v2047_v35  ;;  %1816 = vst.msk [vmem:[#allocation3 + $0x48] sm:$0xff] %vm19_vm4, %v1800_v33  ;;  %v1805_v22 = vadd.f32 %v3154_v37, %v1623_v36  ;;  %v3169_v39 = vpop.f32.mrf.mxu0 }
 0x13f   :  { %v2052_v40 = vld [vmem:[#allocation3 + $0x50] sm:$0xff]  ;;  %v1776_v42 = vpop.f32.mrf.mxu1  ;;  %v2273_v12 = vld [vmem:[#allocation3 + $0x8] sm:$0xff] }
 0x140   :  { %2245 = vst.msk [vmem:[#allocation3 + $0x28] sm:$0xff] %vm19_vm4, %v2229_v38  ;;  %v2234_v43 = vadd.f32 %v3168_v27, %v2052_v40  ;;  %1821 = vst.msk [vmem:[#allocation3 + $0x70] sm:$0xff] %vm19_vm4, %v1805_v22  ;;  %v1803_v28 = vadd.f32 %v1776_v42, %v1621_v41  ;;  %v2196_v44 = vpop.f32.mrf.mxu0 }
 0x141   :  { %v2050_v45 = vld [vmem:[#allocation3 + $0x40] sm:$0xff]  ;;  %v3155_v47 = vpop.f32.mrf.mxu1  ;;  %v2278_v18 = vld [vmem:[#allocation3 + $0x30] sm:$0xff] }
 0x142   :  { %2250 = vst.msk [vmem:[#allocation3 + $0x50] sm:$0xff] %vm19_vm4, %v2234_v43  ;;  %v2232_v48 = vadd.f32 %v2193_v34, %v2050_v45  ;;  %1819 = vst.msk [vmem:[#allocation3 + $0x60] sm:$0xff] %vm19_vm4, %v1803_v28  ;;  %v1806_v49 = vadd.f32 %v3155_v47, %v1624_v46  ;;  %v3172_v50 = vpop.f32.mrf.mxu0  ;;  %v4028_v47 = vld [vmem:[%s4133_s2] ss:$0 sm:$0xff] }
 0x143   :  { %v2053_v51 = vld [vmem:[#allocation3 + $0x58] sm:$0xff]  ;;  %v1779_v53 = vpop.f32.mrf.mxu1  ;;  %v2276_v25 = vld [vmem:[#allocation3 + $0x20] sm:$0xff] }
 0x144   :  { %2248 = vst.msk [vmem:[#allocation3 + $0x40] sm:$0xff] %vm19_vm4, %v2232_v48  ;;  %v2235_v54 = vadd.f32 %v3169_v39, %v2053_v51  ;;  %1822 = vst.msk [vmem:[#allocation3 + $0x78] sm:$0xff] %vm19_vm4, %v1806_v49  ;;  %v1804_v55 = vadd.f32 %v1779_v53, %v1622_v52  ;;  %v2209_v56 = vpop.f32.mrf.mxu0 }
 0x145   :  { %v2051_v57 = vld [vmem:[#allocation3 + $0x48] sm:$0xff]  ;;  %v3178_v59 = vpop.f32.mrf.mxu1  ;;  %v2279_v32 = vld [vmem:[#allocation3 + $0x38] sm:$0xff] }
 0x146   :  { %2251 = vst.msk [vmem:[#allocation3 + $0x58] sm:$0xff] %vm19_vm4, %v2235_v54  ;;  %v2233_v60 = vadd.f32 %v2196_v44, %v2051_v57  ;;  %1820 = vst.msk [vmem:[#allocation3 + $0x68] sm:$0xff] %vm19_vm4, %v1804_v55  ;;  %v3173_v61 = vpop.f32.mrf.mxu0  ;;  %v2456_v62 = vadd.f32 %v3178_v59, %v2274_v58 }
 0x147   :  { %v2056_v63 = vld [vmem:[#allocation3 + $0x70] sm:$0xff]  ;;  %v2391_v1 = vpop.f32.mrf.mxu1  ;;  %v2277_v38 = vld [vmem:[#allocation3 + $0x28] sm:$0xff] }
 0x148   :  { %2249 = vst.msk [vmem:[#allocation3 + $0x48] sm:$0xff] %vm19_vm4, %v2233_v60  ;;  %v2238_v2 = vadd.f32 %v3172_v50, %v2056_v63  ;;  %2472 = vst.msk [vmem:[#allocation3 + $0x10] sm:$0xff] %vm19_vm4, %v2456_v62  ;;  %v2212_v3 = vpop.f32.mrf.mxu0  ;;  %v2454_v4 = vadd.f32 %v2391_v1, %v2272_v0 }
 0x149   :  { %v2054_v5 = vld [vmem:[#allocation3 + $0x60] sm:$0xff]  ;;  %v3179_v7 = vpop.f32.mrf.mxu1  ;;  %v2282_v43 = vld [vmem:[#allocation3 + $0x50] sm:$0xff] }
 0x14a   :  { %2254 = vst.msk [vmem:[#allocation3 + $0x70] sm:$0xff] %vm19_vm4, %v2238_v2  ;;  %v2236_v8 = vadd.f32 %v2209_v56, %v2054_v5  ;;  %2470 = vst.msk [vmem:[#allocation3] sm:$0xff] %vm19_vm4, %v2454_v4  ;;  %v2457_v9 = vadd.f32 %v3179_v7, %v2275_v6  ;;  %v3196_v10 = vpop.f32.mrf.mxu0 }
 0x14b   :  { %v2057_v11 = vld [vmem:[#allocation3 + $0x78] sm:$0xff]  ;;  %v2394_v13 = vpop.f32.mrf.mxu1  ;;  %v2280_v49 = vld [vmem:[#allocation3 + $0x40] sm:$0xff] }
 0x14c   :  { %2252 = vst.msk [vmem:[#allocation3 + $0x60] sm:$0xff] %vm19_vm4, %v2236_v8  ;;  %v2239_v14 = vadd.f32 %v3173_v61, %v2057_v11  ;;  %2473 = vst.msk [vmem:[#allocation3 + $0x18] sm:$0xff] %vm19_vm4, %v2457_v9  ;;  %v2455_v15 = vadd.f32 %v2394_v13, %v2273_v12  ;;  %v2621_v16 = vpop.f32.mrf.mxu0 }
 0x14d   :  { %v2055_v17 = vld [vmem:[#allocation3 + $0x68] sm:$0xff]  ;;  %v3182_v19 = vpop.f32.mrf.mxu1  ;;  %v2283_v56 = vld [vmem:[#allocation3 + $0x58] sm:$0xff] }
 0x14e   :  { %2255 = vst.msk [vmem:[#allocation3 + $0x78] sm:$0xff] %vm19_vm4, %v2239_v14  ;;  %v2237_v20 = vadd.f32 %v2212_v3, %v2055_v17  ;;  %2471 = vst.msk [vmem:[#allocation3 + $0x8] sm:$0xff] %vm19_vm4, %v2455_v15  ;;  %v2460_v21 = vadd.f32 %v3182_v19, %v2278_v18  ;;  %v3197_v23 = vpop.f32.mrf.mxu0 }
 0x14f   :  { %v2504_v24 = vld [vmem:[#allocation3 + $0x10] sm:$0xff]  ;;  %v2407_v26 = vpop.f32.mrf.mxu1  ;;  %v2281_v0 = vld [vmem:[#allocation3 + $0x48] sm:$0xff] }
 0x150   :  { %2253 = vst.msk [vmem:[#allocation3 + $0x68] sm:$0xff] %vm19_vm4, %v2237_v20  ;;  %v2686_v27 = vadd.f32 %v3196_v10, %v2504_v24  ;;  %2476 = vst.msk [vmem:[#allocation3 + $0x30] sm:$0xff] %vm19_vm4, %v2460_v21  ;;  %v2458_v29 = vadd.f32 %v2407_v26, %v2276_v25  ;;  %v2624_v30 = vpop.f32.mrf.mxu0 }
 0x151   :  { %v2502_v31 = vld [vmem:[#allocation3] sm:$0xff]  ;;  %v3183_v33 = vpop.f32.mrf.mxu1  ;;  %v2286_v9 = vld [vmem:[#allocation3 + $0x70] sm:$0xff] }
 0x152   :  { %2702 = vst.msk [vmem:[#allocation3 + $0x10] sm:$0xff] %vm19_vm4, %v2686_v27  ;;  %v2684_v34 = vadd.f32 %v2621_v16, %v2502_v31  ;;  %2474 = vst.msk [vmem:[#allocation3 + $0x20] sm:$0xff] %vm19_vm4, %v2458_v29  ;;  %v2461_v35 = vadd.f32 %v3183_v33, %v2279_v32  ;;  %v3200_v36 = vpop.f32.mrf.mxu0 }
 0x153   :  { %v2505_v37 = vld [vmem:[#allocation3 + $0x18] sm:$0xff]  ;;  %v2410_v22 = vpop.f32.mrf.mxu1  ;;  %v2284_v18 = vld [vmem:[#allocation3 + $0x60] sm:$0xff] }
 0x154   :  { %2700 = vst.msk [vmem:[#allocation3] sm:$0xff] %vm19_vm4, %v2684_v34  ;;  %v2687_v39 = vadd.f32 %v3197_v23, %v2505_v37  ;;  %2477 = vst.msk [vmem:[#allocation3 + $0x38] sm:$0xff] %vm19_vm4, %v2461_v35  ;;  %v2459_v40 = vadd.f32 %v2410_v22, %v2277_v38  ;;  %v2637_v41 = vpop.f32.mrf.mxu0 }
 0x155   :  { %v2503_v42 = vld [vmem:[#allocation3 + $0x8] sm:$0xff]  ;;  %v3186_v28 = vpop.f32.mrf.mxu1  ;;  %v2287_v29 = vld [vmem:[#allocation3 + $0x78] sm:$0xff] }
 0x156   :  { %2703 = vst.msk [vmem:[#allocation3 + $0x18] sm:$0xff] %vm19_vm4, %v2687_v39  ;;  %v2685_v44 = vadd.f32 %v2624_v30, %v2503_v42  ;;  %2475 = vst.msk [vmem:[#allocation3 + $0x28] sm:$0xff] %vm19_vm4, %v2459_v40  ;;  %v2464_v45 = vadd.f32 %v3186_v28, %v2282_v43  ;;  %v3201_v46 = vpop.f32.mrf.mxu0 }
 0x157   :  { %v2508_v48 = vld [vmem:[#allocation3 + $0x30] sm:$0xff]  ;;  %v2423_v50 = vpop.f32.mrf.mxu1  ;;  %v2285_v38 = vld [vmem:[#allocation3 + $0x68] sm:$0xff] }
 0x158   :  { %2701 = vst.msk [vmem:[#allocation3 + $0x8] sm:$0xff] %vm19_vm4, %v2685_v44  ;;  %v2690_v51 = vadd.f32 %v3200_v36, %v2508_v48  ;;  %2480 = vst.msk [vmem:[#allocation3 + $0x50] sm:$0xff] %vm19_vm4, %v2464_v45  ;;  %v2462_v52 = vadd.f32 %v2423_v50, %v2280_v49  ;;  %v2640_v53 = vpop.f32.mrf.mxu0 }
 0x159   :  { %v2721_v54 = vld [vmem:[#allocation3 + $0x10] sm:$0xff]  ;;  %v2506_v55 = vld [vmem:[#allocation3 + $0x20] sm:$0xff]  ;;  %v3187_v57 = vpop.f32.mrf.mxu1 }
 0x15a   :  { %v2744_v58 = vadd.f32 %v4028_v47, %v2721_v54  ;;  %2706 = vst.msk [vmem:[#allocation3 + $0x30] sm:$0xff] %vm19_vm4, %v2690_v51  ;;  %v2688_v59 = vadd.f32 %v2637_v41, %v2506_v55  ;;  %2478 = vst.msk [vmem:[#allocation3 + $0x40] sm:$0xff] %vm19_vm4, %v2462_v52  ;;  %v2465_v60 = vadd.f32 %v3187_v57, %v2283_v56  ;;  %v3204_v61 = vpop.f32.mrf.mxu0 }
 0x15b   :  { %v2719_v62 = vld [vmem:[#allocation3] sm:$0xff]  ;;  %v2509_v63 = vld [vmem:[#allocation3 + $0x38] sm:$0xff]  ;;  %v2426_v1 = vpop.f32.mrf.mxu1 }
 0x15c   :  { %v2760_v2 = vpack.c.bf16 %v2744_v58, %v2744_v58  ;;  %v2742_v3 = vadd.f32 %v4028_v47, %v2719_v62  ;;  %2704 = vst.msk [vmem:[#allocation3 + $0x20] sm:$0xff] %vm19_vm4, %v2688_v59  ;;  %v2691_v4 = vadd.f32 %v3201_v46, %v2509_v63  ;;  %2481 = vst.msk [vmem:[#allocation3 + $0x58] sm:$0xff] %vm19_vm4, %v2465_v60  ;;  %v2653_v6 = vpop.f32.mrf.mxu0 }
 0x15d   :  { %v2463_v5 = vadd.f32 %v2426_v1, %v2281_v0  ;;  %v2722_v7 = vld [vmem:[#allocation3 + $0x18] sm:$0xff]  ;;  %v2507_v8 = vld [vmem:[#allocation3 + $0x28] sm:$0xff]  ;;  %v3190_v10 = vpop.f32.mrf.mxu1 }
 0x15e   :  { %2776 = vst.msk [vmem:[%s4134_s3 + $0x8] sm:$0xf] %vm56_vm1, %v2760_v2  ;;  %v2758_v11 = vpack.c.bf16 %v2742_v3, %v2742_v3  ;;  %v2745_v12 = vadd.f32 %v4028_v47, %v2722_v7  ;;  %v2689_v13 = vadd.f32 %v2640_v53, %v2507_v8  ;;  %v2468_v14 = vadd.f32 %v3190_v10, %v2286_v9  ;;  %v3205_v15 = vpop.f32.mrf.mxu0 }
 0x15f   :  { %2707 = vst.msk [vmem:[#allocation3 + $0x38] sm:$0xff] %vm19_vm4, %v2691_v4  ;;  %2479 = vst.msk [vmem:[#allocation3 + $0x48] sm:$0xff] %vm19_vm4, %v2463_v5  ;;  %v2720_v16 = vld [vmem:[#allocation3 + $0x8] sm:$0xff]  ;;  %v2512_v17 = vld [vmem:[#allocation3 + $0x50] sm:$0xff]  ;;  %v2439_v19 = vpop.f32.mrf.mxu1 }
 0x160   :  { %2774 = vst.msk [vmem:[%s4134_s3] sm:$0xf] %vm56_vm1, %v2758_v11  ;;  %v2761_v20 = vpack.c.bf16 %v2745_v12, %v2745_v12  ;;  %v2743_v21 = vadd.f32 %v4028_v47, %v2720_v16  ;;  %v2694_v23 = vadd.f32 %v3204_v61, %v2512_v17  ;;  %v2466_v24 = vadd.f32 %v2439_v19, %v2284_v18  ;;  %v2656_v25 = vpop.f32.mrf.mxu0 }
 0x161   :  { %2705 = vst.msk [vmem:[#allocation3 + $0x28] sm:$0xff] %vm19_vm4, %v2689_v13  ;;  %2484 = vst.msk [vmem:[#allocation3 + $0x70] sm:$0xff] %vm19_vm4, %v2468_v14  ;;  %v2725_v26 = vld [vmem:[#allocation3 + $0x30] sm:$0xff]  ;;  %v2510_v27 = vld [vmem:[#allocation3 + $0x40] sm:$0xff]  ;;  %v3191_v30 = vpop.f32.mrf.mxu1 }
 0x162   :  { %2777 = vst.msk [vmem:[%s4134_s3 + $0xc] sm:$0xf] %vm56_vm1, %v2761_v20  ;;  %v2759_v31 = vpack.c.bf16 %v2743_v21, %v2743_v21  ;;  %v2748_v32 = vadd.f32 %v4028_v47, %v2725_v26  ;;  %v2692_v33 = vadd.f32 %v2653_v6, %v2510_v27  ;;  %v2469_v34 = vadd.f32 %v3191_v30, %v2287_v29  ;;  %v3208_v35 = vpop.f32.mrf.mxu0 }
 0x163   :  { %2710 = vst.msk [vmem:[#allocation3 + $0x50] sm:$0xff] %vm19_vm4, %v2694_v23  ;;  %2482 = vst.msk [vmem:[#allocation3 + $0x60] sm:$0xff] %vm19_vm4, %v2466_v24  ;;  %v2723_v36 = vld [vmem:[#allocation3 + $0x20] sm:$0xff]  ;;  %v2513_v37 = vld [vmem:[#allocation3 + $0x58] sm:$0xff]  ;;  %v2442_v22 = vpop.f32.mrf.mxu1 }
 0x164   :  { %2775 = vst.msk [vmem:[%s4134_s3 + $0x4] sm:$0xf] %vm56_vm1, %v2759_v31  ;;  %v2764_v39 = vpack.c.bf16 %v2748_v32, %v2748_v32  ;;  %v2746_v40 = vadd.f32 %v4028_v47, %v2723_v36  ;;  %v2695_v41 = vadd.f32 %v3205_v15, %v2513_v37  ;;  %v2467_v42 = vadd.f32 %v2442_v22, %v2285_v38  ;;  %v2669_v44 = vpop.f32.mrf.mxu0 }
 0x165   :  { %2708 = vst.msk [vmem:[#allocation3 + $0x40] sm:$0xff] %vm19_vm4, %v2692_v33  ;;  %2485 = vst.msk [vmem:[#allocation3 + $0x78] sm:$0xff] %vm19_vm4, %v2469_v34 }
 0x166   :  { %v2726_v43 = vld [vmem:[#allocation3 + $0x38] sm:$0xff]  ;;  %v2511_v28 = vld [vmem:[#allocation3 + $0x48] sm:$0xff]  ;;  %2780 = vst.msk [vmem:[%s4134_s3 + $0x18] sm:$0xf] %vm56_vm1, %v2764_v39  ;;  %v2762_v45 = vpack.c.bf16 %v2746_v40, %v2746_v40  ;;  %v3209_v56 = vpop.f32.mrf.mxu0 }
 0x167   :  { %v2749_v46 = vadd.f32 %v4028_v47, %v2726_v43  ;;  %2711 = vst.msk [vmem:[#allocation3 + $0x58] sm:$0xff] %vm19_vm4, %v2695_v41  ;;  %v2693_v48 = vadd.f32 %v2656_v25, %v2511_v28  ;;  %2483 = vst.msk [vmem:[#allocation3 + $0x68] sm:$0xff] %vm19_vm4, %v2467_v42 }
 0x168   :  { %v2724_v49 = vld [vmem:[#allocation3 + $0x28] sm:$0xff]  ;;  %v2516_v50 = vld [vmem:[#allocation3 + $0x70] sm:$0xff]  ;;  %2778 = vst.msk [vmem:[%s4134_s3 + $0x10] sm:$0xf] %vm56_vm1, %v2762_v45  ;;  %v2672_v3 = vpop.f32.mrf.mxu0 }
 0x169   :  { %v2765_v51 = vpack.c.bf16 %v2749_v46, %v2749_v46  ;;  %v2747_v52 = vadd.f32 %v4028_v47, %v2724_v49  ;;  %2709 = vst.msk [vmem:[#allocation3 + $0x48] sm:$0xff] %vm19_vm4, %v2693_v48  ;;  %v2698_v53 = vadd.f32 %v3208_v35, %v2516_v50 }
 0x16a   :  { %v2729_v54 = vld [vmem:[#allocation3 + $0x50] sm:$0xff]  ;;  %v2514_v55 = vld [vmem:[#allocation3 + $0x60] sm:$0xff] }
 0x16b   :  { %2781 = vst.msk [vmem:[%s4134_s3 + $0x1c] sm:$0xf] %vm56_vm1, %v2765_v51  ;;  %v2763_v57 = vpack.c.bf16 %v2747_v52, %v2747_v52  ;;  %v2752_v58 = vadd.f32 %v4028_v47, %v2729_v54  ;;  %v2696_v59 = vadd.f32 %v2669_v44, %v2514_v55 }
 0x16c   :  { %2714 = vst.msk [vmem:[#allocation3 + $0x70] sm:$0xff] %vm19_vm4, %v2698_v53  ;;  %v2727_v60 = vld [vmem:[#allocation3 + $0x40] sm:$0xff]  ;;  %v2517_v61 = vld [vmem:[#allocation3 + $0x78] sm:$0xff] }
 0x16d   :  { %2779 = vst.msk [vmem:[%s4134_s3 + $0x14] sm:$0xf] %vm56_vm1, %v2763_v57  ;;  %v2768_v62 = vpack.c.bf16 %v2752_v58, %v2752_v58  ;;  %v2750_v63 = vadd.f32 %v4028_v47, %v2727_v60  ;;  %v2699_v0 = vadd.f32 %v3209_v56, %v2517_v61 }
 0x16e   :  { %2712 = vst.msk [vmem:[#allocation3 + $0x60] sm:$0xff] %vm19_vm4, %v2696_v59  ;;  %v2730_v1 = vld [vmem:[#allocation3 + $0x58] sm:$0xff]  ;;  %v2515_v2 = vld [vmem:[#allocation3 + $0x68] sm:$0xff] }
 0x16f   :  { %2784 = vst.msk [vmem:[%s4134_s3 + $0x28] sm:$0xf] %vm56_vm1, %v2768_v62  ;;  %v2766_v4 = vpack.c.bf16 %v2750_v63, %v2750_v63  ;;  %v2753_v5 = vadd.f32 %v4028_v47, %v2730_v1  ;;  %v2697_v6 = vadd.f32 %v2672_v3, %v2515_v2 }
 0x170   :  { %2715 = vst.msk [vmem:[#allocation3 + $0x78] sm:$0xff] %vm19_vm4, %v2699_v0  ;;  %v2728_v7 = vld [vmem:[#allocation3 + $0x48] sm:$0xff] }
 0x171   :  { %2782 = vst.msk [vmem:[%s4134_s3 + $0x20] sm:$0xf] %vm56_vm1, %v2766_v4  ;;  %v2769_v8 = vpack.c.bf16 %v2753_v5, %v2753_v5  ;;  %v2751_v9 = vadd.f32 %v4028_v47, %v2728_v7 }
 0x172   :  { %2713 = vst.msk [vmem:[#allocation3 + $0x68] sm:$0xff] %vm19_vm4, %v2697_v6 }
 0x173   :  { %v2733_v10 = vld [vmem:[#allocation3 + $0x70] sm:$0xff]  ;;  %2785 = vst.msk [vmem:[%s4134_s3 + $0x2c] sm:$0xf] %vm56_vm1, %v2769_v8  ;;  %v2767_v11 = vpack.c.bf16 %v2751_v9, %v2751_v9 }
 0x174   :  { %v2756_v12 = vadd.f32 %v4028_v47, %v2733_v10 }
 0x175   :  { %v2731_v13 = vld [vmem:[#allocation3 + $0x60] sm:$0xff]  ;;  %2783 = vst.msk [vmem:[%s4134_s3 + $0x24] sm:$0xf] %vm56_vm1, %v2767_v11 }
 0x176   :  { %v2772_v14 = vpack.c.bf16 %v2756_v12, %v2756_v12  ;;  %v2754_v15 = vadd.f32 %v4028_v47, %v2731_v13 }
 0x177   :  { %v2734_v16 = vld [vmem:[#allocation3 + $0x78] sm:$0xff] }
 0x178   :  { %2788 = vst.msk [vmem:[%s4134_s3 + $0x38] sm:$0xf] %vm56_vm1, %v2772_v14  ;;  %v2770_v17 = vpack.c.bf16 %v2754_v15, %v2754_v15  ;;  %v2757_v18 = vadd.f32 %v4028_v47, %v2734_v16 }
 0x179   :  { %v2732_v19 = vld [vmem:[#allocation3 + $0x68] sm:$0xff] }
 0x17a   :  { %2786 = vst.msk [vmem:[%s4134_s3 + $0x30] sm:$0xf] %vm56_vm1, %v2770_v17  ;;  %v2773_v20 = vpack.c.bf16 %v2757_v18, %v2757_v18  ;;  %v2755_v21 = vadd.f32 %v4028_v47, %v2732_v19 }
 0x17c   :  { %2789 = vst.msk [vmem:[%s4134_s3 + $0x3c] sm:$0xf] %vm56_vm1, %v2773_v20  ;;  %v2771_v23 = vpack.c.bf16 %v2755_v21, %v2755_v21 }
 0x17e   :  { %2787 = vst.msk [vmem:[%s4134_s3 + $0x34] sm:$0xf] %vm56_vm1, %v2771_v23 }

// kernel: resnet_conv5_forward.4
= control target key start
LH: loop header
LB: loop body
LE: loop exit
PB: predicated region body
PF: predicated region fallthrough
CT: control target
= control target key end

     0   :  { %vm175_vm0 = vcmask 1043456   ;;  %vm56_vm1 = vcmask 60416   ;;  %vm811_vm2 = vsmask.f32 3328  ;;  %vm812_vm3 = vsmask.f32 7440  ;;  %s4136_s1 = inlined_call_operand.vmem [shape: bf16[3,3,8,4], index: 1, kind: input, shape index: {}]   ;;  %s4137_s0 = inlined_call_operand.vmem [shape: bf16[2,10,10,8], index: 0, kind: input, shape index: {}]   ;;  %s4138_s2 = inlined_call_operand.vmem [shape: f32[1,4], index: 2, kind: input, shape index: {}]   ;;  %s4139_s3 = inlined_call_operand.vmem [shape: bf16[2,8,8,4], index: 3, kind: output, shape index: {}]  }
   0x1   :  { %v109_v0 = vld [vmem:[%s4136_s1] sm:$0xf]  ;;  %v46_v1 = vld [vmem:[%s4137_s0 + $0x50] sm:$0xf]  ;;  %v47_v2 = vld [vmem:[%s4137_s0 + $0x58] sm:$0xf] }
   0x2   :  { %3215 = vmatprep.subr.msk.bf16.mxu1 %vm175_vm0, %v109_v0  ;;  %v177_v3 = vsel %vm175_vm0, %v109_v0, 0  ;;  %67 = vst.msk [vmem:[#allocation2 + $0x28] sm:$0xf] %vm56_vm1, %v46_v1  ;;  %68 = vst.msk [vmem:[#allocation2 + $0x2c] sm:$0xf] %vm56_vm1, %v47_v2  ;;  %3214 = vmatprep.subr.msk.bf16.mxu0 %vm175_vm0, %v109_v0  ;;  %vm150_vm4 = vcmask 64512  }
   0x3   :  { %v791_v4 = vld [vmem:[%s4137_s0 + $0x50] sm:$0xf]  ;;  %v792_v5 = vld [vmem:[%s4137_s0 + $0x54] sm:$0x1]  ;;  %3213 = vmatpush3.bf16.msra.mxu1 %v177_v3  ;;  %3051 = vmatpush3.bf16.msra.mxu0 %v177_v3  ;;  %v2812_v9 = vld [vmem:[%s4136_s1 + $0xc] sm:$0xf] }
   0x4   :  { %v955_v6 = vshrl.u32 %v791_v4, 16  ;;  %v958_v7 = vshll.u32 %v791_v4, 16  ;;  %v964_v8 = vshll.u32 %v792_v5, 16  ;;  %v48_v10 = vld [vmem:[%s4137_s0 + $0x60] sm:$0xf]  ;;  %3216 = vmatprep.subr.msk.bf16.mxu1 %vm175_vm0, %v2812_v9  ;;  %vm3378_vm5 = vmor %vm811_vm2, %vm812_vm3  ;;  %v409_v36 = vsel %vm175_vm0, %v2812_v9, 0 }
   0x5   :  { %v49_v14 = vld [vmem:[%s4137_s0 + $0x68] sm:$0xf]  ;;  %69 = vst.msk [vmem:[#allocation2 + $0x30] sm:$0xf] %vm56_vm1, %v48_v10  ;;  %v36_v15 = vld [vmem:[%s4137_s0] sm:$0xf] }
   0x6   :  { %v957_v11 = vrot.slane %v955_v6, 4  ;;  %v960_v12 = vrot.slane %v958_v7, 5  ;;  %v966_v13 = vrot.slane %v964_v8, 5  ;;  %70 = vst.msk [vmem:[#allocation2 + $0x34] sm:$0xf] %vm56_vm1, %v49_v14  ;;  %vm1904_vm6 = vcmask 1042432  }
   0x7   :  { %v37_v16 = vld [vmem:[%s4137_s0 + $0x8] sm:$0xf]  ;;  %v771_v17 = vld [vmem:[%s4137_s0] sm:$0xf]  ;;  %57 = vst.msk [vmem:[#allocation2] sm:$0xf] %vm56_vm1, %v36_v15 }
   0x8   :  { %v961_v18 = vor.u32 %v960_v12, %v957_v11  ;;  %58 = vst.msk [vmem:[#allocation2 + $0x4] sm:$0xf] %vm56_vm1, %v37_v16  ;;  %v772_v19 = vld [vmem:[%s4137_s0 + $0x4] sm:$0x1]  ;;  %v815_v20 = vshrl.u32 %v771_v17, 16  ;;  %v818_v21 = vshll.u32 %v771_v17, 16 }
   0x9   :  { %v38_v22 = vld [vmem:[%s4137_s0 + $0x10] sm:$0xf]  ;;  %v824_v23 = vshll.u32 %v772_v19, 16  ;;  %v39_v24 = vld [vmem:[%s4137_s0 + $0x18] sm:$0xf]  ;;  %v3225_v26 = vld [vmem:[#allocation2 + $0x28] sm:$0xff]  }
   0xa   :  { %59 = vst.msk [vmem:[#allocation2 + $0x8] sm:$0xf] %vm56_vm1, %v38_v22  ;;  %v50_v25 = vld [vmem:[%s4137_s0 + $0x70] sm:$0xf]  ;;  %v962_v27 = vrot.slane %v961_v18, 4  ;;  %v817_v29 = vrot.slane %v815_v20, 4  ;;  %3060 = vmatprep.mubr.msk.bf16.mxu1 %vm150_vm4, %v3225_v26 }
   0xb   :  { %60 = vst.msk [vmem:[#allocation2 + $0xc] sm:$0xf] %vm56_vm1, %v39_v24  ;;  %71 = vst.msk [vmem:[#allocation2 + $0x38] sm:$0xf] %vm56_vm1, %v50_v25  ;;  %v820_v30 = vrot.slane %v818_v21, 5  ;;  %v826_v38 = vrot.slane %v824_v23, 5 }
   0xc   :  { %v51_v31 = vld [vmem:[%s4137_s0 + $0x78] sm:$0xf]  ;;  %v967_v32 = vsel %vm3378_vm5, %v962_v27, %v966_v13  ;;  %v52_v33 = vld [vmem:[%s4137_s0 + $0x80] sm:$0xf]  ;;  %v53_v34 = vld [vmem:[%s4137_s0 + $0x88] sm:$0xf] }
   0xd   :  { %72 = vst.msk [vmem:[#allocation2 + $0x3c] sm:$0xf] %vm56_vm1, %v51_v31  ;;  %v2829_v35 = vld [vmem:[%s4136_s1 + $0x18] sm:$0xf]  ;;  %1124 = vst.msk [vmem:[#allocation2 + $0x28] sm:$0xf] %vm56_vm1, %v967_v32  ;;  %v821_v37 = vor.u32 %v820_v30, %v817_v29 }
   0xe   :  { %73 = vst.msk [vmem:[#allocation2 + $0x40] sm:$0xf] %vm56_vm1, %v52_v33  ;;  %74 = vst.msk [vmem:[#allocation2 + $0x44] sm:$0xf] %vm56_vm1, %v53_v34  ;;  %3217 = vmatprep.subr.msk.bf16.mxu0 %vm175_vm0, %v2829_v35  ;;  %v40_v39 = vld [vmem:[%s4137_s0 + $0x20] sm:$0xf] }
   0xf   :  { %v3226_v40 = vld [vmem:[#allocation2 + $0x30] sm:$0xff]   ;;  %v640_v41 = vsel %vm175_vm0, %v2829_v35, 0  ;;  %v41_v42 = vld [vmem:[%s4137_s0 + $0x28] sm:$0xf]  ;;  %61 = vst.msk [vmem:[#allocation2 + $0x10] sm:$0xf] %vm56_vm1, %v40_v39 }
  0x10   :  { %v3227_v43 = vld [vmem:[#allocation2] sm:$0xff]   ;;  %v822_v44 = vrot.slane %v821_v37, 4  ;;  %62 = vst.msk [vmem:[#allocation2 + $0x14] sm:$0xf] %vm56_vm1, %v41_v42  ;;  %3061 = vmatmul.mubr.msk.bf16.vlgmr.msra.gmra.mxu1 %vm150_vm4, %v3226_v40  ;;  %v42_v52 = vld [vmem:[%s4137_s0 + $0x30] sm:$0xf] }
  0x11   :  { %v779_v45 = vld [vmem:[%s4137_s0 + $0x20] sm:$0xf]  ;;  %v780_v46 = vld [vmem:[%s4137_s0 + $0x24] sm:$0x1]  ;;  %3069 = vmatpush3.bf16.msra.mxu1 %v409_v36  ;;  %3052 = vmatprep.mubr.msk.bf16.mxu0 %vm150_vm4, %v3227_v43  ;;  %v43_v53 = vld [vmem:[%s4137_s0 + $0x38] sm:$0xf] }
  0x12   :  { %v827_v47 = vsel %vm3378_vm5, %v822_v44, %v826_v38  ;;  %v3228_v48 = vld [vmem:[#allocation2 + $0x8] sm:$0xff]   ;;  %v871_v49 = vshrl.u32 %v779_v45, 16  ;;  %v874_v50 = vshll.u32 %v779_v45, 16  ;;  %v880_v51 = vshll.u32 %v780_v46, 16  ;;  %63 = vst.msk [vmem:[#allocation2 + $0x18] sm:$0xf] %vm56_vm1, %v42_v52 }
  0x13   :  { %1114 = vst.msk [vmem:[#allocation2] sm:$0xf] %vm56_vm1, %v827_v47  ;;  %3053 = vmatmul.mubr.msk.bf16.vlgmr.msra.gmra.mxu0 %vm150_vm4, %v3228_v48  ;;  %64 = vst.msk [vmem:[#allocation2 + $0x1c] sm:$0xf] %vm56_vm1, %v43_v53  ;;  %v3233_v62 = vld [vmem:[#allocation2 + $0x4] sm:$0xff]   ;;  %vm1905_vm7 = vcmask 1046532  }
  0x14   :  { %v3229_v54 = vld [vmem:[#allocation2 + $0x38] sm:$0xff]   ;;  %v873_v55 = vrot.slane %v871_v49, 4  ;;  %3087 = vmatpush3.bf16.msra.mxu0 %v640_v41  ;;  %v876_v57 = vrot.slane %v874_v50, 5  ;;  %v882_v60 = vrot.slane %v880_v51, 5  ;;  %v773_v63 = vld [vmem:[%s4137_s0 + $0x8] sm:$0xf]  ;;  %vm3635_vm8 = vmor %vm1904_vm6, %vm1905_vm7 }
  0x15   :  { %v3230_v56 = vld [vmem:[#allocation2 + $0x40] sm:$0xff]   ;;  %3064 = vmatprep.mubr.msk.bf16.mxu1 %vm150_vm4, %v3229_v54  ;;  %v774_v0 = vld [vmem:[%s4137_s0 + $0xc] sm:$0x1]  ;;  %v829_v3 = vshrl.u32 %v773_v63, 16  ;;  %v832_v4 = vshll.u32 %v773_v63, 16  ;;  %vm19_vm9 = vcmask 31744  }
  0x16   :  { %v877_v59 = vor.u32 %v876_v57, %v873_v55  ;;  %v313_v61 = vld [vmem:[#allocation2 + $0xc] sm:$0xff]   ;;  %v838_v5 = vshll.u32 %v774_v0, 16  ;;  %v2846_v6 = vld [vmem:[%s4136_s1 + $0x4] sm:$0xf]  ;;  %v776_v14 = vld [vmem:[%s4137_s0 + $0x14] sm:$0x1] }
  0x17   :  { %v3231_v58 = vld [vmem:[#allocation2 + $0x10] sm:$0xff]   ;;  %3218 = vmatprep.subr.msk.bf16.mxu1 %vm175_vm0, %v2846_v6  ;;  %v3234_v7 = vld [vmem:[#allocation2 + $0x8] sm:$0xff]   ;;  %v831_v10 = vrot.slane %v829_v3, 4  ;;  %v834_v11 = vrot.slane %v832_v4, 5  ;;  %v777_v15 = vld [vmem:[%s4137_s0 + $0x18] sm:$0xf] }
  0x18   :  { %3065 = vmatmul.mubr.msk.bf16.gmra.mxu1 %vm150_vm4, %v3230_v56  ;;  %3056 = vmatprep.mubr.msk.bf16.mxu0 %vm150_vm4, %v3231_v58  ;;  %v543_v1 = vld [vmem:[#allocation2 + $0x10] sm:$0xff]   ;;  %v878_v2 = vrot.slane %v877_v59, 4  ;;  %v840_v12 = vrot.slane %v838_v5, 5  ;;  %v778_v16 = vld [vmem:[%s4137_s0 + $0x1c] sm:$0x1]  ;;  %v852_v20 = vshll.u32 %v776_v14, 16 }
  0x19   :  { %3070 = vmatprep.mubr.msk.bf16.mxu1 %vm150_vm4, %v3233_v62  ;;  %v775_v13 = vld [vmem:[%s4137_s0 + $0x10] sm:$0xf]  ;;  %v835_v19 = vor.u32 %v834_v11, %v831_v10  ;;  %v857_v21 = vshrl.u32 %v777_v15, 16  ;;  %v860_v22 = vshll.u32 %v777_v15, 16  ;;  %v3235_v23 = vld [vmem:[#allocation2 + $0x14] sm:$0xff]   ;;  %v1233_v24 = vsel %vm175_vm0, %v2846_v6, 0 }
  0x1a   :  { %v883_v8 = vsel %vm3378_vm5, %v878_v2, %v882_v60  ;;  %v3232_v9 = vld [vmem:[#allocation2 + $0x18] sm:$0xff]   ;;  %v843_v17 = vshrl.u32 %v775_v13, 16  ;;  %v846_v18 = vshll.u32 %v775_v13, 16  ;;  %v866_v27 = vshll.u32 %v778_v16, 16  ;;  %v781_v32 = vld [vmem:[%s4137_s0 + $0x28] sm:$0xf] }
  0x1b   :  { %1118 = vst.msk [vmem:[#allocation2 + $0x10] sm:$0xf] %vm56_vm1, %v883_v8  ;;  %3057 = vmatmul.mubr.msk.bf16.gmra.mxu0 %vm150_vm4, %v3232_v9  ;;  %v836_v29 = vrot.slane %v835_v19, 4  ;;  %v859_v30 = vrot.slane %v857_v21, 4  ;;  %v862_v31 = vrot.slane %v860_v22, 5  ;;  %v854_v34 = vrot.slane %v852_v20, 5 }
  0x1c   :  { %3088 = vmatprep.mubr.msk.bf16.mxu0 %vm150_vm4, %v3234_v7  ;;  %v845_v25 = vrot.slane %v843_v17, 4  ;;  %v848_v26 = vrot.slane %v846_v18, 5  ;;  %v782_v35 = vld [vmem:[%s4137_s0 + $0x2c] sm:$0x1]  ;;  %v885_v36 = vshrl.u32 %v781_v32, 16  ;;  %v888_v37 = vshll.u32 %v781_v32, 16 }
  0x1d   :  { %v3237_v38 = vld [vmem:[#allocation2 + $0x18] sm:$0xff]   ;;  %v841_v39 = vsel %vm3378_vm5, %v836_v29, %v840_v12  ;;  %v863_v40 = vor.u32 %v862_v31, %v859_v30  ;;  %v868_v41 = vrot.slane %v866_v27, 5  ;;  %v894_v42 = vshll.u32 %v782_v35, 16  ;;  %v44_v43 = vld [vmem:[%s4137_s0 + $0x40] sm:$0xf]  ;;  %v3239_v10 = vld [vmem:[#allocation2 + $0x2c] sm:$0xff]  }
  0x1e   :  { %v849_v33 = vor.u32 %v848_v26, %v845_v25  ;;  %1115 = vst.msk [vmem:[#allocation2 + $0x4] sm:$0xf] %vm56_vm1, %v841_v39  ;;  %v887_v45 = vrot.slane %v885_v36, 4  ;;  %v890_v46 = vrot.slane %v888_v37, 5  ;;  %65 = vst.msk [vmem:[#allocation2 + $0x20] sm:$0xf] %vm56_vm1, %v44_v43 }
  0x1f   :  { %v2863_v47 = vld [vmem:[%s4136_s1 + $0x10] sm:$0xf]  ;;  %v864_v48 = vrot.slane %v863_v40, 4  ;;  %v896_v49 = vrot.slane %v894_v42, 5  ;;  %v784_v54 = vld [vmem:[%s4137_s0 + $0x34] sm:$0x1] }
  0x20   :  { %3071 = vmatmul.mubr.msk.bf16.vlgmr.msra.gmra.mxu1 %vm150_vm4, %v313_v61  ;;  %v850_v44 = vrot.slane %v849_v33, 4  ;;  %3219 = vmatprep.subr.msk.bf16.mxu0 %vm175_vm0, %v2863_v47  ;;  %v1463_v50 = vsel %vm175_vm0, %v2863_v47, 0  ;;  %v891_v52 = vor.u32 %v890_v46, %v887_v45  ;;  %v783_v53 = vld [vmem:[%s4137_s0 + $0x30] sm:$0xf]  ;;  %v785_v56 = vld [vmem:[%s4137_s0 + $0x38] sm:$0xf] }
  0x21   :  { %3105 = vmatpush3.bf16.msra.mxu1 %v1233_v24  ;;  %3074 = vmatprep.mubr.msk.bf16.mxu1 %vm150_vm4, %v3235_v23  ;;  %v869_v55 = vsel %vm3378_vm5, %v864_v48, %v868_v41  ;;  %v786_v57 = vld [vmem:[%s4137_s0 + $0x3c] sm:$0x1]  ;;  %v899_v58 = vshrl.u32 %v783_v53, 16  ;;  %v902_v59 = vshll.u32 %v783_v53, 16  ;;  %v908_v61 = vshll.u32 %v784_v54, 16  ;;  %v3241_v33 = vld [vmem:[#allocation2 + $0x30] sm:$0xff]  }
  0x22   :  { %v855_v51 = vsel %vm3378_vm5, %v850_v44, %v854_v34  ;;  %1117 = vst.msk [vmem:[#allocation2 + $0xc] sm:$0xf] %vm56_vm1, %v869_v55  ;;  %v892_v60 = vrot.slane %v891_v52, 4  ;;  %v913_v62 = vshrl.u32 %v785_v56, 16  ;;  %v916_v63 = vshll.u32 %v785_v56, 16  ;;  %v3240_v43 = vld [vmem:[#allocation2 + $0x34] sm:$0xff]  }
  0x23   :  { %3089 = vmatmul.mubr.msk.bf16.vlgmr.msra.gmra.mxu0 %vm150_vm4, %v543_v1  ;;  %1116 = vst.msk [vmem:[#allocation2 + $0x8] sm:$0xf] %vm56_vm1, %v855_v51  ;;  %v45_v0 = vld [vmem:[%s4137_s0 + $0x48] sm:$0xf]  ;;  %v901_v1 = vrot.slane %v899_v58, 4  ;;  %v904_v2 = vrot.slane %v902_v59, 5 }
  0x24   :  { %3123 = vmatpush3.bf16.msra.mxu0 %v1463_v50  ;;  %3092 = vmatprep.mubr.msk.bf16.mxu0 %vm150_vm4, %v3237_v38  ;;  %v922_v3 = vshll.u32 %v786_v57, 16  ;;  %66 = vst.msk [vmem:[#allocation2 + $0x24] sm:$0xf] %vm56_vm1, %v45_v0  ;;  %v787_v4 = vld [vmem:[%s4137_s0 + $0x40] sm:$0xf]  ;;  %v897_v5 = vsel %vm3378_vm5, %v892_v60, %v896_v49  ;;  %v910_v6 = vrot.slane %v908_v61, 5 }
  0x25   :  { %v915_v7 = vrot.slane %v913_v62, 4  ;;  %v918_v8 = vrot.slane %v916_v63, 5  ;;  %v788_v9 = vld [vmem:[%s4137_s0 + $0x44] sm:$0x1]  ;;  %1119 = vst.msk [vmem:[#allocation2 + $0x14] sm:$0xf] %vm56_vm1, %v897_v5  ;;  %v905_v12 = vor.u32 %v904_v2, %v901_v1 }
  0x26   :  { %v3236_v11 = vld [vmem:[#allocation2 + $0x1c] sm:$0xff]   ;;  %v924_v13 = vrot.slane %v922_v3, 5  ;;  %v789_v15 = vld [vmem:[%s4137_s0 + $0x48] sm:$0xf]  ;;  %v790_v16 = vld [vmem:[%s4137_s0 + $0x4c] sm:$0x1] }
  0x27   :  { %v919_v14 = vor.u32 %v918_v8, %v915_v7  ;;  %v927_v17 = vshrl.u32 %v787_v4, 16  ;;  %v930_v18 = vshll.u32 %v787_v4, 16  ;;  %v906_v19 = vrot.slane %v905_v12, 4  ;;  %v793_v32 = vld [vmem:[%s4137_s0 + $0x58] sm:$0xf]  ;;  %v3243_v45 = vld [vmem:[#allocation2 + $0x3c] sm:$0xff]  }
  0x28   :  { %3075 = vmatmul.mubr.msk.bf16.gmra.mxu1 %vm150_vm4, %v3236_v11  ;;  %v936_v20 = vshll.u32 %v788_v9, 16  ;;  %v941_v21 = vshrl.u32 %v789_v15, 16  ;;  %v944_v22 = vshll.u32 %v789_v15, 16  ;;  %v950_v26 = vshll.u32 %v790_v16, 16  ;;  %v794_v38 = vld [vmem:[%s4137_s0 + $0x5c] sm:$0x1] }
  0x29   :  { %v920_v23 = vrot.slane %v919_v14, 4  ;;  %v929_v24 = vrot.slane %v927_v17, 4  ;;  %v932_v25 = vrot.slane %v930_v18, 5  ;;  %3078 = vmatprep.mubr.msk.bf16.mxu1 %vm150_vm4, %v3239_v10  ;;  %v911_v27 = vsel %vm3378_vm5, %v906_v19, %v910_v6  ;;  %v795_v51 = vld [vmem:[%s4137_s0 + $0x60] sm:$0xf]  ;;  %v3242_v54 = vld [vmem:[#allocation2 + $0x38] sm:$0xff]  }
  0x2a   :  { %v938_v29 = vrot.slane %v936_v20, 5  ;;  %v943_v30 = vrot.slane %v941_v21, 4  ;;  %v946_v31 = vrot.slane %v944_v22, 5  ;;  %1120 = vst.msk [vmem:[#allocation2 + $0x18] sm:$0xf] %vm56_vm1, %v911_v27  ;;  %v952_v37 = vrot.slane %v950_v26, 5 }
  0x2b   :  { %v925_v34 = vsel %vm3378_vm5, %v920_v23, %v924_v13  ;;  %v3238_v35 = vld [vmem:[#allocation2 + $0x20] sm:$0xff]   ;;  %v933_v36 = vor.u32 %v932_v25, %v929_v24  ;;  %v969_v40 = vshrl.u32 %v793_v32, 16  ;;  %v972_v41 = vshll.u32 %v793_v32, 16  ;;  %v797_v53 = vld [vmem:[%s4137_s0 + $0x68] sm:$0xf] }
  0x2c   :  { %1121 = vst.msk [vmem:[#allocation2 + $0x1c] sm:$0xf] %vm56_vm1, %v925_v34  ;;  %v947_v39 = vor.u32 %v946_v31, %v943_v30  ;;  %v978_v42 = vshll.u32 %v794_v38, 16  ;;  %3093 = vmatmul.mubr.msk.bf16.gmra.mxu0 %vm150_vm4, %v3238_v35  ;;  %v796_v52 = vld [vmem:[%s4137_s0 + $0x64] sm:$0x1]  ;;  %v983_v58 = vshrl.u32 %v795_v51, 16 }
  0x2d   :  { %v934_v44 = vrot.slane %v933_v36, 4  ;;  %v971_v47 = vrot.slane %v969_v40, 4  ;;  %v974_v48 = vrot.slane %v972_v41, 5  ;;  %3096 = vmatprep.mubr.msk.bf16.mxu0 %vm150_vm4, %v3241_v33  ;;  %v798_v57 = vld [vmem:[%s4137_s0 + $0x6c] sm:$0x1]  ;;  %v986_v59 = vshll.u32 %v795_v51, 16 }
  0x2e   :  { %v948_v46 = vrot.slane %v947_v39, 4  ;;  %v980_v49 = vrot.slane %v978_v42, 5  ;;  %v992_v60 = vshll.u32 %v796_v52, 16  ;;  %v997_v61 = vshrl.u32 %v797_v53, 16  ;;  %v799_v3 = vld [vmem:[%s4137_s0 + $0x70] sm:$0xf] }
  0x2f   :  { %v939_v50 = vsel %vm3378_vm5, %v934_v44, %v938_v29  ;;  %v975_v56 = vor.u32 %v974_v48, %v971_v47  ;;  %v1000_v62 = vshll.u32 %v797_v53, 16  ;;  %v1006_v63 = vshll.u32 %v798_v57, 16  ;;  %v3245_v4 = vld [vmem:[#allocation2 + $0x40] sm:$0xff]   ;;  %v800_v8 = vld [vmem:[%s4137_s0 + $0x74] sm:$0x1] }
  0x30   :  { %v953_v55 = vsel %vm3378_vm5, %v948_v46, %v952_v37  ;;  %1122 = vst.msk [vmem:[#allocation2 + $0x20] sm:$0xf] %vm56_vm1, %v939_v50  ;;  %3079 = vmatmul.mubr.msk.bf16.gmra.mxu1 %vm150_vm4, %v3240_v43  ;;  %v985_v1 = vrot.slane %v983_v58, 4  ;;  %v988_v2 = vrot.slane %v986_v59, 5  ;;  %v994_v5 = vrot.slane %v992_v60, 5  ;;  %v3247_v50 = vld [vmem:[#allocation2] sm:$0xff]  }
  0x31   :  { %1123 = vst.msk [vmem:[#allocation2 + $0x24] sm:$0xf] %vm56_vm1, %v953_v55  ;;  %3082 = vmatprep.mubr.msk.bf16.mxu1 %vm150_vm4, %v3243_v45  ;;  %v976_v0 = vrot.slane %v975_v56, 4  ;;  %v999_v6 = vrot.slane %v997_v61, 4  ;;  %v1002_v7 = vrot.slane %v1000_v62, 5  ;;  %v1011_v11 = vshrl.u32 %v799_v3, 16 }
  0x32   :  { %v989_v10 = vor.u32 %v988_v2, %v985_v1  ;;  %v1014_v12 = vshll.u32 %v799_v3, 16  ;;  %v1008_v14 = vrot.slane %v1006_v63, 5  ;;  %v1020_v15 = vshll.u32 %v800_v8, 16  ;;  %v801_v16 = vld [vmem:[%s4137_s0 + $0x78] sm:$0xf] }
  0x33   :  { %v981_v9 = vsel %vm3378_vm5, %v976_v0, %v980_v49  ;;  %v1003_v13 = vor.u32 %v1002_v7, %v999_v6  ;;  %v802_v17 = vld [vmem:[%s4137_s0 + $0x7c] sm:$0x1]  ;;  %v1013_v19 = vrot.slane %v1011_v11, 4  ;;  %v1025_v21 = vshrl.u32 %v801_v16, 16  ;;  %v54_v22 = vld [vmem:[%s4137_s0 + $0x90] sm:$0xf] }
  0x34   :  { %1125 = vst.msk [vmem:[#allocation2 + $0x2c] sm:$0xf] %vm56_vm1, %v981_v9  ;;  %3097 = vmatmul.mubr.msk.bf16.gmra.mxu0 %vm150_vm4, %v3242_v54  ;;  %v990_v18 = vrot.slane %v989_v10, 4  ;;  %v1016_v20 = vrot.slane %v1014_v12, 5  ;;  %v1028_v24 = vshll.u32 %v801_v16, 16  ;;  %v1034_v25 = vshll.u32 %v802_v17, 16 }
  0x35   :  { %3100 = vmatprep.mubr.msk.bf16.mxu0 %vm150_vm4, %v3245_v4  ;;  %v1004_v23 = vrot.slane %v1003_v13, 4  ;;  %75 = vst.msk [vmem:[#allocation2 + $0x48] sm:$0xf] %vm56_vm1, %v54_v22  ;;  %v1022_v29 = vrot.slane %v1020_v15, 5  ;;  %v1027_v30 = vrot.slane %v1025_v21, 4  ;;  %v3248_v11 = vld [vmem:[#allocation2 + $0x8] sm:$0xff]  }
  0x36   :  { %v995_v26 = vsel %vm3378_vm5, %v990_v18, %v994_v5  ;;  %v1017_v27 = vor.u32 %v1016_v20, %v1013_v19  ;;  %v1030_v32 = vrot.slane %v1028_v24, 5  ;;  %v1036_v33 = vrot.slane %v1034_v25, 5  ;;  %v803_v34 = vld [vmem:[%s4137_s0 + $0x80] sm:$0xf]  ;;  %v804_v35 = vld [vmem:[%s4137_s0 + $0x84] sm:$0x1] }
  0x37   :  { %v1009_v31 = vsel %vm3378_vm5, %v1004_v23, %v1008_v14  ;;  %1126 = vst.msk [vmem:[#allocation2 + $0x30] sm:$0xf] %vm56_vm1, %v995_v26  ;;  %v805_v37 = vld [vmem:[%s4137_s0 + $0x88] sm:$0xf]  ;;  %v806_v38 = vld [vmem:[%s4137_s0 + $0x8c] sm:$0x1] }
  0x38   :  { %1127 = vst.msk [vmem:[#allocation2 + $0x34] sm:$0xf] %vm56_vm1, %v1009_v31  ;;  %v1018_v36 = vrot.slane %v1017_v27, 4  ;;  %v1039_v39 = vshrl.u32 %v803_v34, 16  ;;  %v1031_v40 = vor.u32 %v1030_v32, %v1027_v30  ;;  %v1042_v41 = vshll.u32 %v803_v34, 16  ;;  %v3249_v12 = vld [vmem:[#allocation2 + $0x4] sm:$0xff]  }
  0x39   :  { %v1048_v42 = vshll.u32 %v804_v35, 16  ;;  %v1053_v43 = vshrl.u32 %v805_v37, 16  ;;  %v55_v44 = vld [vmem:[%s4137_s0 + $0x98] sm:$0xf]  ;;  %v1056_v47 = vshll.u32 %v805_v37, 16  ;;  %v1062_v48 = vshll.u32 %v806_v38, 16 }
  0x3a   :  { %v1023_v45 = vsel %vm3378_vm5, %v1018_v36, %v1022_v29  ;;  %v1041_v46 = vrot.slane %v1039_v39, 4  ;;  %76 = vst.msk [vmem:[#allocation2 + $0x4c] sm:$0xf] %vm56_vm1, %v55_v44  ;;  %v807_v49 = vld [vmem:[%s4137_s0 + $0x90] sm:$0xf]  ;;  %v1032_v51 = vrot.slane %v1031_v40, 4 }
  0x3b   :  { %1128 = vst.msk [vmem:[#allocation2 + $0x38] sm:$0xf] %vm56_vm1, %v1023_v45  ;;  %v1044_v52 = vrot.slane %v1042_v41, 5  ;;  %v1050_v53 = vrot.slane %v1048_v42, 5  ;;  %v1055_v54 = vrot.slane %v1053_v43, 4  ;;  %v1058_v57 = vrot.slane %v1056_v47, 5 }
  0x3c   :  { %v808_v55 = vld [vmem:[%s4137_s0 + $0x94] sm:$0x1]  ;;  %v3244_v56 = vld [vmem:[#allocation2 + $0x44] sm:$0xff]   ;;  %v1064_v58 = vrot.slane %v1062_v48, 5  ;;  %v1067_v59 = vshrl.u32 %v807_v49, 16  ;;  %v1037_v60 = vsel %vm3378_vm5, %v1032_v51, %v1036_v33  ;;  %v1070_v2 = vshll.u32 %v807_v49, 16 }
  0x3d   :  { %v1045_v61 = vor.u32 %v1044_v52, %v1041_v46  ;;  %v809_v62 = vld [vmem:[%s4137_s0 + $0x98] sm:$0xf]  ;;  %v810_v63 = vld [vmem:[%s4137_s0 + $0x9c] sm:$0x1]  ;;  %1129 = vst.msk [vmem:[#allocation2 + $0x3c] sm:$0xf] %vm56_vm1, %v1037_v60  ;;  %3083 = vmatmul.mubr.msk.bf16.gmra.mxu1 %vm150_vm4, %v3244_v56  ;;  %v1059_v0 = vor.u32 %v1058_v57, %v1055_v54 }
  0x3e   :  { %v1069_v1 = vrot.slane %v1067_v59, 4  ;;  %v1076_v3 = vshll.u32 %v808_v55, 16  ;;  %v1081_v5 = vshrl.u32 %v809_v62, 16  ;;  %v1084_v6 = vshll.u32 %v809_v62, 16  ;;  %3106 = vmatprep.mubr.msk.bf16.mxu1 %vm150_vm4, %v3247_v50  ;;  %v1824_v10 = vld [vmem:[%s4137_s0] sm:$0xe] }
  0x3f   :  { %v1046_v4 = vrot.slane %v1045_v61, 4  ;;  %v1090_v7 = vshll.u32 %v810_v63, 16  ;;  %v1060_v8 = vrot.slane %v1059_v0, 4  ;;  %v1072_v9 = vrot.slane %v1070_v2, 5  ;;  %v3251_v17 = vld [vmem:[#allocation2 + $0x10] sm:$0xff]   ;;  %v3252_v42 = vld [vmem:[#allocation2 + $0x18] sm:$0xff]  }
  0x40   :  { %v1083_v15 = vrot.slane %v1081_v5, 4  ;;  %v1086_v16 = vrot.slane %v1084_v6, 5  ;;  %v1078_v20 = vrot.slane %v1076_v3, 5  ;;  %v1825_v21 = vld [vmem:[%s4137_s0 + $0x4] sm:$0x1]  ;;  %v2897_v23 = vrot.slane %v1824_v10, 9 }
  0x41   :  { %v1051_v13 = vsel %vm3378_vm5, %v1046_v4, %v1050_v53  ;;  %v3246_v14 = vld [vmem:[#allocation2 + $0x48] sm:$0xff]   ;;  %v1065_v18 = vsel %vm3378_vm5, %v1060_v8, %v1064_v58  ;;  %v1073_v19 = vor.u32 %v1072_v9, %v1069_v1  ;;  %v2880_v24 = vld [vmem:[%s4136_s1 + $0x1c] sm:$0xf]  ;;  %v1092_v26 = vrot.slane %v1090_v7, 5  ;;  %v3253_v39 = vld [vmem:[#allocation2 + $0x14] sm:$0xff]  }
  0x42   :  { %1130 = vst.msk [vmem:[#allocation2 + $0x40] sm:$0xf] %vm56_vm1, %v1051_v13  ;;  %1131 = vst.msk [vmem:[#allocation2 + $0x44] sm:$0xf] %vm56_vm1, %v1065_v18  ;;  %3101 = vmatmul.mubr.msk.bf16.gmra.mxu0 %vm150_vm4, %v3246_v14  ;;  %v1087_v25 = vor.u32 %v1086_v16, %v1083_v15  ;;  %v1909_v27 = vrot.slane %v1825_v21, 5  ;;  %3220 = vmatprep.subr.msk.bf16.mxu1 %vm175_vm0, %v2880_v24  ;;  %v1693_v30 = vsel %vm175_vm0, %v2880_v24, 0 }
  0x43   :  { %v1074_v29 = vrot.slane %v1073_v19, 4  ;;  %3124 = vmatprep.mubr.msk.bf16.mxu0 %vm150_vm4, %v3249_v12  ;;  %v1826_v33 = vld [vmem:[%s4137_s0 + $0x8] sm:$0xe]  ;;  %v1827_v34 = vld [vmem:[%s4137_s0 + $0xc] sm:$0x1]  ;;  %v3254_v49 = vld [vmem:[#allocation2 + $0x1c] sm:$0xff]  }
  0x44   :  { %v1088_v31 = vrot.slane %v1087_v25, 4  ;;  %v1910_v32 = vsel %vm3635_vm8, %v2897_v23, %v1909_v27  ;;  %v3250_v35 = vld [vmem:[#allocation2 + $0xc] sm:$0xff]   ;;  %v2898_v37 = vrot.slane %v1826_v33, 9  ;;  %v1913_v38 = vrot.slane %v1827_v34, 5  ;;  %v2917_v43 = vld [vmem:[%s4136_s1 + $0x8] sm:$0xf] }
  0x45   :  { %v1079_v36 = vsel %vm3378_vm5, %v1074_v29, %v1078_v20  ;;  %2007 = vst.msk [vmem:[#allocation2] sm:$0xf] %vm56_vm1, %v1910_v32  ;;  %3107 = vmatmul.mubr.msk.bf16.vlgmr.msra.gmra.mxu1 %vm150_vm4, %v3248_v11  ;;  %3221 = vmatprep.subr.msk.bf16.mxu0 %vm175_vm0, %v2917_v43  ;;  %v2126_v28 = vsel %vm175_vm0, %v2917_v43, 0  ;;  %v3255_v44 = vld [vmem:[#allocation2 + $0x28] sm:$0xff]   ;;  %v1844_v45 = vld [vmem:[%s4137_s0 + $0x50] sm:$0xe] }
  0x46   :  { %v1093_v40 = vsel %vm3378_vm5, %v1088_v31, %v1092_v26  ;;  %1132 = vst.msk [vmem:[#allocation2 + $0x48] sm:$0xf] %vm56_vm1, %v1079_v36  ;;  %3141 = vmatpush3.bf16.msra.mxu1 %v1693_v30  ;;  %3110 = vmatprep.mubr.msk.bf16.mxu1 %vm150_vm4, %v3251_v17  ;;  %v1914_v41 = vsel %vm3635_vm8, %v2898_v37, %v1913_v38  ;;  %v1845_v46 = vld [vmem:[%s4137_s0 + $0x54] sm:$0x1]  ;;  %v2907_v47 = vrot.slane %v1844_v45, 9  ;;  %v3257_v56 = vld [vmem:[#allocation2 + $0x2c] sm:$0xff]  }
  0x47   :  { %1133 = vst.msk [vmem:[#allocation2 + $0x4c] sm:$0xf] %vm56_vm1, %v1093_v40  ;;  %2008 = vst.msk [vmem:[#allocation2 + $0x4] sm:$0xf] %vm56_vm1, %v1914_v41  ;;  %v1949_v48 = vrot.slane %v1845_v46, 5  ;;  %v3256_v55 = vld [vmem:[#allocation2 + $0x30] sm:$0xff]  }
  0x48   :  { %v1846_v50 = vld [vmem:[%s4137_s0 + $0x58] sm:$0xe]  ;;  %v1847_v51 = vld [vmem:[%s4137_s0 + $0x5c] sm:$0x1]  ;;  %v3695_v59 = vld [vmem:[#allocation2 + $0x8] sm:$0xff]   ;;  %v3297_v62 = vmov 0.0  }
  0x49   :  { %v1950_v52 = vsel %vm3635_vm8, %v2907_v47, %v1949_v48  ;;  %v2908_v53 = vrot.slane %v1846_v50, 9  ;;  %v1953_v54 = vrot.slane %v1847_v51, 5  ;;  %v3259_v58 = vld [vmem:[#allocation2 + $0x38] sm:$0xff]   ;;  %v1828_v60 = vld [vmem:[%s4137_s0 + $0x10] sm:$0xe]  ;;  %30 = vst.msk [vmem:[#allocation3 + $0x50] sm:$0xff] %vm19_vm9, %v3297_v62 }
  0x4a   :  { %3125 = vmatmul.mubr.msk.bf16.vlgmr.msra.gmra.mxu0 %vm150_vm4, %v3250_v35  ;;  %2017 = vst.msk [vmem:[#allocation2 + $0x28] sm:$0xf] %vm56_vm1, %v1950_v52  ;;  %v1829_v61 = vld [vmem:[%s4137_s0 + $0x14] sm:$0x1]  ;;  %v1830_v63 = vld [vmem:[%s4137_s0 + $0x18] sm:$0xe] }
  0x4b   :  { %3159 = vmatpush3.bf16.msra.mxu0 %v2126_v28  ;;  %3128 = vmatprep.mubr.msk.bf16.mxu0 %vm150_vm4, %v3253_v39  ;;  %v1954_v57 = vsel %vm3635_vm8, %v2908_v53, %v1953_v54  ;;  %20 = vst.msk [vmem:[#allocation3] sm:$0xff] %vm19_vm9, %v3297_v62  ;;  %21 = vst.msk [vmem:[#allocation3 + $0x8] sm:$0xff] %vm19_vm9, %v3297_v62  ;;  %v1831_v0 = vld [vmem:[%s4137_s0 + $0x1c] sm:$0x1]  ;;  %v2899_v1 = vrot.slane %v1828_v60, 9  ;;  %v1917_v2 = vrot.slane %v1829_v61, 5 }
  0x4c   :  { %2018 = vst.msk [vmem:[#allocation2 + $0x2c] sm:$0xf] %vm56_vm1, %v1954_v57  ;;  %v3258_v3 = vld [vmem:[#allocation2 + $0x34] sm:$0xff]   ;;  %v2900_v4 = vrot.slane %v1830_v63, 9  ;;  %v1921_v5 = vrot.slane %v1831_v0, 5  ;;  %v3261_v7 = vld [vmem:[#allocation2 + $0x3c] sm:$0xff]  }
  0x4d   :  { %3111 = vmatmul.mubr.msk.bf16.gmra.mxu1 %vm150_vm4, %v3252_v42  ;;  %22 = vst.msk [vmem:[#allocation3 + $0x10] sm:$0xff] %vm19_vm9, %v3297_v62  ;;  %23 = vst.msk [vmem:[#allocation3 + $0x18] sm:$0xff] %vm19_vm9, %v3297_v62  ;;  %v2934_v6 = vld [vmem:[%s4136_s1 + $0x14] sm:$0xf]  ;;  %v1918_v8 = vsel %vm3635_vm8, %v2899_v1, %v1917_v2  ;;  %v1832_v9 = vld [vmem:[%s4137_s0 + $0x20] sm:$0xe] }
  0x4e   :  { %3114 = vmatprep.mubr.msk.bf16.mxu1 %vm150_vm4, %v3255_v44  ;;  %24 = vst.msk [vmem:[#allocation3 + $0x20] sm:$0xff] %vm19_vm9, %v3297_v62  ;;  %25 = vst.msk [vmem:[#allocation3 + $0x28] sm:$0xff] %vm19_vm9, %v3297_v62  ;;  %3222 = vmatprep.subr.msk.bf16.mxu1 %vm175_vm0, %v2934_v6  ;;  %v1922_v10 = vsel %vm3635_vm8, %v2900_v4, %v1921_v5  ;;  %v1833_v11 = vld [vmem:[%s4137_s0 + $0x24] sm:$0x1]  ;;  %v1834_v12 = vld [vmem:[%s4137_s0 + $0x28] sm:$0xe] }
  0x4f   :  { %26 = vst.msk [vmem:[#allocation3 + $0x30] sm:$0xff] %vm19_vm9, %v3297_v62  ;;  %27 = vst.msk [vmem:[#allocation3 + $0x38] sm:$0xff] %vm19_vm9, %v3297_v62  ;;  %v1835_v13 = vld [vmem:[%s4137_s0 + $0x2c] sm:$0x1]  ;;  %v3260_v14 = vld [vmem:[#allocation2 + $0x40] sm:$0xff]   ;;  %v2901_v15 = vrot.slane %v1832_v9, 9 }
  0x50   :  { %28 = vst.msk [vmem:[#allocation3 + $0x40] sm:$0xff] %vm19_vm9, %v3297_v62  ;;  %29 = vst.msk [vmem:[#allocation3 + $0x48] sm:$0xff] %vm19_vm9, %v3297_v62  ;;  %v1925_v16 = vrot.slane %v1833_v11, 5  ;;  %v2902_v17 = vrot.slane %v1834_v12, 9  ;;  %v1929_v18 = vrot.slane %v1835_v13, 5  ;;  %v3264_v19 = vld [vmem:[#allocation2 + $0x10] sm:$0xff]  }
  0x51   :  { %31 = vst.msk [vmem:[#allocation3 + $0x58] sm:$0xff] %vm19_vm9, %v3297_v62  ;;  %32 = vst.msk [vmem:[#allocation3 + $0x60] sm:$0xff] %vm19_vm9, %v3297_v62  ;;  %v3267_v23 = vld [vmem:[#allocation2 + $0x18] sm:$0xff]   ;;  %v1836_v24 = vld [vmem:[%s4137_s0 + $0x30] sm:$0xe]  ;;  %v2356_v45 = vsel %vm175_vm0, %v2934_v6, 0 }
  0x52   :  { %3129 = vmatmul.mubr.msk.bf16.gmra.mxu0 %vm150_vm4, %v3254_v49  ;;  %33 = vst.msk [vmem:[#allocation3 + $0x68] sm:$0xff] %vm19_vm9, %v3297_v62  ;;  %34 = vst.msk [vmem:[#allocation3 + $0x70] sm:$0xff] %vm19_vm9, %v3297_v62  ;;  %v1926_v20 = vsel %vm3635_vm8, %v2901_v15, %v1925_v16  ;;  %v1930_v21 = vsel %vm3635_vm8, %v2902_v17, %v1929_v18  ;;  %v1837_v25 = vld [vmem:[%s4137_s0 + $0x34] sm:$0x1]  ;;  %v1838_v26 = vld [vmem:[%s4137_s0 + $0x38] sm:$0xe] }
  0x53   :  { %35 = vst.msk [vmem:[#allocation3 + $0x78] sm:$0xff] %vm19_vm9, %v3297_v62  ;;  %3132 = vmatprep.mubr.msk.bf16.mxu0 %vm150_vm4, %v3257_v56  ;;  %v1839_v27 = vld [vmem:[%s4137_s0 + $0x3c] sm:$0x1]  ;;  %v2903_v29 = vrot.slane %v1836_v24, 9  ;;  %v1933_v30 = vrot.slane %v1837_v25, 5  ;;  %v2904_v31 = vrot.slane %v1838_v26, 9 }
  0x54   :  { %2009 = vst.msk [vmem:[#allocation2 + $0x8] sm:$0xf] %vm56_vm1, %v1918_v8  ;;  %2010 = vst.msk [vmem:[#allocation2 + $0xc] sm:$0xf] %vm56_vm1, %v1922_v10  ;;  %v1937_v32 = vrot.slane %v1839_v27, 5  ;;  %v3262_v38 = vld [vmem:[#allocation2 + $0x44] sm:$0xff]  }
  0x55   :  { %3115 = vmatmul.mubr.msk.bf16.gmra.mxu1 %vm150_vm4, %v3256_v55  ;;  %2011 = vst.msk [vmem:[#allocation2 + $0x10] sm:$0xf] %vm56_vm1, %v1926_v20  ;;  %2012 = vst.msk [vmem:[#allocation2 + $0x14] sm:$0xf] %vm56_vm1, %v1930_v21  ;;  %v1840_v33 = vld [vmem:[%s4137_s0 + $0x40] sm:$0xe]  ;;  %v1934_v34 = vsel %vm3635_vm8, %v2903_v29, %v1933_v30 }
  0x56   :  { %3118 = vmatprep.mubr.msk.bf16.mxu1 %vm150_vm4, %v3259_v58  ;;  %v1938_v35 = vsel %vm3635_vm8, %v2904_v31, %v1937_v32  ;;  %v1841_v36 = vld [vmem:[%s4137_s0 + $0x44] sm:$0x1]  ;;  %v1842_v37 = vld [vmem:[%s4137_s0 + $0x48] sm:$0xe]  ;;  %2013 = vst.msk [vmem:[#allocation2 + $0x18] sm:$0xf] %vm56_vm1, %v1934_v34 }
  0x57   :  { %2014 = vst.msk [vmem:[#allocation2 + $0x1c] sm:$0xf] %vm56_vm1, %v1938_v35  ;;  %v1843_v39 = vld [vmem:[%s4137_s0 + $0x4c] sm:$0x1]  ;;  %v2905_v40 = vrot.slane %v1840_v33, 9  ;;  %v3265_v41 = vld [vmem:[#allocation2] sm:$0xff]  }
  0x58   :  { %v1941_v42 = vrot.slane %v1841_v36, 5  ;;  %v2906_v43 = vrot.slane %v1842_v37, 9  ;;  %v1945_v28 = vrot.slane %v1843_v39, 5  ;;  %v2951_v44 = vld [vmem:[%s4136_s1 + $0x20] sm:$0xf]  ;;  %v3271_v52 = vld [vmem:[#allocation2 + $0x30] sm:$0xff]  }
  0x59   :  { %3223 = vmatprep.subr.msk.bf16.mxu0 %vm175_vm0, %v2951_v44  ;;  %v3268_v46 = vld [vmem:[#allocation2 + $0x20] sm:$0xff]   ;;  %v1850_v51 = vld [vmem:[%s4137_s0 + $0x68] sm:$0xe]  ;;  %v1851_v53 = vld [vmem:[%s4137_s0 + $0x6c] sm:$0x1]  ;;  %vm2775_vm10 = vcmask 27648  }
  0x5a   :  { %3133 = vmatmul.mubr.msk.bf16.gmra.mxu0 %vm150_vm4, %v3258_v3  ;;  %v1942_v47 = vsel %vm3635_vm8, %v2905_v40, %v1941_v42  ;;  %v1946_v48 = vsel %vm3635_vm8, %v2906_v43, %v1945_v28  ;;  %v1848_v49 = vld [vmem:[%s4137_s0 + $0x60] sm:$0xe]  ;;  %v1849_v50 = vld [vmem:[%s4137_s0 + $0x64] sm:$0x1]  ;;  %v2910_v56 = vrot.slane %v1850_v51, 9  ;;  %v1961_v57 = vrot.slane %v1851_v53, 5 }
  0x5b   :  { %3136 = vmatprep.mubr.msk.bf16.mxu0 %vm150_vm4, %v3261_v7  ;;  %2015 = vst.msk [vmem:[#allocation2 + $0x20] sm:$0xf] %vm56_vm1, %v1942_v47  ;;  %2016 = vst.msk [vmem:[#allocation2 + $0x24] sm:$0xf] %vm56_vm1, %v1946_v48  ;;  %v2909_v54 = vrot.slane %v1848_v49, 9  ;;  %v1957_v55 = vrot.slane %v1849_v50, 5 }
  0x5c   :  { %v3266_v58 = vld [vmem:[#allocation2 + $0x8] sm:$0xff]   ;;  %v1962_v61 = vsel %vm3635_vm8, %v2910_v56, %v1961_v57  ;;  %v1852_v62 = vld [vmem:[%s4137_s0 + $0x70] sm:$0xe]  ;;  %v1853_v63 = vld [vmem:[%s4137_s0 + $0x74] sm:$0x1] }
  0x5d   :  { %3119 = vmatmul.mubr.msk.bf16.gmra.mxu1 %vm150_vm4, %v3260_v14  ;;  %v1958_v60 = vsel %vm3635_vm8, %v2909_v54, %v1957_v55  ;;  %v1854_v0 = vld [vmem:[%s4137_s0 + $0x78] sm:$0xe]  ;;  %v3269_v1 = vld [vmem:[#allocation2 + $0x10] sm:$0xff]   ;;  %2020 = vst.msk [vmem:[#allocation2 + $0x34] sm:$0xf] %vm56_vm1, %v1962_v61  ;;  %v2911_v3 = vrot.slane %v1852_v62, 9 }
  0x5e   :  { %3142 = vmatprep.mubr.msk.bf16.mxu1 %vm150_vm4, %v3695_v59  ;;  %v2586_v59 = vsel %vm175_vm0, %v2951_v44, 0  ;;  %2019 = vst.msk [vmem:[#allocation2 + $0x30] sm:$0xf] %vm56_vm1, %v1958_v60  ;;  %v1855_v2 = vld [vmem:[%s4137_s0 + $0x7c] sm:$0x1]  ;;  %v1965_v4 = vrot.slane %v1853_v63, 5 }
  0x5f   :  { %v2912_v5 = vrot.slane %v1854_v0, 9  ;;  %v3272_v6 = vld [vmem:[#allocation2 + $0x38] sm:$0xff]   ;;  %v1969_v7 = vrot.slane %v1855_v2, 5  ;;  %v3275_v9 = vld [vmem:[#allocation2 + $0x40] sm:$0xff]   ;;  %v1858_v13 = vld [vmem:[%s4137_s0 + $0x88] sm:$0xe] }
  0x60   :  { %v1966_v8 = vsel %vm3635_vm8, %v2911_v3, %v1965_v4  ;;  %v1856_v10 = vld [vmem:[%s4137_s0 + $0x80] sm:$0xe]  ;;  %v1857_v12 = vld [vmem:[%s4137_s0 + $0x84] sm:$0x1]  ;;  %v1859_v14 = vld [vmem:[%s4137_s0 + $0x8c] sm:$0x1] }
  0x61   :  { %v1970_v11 = vsel %vm3635_vm8, %v2912_v5, %v1969_v7  ;;  %2021 = vst.msk [vmem:[#allocation2 + $0x38] sm:$0xf] %vm56_vm1, %v1966_v8  ;;  %v2913_v15 = vrot.slane %v1856_v10, 9  ;;  %v1973_v16 = vrot.slane %v1857_v12, 5  ;;  %v2914_v17 = vrot.slane %v1858_v13, 9  ;;  %v3273_v21 = vld [vmem:[#allocation2 + $0x28] sm:$0xff]  }
  0x62   :  { %3137 = vmatmul.mubr.msk.bf16.gmra.mxu0 %vm150_vm4, %v3262_v38  ;;  %2022 = vst.msk [vmem:[#allocation2 + $0x3c] sm:$0xf] %vm56_vm1, %v1970_v11  ;;  %v1977_v18 = vrot.slane %v1859_v14, 5  ;;  %v1861_v20 = vld [vmem:[%s4137_s0 + $0x94] sm:$0x1]  ;;  %v3270_v27 = vld [vmem:[#allocation2 + $0x18] sm:$0xff]  }
  0x63   :  { %3160 = vmatprep.mubr.msk.bf16.mxu0 %vm150_vm4, %v3265_v41  ;;  %v1862_v25 = vld [vmem:[%s4137_s0 + $0x98] sm:$0xe]  ;;  %v1863_v26 = vld [vmem:[%s4137_s0 + $0x9c] sm:$0x1]  ;;  %v1981_v30 = vrot.slane %v1861_v20, 5  ;;  %v3276_v32 = vld [vmem:[#allocation2 + $0x48] sm:$0xff]  }
  0x64   :  { %v1978_v24 = vsel %vm3635_vm8, %v2914_v17, %v1977_v18  ;;  %v2916_v31 = vrot.slane %v1862_v25, 9  ;;  %v1985_v33 = vrot.slane %v1863_v26, 5  ;;  %v3279_v38 = vld [vmem:[#allocation2 + $0x4] sm:$0xff]   ;;  %v3280_v40 = vld [vmem:[#allocation2 + $0xc] sm:$0xff]   ;;  %v3283_v41 = vld [vmem:[#allocation2 + $0x14] sm:$0xff]  }
  0x65   :  { %3143 = vmatmul.mubr.msk.bf16.vlgmr.msra.gmra.mxu1 %vm150_vm4, %v3264_v19  ;;  %v1860_v19 = vld [vmem:[%s4137_s0 + $0x90] sm:$0xe]  ;;  %2024 = vst.msk [vmem:[#allocation2 + $0x44] sm:$0xf] %vm56_vm1, %v1978_v24  ;;  %v3281_v39 = vld [vmem:[#allocation2 + $0x8] sm:$0xff]   ;;  %v3285_v43 = vld [vmem:[#allocation2 + $0x18] sm:$0xff]  }
  0x66   :  { %3177 = vmatpush3.bf16.msra.mxu1 %v2356_v45  ;;  %3146 = vmatprep.mubr.msk.bf16.mxu1 %vm150_vm4, %v3267_v23  ;;  %v1974_v23 = vsel %vm3635_vm8, %v2913_v15, %v1973_v16  ;;  %v2915_v29 = vrot.slane %v1860_v19, 9  ;;  %v1986_v35 = vsel %vm3635_vm8, %v2916_v31, %v1985_v33  ;;  %v3274_v36 = vld [vmem:[#allocation2 + $0x30] sm:$0xff]   ;;  %v3284_v28 = vld [vmem:[#allocation2 + $0x1c] sm:$0xff]   ;;  %v96_v4 = vld [vmem:[#allocation3 + $0x18] sm:$0xff] }
  0x67   :  { %2023 = vst.msk [vmem:[#allocation2 + $0x40] sm:$0xf] %vm56_vm1, %v1974_v23  ;;  %2026 = vst.msk [vmem:[#allocation2 + $0x4c] sm:$0xf] %vm56_vm1, %v1986_v35  ;;  %v3282_v42 = vld [vmem:[#allocation2 + $0x10] sm:$0xff]   ;;  %v3286_v45 = vld [vmem:[#allocation2 + $0x20] sm:$0xff]  }
  0x68   :  { %v1982_v34 = vsel %vm3635_vm8, %v2915_v29, %v1981_v30  ;;  %v3287_v44 = vld [vmem:[#allocation2 + $0x2c] sm:$0xff]   ;;  %v3288_v47 = vld [vmem:[#allocation2 + $0x34] sm:$0xff]   ;;  %v103_v53 = vld [vmem:[#allocation3 + $0x50] sm:$0xff] }
  0x69   :  { %2025 = vst.msk [vmem:[#allocation2 + $0x48] sm:$0xf] %vm56_vm1, %v1982_v34  ;;  %v3277_v37 = vld [vmem:[#allocation2 + $0x38] sm:$0xff]   ;;  %v101_v55 = vld [vmem:[#allocation3 + $0x40] sm:$0xff]  ;;  %v95_v57 = vld [vmem:[#allocation3 + $0x10] sm:$0xff] }
  0x6a   :  { %3161 = vmatmul.mubr.msk.bf16.vlgmr.msra.gmra.mxu0 %vm150_vm4, %v3266_v58  ;;  %v3290_v49 = vld [vmem:[#allocation2 + $0x38] sm:$0xff]   ;;  %v93_v62 = vld [vmem:[#allocation3] sm:$0xff]  ;;  %v107_v7 = vld [vmem:[#allocation3 + $0x70] sm:$0xff] }
  0x6b   :  { %3195 = vmatpush3.bf16.msra.mxu0 %v2586_v59  ;;  %3164 = vmatprep.mubr.msk.bf16.mxu0 %vm150_vm4, %v3269_v1  ;;  %v104_v59 = vld [vmem:[#allocation3 + $0x58] sm:$0xff]  ;;  %v102_v1 = vld [vmem:[#allocation3 + $0x48] sm:$0xff]  ;;  %v105_v13 = vld [vmem:[#allocation3 + $0x60] sm:$0xff] }
  0x6c   :  { %v94_v10 = vld [vmem:[#allocation3 + $0x8] sm:$0xff]  ;;  %v99_v18 = vld [vmem:[#allocation3 + $0x30] sm:$0xff]  ;;  %v108_v19 = vld [vmem:[#allocation3 + $0x78] sm:$0xff] }
  0x6d   :  { %3147 = vmatmul.mubr.msk.bf16.gmra.mxu1 %vm150_vm4, %v3268_v46  ;;  %v3289_v46 = vld [vmem:[#allocation2 + $0x30] sm:$0xff]   ;;  %v106_v25 = vld [vmem:[#allocation3 + $0x68] sm:$0xff]  ;;  %v100_v31 = vld [vmem:[#allocation3 + $0x38] sm:$0xff] }
  0x6e   :  { %3150 = vmatprep.mubr.msk.bf16.mxu1 %vm150_vm4, %v3271_v52  ;;  %v3278_v22 = vld [vmem:[#allocation2 + $0x40] sm:$0xff]   ;;  %v97_v24 = vld [vmem:[#allocation3 + $0x20] sm:$0xff] }
  0x6f   :  { %v3291_v48 = vld [vmem:[#allocation2 + $0x3c] sm:$0xff]  }
  0x70   :  { %v3293_v50 = vld [vmem:[#allocation2 + $0x40] sm:$0xff]   ;;  %v3294_v52 = vld [vmem:[#allocation2 + $0x48] sm:$0xff]  }
  0x71   :  { %v3292_v51 = vld [vmem:[#allocation2 + $0x44] sm:$0xff]  }
  0x72   :  { %3165 = vmatmul.mubr.msk.bf16.gmra.mxu0 %vm150_vm4, %v3270_v27 }
  0x73   :  { %3168 = vmatprep.mubr.msk.bf16.mxu0 %vm150_vm4, %v3273_v21 }
  0x75   :  { %3151 = vmatmul.mubr.msk.bf16.gmra.mxu1 %vm150_vm4, %v3272_v6 }
  0x76   :  { %3154 = vmatprep.mubr.msk.bf16.mxu1 %vm150_vm4, %v3275_v9 }
  0x7a   :  { %3169 = vmatmul.mubr.msk.bf16.gmra.mxu0 %vm150_vm4, %v3274_v36 }
  0x7b   :  { %3172 = vmatprep.mubr.msk.bf16.mxu0 %vm150_vm4, %v3277_v37  ;;  %v98_v37 = vld [vmem:[#allocation3 + $0x28] sm:$0xff] }
  0x7d   :  { %3155 = vmatmul.mubr.msk.bf16.gmra.mxu1 %vm150_vm4, %v3276_v32 }
  0x7e   :  { %3178 = vmatprep.mubr.msk.bf16.mxu1 %vm150_vm4, %v3279_v38 }
  0x82   :  { %3173 = vmatmul.mubr.msk.bf16.gmra.mxu0 %vm150_vm4, %v3278_v22 }
  0x83   :  { %3196 = vmatprep.mubr.msk.bf16.mxu0 %vm150_vm4, %v3281_v39 }
  0x85   :  { %3179 = vmatmul.mubr.msk.bf16.vlgmr.msra.gmra.mxu1 %vm150_vm4, %v3280_v40 }
  0x86   :  { %3182 = vmatprep.mubr.msk.bf16.mxu1 %vm150_vm4, %v3283_v41 }
  0x8a   :  { %3197 = vmatmul.mubr.msk.bf16.vlgmr.msra.gmra.mxu0 %vm150_vm4, %v3282_v42 }
  0x8b   :  { %3200 = vmatprep.mubr.msk.bf16.mxu0 %vm150_vm4, %v3285_v43 }
  0x8d   :  { %3183 = vmatmul.mubr.msk.bf16.gmra.mxu1 %vm150_vm4, %v3284_v28 }
  0x8e   :  { %3186 = vmatprep.mubr.msk.bf16.mxu1 %vm150_vm4, %v3287_v44 }
  0x92   :  { %3201 = vmatmul.mubr.msk.bf16.gmra.mxu0 %vm150_vm4, %v3286_v45 }
  0x93   :  { %3204 = vmatprep.mubr.msk.bf16.mxu0 %vm150_vm4, %v3289_v46 }
  0x95   :  { %3187 = vmatmul.mubr.msk.bf16.gmra.mxu1 %vm150_vm4, %v3288_v47 }
  0x96   :  { %3190 = vmatprep.mubr.msk.bf16.mxu1 %vm150_vm4, %v3291_v48 }
  0x9a   :  { %3205 = vmatmul.mubr.msk.bf16.gmra.mxu0 %vm150_vm4, %v3290_v49 }
  0x9b   :  { %3208 = vmatprep.mubr.msk.bf16.mxu0 %vm150_vm4, %v3293_v50 }
  0x9d   :  { %3191 = vmatmul.mubr.msk.bf16.gmra.mxu1 %vm150_vm4, %v3292_v51 }
  0xa2   :  { %3209 = vmatmul.mubr.msk.bf16.gmra.mxu0 %vm150_vm4, %v3294_v52 }
  0xd0   :  { %v3062_v54 = vpop.f32.mrf.mxu1 }
  0xd1   :  { %v286_v56 = vadd.f32 %v3062_v54, %v103_v53 }
  0xd2   :  { %v245_v58 = vpop.f32.mrf.mxu1 }
  0xd3   :  { %303 = vst.msk [vmem:[#allocation3 + $0x50] sm:$0xff] %vm19_vm9, %v286_v56  ;;  %v284_v60 = vadd.f32 %v245_v58, %v101_v55  ;;  %v3054_v61 = vpop.f32.mrf.mxu0 }
  0xd4   :  { %v278_v63 = vadd.f32 %v3054_v61, %v95_v57  ;;  %v3063_v0 = vpop.f32.mrf.mxu1 }
  0xd5   :  { %301 = vst.msk [vmem:[#allocation3 + $0x40] sm:$0xff] %vm19_vm9, %v284_v60  ;;  %v287_v2 = vadd.f32 %v3063_v0, %v104_v59  ;;  %v213_v3 = vpop.f32.mrf.mxu0 }
  0xd6   :  { %295 = vst.msk [vmem:[#allocation3 + $0x10] sm:$0xff] %vm19_vm9, %v278_v63  ;;  %v276_v5 = vadd.f32 %v213_v3, %v93_v62  ;;  %v248_v6 = vpop.f32.mrf.mxu1 }
  0xd7   :  { %304 = vst.msk [vmem:[#allocation3 + $0x58] sm:$0xff] %vm19_vm9, %v287_v2  ;;  %v285_v8 = vadd.f32 %v248_v6, %v102_v1  ;;  %v3055_v9 = vpop.f32.mrf.mxu0 }
  0xd8   :  { %293 = vst.msk [vmem:[#allocation3] sm:$0xff] %vm19_vm9, %v276_v5  ;;  %v279_v11 = vadd.f32 %v3055_v9, %v96_v4  ;;  %v3066_v12 = vpop.f32.mrf.mxu1 }
  0xd9   :  { %302 = vst.msk [vmem:[#allocation3 + $0x48] sm:$0xff] %vm19_vm9, %v285_v8  ;;  %v290_v14 = vadd.f32 %v3066_v12, %v107_v7  ;;  %v216_v15 = vpop.f32.mrf.mxu0 }
  0xda   :  { %296 = vst.msk [vmem:[#allocation3 + $0x18] sm:$0xff] %vm19_vm9, %v279_v11  ;;  %v277_v16 = vadd.f32 %v216_v15, %v94_v10  ;;  %v261_v17 = vpop.f32.mrf.mxu1  ;;  %v336_v11 = vld [vmem:[#allocation3 + $0x50] sm:$0xff] }
  0xdb   :  { %307 = vst.msk [vmem:[#allocation3 + $0x70] sm:$0xff] %vm19_vm9, %v290_v14  ;;  %v288_v20 = vadd.f32 %v261_v17, %v105_v13  ;;  %v3058_v21 = vpop.f32.mrf.mxu0 }
  0xdc   :  { %294 = vst.msk [vmem:[#allocation3 + $0x8] sm:$0xff] %vm19_vm9, %v277_v16  ;;  %v3067_v23 = vpop.f32.mrf.mxu1  ;;  %v282_v26 = vadd.f32 %v3058_v21, %v99_v18  ;;  %v334_v16 = vld [vmem:[#allocation3 + $0x40] sm:$0xff] }
  0xdd   :  { %305 = vst.msk [vmem:[#allocation3 + $0x60] sm:$0xff] %vm19_vm9, %v288_v20  ;;  %v291_v27 = vadd.f32 %v3067_v23, %v108_v19  ;;  %v229_v29 = vpop.f32.mrf.mxu0  ;;  %v328_v32 = vld [vmem:[#allocation3 + $0x10] sm:$0xff] }
  0xde   :  { %v264_v30 = vpop.f32.mrf.mxu1  ;;  %299 = vst.msk [vmem:[#allocation3 + $0x30] sm:$0xff] %vm19_vm9, %v282_v26  ;;  %v280_v33 = vadd.f32 %v229_v29, %v97_v24  ;;  %v337_v23 = vld [vmem:[#allocation3 + $0x58] sm:$0xff] }
  0xdf   :  { %308 = vst.msk [vmem:[#allocation3 + $0x78] sm:$0xff] %vm19_vm9, %v291_v27  ;;  %v289_v34 = vadd.f32 %v264_v30, %v106_v25  ;;  %v3059_v35 = vpop.f32.mrf.mxu0  ;;  %v326_v38 = vld [vmem:[#allocation3] sm:$0xff] }
  0xe0   :  { %v3072_v36 = vpop.f32.mrf.mxu1  ;;  %297 = vst.msk [vmem:[#allocation3 + $0x20] sm:$0xff] %vm19_vm9, %v280_v33  ;;  %v283_v22 = vadd.f32 %v3059_v35, %v100_v31  ;;  %v335_v30 = vld [vmem:[#allocation3 + $0x48] sm:$0xff] }
  0xe1   :  { %306 = vst.msk [vmem:[#allocation3 + $0x68] sm:$0xff] %vm19_vm9, %v289_v34  ;;  %v510_v39 = vadd.f32 %v3072_v36, %v328_v32  ;;  %v232_v40 = vpop.f32.mrf.mxu0  ;;  %v329_v42 = vld [vmem:[#allocation3 + $0x18] sm:$0xff] }
  0xe2   :  { %v445_v41 = vpop.f32.mrf.mxu1  ;;  %300 = vst.msk [vmem:[#allocation3 + $0x38] sm:$0xff] %vm19_vm9, %v283_v22  ;;  %v281_v43 = vadd.f32 %v232_v40, %v98_v37 }
  0xe3   :  { %526 = vst.msk [vmem:[#allocation3 + $0x10] sm:$0xff] %vm19_vm9, %v510_v39  ;;  %v508_v28 = vadd.f32 %v445_v41, %v326_v38  ;;  %v3090_v45 = vpop.f32.mrf.mxu0  ;;  %v327_v47 = vld [vmem:[#allocation3 + $0x8] sm:$0xff] }
  0xe4   :  { %v3073_v44 = vpop.f32.mrf.mxu1  ;;  %298 = vst.msk [vmem:[#allocation3 + $0x28] sm:$0xff] %vm19_vm9, %v281_v43  ;;  %v340_v43 = vld [vmem:[#allocation3 + $0x70] sm:$0xff] }
  0xe5   :  { %524 = vst.msk [vmem:[#allocation3] sm:$0xff] %vm19_vm9, %v508_v28  ;;  %v511_v46 = vadd.f32 %v3073_v44, %v329_v42  ;;  %v676_v49 = vpop.f32.mrf.mxu0  ;;  %v332_v52 = vld [vmem:[#allocation3 + $0x30] sm:$0xff] }
  0xe6   :  { %v448_v48 = vpop.f32.mrf.mxu1 }
  0xe7   :  { %527 = vst.msk [vmem:[#allocation3 + $0x18] sm:$0xff] %vm19_vm9, %v511_v46  ;;  %v509_v50 = vadd.f32 %v448_v48, %v327_v47  ;;  %v3091_v51 = vpop.f32.mrf.mxu0  ;;  %v330_v56 = vld [vmem:[#allocation3 + $0x20] sm:$0xff] }
  0xe8   :  { %v3076_v55 = vpop.f32.mrf.mxu1  ;;  %v338_v48 = vld [vmem:[#allocation3 + $0x60] sm:$0xff] }
  0xe9   :  { %525 = vst.msk [vmem:[#allocation3 + $0x8] sm:$0xff] %vm19_vm9, %v509_v50  ;;  %v514_v58 = vadd.f32 %v3076_v55, %v332_v52  ;;  %v679_v59 = vpop.f32.mrf.mxu0  ;;  %v333_v62 = vld [vmem:[#allocation3 + $0x38] sm:$0xff]  ;;  %v339_v55 = vld [vmem:[#allocation3 + $0x68] sm:$0xff] }
  0xea   :  { %v559_v53 = vld [vmem:[#allocation3 + $0x10] sm:$0xff]  ;;  %v461_v61 = vpop.f32.mrf.mxu1 }
  0xeb   :  { %v741_v54 = vadd.f32 %v3090_v45, %v559_v53  ;;  %530 = vst.msk [vmem:[#allocation3 + $0x30] sm:$0xff] %vm19_vm9, %v514_v58  ;;  %v512_v0 = vadd.f32 %v461_v61, %v330_v56  ;;  %v331_v7 = vld [vmem:[#allocation3 + $0x28] sm:$0xff] }
  0xec   :  { %v557_v57 = vld [vmem:[#allocation3] sm:$0xff]  ;;  %v3077_v2 = vpop.f32.mrf.mxu1  ;;  %v3094_v5 = vpop.f32.mrf.mxu0 }
  0xed   :  { %757 = vst.msk [vmem:[#allocation3 + $0x10] sm:$0xff] %vm19_vm9, %v741_v54  ;;  %v739_v60 = vadd.f32 %v676_v49, %v557_v57  ;;  %528 = vst.msk [vmem:[#allocation3 + $0x20] sm:$0xff] %vm19_vm9, %v512_v0  ;;  %v515_v4 = vadd.f32 %v3077_v2, %v333_v62 }
  0xee   :  { %v560_v63 = vld [vmem:[#allocation3 + $0x18] sm:$0xff]  ;;  %v464_v8 = vpop.f32.mrf.mxu1  ;;  %v692_v10 = vpop.f32.mrf.mxu0 }
  0xef   :  { %755 = vst.msk [vmem:[#allocation3] sm:$0xff] %vm19_vm9, %v739_v60  ;;  %v742_v1 = vadd.f32 %v3091_v51, %v560_v63  ;;  %531 = vst.msk [vmem:[#allocation3 + $0x38] sm:$0xff] %vm19_vm9, %v515_v4  ;;  %v513_v9 = vadd.f32 %v464_v8, %v331_v7  ;;  %v341_v51 = vld [vmem:[#allocation3 + $0x78] sm:$0xff] }
  0xf0   :  { %v558_v3 = vld [vmem:[#allocation3 + $0x8] sm:$0xff]  ;;  %v3080_v12 = vpop.f32.mrf.mxu1  ;;  %v3095_v14 = vpop.f32.mrf.mxu0 }
  0xf1   :  { %758 = vst.msk [vmem:[#allocation3 + $0x18] sm:$0xff] %vm19_vm9, %v742_v1  ;;  %v740_v6 = vadd.f32 %v679_v59, %v558_v3  ;;  %529 = vst.msk [vmem:[#allocation3 + $0x28] sm:$0xff] %vm19_vm9, %v513_v9  ;;  %v518_v13 = vadd.f32 %v3080_v12, %v336_v11 }
  0xf2   :  { %v563_v15 = vld [vmem:[#allocation3 + $0x30] sm:$0xff]  ;;  %v477_v17 = vpop.f32.mrf.mxu1  ;;  %v695_v20 = vpop.f32.mrf.mxu0 }
  0xf3   :  { %756 = vst.msk [vmem:[#allocation3 + $0x8] sm:$0xff] %vm19_vm9, %v740_v6  ;;  %v745_v18 = vadd.f32 %v3094_v5, %v563_v15  ;;  %534 = vst.msk [vmem:[#allocation3 + $0x50] sm:$0xff] %vm19_vm9, %v518_v13  ;;  %v516_v19 = vadd.f32 %v477_v17, %v334_v16 }
  0xf4   :  { %v561_v21 = vld [vmem:[#allocation3 + $0x20] sm:$0xff]  ;;  %v3081_v24 = vpop.f32.mrf.mxu1  ;;  %v3098_v27 = vpop.f32.mrf.mxu0  ;;  %v1152_v59 = vld [vmem:[#allocation3 + $0x10] sm:$0xff] }
  0xf5   :  { %761 = vst.msk [vmem:[#allocation3 + $0x30] sm:$0xff] %vm19_vm9, %v745_v18  ;;  %v743_v25 = vadd.f32 %v692_v10, %v561_v21  ;;  %532 = vst.msk [vmem:[#allocation3 + $0x40] sm:$0xff] %vm19_vm9, %v516_v19  ;;  %v519_v26 = vadd.f32 %v3081_v24, %v337_v23 }
  0xf6   :  { %v564_v29 = vld [vmem:[#allocation3 + $0x38] sm:$0xff]  ;;  %v480_v31 = vpop.f32.mrf.mxu1  ;;  %v708_v35 = vpop.f32.mrf.mxu0  ;;  %v1150_v0 = vld [vmem:[#allocation3] sm:$0xff] }
  0xf7   :  { %759 = vst.msk [vmem:[#allocation3 + $0x20] sm:$0xff] %vm19_vm9, %v743_v25  ;;  %v746_v32 = vadd.f32 %v3095_v14, %v564_v29  ;;  %535 = vst.msk [vmem:[#allocation3 + $0x58] sm:$0xff] %vm19_vm9, %v519_v26  ;;  %v517_v33 = vadd.f32 %v480_v31, %v335_v30 }
  0xf8   :  { %v562_v34 = vld [vmem:[#allocation3 + $0x28] sm:$0xff]  ;;  %v3099_v39 = vpop.f32.mrf.mxu0  ;;  %v1153_v6 = vld [vmem:[#allocation3 + $0x18] sm:$0xff] }
  0xf9   :  { %762 = vst.msk [vmem:[#allocation3 + $0x38] sm:$0xff] %vm19_vm9, %v746_v32  ;;  %v744_v36 = vadd.f32 %v695_v20, %v562_v34  ;;  %533 = vst.msk [vmem:[#allocation3 + $0x48] sm:$0xff] %vm19_vm9, %v517_v33 }
  0xfa   :  { %v567_v37 = vld [vmem:[#allocation3 + $0x50] sm:$0xff]  ;;  %v711_v45 = vpop.f32.mrf.mxu0  ;;  %v1151_v12 = vld [vmem:[#allocation3 + $0x8] sm:$0xff] }
  0xfb   :  { %760 = vst.msk [vmem:[#allocation3 + $0x28] sm:$0xff] %vm19_vm9, %v744_v36  ;;  %v749_v38 = vadd.f32 %v3098_v27, %v567_v37 }
  0xfc   :  { %v565_v22 = vld [vmem:[#allocation3 + $0x40] sm:$0xff]  ;;  %v1156_v18 = vld [vmem:[#allocation3 + $0x30] sm:$0xff] }
  0xfd   :  { %765 = vst.msk [vmem:[#allocation3 + $0x50] sm:$0xff] %vm19_vm9, %v749_v38  ;;  %v747_v40 = vadd.f32 %v708_v35, %v565_v22  ;;  %v3084_v28 = vpop.f32.mrf.mxu1 }
  0xfe   :  { %v568_v41 = vld [vmem:[#allocation3 + $0x58] sm:$0xff]  ;;  %v522_v46 = vadd.f32 %v3084_v28, %v340_v43  ;;  %v1154_v25 = vld [vmem:[#allocation3 + $0x20] sm:$0xff] }
  0xff   :  { %763 = vst.msk [vmem:[#allocation3 + $0x40] sm:$0xff] %vm19_vm9, %v747_v40  ;;  %v750_v42 = vadd.f32 %v3099_v39, %v568_v41  ;;  %v493_v49 = vpop.f32.mrf.mxu1 }
 0x100   :  { %v566_v44 = vld [vmem:[#allocation3 + $0x48] sm:$0xff]  ;;  %538 = vst.msk [vmem:[#allocation3 + $0x70] sm:$0xff] %vm19_vm9, %v522_v46  ;;  %v520_v50 = vadd.f32 %v493_v49, %v338_v48  ;;  %v1157_v32 = vld [vmem:[#allocation3 + $0x38] sm:$0xff] }
 0x101   :  { %766 = vst.msk [vmem:[#allocation3 + $0x58] sm:$0xff] %vm19_vm9, %v750_v42  ;;  %v748_v47 = vadd.f32 %v711_v45, %v566_v44  ;;  %v3085_v52 = vpop.f32.mrf.mxu1 }
 0x102   :  { %536 = vst.msk [vmem:[#allocation3 + $0x60] sm:$0xff] %vm19_vm9, %v520_v50  ;;  %v523_v53 = vadd.f32 %v3085_v52, %v341_v51  ;;  %v3102_v54 = vpop.f32.mrf.mxu0  ;;  %v1155_v38 = vld [vmem:[#allocation3 + $0x28] sm:$0xff] }
 0x103   :  { %764 = vst.msk [vmem:[#allocation3 + $0x48] sm:$0xff] %vm19_vm9, %v748_v47  ;;  %v496_v56 = vpop.f32.mrf.mxu1 }
 0x104   :  { %539 = vst.msk [vmem:[#allocation3 + $0x78] sm:$0xff] %vm19_vm9, %v523_v53  ;;  %v521_v57 = vadd.f32 %v496_v56, %v339_v55  ;;  %v724_v58 = vpop.f32.mrf.mxu0  ;;  %v1160_v43 = vld [vmem:[#allocation3 + $0x50] sm:$0xff] }
 0x105   :  { %v3108_v60 = vpop.f32.mrf.mxu1 }
 0x106   :  { %537 = vst.msk [vmem:[#allocation3 + $0x68] sm:$0xff] %vm19_vm9, %v521_v57  ;;  %v3103_v61 = vpop.f32.mrf.mxu0  ;;  %v1334_v62 = vadd.f32 %v3108_v60, %v1152_v59  ;;  %v1158_v48 = vld [vmem:[#allocation3 + $0x40] sm:$0xff] }
 0x107   :  { %v571_v63 = vld [vmem:[#allocation3 + $0x70] sm:$0xff]  ;;  %v1269_v1 = vpop.f32.mrf.mxu1 }
 0x108   :  { %v753_v2 = vadd.f32 %v3102_v54, %v571_v63  ;;  %1350 = vst.msk [vmem:[#allocation3 + $0x10] sm:$0xff] %vm19_vm9, %v1334_v62  ;;  %v727_v3 = vpop.f32.mrf.mxu0  ;;  %v1332_v4 = vadd.f32 %v1269_v1, %v1150_v0  ;;  %v1161_v54 = vld [vmem:[#allocation3 + $0x58] sm:$0xff] }
 0x109   :  { %v569_v5 = vld [vmem:[#allocation3 + $0x60] sm:$0xff]  ;;  %v3109_v7 = vpop.f32.mrf.mxu1 }
 0x10a   :  { %769 = vst.msk [vmem:[#allocation3 + $0x70] sm:$0xff] %vm19_vm9, %v753_v2  ;;  %v751_v8 = vadd.f32 %v724_v58, %v569_v5  ;;  %1348 = vst.msk [vmem:[#allocation3] sm:$0xff] %vm19_vm9, %v1332_v4  ;;  %v1335_v9 = vadd.f32 %v3109_v7, %v1153_v6  ;;  %v3126_v10 = vpop.f32.mrf.mxu0  ;;  %v1159_v60 = vld [vmem:[#allocation3 + $0x48] sm:$0xff] }
 0x10b   :  { %v572_v11 = vld [vmem:[#allocation3 + $0x78] sm:$0xff]  ;;  %v1272_v13 = vpop.f32.mrf.mxu1 }
 0x10c   :  { %767 = vst.msk [vmem:[#allocation3 + $0x60] sm:$0xff] %vm19_vm9, %v751_v8  ;;  %v754_v14 = vadd.f32 %v3103_v61, %v572_v11  ;;  %1351 = vst.msk [vmem:[#allocation3 + $0x18] sm:$0xff] %vm19_vm9, %v1335_v9  ;;  %v1333_v15 = vadd.f32 %v1272_v13, %v1151_v12  ;;  %v1499_v16 = vpop.f32.mrf.mxu0 }
 0x10d   :  { %v570_v17 = vld [vmem:[#allocation3 + $0x68] sm:$0xff]  ;;  %v3112_v19 = vpop.f32.mrf.mxu1 }
 0x10e   :  { %770 = vst.msk [vmem:[#allocation3 + $0x78] sm:$0xff] %vm19_vm9, %v754_v14  ;;  %v752_v20 = vadd.f32 %v727_v3, %v570_v17  ;;  %1349 = vst.msk [vmem:[#allocation3 + $0x8] sm:$0xff] %vm19_vm9, %v1333_v15  ;;  %v1338_v21 = vadd.f32 %v3112_v19, %v1156_v18  ;;  %v3127_v23 = vpop.f32.mrf.mxu0 }
 0x10f   :  { %v1382_v24 = vld [vmem:[#allocation3 + $0x10] sm:$0xff]  ;;  %v1285_v26 = vpop.f32.mrf.mxu1 }
 0x110   :  { %768 = vst.msk [vmem:[#allocation3 + $0x68] sm:$0xff] %vm19_vm9, %v752_v20  ;;  %v1564_v27 = vadd.f32 %v3126_v10, %v1382_v24  ;;  %1354 = vst.msk [vmem:[#allocation3 + $0x30] sm:$0xff] %vm19_vm9, %v1338_v21  ;;  %v1336_v29 = vadd.f32 %v1285_v26, %v1154_v25  ;;  %v1502_v30 = vpop.f32.mrf.mxu0 }
 0x111   :  { %v1380_v31 = vld [vmem:[#allocation3] sm:$0xff]  ;;  %v3113_v33 = vpop.f32.mrf.mxu1  ;;  %v1164_v2 = vld [vmem:[#allocation3 + $0x70] sm:$0xff] }
 0x112   :  { %1580 = vst.msk [vmem:[#allocation3 + $0x10] sm:$0xff] %vm19_vm9, %v1564_v27  ;;  %v1562_v34 = vadd.f32 %v1499_v16, %v1380_v31  ;;  %1352 = vst.msk [vmem:[#allocation3 + $0x20] sm:$0xff] %vm19_vm9, %v1336_v29  ;;  %v1339_v35 = vadd.f32 %v3113_v33, %v1157_v32  ;;  %v3130_v36 = vpop.f32.mrf.mxu0 }
 0x113   :  { %v1383_v37 = vld [vmem:[#allocation3 + $0x18] sm:$0xff]  ;;  %v1288_v22 = vpop.f32.mrf.mxu1  ;;  %v1162_v8 = vld [vmem:[#allocation3 + $0x60] sm:$0xff] }
 0x114   :  { %1578 = vst.msk [vmem:[#allocation3] sm:$0xff] %vm19_vm9, %v1562_v34  ;;  %v1565_v39 = vadd.f32 %v3127_v23, %v1383_v37  ;;  %1355 = vst.msk [vmem:[#allocation3 + $0x38] sm:$0xff] %vm19_vm9, %v1339_v35  ;;  %v1337_v40 = vadd.f32 %v1288_v22, %v1155_v38  ;;  %v1515_v41 = vpop.f32.mrf.mxu0 }
 0x115   :  { %v1381_v42 = vld [vmem:[#allocation3 + $0x8] sm:$0xff]  ;;  %v3116_v28 = vpop.f32.mrf.mxu1  ;;  %v1165_v14 = vld [vmem:[#allocation3 + $0x78] sm:$0xff] }
 0x116   :  { %1581 = vst.msk [vmem:[#allocation3 + $0x18] sm:$0xff] %vm19_vm9, %v1565_v39  ;;  %v1563_v44 = vadd.f32 %v1502_v30, %v1381_v42  ;;  %1353 = vst.msk [vmem:[#allocation3 + $0x28] sm:$0xff] %vm19_vm9, %v1337_v40  ;;  %v1342_v45 = vadd.f32 %v3116_v28, %v1160_v43  ;;  %v3131_v46 = vpop.f32.mrf.mxu0 }
 0x117   :  { %v1386_v47 = vld [vmem:[#allocation3 + $0x30] sm:$0xff]  ;;  %v1301_v49 = vpop.f32.mrf.mxu1  ;;  %v1163_v20 = vld [vmem:[#allocation3 + $0x68] sm:$0xff] }
 0x118   :  { %1579 = vst.msk [vmem:[#allocation3 + $0x8] sm:$0xff] %vm19_vm9, %v1563_v44  ;;  %v1568_v50 = vadd.f32 %v3130_v36, %v1386_v47  ;;  %1358 = vst.msk [vmem:[#allocation3 + $0x50] sm:$0xff] %vm19_vm9, %v1342_v45  ;;  %v1340_v51 = vadd.f32 %v1301_v49, %v1158_v48  ;;  %v1518_v52 = vpop.f32.mrf.mxu0 }
 0x119   :  { %v1384_v53 = vld [vmem:[#allocation3 + $0x20] sm:$0xff]  ;;  %v3117_v55 = vpop.f32.mrf.mxu1  ;;  %v1612_v27 = vld [vmem:[#allocation3 + $0x10] sm:$0xff] }
 0x11a   :  { %1584 = vst.msk [vmem:[#allocation3 + $0x30] sm:$0xff] %vm19_vm9, %v1568_v50  ;;  %v1566_v56 = vadd.f32 %v1515_v41, %v1384_v53  ;;  %1356 = vst.msk [vmem:[#allocation3 + $0x40] sm:$0xff] %vm19_vm9, %v1340_v51  ;;  %v1343_v57 = vadd.f32 %v3117_v55, %v1161_v54  ;;  %v3134_v58 = vpop.f32.mrf.mxu0 }
 0x11b   :  { %v1387_v59 = vld [vmem:[#allocation3 + $0x38] sm:$0xff]  ;;  %v1304_v61 = vpop.f32.mrf.mxu1  ;;  %v1610_v34 = vld [vmem:[#allocation3] sm:$0xff] }
 0x11c   :  { %1582 = vst.msk [vmem:[#allocation3 + $0x20] sm:$0xff] %vm19_vm9, %v1566_v56  ;;  %v1569_v62 = vadd.f32 %v3131_v46, %v1387_v59  ;;  %1359 = vst.msk [vmem:[#allocation3 + $0x58] sm:$0xff] %vm19_vm9, %v1343_v57  ;;  %v1341_v63 = vadd.f32 %v1304_v61, %v1159_v60  ;;  %v1531_v0 = vpop.f32.mrf.mxu0 }
 0x11d   :  { %v1385_v1 = vld [vmem:[#allocation3 + $0x28] sm:$0xff]  ;;  %v3120_v3 = vpop.f32.mrf.mxu1  ;;  %v1613_v39 = vld [vmem:[#allocation3 + $0x18] sm:$0xff] }
 0x11e   :  { %1585 = vst.msk [vmem:[#allocation3 + $0x38] sm:$0xff] %vm19_vm9, %v1569_v62  ;;  %v1567_v4 = vadd.f32 %v1518_v52, %v1385_v1  ;;  %1357 = vst.msk [vmem:[#allocation3 + $0x48] sm:$0xff] %vm19_vm9, %v1341_v63  ;;  %v1346_v5 = vadd.f32 %v3120_v3, %v1164_v2  ;;  %v3135_v6 = vpop.f32.mrf.mxu0 }
 0x11f   :  { %v1390_v7 = vld [vmem:[#allocation3 + $0x50] sm:$0xff]  ;;  %v1317_v9 = vpop.f32.mrf.mxu1  ;;  %v1611_v44 = vld [vmem:[#allocation3 + $0x8] sm:$0xff] }
 0x120   :  { %1583 = vst.msk [vmem:[#allocation3 + $0x28] sm:$0xff] %vm19_vm9, %v1567_v4  ;;  %v1572_v10 = vadd.f32 %v3134_v58, %v1390_v7  ;;  %1362 = vst.msk [vmem:[#allocation3 + $0x70] sm:$0xff] %vm19_vm9, %v1346_v5  ;;  %v1344_v11 = vadd.f32 %v1317_v9, %v1162_v8  ;;  %v1534_v12 = vpop.f32.mrf.mxu0 }
 0x121   :  { %v1388_v13 = vld [vmem:[#allocation3 + $0x40] sm:$0xff]  ;;  %v3121_v15 = vpop.f32.mrf.mxu1  ;;  %v1616_v50 = vld [vmem:[#allocation3 + $0x30] sm:$0xff] }
 0x122   :  { %1588 = vst.msk [vmem:[#allocation3 + $0x50] sm:$0xff] %vm19_vm9, %v1572_v10  ;;  %v1570_v16 = vadd.f32 %v1531_v0, %v1388_v13  ;;  %1360 = vst.msk [vmem:[#allocation3 + $0x60] sm:$0xff] %vm19_vm9, %v1344_v11  ;;  %v1347_v17 = vadd.f32 %v3121_v15, %v1165_v14  ;;  %v3138_v18 = vpop.f32.mrf.mxu0 }
 0x123   :  { %v1391_v19 = vld [vmem:[#allocation3 + $0x58] sm:$0xff]  ;;  %v1320_v21 = vpop.f32.mrf.mxu1  ;;  %v1614_v56 = vld [vmem:[#allocation3 + $0x20] sm:$0xff] }
 0x124   :  { %1586 = vst.msk [vmem:[#allocation3 + $0x40] sm:$0xff] %vm19_vm9, %v1570_v16  ;;  %v1573_v23 = vadd.f32 %v3135_v6, %v1391_v19  ;;  %1363 = vst.msk [vmem:[#allocation3 + $0x78] sm:$0xff] %vm19_vm9, %v1347_v17  ;;  %v1345_v24 = vadd.f32 %v1320_v21, %v1163_v20  ;;  %v1547_v25 = vpop.f32.mrf.mxu0 }
 0x125   :  { %v1389_v26 = vld [vmem:[#allocation3 + $0x48] sm:$0xff]  ;;  %v3144_v29 = vpop.f32.mrf.mxu1  ;;  %v1617_v62 = vld [vmem:[#allocation3 + $0x38] sm:$0xff] }
 0x126   :  { %1589 = vst.msk [vmem:[#allocation3 + $0x58] sm:$0xff] %vm19_vm9, %v1573_v23  ;;  %v1571_v30 = vadd.f32 %v1534_v12, %v1389_v26  ;;  %1361 = vst.msk [vmem:[#allocation3 + $0x68] sm:$0xff] %vm19_vm9, %v1345_v24  ;;  %v3139_v31 = vpop.f32.mrf.mxu0  ;;  %v1794_v32 = vadd.f32 %v3144_v29, %v1612_v27 }
 0x127   :  { %v1394_v33 = vld [vmem:[#allocation3 + $0x70] sm:$0xff]  ;;  %v1729_v35 = vpop.f32.mrf.mxu1  ;;  %v1615_v4 = vld [vmem:[#allocation3 + $0x28] sm:$0xff] }
 0x128   :  { %1587 = vst.msk [vmem:[#allocation3 + $0x48] sm:$0xff] %vm19_vm9, %v1571_v30  ;;  %v1576_v36 = vadd.f32 %v3138_v18, %v1394_v33  ;;  %1810 = vst.msk [vmem:[#allocation3 + $0x10] sm:$0xff] %vm19_vm9, %v1794_v32  ;;  %v1550_v37 = vpop.f32.mrf.mxu0  ;;  %v1792_v38 = vadd.f32 %v1729_v35, %v1610_v34 }
 0x129   :  { %v1392_v22 = vld [vmem:[#allocation3 + $0x60] sm:$0xff]  ;;  %v3145_v40 = vpop.f32.mrf.mxu1  ;;  %v1620_v10 = vld [vmem:[#allocation3 + $0x50] sm:$0xff] }
 0x12a   :  { %1592 = vst.msk [vmem:[#allocation3 + $0x70] sm:$0xff] %vm19_vm9, %v1576_v36  ;;  %v1574_v41 = vadd.f32 %v1547_v25, %v1392_v22  ;;  %1808 = vst.msk [vmem:[#allocation3] sm:$0xff] %vm19_vm9, %v1792_v38  ;;  %v1795_v42 = vadd.f32 %v3145_v40, %v1613_v39  ;;  %v3162_v43 = vpop.f32.mrf.mxu0 }
 0x12b   :  { %v1395_v28 = vld [vmem:[#allocation3 + $0x78] sm:$0xff]  ;;  %v1732_v45 = vpop.f32.mrf.mxu1  ;;  %v1618_v16 = vld [vmem:[#allocation3 + $0x40] sm:$0xff] }
 0x12c   :  { %1590 = vst.msk [vmem:[#allocation3 + $0x60] sm:$0xff] %vm19_vm9, %v1574_v41  ;;  %v1577_v46 = vadd.f32 %v3139_v31, %v1395_v28  ;;  %1811 = vst.msk [vmem:[#allocation3 + $0x18] sm:$0xff] %vm19_vm9, %v1795_v42  ;;  %v1793_v47 = vadd.f32 %v1732_v45, %v1611_v44  ;;  %v2162_v48 = vpop.f32.mrf.mxu0 }
 0x12d   :  { %v1393_v49 = vld [vmem:[#allocation3 + $0x68] sm:$0xff]  ;;  %v3148_v51 = vpop.f32.mrf.mxu1  ;;  %v1621_v23 = vld [vmem:[#allocation3 + $0x58] sm:$0xff] }
 0x12e   :  { %1593 = vst.msk [vmem:[#allocation3 + $0x78] sm:$0xff] %vm19_vm9, %v1577_v46  ;;  %v1575_v52 = vadd.f32 %v1550_v37, %v1393_v49  ;;  %1809 = vst.msk [vmem:[#allocation3 + $0x8] sm:$0xff] %vm19_vm9, %v1793_v47  ;;  %v1798_v53 = vadd.f32 %v3148_v51, %v1616_v50  ;;  %v3163_v54 = vpop.f32.mrf.mxu0 }
 0x12f   :  { %v2045_v55 = vld [vmem:[#allocation3 + $0x10] sm:$0xff]  ;;  %v1745_v57 = vpop.f32.mrf.mxu1  ;;  %v1619_v30 = vld [vmem:[#allocation3 + $0x48] sm:$0xff] }
 0x130   :  { %1591 = vst.msk [vmem:[#allocation3 + $0x68] sm:$0xff] %vm19_vm9, %v1575_v52  ;;  %v2227_v58 = vadd.f32 %v3162_v43, %v2045_v55  ;;  %1814 = vst.msk [vmem:[#allocation3 + $0x30] sm:$0xff] %vm19_vm9, %v1798_v53  ;;  %v1796_v59 = vadd.f32 %v1745_v57, %v1614_v56  ;;  %v2165_v60 = vpop.f32.mrf.mxu0 }
 0x131   :  { %v2043_v61 = vld [vmem:[#allocation3] sm:$0xff]  ;;  %v3149_v63 = vpop.f32.mrf.mxu1  ;;  %v1624_v36 = vld [vmem:[#allocation3 + $0x70] sm:$0xff] }
 0x132   :  { %2243 = vst.msk [vmem:[#allocation3 + $0x10] sm:$0xff] %vm19_vm9, %v2227_v58  ;;  %v2225_v0 = vadd.f32 %v2162_v48, %v2043_v61  ;;  %1812 = vst.msk [vmem:[#allocation3 + $0x20] sm:$0xff] %vm19_vm9, %v1796_v59  ;;  %v1799_v1 = vadd.f32 %v3149_v63, %v1617_v62  ;;  %v3166_v2 = vpop.f32.mrf.mxu0 }
 0x133   :  { %v2046_v3 = vld [vmem:[#allocation3 + $0x18] sm:$0xff]  ;;  %v1748_v5 = vpop.f32.mrf.mxu1  ;;  %v1622_v41 = vld [vmem:[#allocation3 + $0x60] sm:$0xff] }
 0x134   :  { %2241 = vst.msk [vmem:[#allocation3] sm:$0xff] %vm19_vm9, %v2225_v0  ;;  %v2228_v6 = vadd.f32 %v3163_v54, %v2046_v3  ;;  %1815 = vst.msk [vmem:[#allocation3 + $0x38] sm:$0xff] %vm19_vm9, %v1799_v1  ;;  %v1797_v7 = vadd.f32 %v1748_v5, %v1615_v4  ;;  %v2178_v8 = vpop.f32.mrf.mxu0 }
 0x135   :  { %v2044_v9 = vld [vmem:[#allocation3 + $0x8] sm:$0xff]  ;;  %v3152_v11 = vpop.f32.mrf.mxu1  ;;  %v1625_v46 = vld [vmem:[#allocation3 + $0x78] sm:$0xff] }
 0x136   :  { %2244 = vst.msk [vmem:[#allocation3 + $0x18] sm:$0xff] %vm19_vm9, %v2228_v6  ;;  %v2226_v12 = vadd.f32 %v2165_v60, %v2044_v9  ;;  %1813 = vst.msk [vmem:[#allocation3 + $0x28] sm:$0xff] %vm19_vm9, %v1797_v7  ;;  %v1802_v13 = vadd.f32 %v3152_v11, %v1620_v10  ;;  %v3167_v14 = vpop.f32.mrf.mxu0 }
 0x137   :  { %v2049_v15 = vld [vmem:[#allocation3 + $0x30] sm:$0xff]  ;;  %v1761_v17 = vpop.f32.mrf.mxu1  ;;  %v1623_v52 = vld [vmem:[#allocation3 + $0x68] sm:$0xff] }
 0x138   :  { %2242 = vst.msk [vmem:[#allocation3 + $0x8] sm:$0xff] %vm19_vm9, %v2226_v12  ;;  %v2231_v18 = vadd.f32 %v3166_v2, %v2049_v15  ;;  %1818 = vst.msk [vmem:[#allocation3 + $0x50] sm:$0xff] %vm19_vm9, %v1802_v13  ;;  %v1800_v19 = vadd.f32 %v1761_v17, %v1618_v16  ;;  %v2181_v20 = vpop.f32.mrf.mxu0 }
 0x139   :  { %v2047_v21 = vld [vmem:[#allocation3 + $0x20] sm:$0xff]  ;;  %v3153_v24 = vpop.f32.mrf.mxu1  ;;  %v2275_v58 = vld [vmem:[#allocation3 + $0x10] sm:$0xff] }
 0x13a   :  { %2247 = vst.msk [vmem:[#allocation3 + $0x30] sm:$0xff] %vm19_vm9, %v2231_v18  ;;  %v2229_v25 = vadd.f32 %v2178_v8, %v2047_v21  ;;  %1816 = vst.msk [vmem:[#allocation3 + $0x40] sm:$0xff] %vm19_vm9, %v1800_v19  ;;  %v1803_v26 = vadd.f32 %v3153_v24, %v1621_v23  ;;  %v3170_v27 = vpop.f32.mrf.mxu0 }
 0x13b   :  { %v2050_v29 = vld [vmem:[#allocation3 + $0x38] sm:$0xff]  ;;  %v1764_v31 = vpop.f32.mrf.mxu1  ;;  %v2273_v0 = vld [vmem:[#allocation3] sm:$0xff] }
 0x13c   :  { %2245 = vst.msk [vmem:[#allocation3 + $0x20] sm:$0xff] %vm19_vm9, %v2229_v25  ;;  %v2232_v32 = vadd.f32 %v3167_v14, %v2050_v29  ;;  %1819 = vst.msk [vmem:[#allocation3 + $0x58] sm:$0xff] %vm19_vm9, %v1803_v26  ;;  %v1801_v33 = vadd.f32 %v1764_v31, %v1619_v30  ;;  %v2194_v34 = vpop.f32.mrf.mxu0 }
 0x13d   :  { %v2048_v35 = vld [vmem:[#allocation3 + $0x28] sm:$0xff]  ;;  %v3156_v37 = vpop.f32.mrf.mxu1  ;;  %v2276_v6 = vld [vmem:[#allocation3 + $0x18] sm:$0xff] }
 0x13e   :  { %2248 = vst.msk [vmem:[#allocation3 + $0x38] sm:$0xff] %vm19_vm9, %v2232_v32  ;;  %v2230_v38 = vadd.f32 %v2181_v20, %v2048_v35  ;;  %1817 = vst.msk [vmem:[#allocation3 + $0x48] sm:$0xff] %vm19_vm9, %v1801_v33  ;;  %v1806_v22 = vadd.f32 %v3156_v37, %v1624_v36  ;;  %v3171_v39 = vpop.f32.mrf.mxu0 }
 0x13f   :  { %v2053_v40 = vld [vmem:[#allocation3 + $0x50] sm:$0xff]  ;;  %v1777_v42 = vpop.f32.mrf.mxu1  ;;  %v2274_v12 = vld [vmem:[#allocation3 + $0x8] sm:$0xff] }
 0x140   :  { %2246 = vst.msk [vmem:[#allocation3 + $0x28] sm:$0xff] %vm19_vm9, %v2230_v38  ;;  %v2235_v43 = vadd.f32 %v3170_v27, %v2053_v40  ;;  %1822 = vst.msk [vmem:[#allocation3 + $0x70] sm:$0xff] %vm19_vm9, %v1806_v22  ;;  %v1804_v28 = vadd.f32 %v1777_v42, %v1622_v41  ;;  %v2197_v44 = vpop.f32.mrf.mxu0 }
 0x141   :  { %v2051_v45 = vld [vmem:[#allocation3 + $0x40] sm:$0xff]  ;;  %v3157_v47 = vpop.f32.mrf.mxu1  ;;  %v2279_v18 = vld [vmem:[#allocation3 + $0x30] sm:$0xff] }
 0x142   :  { %2251 = vst.msk [vmem:[#allocation3 + $0x50] sm:$0xff] %vm19_vm9, %v2235_v43  ;;  %v2233_v48 = vadd.f32 %v2194_v34, %v2051_v45  ;;  %1820 = vst.msk [vmem:[#allocation3 + $0x60] sm:$0xff] %vm19_vm9, %v1804_v28  ;;  %v1807_v49 = vadd.f32 %v3157_v47, %v1625_v46  ;;  %v3174_v50 = vpop.f32.mrf.mxu0  ;;  %v4033_v47 = vld [vmem:[%s4138_s2] ss:$0 sm:$0xff] }
 0x143   :  { %v2054_v51 = vld [vmem:[#allocation3 + $0x58] sm:$0xff]  ;;  %v1780_v53 = vpop.f32.mrf.mxu1  ;;  %v2277_v25 = vld [vmem:[#allocation3 + $0x20] sm:$0xff] }
 0x144   :  { %2249 = vst.msk [vmem:[#allocation3 + $0x40] sm:$0xff] %vm19_vm9, %v2233_v48  ;;  %v2236_v54 = vadd.f32 %v3171_v39, %v2054_v51  ;;  %1823 = vst.msk [vmem:[#allocation3 + $0x78] sm:$0xff] %vm19_vm9, %v1807_v49  ;;  %v1805_v55 = vadd.f32 %v1780_v53, %v1623_v52  ;;  %v2210_v56 = vpop.f32.mrf.mxu0 }
 0x145   :  { %v2052_v57 = vld [vmem:[#allocation3 + $0x48] sm:$0xff]  ;;  %v3180_v59 = vpop.f32.mrf.mxu1  ;;  %v2280_v32 = vld [vmem:[#allocation3 + $0x38] sm:$0xff] }
 0x146   :  { %2252 = vst.msk [vmem:[#allocation3 + $0x58] sm:$0xff] %vm19_vm9, %v2236_v54  ;;  %v2234_v60 = vadd.f32 %v2197_v44, %v2052_v57  ;;  %1821 = vst.msk [vmem:[#allocation3 + $0x68] sm:$0xff] %vm19_vm9, %v1805_v55  ;;  %v3175_v61 = vpop.f32.mrf.mxu0  ;;  %v2457_v62 = vadd.f32 %v3180_v59, %v2275_v58 }
 0x147   :  { %v2057_v63 = vld [vmem:[#allocation3 + $0x70] sm:$0xff]  ;;  %v2392_v1 = vpop.f32.mrf.mxu1  ;;  %v2278_v38 = vld [vmem:[#allocation3 + $0x28] sm:$0xff] }
 0x148   :  { %2250 = vst.msk [vmem:[#allocation3 + $0x48] sm:$0xff] %vm19_vm9, %v2234_v60  ;;  %v2239_v2 = vadd.f32 %v3174_v50, %v2057_v63  ;;  %2473 = vst.msk [vmem:[#allocation3 + $0x10] sm:$0xff] %vm19_vm9, %v2457_v62  ;;  %v2213_v3 = vpop.f32.mrf.mxu0  ;;  %v2455_v4 = vadd.f32 %v2392_v1, %v2273_v0 }
 0x149   :  { %v2055_v5 = vld [vmem:[#allocation3 + $0x60] sm:$0xff]  ;;  %v3181_v7 = vpop.f32.mrf.mxu1  ;;  %v2283_v43 = vld [vmem:[#allocation3 + $0x50] sm:$0xff] }
 0x14a   :  { %2255 = vst.msk [vmem:[#allocation3 + $0x70] sm:$0xff] %vm19_vm9, %v2239_v2  ;;  %v2237_v8 = vadd.f32 %v2210_v56, %v2055_v5  ;;  %2471 = vst.msk [vmem:[#allocation3] sm:$0xff] %vm19_vm9, %v2455_v4  ;;  %v2458_v9 = vadd.f32 %v3181_v7, %v2276_v6  ;;  %v3198_v10 = vpop.f32.mrf.mxu0 }
 0x14b   :  { %v2058_v11 = vld [vmem:[#allocation3 + $0x78] sm:$0xff]  ;;  %v2395_v13 = vpop.f32.mrf.mxu1  ;;  %v2281_v49 = vld [vmem:[#allocation3 + $0x40] sm:$0xff] }
 0x14c   :  { %2253 = vst.msk [vmem:[#allocation3 + $0x60] sm:$0xff] %vm19_vm9, %v2237_v8  ;;  %v2240_v14 = vadd.f32 %v3175_v61, %v2058_v11  ;;  %2474 = vst.msk [vmem:[#allocation3 + $0x18] sm:$0xff] %vm19_vm9, %v2458_v9  ;;  %v2456_v15 = vadd.f32 %v2395_v13, %v2274_v12  ;;  %v2622_v16 = vpop.f32.mrf.mxu0 }
 0x14d   :  { %v2056_v17 = vld [vmem:[#allocation3 + $0x68] sm:$0xff]  ;;  %v3184_v19 = vpop.f32.mrf.mxu1  ;;  %v2284_v56 = vld [vmem:[#allocation3 + $0x58] sm:$0xff] }
 0x14e   :  { %2256 = vst.msk [vmem:[#allocation3 + $0x78] sm:$0xff] %vm19_vm9, %v2240_v14  ;;  %v2238_v20 = vadd.f32 %v2213_v3, %v2056_v17  ;;  %2472 = vst.msk [vmem:[#allocation3 + $0x8] sm:$0xff] %vm19_vm9, %v2456_v15  ;;  %v2461_v21 = vadd.f32 %v3184_v19, %v2279_v18  ;;  %v3199_v23 = vpop.f32.mrf.mxu0 }
 0x14f   :  { %v2505_v24 = vld [vmem:[#allocation3 + $0x10] sm:$0xff]  ;;  %v2408_v26 = vpop.f32.mrf.mxu1  ;;  %v2282_v0 = vld [vmem:[#allocation3 + $0x48] sm:$0xff] }
 0x150   :  { %2254 = vst.msk [vmem:[#allocation3 + $0x68] sm:$0xff] %vm19_vm9, %v2238_v20  ;;  %v2687_v27 = vadd.f32 %v3198_v10, %v2505_v24  ;;  %2477 = vst.msk [vmem:[#allocation3 + $0x30] sm:$0xff] %vm19_vm9, %v2461_v21  ;;  %v2459_v29 = vadd.f32 %v2408_v26, %v2277_v25  ;;  %v2625_v30 = vpop.f32.mrf.mxu0 }
 0x151   :  { %v2503_v31 = vld [vmem:[#allocation3] sm:$0xff]  ;;  %v3185_v33 = vpop.f32.mrf.mxu1  ;;  %v2287_v9 = vld [vmem:[#allocation3 + $0x70] sm:$0xff] }
 0x152   :  { %2703 = vst.msk [vmem:[#allocation3 + $0x10] sm:$0xff] %vm19_vm9, %v2687_v27  ;;  %v2685_v34 = vadd.f32 %v2622_v16, %v2503_v31  ;;  %2475 = vst.msk [vmem:[#allocation3 + $0x20] sm:$0xff] %vm19_vm9, %v2459_v29  ;;  %v2462_v35 = vadd.f32 %v3185_v33, %v2280_v32  ;;  %v3202_v36 = vpop.f32.mrf.mxu0 }
 0x153   :  { %v2506_v37 = vld [vmem:[#allocation3 + $0x18] sm:$0xff]  ;;  %v2411_v22 = vpop.f32.mrf.mxu1  ;;  %v2285_v18 = vld [vmem:[#allocation3 + $0x60] sm:$0xff] }
 0x154   :  { %2701 = vst.msk [vmem:[#allocation3] sm:$0xff] %vm19_vm9, %v2685_v34  ;;  %v2688_v39 = vadd.f32 %v3199_v23, %v2506_v37  ;;  %2478 = vst.msk [vmem:[#allocation3 + $0x38] sm:$0xff] %vm19_vm9, %v2462_v35  ;;  %v2460_v40 = vadd.f32 %v2411_v22, %v2278_v38  ;;  %v2638_v41 = vpop.f32.mrf.mxu0 }
 0x155   :  { %v2504_v42 = vld [vmem:[#allocation3 + $0x8] sm:$0xff]  ;;  %v3188_v28 = vpop.f32.mrf.mxu1  ;;  %v2288_v29 = vld [vmem:[#allocation3 + $0x78] sm:$0xff] }
 0x156   :  { %2704 = vst.msk [vmem:[#allocation3 + $0x18] sm:$0xff] %vm19_vm9, %v2688_v39  ;;  %v2686_v44 = vadd.f32 %v2625_v30, %v2504_v42  ;;  %2476 = vst.msk [vmem:[#allocation3 + $0x28] sm:$0xff] %vm19_vm9, %v2460_v40  ;;  %v2465_v45 = vadd.f32 %v3188_v28, %v2283_v43  ;;  %v3203_v46 = vpop.f32.mrf.mxu0 }
 0x157   :  { %v2509_v48 = vld [vmem:[#allocation3 + $0x30] sm:$0xff]  ;;  %v2424_v50 = vpop.f32.mrf.mxu1  ;;  %v2286_v38 = vld [vmem:[#allocation3 + $0x68] sm:$0xff] }
 0x158   :  { %2702 = vst.msk [vmem:[#allocation3 + $0x8] sm:$0xff] %vm19_vm9, %v2686_v44  ;;  %v2691_v51 = vadd.f32 %v3202_v36, %v2509_v48  ;;  %2481 = vst.msk [vmem:[#allocation3 + $0x50] sm:$0xff] %vm19_vm9, %v2465_v45  ;;  %v2463_v52 = vadd.f32 %v2424_v50, %v2281_v49  ;;  %v2641_v53 = vpop.f32.mrf.mxu0 }
 0x159   :  { %v2722_v54 = vld [vmem:[#allocation3 + $0x10] sm:$0xff]  ;;  %v2507_v55 = vld [vmem:[#allocation3 + $0x20] sm:$0xff]  ;;  %v3189_v57 = vpop.f32.mrf.mxu1 }
 0x15a   :  { %v2745_v58 = vadd.f32 %v4033_v47, %v2722_v54  ;;  %2707 = vst.msk [vmem:[#allocation3 + $0x30] sm:$0xff] %vm19_vm9, %v2691_v51  ;;  %v2689_v59 = vadd.f32 %v2638_v41, %v2507_v55  ;;  %2479 = vst.msk [vmem:[#allocation3 + $0x40] sm:$0xff] %vm19_vm9, %v2463_v52  ;;  %v2466_v60 = vadd.f32 %v3189_v57, %v2284_v56  ;;  %v3206_v61 = vpop.f32.mrf.mxu0 }
 0x15b   :  { %v2720_v62 = vld [vmem:[#allocation3] sm:$0xff]  ;;  %v2510_v63 = vld [vmem:[#allocation3 + $0x38] sm:$0xff]  ;;  %v2427_v1 = vpop.f32.mrf.mxu1 }
 0x15c   :  { %v2761_v2 = vpack.c.bf16 %v2745_v58, %v2745_v58  ;;  %v2743_v3 = vadd.f32 %v4033_v47, %v2720_v62  ;;  %2705 = vst.msk [vmem:[#allocation3 + $0x20] sm:$0xff] %vm19_vm9, %v2689_v59  ;;  %v2692_v4 = vadd.f32 %v3203_v46, %v2510_v63  ;;  %2482 = vst.msk [vmem:[#allocation3 + $0x58] sm:$0xff] %vm19_vm9, %v2466_v60  ;;  %v2654_v6 = vpop.f32.mrf.mxu0 }
 0x15d   :  { %v2464_v5 = vadd.f32 %v2427_v1, %v2282_v0  ;;  %v2723_v7 = vld [vmem:[#allocation3 + $0x18] sm:$0xff]  ;;  %v2508_v8 = vld [vmem:[#allocation3 + $0x28] sm:$0xff]  ;;  %v3192_v10 = vpop.f32.mrf.mxu1 }
 0x15e   :  { %2778 = vst.msk [vmem:[%s4139_s3 + $0x8] sm:$0xf] %vm2775_vm10, %v2761_v2  ;;  %v2759_v11 = vpack.c.bf16 %v2743_v3, %v2743_v3  ;;  %v2746_v12 = vadd.f32 %v4033_v47, %v2723_v7  ;;  %v2690_v13 = vadd.f32 %v2641_v53, %v2508_v8  ;;  %v2469_v14 = vadd.f32 %v3192_v10, %v2287_v9  ;;  %v3207_v15 = vpop.f32.mrf.mxu0 }
 0x15f   :  { %2708 = vst.msk [vmem:[#allocation3 + $0x38] sm:$0xff] %vm19_vm9, %v2692_v4  ;;  %2480 = vst.msk [vmem:[#allocation3 + $0x48] sm:$0xff] %vm19_vm9, %v2464_v5  ;;  %v2721_v16 = vld [vmem:[#allocation3 + $0x8] sm:$0xff]  ;;  %v2513_v17 = vld [vmem:[#allocation3 + $0x50] sm:$0xff]  ;;  %v2440_v19 = vpop.f32.mrf.mxu1 }
 0x160   :  { %2776 = vst.msk [vmem:[%s4139_s3] sm:$0xf] %vm2775_vm10, %v2759_v11  ;;  %v2762_v20 = vpack.c.bf16 %v2746_v12, %v2746_v12  ;;  %v2744_v21 = vadd.f32 %v4033_v47, %v2721_v16  ;;  %v2695_v23 = vadd.f32 %v3206_v61, %v2513_v17  ;;  %v2467_v24 = vadd.f32 %v2440_v19, %v2285_v18  ;;  %v2657_v25 = vpop.f32.mrf.mxu0 }
 0x161   :  { %2706 = vst.msk [vmem:[#allocation3 + $0x28] sm:$0xff] %vm19_vm9, %v2690_v13  ;;  %2485 = vst.msk [vmem:[#allocation3 + $0x70] sm:$0xff] %vm19_vm9, %v2469_v14  ;;  %v2726_v26 = vld [vmem:[#allocation3 + $0x30] sm:$0xff]  ;;  %v2511_v27 = vld [vmem:[#allocation3 + $0x40] sm:$0xff]  ;;  %v3193_v30 = vpop.f32.mrf.mxu1 }
 0x162   :  { %2779 = vst.msk [vmem:[%s4139_s3 + $0xc] sm:$0xf] %vm2775_vm10, %v2762_v20  ;;  %v2760_v31 = vpack.c.bf16 %v2744_v21, %v2744_v21  ;;  %v2749_v32 = vadd.f32 %v4033_v47, %v2726_v26  ;;  %v2693_v33 = vadd.f32 %v2654_v6, %v2511_v27  ;;  %v2470_v34 = vadd.f32 %v3193_v30, %v2288_v29  ;;  %v3210_v35 = vpop.f32.mrf.mxu0 }
 0x163   :  { %2711 = vst.msk [vmem:[#allocation3 + $0x50] sm:$0xff] %vm19_vm9, %v2695_v23  ;;  %2483 = vst.msk [vmem:[#allocation3 + $0x60] sm:$0xff] %vm19_vm9, %v2467_v24  ;;  %v2724_v36 = vld [vmem:[#allocation3 + $0x20] sm:$0xff]  ;;  %v2514_v37 = vld [vmem:[#allocation3 + $0x58] sm:$0xff]  ;;  %v2443_v22 = vpop.f32.mrf.mxu1 }
 0x164   :  { %2777 = vst.msk [vmem:[%s4139_s3 + $0x4] sm:$0xf] %vm2775_vm10, %v2760_v31  ;;  %v2765_v39 = vpack.c.bf16 %v2749_v32, %v2749_v32  ;;  %v2747_v40 = vadd.f32 %v4033_v47, %v2724_v36  ;;  %v2696_v41 = vadd.f32 %v3207_v15, %v2514_v37  ;;  %v2468_v42 = vadd.f32 %v2443_v22, %v2286_v38  ;;  %v2670_v44 = vpop.f32.mrf.mxu0 }
 0x165   :  { %2709 = vst.msk [vmem:[#allocation3 + $0x40] sm:$0xff] %vm19_vm9, %v2693_v33  ;;  %2486 = vst.msk [vmem:[#allocation3 + $0x78] sm:$0xff] %vm19_vm9, %v2470_v34 }
 0x166   :  { %v2727_v43 = vld [vmem:[#allocation3 + $0x38] sm:$0xff]  ;;  %v2512_v28 = vld [vmem:[#allocation3 + $0x48] sm:$0xff]  ;;  %2782 = vst.msk [vmem:[%s4139_s3 + $0x18] sm:$0xf] %vm2775_vm10, %v2765_v39  ;;  %v2763_v45 = vpack.c.bf16 %v2747_v40, %v2747_v40  ;;  %v3211_v56 = vpop.f32.mrf.mxu0 }
 0x167   :  { %v2750_v46 = vadd.f32 %v4033_v47, %v2727_v43  ;;  %2712 = vst.msk [vmem:[#allocation3 + $0x58] sm:$0xff] %vm19_vm9, %v2696_v41  ;;  %v2694_v48 = vadd.f32 %v2657_v25, %v2512_v28  ;;  %2484 = vst.msk [vmem:[#allocation3 + $0x68] sm:$0xff] %vm19_vm9, %v2468_v42 }
 0x168   :  { %v2725_v49 = vld [vmem:[#allocation3 + $0x28] sm:$0xff]  ;;  %v2517_v50 = vld [vmem:[#allocation3 + $0x70] sm:$0xff]  ;;  %2780 = vst.msk [vmem:[%s4139_s3 + $0x10] sm:$0xf] %vm2775_vm10, %v2763_v45  ;;  %v2673_v3 = vpop.f32.mrf.mxu0 }
 0x169   :  { %v2766_v51 = vpack.c.bf16 %v2750_v46, %v2750_v46  ;;  %v2748_v52 = vadd.f32 %v4033_v47, %v2725_v49  ;;  %2710 = vst.msk [vmem:[#allocation3 + $0x48] sm:$0xff] %vm19_vm9, %v2694_v48  ;;  %v2699_v53 = vadd.f32 %v3210_v35, %v2517_v50 }
 0x16a   :  { %v2730_v54 = vld [vmem:[#allocation3 + $0x50] sm:$0xff]  ;;  %v2515_v55 = vld [vmem:[#allocation3 + $0x60] sm:$0xff] }
 0x16b   :  { %2783 = vst.msk [vmem:[%s4139_s3 + $0x1c] sm:$0xf] %vm2775_vm10, %v2766_v51  ;;  %v2764_v57 = vpack.c.bf16 %v2748_v52, %v2748_v52  ;;  %v2753_v58 = vadd.f32 %v4033_v47, %v2730_v54  ;;  %v2697_v59 = vadd.f32 %v2670_v44, %v2515_v55 }
 0x16c   :  { %2715 = vst.msk [vmem:[#allocation3 + $0x70] sm:$0xff] %vm19_vm9, %v2699_v53  ;;  %v2728_v60 = vld [vmem:[#allocation3 + $0x40] sm:$0xff]  ;;  %v2518_v61 = vld [vmem:[#allocation3 + $0x78] sm:$0xff] }
 0x16d   :  { %2781 = vst.msk [vmem:[%s4139_s3 + $0x14] sm:$0xf] %vm2775_vm10, %v2764_v57  ;;  %v2769_v62 = vpack.c.bf16 %v2753_v58, %v2753_v58  ;;  %v2751_v63 = vadd.f32 %v4033_v47, %v2728_v60  ;;  %v2700_v0 = vadd.f32 %v3211_v56, %v2518_v61 }
 0x16e   :  { %2713 = vst.msk [vmem:[#allocation3 + $0x60] sm:$0xff] %vm19_vm9, %v2697_v59  ;;  %v2731_v1 = vld [vmem:[#allocation3 + $0x58] sm:$0xff]  ;;  %v2516_v2 = vld [vmem:[#allocation3 + $0x68] sm:$0xff] }
 0x16f   :  { %2786 = vst.msk [vmem:[%s4139_s3 + $0x28] sm:$0xf] %vm2775_vm10, %v2769_v62  ;;  %v2767_v4 = vpack.c.bf16 %v2751_v63, %v2751_v63  ;;  %v2754_v5 = vadd.f32 %v4033_v47, %v2731_v1  ;;  %v2698_v6 = vadd.f32 %v2673_v3, %v2516_v2 }
 0x170   :  { %2716 = vst.msk [vmem:[#allocation3 + $0x78] sm:$0xff] %vm19_vm9, %v2700_v0  ;;  %v2729_v7 = vld [vmem:[#allocation3 + $0x48] sm:$0xff] }
 0x171   :  { %2784 = vst.msk [vmem:[%s4139_s3 + $0x20] sm:$0xf] %vm2775_vm10, %v2767_v4  ;;  %v2770_v8 = vpack.c.bf16 %v2754_v5, %v2754_v5  ;;  %v2752_v9 = vadd.f32 %v4033_v47, %v2729_v7 }
 0x172   :  { %2714 = vst.msk [vmem:[#allocation3 + $0x68] sm:$0xff] %vm19_vm9, %v2698_v6 }
 0x173   :  { %v2734_v10 = vld [vmem:[#allocation3 + $0x70] sm:$0xff]  ;;  %2787 = vst.msk [vmem:[%s4139_s3 + $0x2c] sm:$0xf] %vm2775_vm10, %v2770_v8  ;;  %v2768_v11 = vpack.c.bf16 %v2752_v9, %v2752_v9 }
 0x174   :  { %v2757_v12 = vadd.f32 %v4033_v47, %v2734_v10 }
 0x175   :  { %v2732_v13 = vld [vmem:[#allocation3 + $0x60] sm:$0xff]  ;;  %2785 = vst.msk [vmem:[%s4139_s3 + $0x24] sm:$0xf] %vm2775_vm10, %v2768_v11 }
 0x176   :  { %v2773_v14 = vpack.c.bf16 %v2757_v12, %v2757_v12  ;;  %v2755_v15 = vadd.f32 %v4033_v47, %v2732_v13 }
 0x177   :  { %v2735_v16 = vld [vmem:[#allocation3 + $0x78] sm:$0xff] }
 0x178   :  { %2790 = vst.msk [vmem:[%s4139_s3 + $0x38] sm:$0xf] %vm2775_vm10, %v2773_v14  ;;  %v2771_v17 = vpack.c.bf16 %v2755_v15, %v2755_v15  ;;  %v2758_v18 = vadd.f32 %v4033_v47, %v2735_v16 }
 0x179   :  { %v2733_v19 = vld [vmem:[#allocation3 + $0x68] sm:$0xff] }
 0x17a   :  { %2788 = vst.msk [vmem:[%s4139_s3 + $0x30] sm:$0xf] %vm2775_vm10, %v2771_v17  ;;  %v2774_v20 = vpack.c.bf16 %v2758_v18, %v2758_v18  ;;  %v2756_v21 = vadd.f32 %v4033_v47, %v2733_v19 }
 0x17c   :  { %2791 = vst.msk [vmem:[%s4139_s3 + $0x3c] sm:$0xf] %vm2775_vm10, %v2774_v20  ;;  %v2772_v23 = vpack.c.bf16 %v2756_v21, %v2756_v21 }
 0x17e   :  { %2789 = vst.msk [vmem:[%s4139_s3 + $0x34] sm:$0xf] %vm2775_vm10, %v2772_v23 }

// kernel: resnet_conv5_forward.7
= control target key start
LH: loop header
LB: loop body
LE: loop exit
PB: predicated region body
PF: predicated region fallthrough
CT: control target
= control target key end

     0   :  { %vm175_vm0 = vcmask 1041408   ;;  %vm56_vm1 = vcmask 27648   ;;  %vm810_vm2 = vsmask.f32 3328  ;;  %vm811_vm3 = vsmask.f32 7440  ;;  %s4131_s1 = inlined_call_operand.vmem [shape: bf16[3,3,4,4], index: 1, kind: input, shape index: {}]   ;;  %s4132_s0 = inlined_call_operand.vmem [shape: bf16[2,10,10,4], index: 0, kind: input, shape index: {}]   ;;  %s4133_s2 = inlined_call_operand.vmem [shape: f32[1,4], index: 2, kind: input, shape index: {}]   ;;  %s4134_s3 = inlined_call_operand.vmem [shape: f32[2,8,8,4], index: 3, kind: output, shape index: {}]  }
   0x1   :  { %v109_v0 = vld [vmem:[%s4131_s1] sm:$0x3]  ;;  %v46_v1 = vld [vmem:[%s4132_s0 + $0x50] sm:$0xf]  ;;  %v47_v2 = vld [vmem:[%s4132_s0 + $0x58] sm:$0xf] }
   0x2   :  { %3213 = vmatprep.subr.msk.bf16.mxu1 %vm175_vm0, %v109_v0  ;;  %v177_v3 = vsel %vm175_vm0, %v109_v0, 0  ;;  %67 = vst.msk [vmem:[#allocation2 + $0x28] sm:$0xf] %vm56_vm1, %v46_v1  ;;  %68 = vst.msk [vmem:[#allocation2 + $0x2c] sm:$0xf] %vm56_vm1, %v47_v2  ;;  %3212 = vmatprep.subr.msk.bf16.mxu0 %vm175_vm0, %v109_v0  ;;  %vm19_vm4 = vcmask 31744  }
   0x3   :  { %v790_v4 = vld [vmem:[%s4132_s0 + $0x50] sm:$0xf]  ;;  %v791_v5 = vld [vmem:[%s4132_s0 + $0x54] sm:$0x1]  ;;  %3211 = vmatpush3.bf16.msra.mxu1 %v177_v3  ;;  %3049 = vmatpush3.bf16.msra.mxu0 %v177_v3  ;;  %v2810_v9 = vld [vmem:[%s4131_s1 + $0x6] sm:$0x3] }
   0x4   :  { %v954_v6 = vshrl.u32 %v790_v4, 16  ;;  %v957_v7 = vshll.u32 %v790_v4, 16  ;;  %v963_v8 = vshll.u32 %v791_v5, 16  ;;  %v48_v10 = vld [vmem:[%s4132_s0 + $0x60] sm:$0xf]  ;;  %3214 = vmatprep.subr.msk.bf16.mxu1 %vm175_vm0, %v2810_v9  ;;  %vm3376_vm5 = vmor %vm810_vm2, %vm811_vm3  ;;  %v408_v36 = vsel %vm175_vm0, %v2810_v9, 0 }
   0x5   :  { %v49_v14 = vld [vmem:[%s4132_s0 + $0x68] sm:$0xf]  ;;  %69 = vst.msk [vmem:[#allocation2 + $0x30] sm:$0xf] %vm56_vm1, %v48_v10  ;;  %v36_v15 = vld [vmem:[%s4132_s0] sm:$0xf] }
   0x6   :  { %v956_v11 = vrot.slane %v954_v6, 4  ;;  %v959_v12 = vrot.slane %v957_v7, 5  ;;  %v965_v13 = vrot.slane %v963_v8, 5  ;;  %70 = vst.msk [vmem:[#allocation2 + $0x34] sm:$0xf] %vm56_vm1, %v49_v14  ;;  %vm1903_vm6 = vcmask 1042432  }
   0x7   :  { %v37_v16 = vld [vmem:[%s4132_s0 + $0x8] sm:$0xf]  ;;  %v770_v17 = vld [vmem:[%s4132_s0] sm:$0xf]  ;;  %57 = vst.msk [vmem:[#allocation2] sm:$0xf] %vm56_vm1, %v36_v15 }
   0x8   :  { %v960_v18 = vor.u32 %v959_v12, %v956_v11  ;;  %58 = vst.msk [vmem:[#allocation2 + $0x4] sm:$0xf] %vm56_vm1, %v37_v16  ;;  %v771_v19 = vld [vmem:[%s4132_s0 + $0x4] sm:$0x1]  ;;  %v814_v20 = vshrl.u32 %v770_v17, 16  ;;  %v817_v21 = vshll.u32 %v770_v17, 16 }
   0x9   :  { %v38_v22 = vld [vmem:[%s4132_s0 + $0x10] sm:$0xf]  ;;  %v823_v23 = vshll.u32 %v771_v19, 16  ;;  %v39_v24 = vld [vmem:[%s4132_s0 + $0x18] sm:$0xf]  ;;  %v3223_v26 = vld [vmem:[#allocation2 + $0x28] sm:$0xff]  }
   0xa   :  { %59 = vst.msk [vmem:[#allocation2 + $0x8] sm:$0xf] %vm56_vm1, %v38_v22  ;;  %v50_v25 = vld [vmem:[%s4132_s0 + $0x70] sm:$0xf]  ;;  %v961_v27 = vrot.slane %v960_v18, 4  ;;  %v816_v29 = vrot.slane %v814_v20, 4  ;;  %3058 = vmatprep.mubr.msk.bf16.mxu1 %vm19_vm4, %v3223_v26 }
   0xb   :  { %60 = vst.msk [vmem:[#allocation2 + $0xc] sm:$0xf] %vm56_vm1, %v39_v24  ;;  %71 = vst.msk [vmem:[#allocation2 + $0x38] sm:$0xf] %vm56_vm1, %v50_v25  ;;  %v819_v30 = vrot.slane %v817_v21, 5  ;;  %v825_v38 = vrot.slane %v823_v23, 5 }
   0xc   :  { %v51_v31 = vld [vmem:[%s4132_s0 + $0x78] sm:$0xf]  ;;  %v966_v32 = vsel %vm3376_vm5, %v961_v27, %v965_v13  ;;  %v52_v33 = vld [vmem:[%s4132_s0 + $0x80] sm:$0xf]  ;;  %v53_v34 = vld [vmem:[%s4132_s0 + $0x88] sm:$0xf] }
   0xd   :  { %72 = vst.msk [vmem:[#allocation2 + $0x3c] sm:$0xf] %vm56_vm1, %v51_v31  ;;  %v2827_v35 = vld [vmem:[%s4131_s1 + $0xc] sm:$0x3]  ;;  %1123 = vst.msk [vmem:[#allocation2 + $0x28] sm:$0xf] %vm56_vm1, %v966_v32  ;;  %v820_v37 = vor.u32 %v819_v30, %v816_v29 }
   0xe   :  { %73 = vst.msk [vmem:[#allocation2 + $0x40] sm:$0xf] %vm56_vm1, %v52_v33  ;;  %74 = vst.msk [vmem:[#allocation2 + $0x44] sm:$0xf] %vm56_vm1, %v53_v34  ;;  %3215 = vmatprep.subr.msk.bf16.mxu0 %vm175_vm0, %v2827_v35  ;;  %v40_v39 = vld [vmem:[%s4132_s0 + $0x20] sm:$0xf] }
   0xf   :  { %v3224_v40 = vld [vmem:[#allocation2 + $0x30] sm:$0xff]   ;;  %v639_v41 = vsel %vm175_vm0, %v2827_v35, 0  ;;  %v41_v42 = vld [vmem:[%s4132_s0 + $0x28] sm:$0xf]  ;;  %61 = vst.msk [vmem:[#allocation2 + $0x10] sm:$0xf] %vm56_vm1, %v40_v39 }
  0x10   :  { %v3225_v43 = vld [vmem:[#allocation2] sm:$0xff]   ;;  %v821_v44 = vrot.slane %v820_v37, 4  ;;  %62 = vst.msk [vmem:[#allocation2 + $0x14] sm:$0xf] %vm56_vm1, %v41_v42  ;;  %3059 = vmatmul.mubr.msk.bf16.vlgmr.msra.gmra.mxu1 %vm19_vm4, %v3224_v40  ;;  %v42_v52 = vld [vmem:[%s4132_s0 + $0x30] sm:$0xf] }
  0x11   :  { %v778_v45 = vld [vmem:[%s4132_s0 + $0x20] sm:$0xf]  ;;  %v779_v46 = vld [vmem:[%s4132_s0 + $0x24] sm:$0x1]  ;;  %3067 = vmatpush3.bf16.msra.mxu1 %v408_v36  ;;  %3050 = vmatprep.mubr.msk.bf16.mxu0 %vm19_vm4, %v3225_v43  ;;  %v43_v53 = vld [vmem:[%s4132_s0 + $0x38] sm:$0xf] }
  0x12   :  { %v826_v47 = vsel %vm3376_vm5, %v821_v44, %v825_v38  ;;  %v3226_v48 = vld [vmem:[#allocation2 + $0x8] sm:$0xff]   ;;  %v870_v49 = vshrl.u32 %v778_v45, 16  ;;  %v873_v50 = vshll.u32 %v778_v45, 16  ;;  %v879_v51 = vshll.u32 %v779_v46, 16  ;;  %63 = vst.msk [vmem:[#allocation2 + $0x18] sm:$0xf] %vm56_vm1, %v42_v52 }
  0x13   :  { %1113 = vst.msk [vmem:[#allocation2] sm:$0xf] %vm56_vm1, %v826_v47  ;;  %3051 = vmatmul.mubr.msk.bf16.vlgmr.msra.gmra.mxu0 %vm19_vm4, %v3226_v48  ;;  %64 = vst.msk [vmem:[#allocation2 + $0x1c] sm:$0xf] %vm56_vm1, %v43_v53  ;;  %v3231_v62 = vld [vmem:[#allocation2 + $0x4] sm:$0xff]   ;;  %vm1904_vm7 = vcmask 1046532  }
  0x14   :  { %v3227_v54 = vld [vmem:[#allocation2 + $0x38] sm:$0xff]   ;;  %v872_v55 = vrot.slane %v870_v49, 4  ;;  %3085 = vmatpush3.bf16.msra.mxu0 %v639_v41  ;;  %v875_v57 = vrot.slane %v873_v50, 5  ;;  %v881_v60 = vrot.slane %v879_v51, 5  ;;  %v772_v63 = vld [vmem:[%s4132_s0 + $0x8] sm:$0xf]  ;;  %vm3633_vm8 = vmor %vm1903_vm6, %vm1904_vm7 }
  0x15   :  { %v3228_v56 = vld [vmem:[#allocation2 + $0x40] sm:$0xff]   ;;  %3062 = vmatprep.mubr.msk.bf16.mxu1 %vm19_vm4, %v3227_v54  ;;  %v773_v0 = vld [vmem:[%s4132_s0 + $0xc] sm:$0x1]  ;;  %v828_v3 = vshrl.u32 %v772_v63, 16  ;;  %v831_v4 = vshll.u32 %v772_v63, 16 }
  0x16   :  { %v876_v59 = vor.u32 %v875_v57, %v872_v55  ;;  %v312_v61 = vld [vmem:[#allocation2 + $0xc] sm:$0xff]   ;;  %v837_v5 = vshll.u32 %v773_v0, 16  ;;  %v2844_v6 = vld [vmem:[%s4131_s1 + $0x2] sm:$0x3]  ;;  %v775_v14 = vld [vmem:[%s4132_s0 + $0x14] sm:$0x1] }
  0x17   :  { %v3229_v58 = vld [vmem:[#allocation2 + $0x10] sm:$0xff]   ;;  %3216 = vmatprep.subr.msk.bf16.mxu1 %vm175_vm0, %v2844_v6  ;;  %v3232_v7 = vld [vmem:[#allocation2 + $0x8] sm:$0xff]   ;;  %v830_v10 = vrot.slane %v828_v3, 4  ;;  %v833_v11 = vrot.slane %v831_v4, 5  ;;  %v776_v15 = vld [vmem:[%s4132_s0 + $0x18] sm:$0xf] }
  0x18   :  { %3063 = vmatmul.mubr.msk.bf16.gmra.mxu1 %vm19_vm4, %v3228_v56  ;;  %3054 = vmatprep.mubr.msk.bf16.mxu0 %vm19_vm4, %v3229_v58  ;;  %v542_v1 = vld [vmem:[#allocation2 + $0x10] sm:$0xff]   ;;  %v877_v2 = vrot.slane %v876_v59, 4  ;;  %v839_v12 = vrot.slane %v837_v5, 5  ;;  %v777_v16 = vld [vmem:[%s4132_s0 + $0x1c] sm:$0x1]  ;;  %v851_v20 = vshll.u32 %v775_v14, 16 }
  0x19   :  { %3068 = vmatprep.mubr.msk.bf16.mxu1 %vm19_vm4, %v3231_v62  ;;  %v774_v13 = vld [vmem:[%s4132_s0 + $0x10] sm:$0xf]  ;;  %v834_v19 = vor.u32 %v833_v11, %v830_v10  ;;  %v856_v21 = vshrl.u32 %v776_v15, 16  ;;  %v859_v22 = vshll.u32 %v776_v15, 16  ;;  %v3233_v23 = vld [vmem:[#allocation2 + $0x14] sm:$0xff]   ;;  %v1232_v24 = vsel %vm175_vm0, %v2844_v6, 0 }
  0x1a   :  { %v882_v8 = vsel %vm3376_vm5, %v877_v2, %v881_v60  ;;  %v3230_v9 = vld [vmem:[#allocation2 + $0x18] sm:$0xff]   ;;  %v842_v17 = vshrl.u32 %v774_v13, 16  ;;  %v845_v18 = vshll.u32 %v774_v13, 16  ;;  %v865_v27 = vshll.u32 %v777_v16, 16  ;;  %v780_v32 = vld [vmem:[%s4132_s0 + $0x28] sm:$0xf] }
  0x1b   :  { %1117 = vst.msk [vmem:[#allocation2 + $0x10] sm:$0xf] %vm56_vm1, %v882_v8  ;;  %3055 = vmatmul.mubr.msk.bf16.gmra.mxu0 %vm19_vm4, %v3230_v9  ;;  %v835_v29 = vrot.slane %v834_v19, 4  ;;  %v858_v30 = vrot.slane %v856_v21, 4  ;;  %v861_v31 = vrot.slane %v859_v22, 5  ;;  %v853_v34 = vrot.slane %v851_v20, 5 }
  0x1c   :  { %3086 = vmatprep.mubr.msk.bf16.mxu0 %vm19_vm4, %v3232_v7  ;;  %v844_v25 = vrot.slane %v842_v17, 4  ;;  %v847_v26 = vrot.slane %v845_v18, 5  ;;  %v781_v35 = vld [vmem:[%s4132_s0 + $0x2c] sm:$0x1]  ;;  %v884_v36 = vshrl.u32 %v780_v32, 16  ;;  %v887_v37 = vshll.u32 %v780_v32, 16 }
  0x1d   :  { %v3235_v38 = vld [vmem:[#allocation2 + $0x18] sm:$0xff]   ;;  %v840_v39 = vsel %vm3376_vm5, %v835_v29, %v839_v12  ;;  %v862_v40 = vor.u32 %v861_v31, %v858_v30  ;;  %v867_v41 = vrot.slane %v865_v27, 5  ;;  %v893_v42 = vshll.u32 %v781_v35, 16  ;;  %v44_v43 = vld [vmem:[%s4132_s0 + $0x40] sm:$0xf]  ;;  %v3237_v10 = vld [vmem:[#allocation2 + $0x2c] sm:$0xff]  }
  0x1e   :  { %v848_v33 = vor.u32 %v847_v26, %v844_v25  ;;  %1114 = vst.msk [vmem:[#allocation2 + $0x4] sm:$0xf] %vm56_vm1, %v840_v39  ;;  %v886_v45 = vrot.slane %v884_v36, 4  ;;  %v889_v46 = vrot.slane %v887_v37, 5  ;;  %65 = vst.msk [vmem:[#allocation2 + $0x20] sm:$0xf] %vm56_vm1, %v44_v43 }
  0x1f   :  { %v2861_v47 = vld [vmem:[%s4131_s1 + $0x8] sm:$0x3]  ;;  %v863_v48 = vrot.slane %v862_v40, 4  ;;  %v895_v49 = vrot.slane %v893_v42, 5  ;;  %v782_v53 = vld [vmem:[%s4132_s0 + $0x30] sm:$0xf] }
  0x20   :  { %3069 = vmatmul.mubr.msk.bf16.vlgmr.msra.gmra.mxu1 %vm19_vm4, %v312_v61  ;;  %v849_v44 = vrot.slane %v848_v33, 4  ;;  %3217 = vmatprep.subr.msk.bf16.mxu0 %vm175_vm0, %v2861_v47  ;;  %v1462_v50 = vsel %vm175_vm0, %v2861_v47, 0  ;;  %v890_v52 = vor.u32 %v889_v46, %v886_v45  ;;  %v783_v54 = vld [vmem:[%s4132_s0 + $0x34] sm:$0x1]  ;;  %v784_v56 = vld [vmem:[%s4132_s0 + $0x38] sm:$0xf] }
  0x21   :  { %3103 = vmatpush3.bf16.msra.mxu1 %v1232_v24  ;;  %3072 = vmatprep.mubr.msk.bf16.mxu1 %vm19_vm4, %v3233_v23  ;;  %v868_v55 = vsel %vm3376_vm5, %v863_v48, %v867_v41  ;;  %v785_v57 = vld [vmem:[%s4132_s0 + $0x3c] sm:$0x1]  ;;  %v898_v58 = vshrl.u32 %v782_v53, 16  ;;  %v901_v59 = vshll.u32 %v782_v53, 16  ;;  %v907_v61 = vshll.u32 %v783_v54, 16  ;;  %v3239_v33 = vld [vmem:[#allocation2 + $0x30] sm:$0xff]  }
  0x22   :  { %v854_v51 = vsel %vm3376_vm5, %v849_v44, %v853_v34  ;;  %1116 = vst.msk [vmem:[#allocation2 + $0xc] sm:$0xf] %vm56_vm1, %v868_v55  ;;  %v891_v60 = vrot.slane %v890_v52, 4  ;;  %v912_v62 = vshrl.u32 %v784_v56, 16  ;;  %v915_v63 = vshll.u32 %v784_v56, 16  ;;  %v3238_v43 = vld [vmem:[#allocation2 + $0x34] sm:$0xff]  }
  0x23   :  { %3087 = vmatmul.mubr.msk.bf16.vlgmr.msra.gmra.mxu0 %vm19_vm4, %v542_v1  ;;  %1115 = vst.msk [vmem:[#allocation2 + $0x8] sm:$0xf] %vm56_vm1, %v854_v51  ;;  %v45_v0 = vld [vmem:[%s4132_s0 + $0x48] sm:$0xf]  ;;  %v900_v1 = vrot.slane %v898_v58, 4  ;;  %v903_v2 = vrot.slane %v901_v59, 5 }
  0x24   :  { %3121 = vmatpush3.bf16.msra.mxu0 %v1462_v50  ;;  %3090 = vmatprep.mubr.msk.bf16.mxu0 %vm19_vm4, %v3235_v38  ;;  %v921_v3 = vshll.u32 %v785_v57, 16  ;;  %66 = vst.msk [vmem:[#allocation2 + $0x24] sm:$0xf] %vm56_vm1, %v45_v0  ;;  %v786_v4 = vld [vmem:[%s4132_s0 + $0x40] sm:$0xf]  ;;  %v896_v5 = vsel %vm3376_vm5, %v891_v60, %v895_v49  ;;  %v909_v6 = vrot.slane %v907_v61, 5 }
  0x25   :  { %v914_v7 = vrot.slane %v912_v62, 4  ;;  %v917_v8 = vrot.slane %v915_v63, 5  ;;  %v787_v9 = vld [vmem:[%s4132_s0 + $0x44] sm:$0x1]  ;;  %1118 = vst.msk [vmem:[#allocation2 + $0x14] sm:$0xf] %vm56_vm1, %v896_v5  ;;  %v904_v12 = vor.u32 %v903_v2, %v900_v1 }
  0x26   :  { %v3234_v11 = vld [vmem:[#allocation2 + $0x1c] sm:$0xff]   ;;  %v923_v13 = vrot.slane %v921_v3, 5  ;;  %v788_v15 = vld [vmem:[%s4132_s0 + $0x48] sm:$0xf]  ;;  %v789_v16 = vld [vmem:[%s4132_s0 + $0x4c] sm:$0x1] }
  0x27   :  { %v918_v14 = vor.u32 %v917_v8, %v914_v7  ;;  %v926_v17 = vshrl.u32 %v786_v4, 16  ;;  %v929_v18 = vshll.u32 %v786_v4, 16  ;;  %v905_v19 = vrot.slane %v904_v12, 4  ;;  %v792_v32 = vld [vmem:[%s4132_s0 + $0x58] sm:$0xf]  ;;  %v3241_v45 = vld [vmem:[#allocation2 + $0x3c] sm:$0xff]  }
  0x28   :  { %3073 = vmatmul.mubr.msk.bf16.gmra.mxu1 %vm19_vm4, %v3234_v11  ;;  %v935_v20 = vshll.u32 %v787_v9, 16  ;;  %v940_v21 = vshrl.u32 %v788_v15, 16  ;;  %v943_v22 = vshll.u32 %v788_v15, 16  ;;  %v949_v26 = vshll.u32 %v789_v16, 16  ;;  %v793_v38 = vld [vmem:[%s4132_s0 + $0x5c] sm:$0x1] }
  0x29   :  { %v919_v23 = vrot.slane %v918_v14, 4  ;;  %v928_v24 = vrot.slane %v926_v17, 4  ;;  %v931_v25 = vrot.slane %v929_v18, 5  ;;  %3076 = vmatprep.mubr.msk.bf16.mxu1 %vm19_vm4, %v3237_v10  ;;  %v910_v27 = vsel %vm3376_vm5, %v905_v19, %v909_v6  ;;  %v794_v51 = vld [vmem:[%s4132_s0 + $0x60] sm:$0xf]  ;;  %v3240_v54 = vld [vmem:[#allocation2 + $0x38] sm:$0xff]  }
  0x2a   :  { %v937_v29 = vrot.slane %v935_v20, 5  ;;  %v942_v30 = vrot.slane %v940_v21, 4  ;;  %v945_v31 = vrot.slane %v943_v22, 5  ;;  %1119 = vst.msk [vmem:[#allocation2 + $0x18] sm:$0xf] %vm56_vm1, %v910_v27  ;;  %v951_v37 = vrot.slane %v949_v26, 5 }
  0x2b   :  { %v924_v34 = vsel %vm3376_vm5, %v919_v23, %v923_v13  ;;  %v3236_v35 = vld [vmem:[#allocation2 + $0x20] sm:$0xff]   ;;  %v932_v36 = vor.u32 %v931_v25, %v928_v24  ;;  %v968_v40 = vshrl.u32 %v792_v32, 16  ;;  %v971_v41 = vshll.u32 %v792_v32, 16  ;;  %v796_v53 = vld [vmem:[%s4132_s0 + $0x68] sm:$0xf] }
  0x2c   :  { %1120 = vst.msk [vmem:[#allocation2 + $0x1c] sm:$0xf] %vm56_vm1, %v924_v34  ;;  %v946_v39 = vor.u32 %v945_v31, %v942_v30  ;;  %v977_v42 = vshll.u32 %v793_v38, 16  ;;  %3091 = vmatmul.mubr.msk.bf16.gmra.mxu0 %vm19_vm4, %v3236_v35  ;;  %v795_v52 = vld [vmem:[%s4132_s0 + $0x64] sm:$0x1]  ;;  %v982_v58 = vshrl.u32 %v794_v51, 16 }
  0x2d   :  { %v933_v44 = vrot.slane %v932_v36, 4  ;;  %v970_v47 = vrot.slane %v968_v40, 4  ;;  %v973_v48 = vrot.slane %v971_v41, 5  ;;  %3094 = vmatprep.mubr.msk.bf16.mxu0 %vm19_vm4, %v3239_v33  ;;  %v797_v57 = vld [vmem:[%s4132_s0 + $0x6c] sm:$0x1]  ;;  %v985_v59 = vshll.u32 %v794_v51, 16 }
  0x2e   :  { %v947_v46 = vrot.slane %v946_v39, 4  ;;  %v979_v49 = vrot.slane %v977_v42, 5  ;;  %v991_v60 = vshll.u32 %v795_v52, 16  ;;  %v996_v61 = vshrl.u32 %v796_v53, 16  ;;  %v798_v3 = vld [vmem:[%s4132_s0 + $0x70] sm:$0xf] }
  0x2f   :  { %v938_v50 = vsel %vm3376_vm5, %v933_v44, %v937_v29  ;;  %v974_v56 = vor.u32 %v973_v48, %v970_v47  ;;  %v999_v62 = vshll.u32 %v796_v53, 16  ;;  %v1005_v63 = vshll.u32 %v797_v57, 16  ;;  %v3243_v4 = vld [vmem:[#allocation2 + $0x40] sm:$0xff]   ;;  %v799_v8 = vld [vmem:[%s4132_s0 + $0x74] sm:$0x1] }
  0x30   :  { %v952_v55 = vsel %vm3376_vm5, %v947_v46, %v951_v37  ;;  %1121 = vst.msk [vmem:[#allocation2 + $0x20] sm:$0xf] %vm56_vm1, %v938_v50  ;;  %3077 = vmatmul.mubr.msk.bf16.gmra.mxu1 %vm19_vm4, %v3238_v43  ;;  %v984_v1 = vrot.slane %v982_v58, 4  ;;  %v987_v2 = vrot.slane %v985_v59, 5  ;;  %v993_v5 = vrot.slane %v991_v60, 5  ;;  %v3245_v50 = vld [vmem:[#allocation2] sm:$0xff]  }
  0x31   :  { %1122 = vst.msk [vmem:[#allocation2 + $0x24] sm:$0xf] %vm56_vm1, %v952_v55  ;;  %3080 = vmatprep.mubr.msk.bf16.mxu1 %vm19_vm4, %v3241_v45  ;;  %v975_v0 = vrot.slane %v974_v56, 4  ;;  %v998_v6 = vrot.slane %v996_v61, 4  ;;  %v1001_v7 = vrot.slane %v999_v62, 5  ;;  %v1010_v11 = vshrl.u32 %v798_v3, 16 }
  0x32   :  { %v988_v10 = vor.u32 %v987_v2, %v984_v1  ;;  %v1013_v12 = vshll.u32 %v798_v3, 16  ;;  %v1007_v14 = vrot.slane %v1005_v63, 5  ;;  %v1019_v15 = vshll.u32 %v799_v8, 16  ;;  %v800_v16 = vld [vmem:[%s4132_s0 + $0x78] sm:$0xf] }
  0x33   :  { %v980_v9 = vsel %vm3376_vm5, %v975_v0, %v979_v49  ;;  %v1002_v13 = vor.u32 %v1001_v7, %v998_v6  ;;  %v801_v17 = vld [vmem:[%s4132_s0 + $0x7c] sm:$0x1]  ;;  %v1012_v19 = vrot.slane %v1010_v11, 4  ;;  %v1024_v21 = vshrl.u32 %v800_v16, 16  ;;  %v54_v22 = vld [vmem:[%s4132_s0 + $0x90] sm:$0xf] }
  0x34   :  { %1124 = vst.msk [vmem:[#allocation2 + $0x2c] sm:$0xf] %vm56_vm1, %v980_v9  ;;  %3095 = vmatmul.mubr.msk.bf16.gmra.mxu0 %vm19_vm4, %v3240_v54  ;;  %v989_v18 = vrot.slane %v988_v10, 4  ;;  %v1015_v20 = vrot.slane %v1013_v12, 5  ;;  %v1027_v24 = vshll.u32 %v800_v16, 16  ;;  %v1033_v25 = vshll.u32 %v801_v17, 16 }
  0x35   :  { %3098 = vmatprep.mubr.msk.bf16.mxu0 %vm19_vm4, %v3243_v4  ;;  %v1003_v23 = vrot.slane %v1002_v13, 4  ;;  %75 = vst.msk [vmem:[#allocation2 + $0x48] sm:$0xf] %vm56_vm1, %v54_v22  ;;  %v1021_v29 = vrot.slane %v1019_v15, 5  ;;  %v1026_v30 = vrot.slane %v1024_v21, 4  ;;  %v3246_v11 = vld [vmem:[#allocation2 + $0x8] sm:$0xff]  }
  0x36   :  { %v994_v26 = vsel %vm3376_vm5, %v989_v18, %v993_v5  ;;  %v1016_v27 = vor.u32 %v1015_v20, %v1012_v19  ;;  %v1029_v32 = vrot.slane %v1027_v24, 5  ;;  %v1035_v33 = vrot.slane %v1033_v25, 5  ;;  %v802_v34 = vld [vmem:[%s4132_s0 + $0x80] sm:$0xf]  ;;  %v803_v35 = vld [vmem:[%s4132_s0 + $0x84] sm:$0x1] }
  0x37   :  { %v1008_v31 = vsel %vm3376_vm5, %v1003_v23, %v1007_v14  ;;  %1125 = vst.msk [vmem:[#allocation2 + $0x30] sm:$0xf] %vm56_vm1, %v994_v26  ;;  %v804_v37 = vld [vmem:[%s4132_s0 + $0x88] sm:$0xf]  ;;  %v805_v38 = vld [vmem:[%s4132_s0 + $0x8c] sm:$0x1] }
  0x38   :  { %1126 = vst.msk [vmem:[#allocation2 + $0x34] sm:$0xf] %vm56_vm1, %v1008_v31  ;;  %v1017_v36 = vrot.slane %v1016_v27, 4  ;;  %v1038_v39 = vshrl.u32 %v802_v34, 16  ;;  %v1030_v40 = vor.u32 %v1029_v32, %v1026_v30  ;;  %v1041_v41 = vshll.u32 %v802_v34, 16  ;;  %v3247_v12 = vld [vmem:[#allocation2 + $0x4] sm:$0xff]  }
  0x39   :  { %v1047_v42 = vshll.u32 %v803_v35, 16  ;;  %v1052_v43 = vshrl.u32 %v804_v37, 16  ;;  %v55_v44 = vld [vmem:[%s4132_s0 + $0x98] sm:$0xf]  ;;  %v1055_v47 = vshll.u32 %v804_v37, 16  ;;  %v1061_v48 = vshll.u32 %v805_v38, 16 }
  0x3a   :  { %v1022_v45 = vsel %vm3376_vm5, %v1017_v36, %v1021_v29  ;;  %v1040_v46 = vrot.slane %v1038_v39, 4  ;;  %76 = vst.msk [vmem:[#allocation2 + $0x4c] sm:$0xf] %vm56_vm1, %v55_v44  ;;  %v806_v49 = vld [vmem:[%s4132_s0 + $0x90] sm:$0xf]  ;;  %v1031_v51 = vrot.slane %v1030_v40, 4 }
  0x3b   :  { %1127 = vst.msk [vmem:[#allocation2 + $0x38] sm:$0xf] %vm56_vm1, %v1022_v45  ;;  %v1043_v52 = vrot.slane %v1041_v41, 5  ;;  %v1049_v53 = vrot.slane %v1047_v42, 5  ;;  %v1054_v54 = vrot.slane %v1052_v43, 4  ;;  %v1057_v57 = vrot.slane %v1055_v47, 5 }
  0x3c   :  { %v807_v55 = vld [vmem:[%s4132_s0 + $0x94] sm:$0x1]  ;;  %v3242_v56 = vld [vmem:[#allocation2 + $0x44] sm:$0xff]   ;;  %v1063_v58 = vrot.slane %v1061_v48, 5  ;;  %v1066_v59 = vshrl.u32 %v806_v49, 16  ;;  %v1036_v60 = vsel %vm3376_vm5, %v1031_v51, %v1035_v33  ;;  %v1069_v2 = vshll.u32 %v806_v49, 16 }
  0x3d   :  { %v1044_v61 = vor.u32 %v1043_v52, %v1040_v46  ;;  %v808_v62 = vld [vmem:[%s4132_s0 + $0x98] sm:$0xf]  ;;  %v809_v63 = vld [vmem:[%s4132_s0 + $0x9c] sm:$0x1]  ;;  %1128 = vst.msk [vmem:[#allocation2 + $0x3c] sm:$0xf] %vm56_vm1, %v1036_v60  ;;  %3081 = vmatmul.mubr.msk.bf16.gmra.mxu1 %vm19_vm4, %v3242_v56  ;;  %v1058_v0 = vor.u32 %v1057_v57, %v1054_v54 }
  0x3e   :  { %v1068_v1 = vrot.slane %v1066_v59, 4  ;;  %v1075_v3 = vshll.u32 %v807_v55, 16  ;;  %v1080_v5 = vshrl.u32 %v808_v62, 16  ;;  %v1083_v6 = vshll.u32 %v808_v62, 16  ;;  %3104 = vmatprep.mubr.msk.bf16.mxu1 %vm19_vm4, %v3245_v50  ;;  %v1823_v10 = vld [vmem:[%s4132_s0] sm:$0xe] }
  0x3f   :  { %v1045_v4 = vrot.slane %v1044_v61, 4  ;;  %v1089_v7 = vshll.u32 %v809_v63, 16  ;;  %v1059_v8 = vrot.slane %v1058_v0, 4  ;;  %v1071_v9 = vrot.slane %v1069_v2, 5  ;;  %v3249_v17 = vld [vmem:[#allocation2 + $0x10] sm:$0xff]   ;;  %v3250_v42 = vld [vmem:[#allocation2 + $0x18] sm:$0xff]  }
  0x40   :  { %v1082_v15 = vrot.slane %v1080_v5, 4  ;;  %v1085_v16 = vrot.slane %v1083_v6, 5  ;;  %v1077_v20 = vrot.slane %v1075_v3, 5  ;;  %v1824_v21 = vld [vmem:[%s4132_s0 + $0x4] sm:$0x1]  ;;  %v2895_v23 = vrot.slane %v1823_v10, 9 }
  0x41   :  { %v1050_v13 = vsel %vm3376_vm5, %v1045_v4, %v1049_v53  ;;  %v3244_v14 = vld [vmem:[#allocation2 + $0x48] sm:$0xff]   ;;  %v1064_v18 = vsel %vm3376_vm5, %v1059_v8, %v1063_v58  ;;  %v1072_v19 = vor.u32 %v1071_v9, %v1068_v1  ;;  %v1091_v26 = vrot.slane %v1089_v7, 5  ;;  %v3251_v39 = vld [vmem:[#allocation2 + $0x14] sm:$0xff]   ;;  %v2915_v43 = vld [vmem:[%s4131_s1 + $0x4] sm:$0x3] }
  0x42   :  { %1129 = vst.msk [vmem:[#allocation2 + $0x40] sm:$0xf] %vm56_vm1, %v1050_v13  ;;  %v2878_v24 = vld [vmem:[%s4131_s1 + $0xe] sm:$0x3]  ;;  %1130 = vst.msk [vmem:[#allocation2 + $0x44] sm:$0xf] %vm56_vm1, %v1064_v18  ;;  %3099 = vmatmul.mubr.msk.bf16.gmra.mxu0 %vm19_vm4, %v3244_v14  ;;  %v1086_v25 = vor.u32 %v1085_v16, %v1082_v15  ;;  %3219 = vmatprep.subr.msk.bf16.mxu0 %vm175_vm0, %v2915_v43 }
  0x43   :  { %v1908_v27 = vrot.slane %v1824_v21, 5  ;;  %3218 = vmatprep.subr.msk.bf16.mxu1 %vm175_vm0, %v2878_v24  ;;  %v1073_v29 = vrot.slane %v1072_v19, 4  ;;  %v1692_v30 = vsel %vm175_vm0, %v2878_v24, 0  ;;  %3122 = vmatprep.mubr.msk.bf16.mxu0 %vm19_vm4, %v3247_v12  ;;  %v1825_v33 = vld [vmem:[%s4132_s0 + $0x8] sm:$0xe]  ;;  %v3248_v35 = vld [vmem:[#allocation2 + $0xc] sm:$0xff]  }
  0x44   :  { %v1087_v31 = vrot.slane %v1086_v25, 4  ;;  %v1826_v34 = vld [vmem:[%s4132_s0 + $0xc] sm:$0x1]  ;;  %v2896_v37 = vrot.slane %v1825_v33, 9  ;;  %v2125_v28 = vsel %vm175_vm0, %v2915_v43, 0  ;;  %v3252_v49 = vld [vmem:[#allocation2 + $0x1c] sm:$0xff]  }
  0x45   :  { %v1909_v32 = vsel %vm3633_vm8, %v2895_v23, %v1908_v27  ;;  %v1078_v36 = vsel %vm3376_vm5, %v1073_v29, %v1077_v20  ;;  %3105 = vmatmul.mubr.msk.bf16.vlgmr.msra.gmra.mxu1 %vm19_vm4, %v3246_v11  ;;  %v1912_v38 = vrot.slane %v1826_v34, 5  ;;  %v3253_v44 = vld [vmem:[#allocation2 + $0x28] sm:$0xff]   ;;  %v1843_v45 = vld [vmem:[%s4132_s0 + $0x50] sm:$0xe]  ;;  %v1844_v46 = vld [vmem:[%s4132_s0 + $0x54] sm:$0x1] }
  0x46   :  { %2006 = vst.msk [vmem:[#allocation2] sm:$0xf] %vm56_vm1, %v1909_v32  ;;  %v1092_v40 = vsel %vm3376_vm5, %v1087_v31, %v1091_v26  ;;  %1131 = vst.msk [vmem:[#allocation2 + $0x48] sm:$0xf] %vm56_vm1, %v1078_v36  ;;  %3139 = vmatpush3.bf16.msra.mxu1 %v1692_v30  ;;  %3108 = vmatprep.mubr.msk.bf16.mxu1 %vm19_vm4, %v3249_v17  ;;  %v2905_v47 = vrot.slane %v1843_v45, 9  ;;  %v1948_v48 = vrot.slane %v1844_v46, 5 }
  0x47   :  { %1132 = vst.msk [vmem:[#allocation2 + $0x4c] sm:$0xf] %vm56_vm1, %v1092_v40  ;;  %v1913_v41 = vsel %vm3633_vm8, %v2896_v37, %v1912_v38  ;;  %v1845_v50 = vld [vmem:[%s4132_s0 + $0x58] sm:$0xe]  ;;  %v1846_v51 = vld [vmem:[%s4132_s0 + $0x5c] sm:$0x1] }
  0x48   :  { %2007 = vst.msk [vmem:[#allocation2 + $0x4] sm:$0xf] %vm56_vm1, %v1913_v41  ;;  %v1949_v52 = vsel %vm3633_vm8, %v2905_v47, %v1948_v48  ;;  %v2906_v53 = vrot.slane %v1845_v50, 9  ;;  %v1952_v54 = vrot.slane %v1846_v51, 5  ;;  %v3254_v55 = vld [vmem:[#allocation2 + $0x30] sm:$0xff]   ;;  %v3295_v58 = vmov 0.0  }
  0x49   :  { %2016 = vst.msk [vmem:[#allocation2 + $0x28] sm:$0xf] %vm56_vm1, %v1949_v52  ;;  %v3255_v56 = vld [vmem:[#allocation2 + $0x2c] sm:$0xff]   ;;  %v3257_v59 = vld [vmem:[#allocation2 + $0x38] sm:$0xff]   ;;  %v1828_v62 = vld [vmem:[%s4132_s0 + $0x14] sm:$0x1] }
  0x4a   :  { %3123 = vmatmul.mubr.msk.bf16.vlgmr.msra.gmra.mxu0 %vm19_vm4, %v3248_v35  ;;  %v1953_v57 = vsel %vm3633_vm8, %v2906_v53, %v1952_v54  ;;  %30 = vst.msk [vmem:[#allocation3 + $0x50] sm:$0xff] %vm19_vm4, %v3295_v58  ;;  %20 = vst.msk [vmem:[#allocation3] sm:$0xff] %vm19_vm4, %v3295_v58  ;;  %v3261_v60 = vld [vmem:[#allocation2 + $0x8] sm:$0xff]   ;;  %v1827_v61 = vld [vmem:[%s4132_s0 + $0x10] sm:$0xe]  ;;  %v1916_v2 = vrot.slane %v1828_v62, 5 }
  0x4b   :  { %3157 = vmatpush3.bf16.msra.mxu0 %v2125_v28  ;;  %3126 = vmatprep.mubr.msk.bf16.mxu0 %vm19_vm4, %v3251_v39  ;;  %2017 = vst.msk [vmem:[#allocation2 + $0x2c] sm:$0xf] %vm56_vm1, %v1953_v57  ;;  %v1829_v63 = vld [vmem:[%s4132_s0 + $0x18] sm:$0xe]  ;;  %v1830_v0 = vld [vmem:[%s4132_s0 + $0x1c] sm:$0x1] }
  0x4c   :  { %21 = vst.msk [vmem:[#allocation3 + $0x8] sm:$0xff] %vm19_vm4, %v3295_v58  ;;  %22 = vst.msk [vmem:[#allocation3 + $0x10] sm:$0xff] %vm19_vm4, %v3295_v58  ;;  %v2897_v1 = vrot.slane %v1827_v61, 9  ;;  %v3256_v3 = vld [vmem:[#allocation2 + $0x34] sm:$0xff]   ;;  %v2898_v4 = vrot.slane %v1829_v63, 9  ;;  %v1920_v5 = vrot.slane %v1830_v0, 5 }
  0x4d   :  { %3109 = vmatmul.mubr.msk.bf16.gmra.mxu1 %vm19_vm4, %v3250_v42  ;;  %23 = vst.msk [vmem:[#allocation3 + $0x18] sm:$0xff] %vm19_vm4, %v3295_v58  ;;  %24 = vst.msk [vmem:[#allocation3 + $0x20] sm:$0xff] %vm19_vm4, %v3295_v58  ;;  %v2932_v6 = vld [vmem:[%s4131_s1 + $0xa] sm:$0x3]  ;;  %v3259_v7 = vld [vmem:[#allocation2 + $0x3c] sm:$0xff]  }
  0x4e   :  { %3112 = vmatprep.mubr.msk.bf16.mxu1 %vm19_vm4, %v3253_v44  ;;  %25 = vst.msk [vmem:[#allocation3 + $0x28] sm:$0xff] %vm19_vm4, %v3295_v58  ;;  %26 = vst.msk [vmem:[#allocation3 + $0x30] sm:$0xff] %vm19_vm4, %v3295_v58  ;;  %v1917_v8 = vsel %vm3633_vm8, %v2897_v1, %v1916_v2  ;;  %3220 = vmatprep.subr.msk.bf16.mxu1 %vm175_vm0, %v2932_v6  ;;  %v1831_v9 = vld [vmem:[%s4132_s0 + $0x20] sm:$0xe]  ;;  %v1921_v10 = vsel %vm3633_vm8, %v2898_v4, %v1920_v5  ;;  %v1832_v11 = vld [vmem:[%s4132_s0 + $0x24] sm:$0x1] }
  0x4f   :  { %27 = vst.msk [vmem:[#allocation3 + $0x38] sm:$0xff] %vm19_vm4, %v3295_v58  ;;  %28 = vst.msk [vmem:[#allocation3 + $0x40] sm:$0xff] %vm19_vm4, %v3295_v58  ;;  %v1833_v12 = vld [vmem:[%s4132_s0 + $0x28] sm:$0xe]  ;;  %v1834_v13 = vld [vmem:[%s4132_s0 + $0x2c] sm:$0x1] }
  0x50   :  { %29 = vst.msk [vmem:[#allocation3 + $0x48] sm:$0xff] %vm19_vm4, %v3295_v58  ;;  %31 = vst.msk [vmem:[#allocation3 + $0x58] sm:$0xff] %vm19_vm4, %v3295_v58  ;;  %v3258_v14 = vld [vmem:[#allocation2 + $0x40] sm:$0xff]   ;;  %v2899_v15 = vrot.slane %v1831_v9, 9  ;;  %v1924_v16 = vrot.slane %v1832_v11, 5  ;;  %v2900_v17 = vrot.slane %v1833_v12, 9 }
  0x51   :  { %32 = vst.msk [vmem:[#allocation3 + $0x60] sm:$0xff] %vm19_vm4, %v3295_v58  ;;  %33 = vst.msk [vmem:[#allocation3 + $0x68] sm:$0xff] %vm19_vm4, %v3295_v58  ;;  %v1928_v18 = vrot.slane %v1834_v13, 5  ;;  %v3262_v19 = vld [vmem:[#allocation2 + $0x10] sm:$0xff]   ;;  %v3265_v23 = vld [vmem:[#allocation2 + $0x18] sm:$0xff]   ;;  %v2355_v45 = vsel %vm175_vm0, %v2932_v6, 0 }
  0x52   :  { %34 = vst.msk [vmem:[#allocation3 + $0x70] sm:$0xff] %vm19_vm4, %v3295_v58  ;;  %35 = vst.msk [vmem:[#allocation3 + $0x78] sm:$0xff] %vm19_vm4, %v3295_v58  ;;  %3127 = vmatmul.mubr.msk.bf16.gmra.mxu0 %vm19_vm4, %v3252_v49  ;;  %v1925_v20 = vsel %vm3633_vm8, %v2899_v15, %v1924_v16  ;;  %v1835_v24 = vld [vmem:[%s4132_s0 + $0x30] sm:$0xe]  ;;  %v1836_v25 = vld [vmem:[%s4132_s0 + $0x34] sm:$0x1] }
  0x53   :  { %3130 = vmatprep.mubr.msk.bf16.mxu0 %vm19_vm4, %v3255_v56  ;;  %2008 = vst.msk [vmem:[#allocation2 + $0x8] sm:$0xf] %vm56_vm1, %v1917_v8  ;;  %2009 = vst.msk [vmem:[#allocation2 + $0xc] sm:$0xf] %vm56_vm1, %v1921_v10  ;;  %v1929_v21 = vsel %vm3633_vm8, %v2900_v17, %v1928_v18  ;;  %v1837_v26 = vld [vmem:[%s4132_s0 + $0x38] sm:$0xe] }
  0x54   :  { %2010 = vst.msk [vmem:[#allocation2 + $0x10] sm:$0xf] %vm56_vm1, %v1925_v20  ;;  %2011 = vst.msk [vmem:[#allocation2 + $0x14] sm:$0xf] %vm56_vm1, %v1929_v21  ;;  %v1838_v27 = vld [vmem:[%s4132_s0 + $0x3c] sm:$0x1] }
  0x55   :  { %3113 = vmatmul.mubr.msk.bf16.gmra.mxu1 %vm19_vm4, %v3254_v55  ;;  %v2901_v29 = vrot.slane %v1835_v24, 9  ;;  %v1932_v30 = vrot.slane %v1836_v25, 5  ;;  %v2902_v31 = vrot.slane %v1837_v26, 9  ;;  %v1936_v32 = vrot.slane %v1838_v27, 5  ;;  %v1839_v33 = vld [vmem:[%s4132_s0 + $0x40] sm:$0xe] }
  0x56   :  { %3116 = vmatprep.mubr.msk.bf16.mxu1 %vm19_vm4, %v3257_v59  ;;  %v1840_v36 = vld [vmem:[%s4132_s0 + $0x44] sm:$0x1]  ;;  %v1841_v37 = vld [vmem:[%s4132_s0 + $0x48] sm:$0xe]  ;;  %v1842_v39 = vld [vmem:[%s4132_s0 + $0x4c] sm:$0x1] }
  0x57   :  { %v1933_v34 = vsel %vm3633_vm8, %v2901_v29, %v1932_v30  ;;  %v1937_v35 = vsel %vm3633_vm8, %v2902_v31, %v1936_v32  ;;  %v3260_v38 = vld [vmem:[#allocation2 + $0x44] sm:$0xff]   ;;  %v2903_v40 = vrot.slane %v1839_v33, 9  ;;  %v1940_v42 = vrot.slane %v1840_v36, 5  ;;  %v2949_v44 = vld [vmem:[%s4131_s1 + $0x10] sm:$0x3]  ;;  %v3270_v6 = vld [vmem:[#allocation2 + $0x38] sm:$0xff]  }
  0x58   :  { %2012 = vst.msk [vmem:[#allocation2 + $0x18] sm:$0xf] %vm56_vm1, %v1933_v34  ;;  %2013 = vst.msk [vmem:[#allocation2 + $0x1c] sm:$0xf] %vm56_vm1, %v1937_v35  ;;  %v3263_v41 = vld [vmem:[#allocation2] sm:$0xff]   ;;  %v2904_v43 = vrot.slane %v1841_v37, 9  ;;  %3221 = vmatprep.subr.msk.bf16.mxu0 %vm175_vm0, %v2949_v44 }
  0x59   :  { %v1944_v28 = vrot.slane %v1842_v39, 5  ;;  %v3266_v46 = vld [vmem:[#allocation2 + $0x20] sm:$0xff]   ;;  %v1941_v47 = vsel %vm3633_vm8, %v2903_v40, %v1940_v42  ;;  %v1849_v51 = vld [vmem:[%s4132_s0 + $0x68] sm:$0xe]  ;;  %v3269_v52 = vld [vmem:[#allocation2 + $0x30] sm:$0xff]   ;;  %v2585_v59 = vsel %vm175_vm0, %v2949_v44, 0 }
  0x5a   :  { %3131 = vmatmul.mubr.msk.bf16.gmra.mxu0 %vm19_vm4, %v3256_v3  ;;  %2014 = vst.msk [vmem:[#allocation2 + $0x20] sm:$0xf] %vm56_vm1, %v1941_v47  ;;  %v1847_v49 = vld [vmem:[%s4132_s0 + $0x60] sm:$0xe]  ;;  %v1848_v50 = vld [vmem:[%s4132_s0 + $0x64] sm:$0x1] }
  0x5b   :  { %3134 = vmatprep.mubr.msk.bf16.mxu0 %vm19_vm4, %v3259_v7  ;;  %v1945_v48 = vsel %vm3633_vm8, %v2904_v43, %v1944_v28  ;;  %v1850_v53 = vld [vmem:[%s4132_s0 + $0x6c] sm:$0x1]  ;;  %v2907_v54 = vrot.slane %v1847_v49, 9  ;;  %v1956_v55 = vrot.slane %v1848_v50, 5  ;;  %v2908_v56 = vrot.slane %v1849_v51, 9  ;;  %v3267_v1 = vld [vmem:[#allocation2 + $0x10] sm:$0xff]  }
  0x5c   :  { %2015 = vst.msk [vmem:[#allocation2 + $0x24] sm:$0xf] %vm56_vm1, %v1945_v48  ;;  %v1960_v57 = vrot.slane %v1850_v53, 5  ;;  %v3264_v58 = vld [vmem:[#allocation2 + $0x8] sm:$0xff]   ;;  %v1851_v62 = vld [vmem:[%s4132_s0 + $0x70] sm:$0xe] }
  0x5d   :  { %3117 = vmatmul.mubr.msk.bf16.gmra.mxu1 %vm19_vm4, %v3258_v14  ;;  %v1852_v63 = vld [vmem:[%s4132_s0 + $0x74] sm:$0x1]  ;;  %v1853_v0 = vld [vmem:[%s4132_s0 + $0x78] sm:$0xe]  ;;  %v1854_v2 = vld [vmem:[%s4132_s0 + $0x7c] sm:$0x1] }
  0x5e   :  { %3140 = vmatprep.mubr.msk.bf16.mxu1 %vm19_vm4, %v3261_v60  ;;  %v1957_v60 = vsel %vm3633_vm8, %v2907_v54, %v1956_v55  ;;  %v1961_v61 = vsel %vm3633_vm8, %v2908_v56, %v1960_v57  ;;  %v2909_v3 = vrot.slane %v1851_v62, 9  ;;  %v1964_v4 = vrot.slane %v1852_v63, 5  ;;  %v3273_v9 = vld [vmem:[#allocation2 + $0x40] sm:$0xff]   ;;  %v1857_v13 = vld [vmem:[%s4132_s0 + $0x88] sm:$0xe]  ;;  %v3278_v40 = vld [vmem:[#allocation2 + $0xc] sm:$0xff]  }
  0x5f   :  { %2018 = vst.msk [vmem:[#allocation2 + $0x30] sm:$0xf] %vm56_vm1, %v1957_v60  ;;  %2019 = vst.msk [vmem:[#allocation2 + $0x34] sm:$0xf] %vm56_vm1, %v1961_v61  ;;  %v2910_v5 = vrot.slane %v1853_v0, 9  ;;  %v1968_v7 = vrot.slane %v1854_v2, 5 }
  0x60   :  { %v1965_v8 = vsel %vm3633_vm8, %v2909_v3, %v1964_v4  ;;  %v1855_v10 = vld [vmem:[%s4132_s0 + $0x80] sm:$0xe]  ;;  %v1856_v12 = vld [vmem:[%s4132_s0 + $0x84] sm:$0x1]  ;;  %v1858_v14 = vld [vmem:[%s4132_s0 + $0x8c] sm:$0x1] }
  0x61   :  { %v1969_v11 = vsel %vm3633_vm8, %v2910_v5, %v1968_v7  ;;  %2020 = vst.msk [vmem:[#allocation2 + $0x38] sm:$0xf] %vm56_vm1, %v1965_v8  ;;  %v2911_v15 = vrot.slane %v1855_v10, 9  ;;  %v1972_v16 = vrot.slane %v1856_v12, 5  ;;  %v2912_v17 = vrot.slane %v1857_v13, 9  ;;  %v3271_v21 = vld [vmem:[#allocation2 + $0x28] sm:$0xff]  }
  0x62   :  { %3135 = vmatmul.mubr.msk.bf16.gmra.mxu0 %vm19_vm4, %v3260_v38  ;;  %2021 = vst.msk [vmem:[#allocation2 + $0x3c] sm:$0xf] %vm56_vm1, %v1969_v11  ;;  %v1976_v18 = vrot.slane %v1858_v14, 5  ;;  %v1860_v20 = vld [vmem:[%s4132_s0 + $0x94] sm:$0x1]  ;;  %v3268_v27 = vld [vmem:[#allocation2 + $0x18] sm:$0xff]  }
  0x63   :  { %3158 = vmatprep.mubr.msk.bf16.mxu0 %vm19_vm4, %v3263_v41  ;;  %v1861_v25 = vld [vmem:[%s4132_s0 + $0x98] sm:$0xe]  ;;  %v1862_v26 = vld [vmem:[%s4132_s0 + $0x9c] sm:$0x1]  ;;  %v1980_v30 = vrot.slane %v1860_v20, 5  ;;  %v3274_v32 = vld [vmem:[#allocation2 + $0x48] sm:$0xff]  }
  0x64   :  { %v1977_v24 = vsel %vm3633_vm8, %v2912_v17, %v1976_v18  ;;  %v2914_v31 = vrot.slane %v1861_v25, 9  ;;  %v1984_v33 = vrot.slane %v1862_v26, 5  ;;  %v3277_v38 = vld [vmem:[#allocation2 + $0x4] sm:$0xff]   ;;  %v3281_v41 = vld [vmem:[#allocation2 + $0x14] sm:$0xff]   ;;  %v3282_v28 = vld [vmem:[#allocation2 + $0x1c] sm:$0xff]  }
  0x65   :  { %3141 = vmatmul.mubr.msk.bf16.vlgmr.msra.gmra.mxu1 %vm19_vm4, %v3262_v19  ;;  %v1859_v19 = vld [vmem:[%s4132_s0 + $0x90] sm:$0xe]  ;;  %2023 = vst.msk [vmem:[#allocation2 + $0x44] sm:$0xf] %vm56_vm1, %v1977_v24  ;;  %v3279_v39 = vld [vmem:[#allocation2 + $0x8] sm:$0xff]   ;;  %v3283_v43 = vld [vmem:[#allocation2 + $0x18] sm:$0xff]  }
  0x66   :  { %3175 = vmatpush3.bf16.msra.mxu1 %v2355_v45  ;;  %3144 = vmatprep.mubr.msk.bf16.mxu1 %vm19_vm4, %v3265_v23  ;;  %v1973_v23 = vsel %vm3633_vm8, %v2911_v15, %v1972_v16  ;;  %v2913_v29 = vrot.slane %v1859_v19, 9  ;;  %v1985_v35 = vsel %vm3633_vm8, %v2914_v31, %v1984_v33  ;;  %v3272_v36 = vld [vmem:[#allocation2 + $0x30] sm:$0xff]   ;;  %v3284_v45 = vld [vmem:[#allocation2 + $0x20] sm:$0xff]   ;;  %v96_v4 = vld [vmem:[#allocation3 + $0x18] sm:$0xff] }
  0x67   :  { %2022 = vst.msk [vmem:[#allocation2 + $0x40] sm:$0xf] %vm56_vm1, %v1973_v23  ;;  %2025 = vst.msk [vmem:[#allocation2 + $0x4c] sm:$0xf] %vm56_vm1, %v1985_v35  ;;  %v3280_v42 = vld [vmem:[#allocation2 + $0x10] sm:$0xff]   ;;  %v103_v53 = vld [vmem:[#allocation3 + $0x50] sm:$0xff] }
  0x68   :  { %v1981_v34 = vsel %vm3633_vm8, %v2913_v29, %v1980_v30  ;;  %v3285_v44 = vld [vmem:[#allocation2 + $0x2c] sm:$0xff]   ;;  %v3286_v47 = vld [vmem:[#allocation2 + $0x34] sm:$0xff]   ;;  %v95_v57 = vld [vmem:[#allocation3 + $0x10] sm:$0xff] }
  0x69   :  { %2024 = vst.msk [vmem:[#allocation2 + $0x48] sm:$0xf] %vm56_vm1, %v1981_v34  ;;  %v3275_v37 = vld [vmem:[#allocation2 + $0x38] sm:$0xff]   ;;  %v101_v55 = vld [vmem:[#allocation3 + $0x40] sm:$0xff]  ;;  %v107_v7 = vld [vmem:[#allocation3 + $0x70] sm:$0xff] }
  0x6a   :  { %3159 = vmatmul.mubr.msk.bf16.vlgmr.msra.gmra.mxu0 %vm19_vm4, %v3264_v58  ;;  %v3288_v49 = vld [vmem:[#allocation2 + $0x38] sm:$0xff]   ;;  %v93_v62 = vld [vmem:[#allocation3] sm:$0xff]  ;;  %v99_v18 = vld [vmem:[#allocation3 + $0x30] sm:$0xff] }
  0x6b   :  { %3193 = vmatpush3.bf16.msra.mxu0 %v2585_v59  ;;  %3162 = vmatprep.mubr.msk.bf16.mxu0 %vm19_vm4, %v3267_v1  ;;  %v104_v59 = vld [vmem:[#allocation3 + $0x58] sm:$0xff]  ;;  %v102_v1 = vld [vmem:[#allocation3 + $0x48] sm:$0xff]  ;;  %v105_v13 = vld [vmem:[#allocation3 + $0x60] sm:$0xff] }
  0x6c   :  { %v94_v10 = vld [vmem:[#allocation3 + $0x8] sm:$0xff]  ;;  %v108_v19 = vld [vmem:[#allocation3 + $0x78] sm:$0xff]  ;;  %v97_v24 = vld [vmem:[#allocation3 + $0x20] sm:$0xff] }
  0x6d   :  { %3145 = vmatmul.mubr.msk.bf16.gmra.mxu1 %vm19_vm4, %v3266_v46  ;;  %v3287_v46 = vld [vmem:[#allocation2 + $0x30] sm:$0xff]   ;;  %v106_v25 = vld [vmem:[#allocation3 + $0x68] sm:$0xff]  ;;  %v100_v31 = vld [vmem:[#allocation3 + $0x38] sm:$0xff] }
  0x6e   :  { %3148 = vmatprep.mubr.msk.bf16.mxu1 %vm19_vm4, %v3269_v52  ;;  %v3276_v22 = vld [vmem:[#allocation2 + $0x40] sm:$0xff]  }
  0x6f   :  { %v3289_v48 = vld [vmem:[#allocation2 + $0x3c] sm:$0xff]  }
  0x70   :  { %v3291_v50 = vld [vmem:[#allocation2 + $0x40] sm:$0xff]   ;;  %v3292_v52 = vld [vmem:[#allocation2 + $0x48] sm:$0xff]  }
  0x71   :  { %v3290_v51 = vld [vmem:[#allocation2 + $0x44] sm:$0xff]  }
  0x72   :  { %3163 = vmatmul.mubr.msk.bf16.gmra.mxu0 %vm19_vm4, %v3268_v27 }
  0x73   :  { %3166 = vmatprep.mubr.msk.bf16.mxu0 %vm19_vm4, %v3271_v21 }
  0x75   :  { %3149 = vmatmul.mubr.msk.bf16.gmra.mxu1 %vm19_vm4, %v3270_v6 }
  0x76   :  { %3152 = vmatprep.mubr.msk.bf16.mxu1 %vm19_vm4, %v3273_v9 }
  0x7a   :  { %3167 = vmatmul.mubr.msk.bf16.gmra.mxu0 %vm19_vm4, %v3272_v36 }
  0x7b   :  { %3170 = vmatprep.mubr.msk.bf16.mxu0 %vm19_vm4, %v3275_v37  ;;  %v98_v37 = vld [vmem:[#allocation3 + $0x28] sm:$0xff] }
  0x7d   :  { %3153 = vmatmul.mubr.msk.bf16.gmra.mxu1 %vm19_vm4, %v3274_v32 }
  0x7e   :  { %3176 = vmatprep.mubr.msk.bf16.mxu1 %vm19_vm4, %v3277_v38 }
  0x82   :  { %3171 = vmatmul.mubr.msk.bf16.gmra.mxu0 %vm19_vm4, %v3276_v22 }
  0x83   :  { %3194 = vmatprep.mubr.msk.bf16.mxu0 %vm19_vm4, %v3279_v39 }
  0x85   :  { %3177 = vmatmul.mubr.msk.bf16.vlgmr.msra.gmra.mxu1 %vm19_vm4, %v3278_v40 }
  0x86   :  { %3180 = vmatprep.mubr.msk.bf16.mxu1 %vm19_vm4, %v3281_v41 }
  0x8a   :  { %3195 = vmatmul.mubr.msk.bf16.vlgmr.msra.gmra.mxu0 %vm19_vm4, %v3280_v42 }
  0x8b   :  { %3198 = vmatprep.mubr.msk.bf16.mxu0 %vm19_vm4, %v3283_v43 }
  0x8d   :  { %3181 = vmatmul.mubr.msk.bf16.gmra.mxu1 %vm19_vm4, %v3282_v28 }
  0x8e   :  { %3184 = vmatprep.mubr.msk.bf16.mxu1 %vm19_vm4, %v3285_v44 }
  0x92   :  { %3199 = vmatmul.mubr.msk.bf16.gmra.mxu0 %vm19_vm4, %v3284_v45 }
  0x93   :  { %3202 = vmatprep.mubr.msk.bf16.mxu0 %vm19_vm4, %v3287_v46 }
  0x95   :  { %3185 = vmatmul.mubr.msk.bf16.gmra.mxu1 %vm19_vm4, %v3286_v47 }
  0x96   :  { %3188 = vmatprep.mubr.msk.bf16.mxu1 %vm19_vm4, %v3289_v48 }
  0x9a   :  { %3203 = vmatmul.mubr.msk.bf16.gmra.mxu0 %vm19_vm4, %v3288_v49 }
  0x9b   :  { %3206 = vmatprep.mubr.msk.bf16.mxu0 %vm19_vm4, %v3291_v50 }
  0x9d   :  { %3189 = vmatmul.mubr.msk.bf16.gmra.mxu1 %vm19_vm4, %v3290_v51 }
  0xa2   :  { %3207 = vmatmul.mubr.msk.bf16.gmra.mxu0 %vm19_vm4, %v3292_v52 }
  0xd0   :  { %v3060_v54 = vpop.f32.mrf.mxu1 }
  0xd1   :  { %v286_v56 = vadd.f32 %v3060_v54, %v103_v53 }
  0xd2   :  { %v245_v58 = vpop.f32.mrf.mxu1 }
  0xd3   :  { %302 = vst.msk [vmem:[#allocation3 + $0x50] sm:$0xff] %vm19_vm4, %v286_v56  ;;  %v284_v60 = vadd.f32 %v245_v58, %v101_v55  ;;  %v3052_v61 = vpop.f32.mrf.mxu0 }
  0xd4   :  { %v278_v63 = vadd.f32 %v3052_v61, %v95_v57  ;;  %v3061_v0 = vpop.f32.mrf.mxu1 }
  0xd5   :  { %300 = vst.msk [vmem:[#allocation3 + $0x40] sm:$0xff] %vm19_vm4, %v284_v60  ;;  %v287_v2 = vadd.f32 %v3061_v0, %v104_v59  ;;  %v213_v3 = vpop.f32.mrf.mxu0 }
  0xd6   :  { %294 = vst.msk [vmem:[#allocation3 + $0x10] sm:$0xff] %vm19_vm4, %v278_v63  ;;  %v276_v5 = vadd.f32 %v213_v3, %v93_v62  ;;  %v248_v6 = vpop.f32.mrf.mxu1 }
  0xd7   :  { %303 = vst.msk [vmem:[#allocation3 + $0x58] sm:$0xff] %vm19_vm4, %v287_v2  ;;  %v285_v8 = vadd.f32 %v248_v6, %v102_v1  ;;  %v3053_v9 = vpop.f32.mrf.mxu0 }
  0xd8   :  { %292 = vst.msk [vmem:[#allocation3] sm:$0xff] %vm19_vm4, %v276_v5  ;;  %v279_v11 = vadd.f32 %v3053_v9, %v96_v4  ;;  %v3064_v12 = vpop.f32.mrf.mxu1 }
  0xd9   :  { %301 = vst.msk [vmem:[#allocation3 + $0x48] sm:$0xff] %vm19_vm4, %v285_v8  ;;  %v290_v14 = vadd.f32 %v3064_v12, %v107_v7  ;;  %v216_v15 = vpop.f32.mrf.mxu0 }
  0xda   :  { %295 = vst.msk [vmem:[#allocation3 + $0x18] sm:$0xff] %vm19_vm4, %v279_v11  ;;  %v277_v16 = vadd.f32 %v216_v15, %v94_v10  ;;  %v261_v17 = vpop.f32.mrf.mxu1  ;;  %v335_v11 = vld [vmem:[#allocation3 + $0x50] sm:$0xff] }
  0xdb   :  { %306 = vst.msk [vmem:[#allocation3 + $0x70] sm:$0xff] %vm19_vm4, %v290_v14  ;;  %v288_v20 = vadd.f32 %v261_v17, %v105_v13  ;;  %v3056_v21 = vpop.f32.mrf.mxu0 }
  0xdc   :  { %293 = vst.msk [vmem:[#allocation3 + $0x8] sm:$0xff] %vm19_vm4, %v277_v16  ;;  %v3065_v23 = vpop.f32.mrf.mxu1  ;;  %v282_v26 = vadd.f32 %v3056_v21, %v99_v18  ;;  %v333_v16 = vld [vmem:[#allocation3 + $0x40] sm:$0xff] }
  0xdd   :  { %304 = vst.msk [vmem:[#allocation3 + $0x60] sm:$0xff] %vm19_vm4, %v288_v20  ;;  %v291_v27 = vadd.f32 %v3065_v23, %v108_v19  ;;  %v229_v29 = vpop.f32.mrf.mxu0  ;;  %v327_v32 = vld [vmem:[#allocation3 + $0x10] sm:$0xff] }
  0xde   :  { %v264_v30 = vpop.f32.mrf.mxu1  ;;  %298 = vst.msk [vmem:[#allocation3 + $0x30] sm:$0xff] %vm19_vm4, %v282_v26  ;;  %v280_v33 = vadd.f32 %v229_v29, %v97_v24  ;;  %v336_v23 = vld [vmem:[#allocation3 + $0x58] sm:$0xff] }
  0xdf   :  { %307 = vst.msk [vmem:[#allocation3 + $0x78] sm:$0xff] %vm19_vm4, %v291_v27  ;;  %v289_v34 = vadd.f32 %v264_v30, %v106_v25  ;;  %v3057_v35 = vpop.f32.mrf.mxu0  ;;  %v325_v38 = vld [vmem:[#allocation3] sm:$0xff] }
  0xe0   :  { %v3070_v36 = vpop.f32.mrf.mxu1  ;;  %296 = vst.msk [vmem:[#allocation3 + $0x20] sm:$0xff] %vm19_vm4, %v280_v33  ;;  %v283_v22 = vadd.f32 %v3057_v35, %v100_v31  ;;  %v334_v30 = vld [vmem:[#allocation3 + $0x48] sm:$0xff] }
  0xe1   :  { %305 = vst.msk [vmem:[#allocation3 + $0x68] sm:$0xff] %vm19_vm4, %v289_v34  ;;  %v509_v39 = vadd.f32 %v3070_v36, %v327_v32  ;;  %v232_v40 = vpop.f32.mrf.mxu0  ;;  %v328_v42 = vld [vmem:[#allocation3 + $0x18] sm:$0xff] }
  0xe2   :  { %v444_v41 = vpop.f32.mrf.mxu1  ;;  %299 = vst.msk [vmem:[#allocation3 + $0x38] sm:$0xff] %vm19_vm4, %v283_v22  ;;  %v281_v43 = vadd.f32 %v232_v40, %v98_v37 }
  0xe3   :  { %525 = vst.msk [vmem:[#allocation3 + $0x10] sm:$0xff] %vm19_vm4, %v509_v39  ;;  %v507_v28 = vadd.f32 %v444_v41, %v325_v38  ;;  %v3088_v45 = vpop.f32.mrf.mxu0  ;;  %v326_v47 = vld [vmem:[#allocation3 + $0x8] sm:$0xff] }
  0xe4   :  { %v3071_v44 = vpop.f32.mrf.mxu1  ;;  %297 = vst.msk [vmem:[#allocation3 + $0x28] sm:$0xff] %vm19_vm4, %v281_v43  ;;  %v339_v43 = vld [vmem:[#allocation3 + $0x70] sm:$0xff] }
  0xe5   :  { %523 = vst.msk [vmem:[#allocation3] sm:$0xff] %vm19_vm4, %v507_v28  ;;  %v510_v46 = vadd.f32 %v3071_v44, %v328_v42  ;;  %v675_v49 = vpop.f32.mrf.mxu0  ;;  %v331_v52 = vld [vmem:[#allocation3 + $0x30] sm:$0xff] }
  0xe6   :  { %v447_v48 = vpop.f32.mrf.mxu1 }
  0xe7   :  { %526 = vst.msk [vmem:[#allocation3 + $0x18] sm:$0xff] %vm19_vm4, %v510_v46  ;;  %v508_v50 = vadd.f32 %v447_v48, %v326_v47  ;;  %v3089_v51 = vpop.f32.mrf.mxu0  ;;  %v329_v56 = vld [vmem:[#allocation3 + $0x20] sm:$0xff] }
  0xe8   :  { %v3074_v55 = vpop.f32.mrf.mxu1  ;;  %v337_v48 = vld [vmem:[#allocation3 + $0x60] sm:$0xff] }
  0xe9   :  { %524 = vst.msk [vmem:[#allocation3 + $0x8] sm:$0xff] %vm19_vm4, %v508_v50  ;;  %v513_v58 = vadd.f32 %v3074_v55, %v331_v52  ;;  %v678_v59 = vpop.f32.mrf.mxu0  ;;  %v332_v62 = vld [vmem:[#allocation3 + $0x38] sm:$0xff]  ;;  %v338_v55 = vld [vmem:[#allocation3 + $0x68] sm:$0xff] }
  0xea   :  { %v558_v53 = vld [vmem:[#allocation3 + $0x10] sm:$0xff]  ;;  %v460_v61 = vpop.f32.mrf.mxu1 }
  0xeb   :  { %v740_v54 = vadd.f32 %v3088_v45, %v558_v53  ;;  %529 = vst.msk [vmem:[#allocation3 + $0x30] sm:$0xff] %vm19_vm4, %v513_v58  ;;  %v511_v0 = vadd.f32 %v460_v61, %v329_v56  ;;  %v330_v7 = vld [vmem:[#allocation3 + $0x28] sm:$0xff] }
  0xec   :  { %v556_v57 = vld [vmem:[#allocation3] sm:$0xff]  ;;  %v3075_v2 = vpop.f32.mrf.mxu1  ;;  %v3092_v5 = vpop.f32.mrf.mxu0 }
  0xed   :  { %756 = vst.msk [vmem:[#allocation3 + $0x10] sm:$0xff] %vm19_vm4, %v740_v54  ;;  %v738_v60 = vadd.f32 %v675_v49, %v556_v57  ;;  %527 = vst.msk [vmem:[#allocation3 + $0x20] sm:$0xff] %vm19_vm4, %v511_v0  ;;  %v514_v4 = vadd.f32 %v3075_v2, %v332_v62 }
  0xee   :  { %v559_v63 = vld [vmem:[#allocation3 + $0x18] sm:$0xff]  ;;  %v463_v8 = vpop.f32.mrf.mxu1  ;;  %v691_v10 = vpop.f32.mrf.mxu0 }
  0xef   :  { %754 = vst.msk [vmem:[#allocation3] sm:$0xff] %vm19_vm4, %v738_v60  ;;  %v741_v1 = vadd.f32 %v3089_v51, %v559_v63  ;;  %530 = vst.msk [vmem:[#allocation3 + $0x38] sm:$0xff] %vm19_vm4, %v514_v4  ;;  %v512_v9 = vadd.f32 %v463_v8, %v330_v7  ;;  %v340_v51 = vld [vmem:[#allocation3 + $0x78] sm:$0xff] }
  0xf0   :  { %v557_v3 = vld [vmem:[#allocation3 + $0x8] sm:$0xff]  ;;  %v3078_v12 = vpop.f32.mrf.mxu1  ;;  %v3093_v14 = vpop.f32.mrf.mxu0 }
  0xf1   :  { %757 = vst.msk [vmem:[#allocation3 + $0x18] sm:$0xff] %vm19_vm4, %v741_v1  ;;  %v739_v6 = vadd.f32 %v678_v59, %v557_v3  ;;  %528 = vst.msk [vmem:[#allocation3 + $0x28] sm:$0xff] %vm19_vm4, %v512_v9  ;;  %v517_v13 = vadd.f32 %v3078_v12, %v335_v11 }
  0xf2   :  { %v562_v15 = vld [vmem:[#allocation3 + $0x30] sm:$0xff]  ;;  %v476_v17 = vpop.f32.mrf.mxu1  ;;  %v694_v20 = vpop.f32.mrf.mxu0 }
  0xf3   :  { %755 = vst.msk [vmem:[#allocation3 + $0x8] sm:$0xff] %vm19_vm4, %v739_v6  ;;  %v744_v18 = vadd.f32 %v3092_v5, %v562_v15  ;;  %533 = vst.msk [vmem:[#allocation3 + $0x50] sm:$0xff] %vm19_vm4, %v517_v13  ;;  %v515_v19 = vadd.f32 %v476_v17, %v333_v16 }
  0xf4   :  { %v560_v21 = vld [vmem:[#allocation3 + $0x20] sm:$0xff]  ;;  %v3079_v24 = vpop.f32.mrf.mxu1  ;;  %v3096_v27 = vpop.f32.mrf.mxu0  ;;  %v1151_v59 = vld [vmem:[#allocation3 + $0x10] sm:$0xff] }
  0xf5   :  { %760 = vst.msk [vmem:[#allocation3 + $0x30] sm:$0xff] %vm19_vm4, %v744_v18  ;;  %v742_v25 = vadd.f32 %v691_v10, %v560_v21  ;;  %531 = vst.msk [vmem:[#allocation3 + $0x40] sm:$0xff] %vm19_vm4, %v515_v19  ;;  %v518_v26 = vadd.f32 %v3079_v24, %v336_v23 }
  0xf6   :  { %v563_v29 = vld [vmem:[#allocation3 + $0x38] sm:$0xff]  ;;  %v479_v31 = vpop.f32.mrf.mxu1  ;;  %v707_v35 = vpop.f32.mrf.mxu0  ;;  %v1149_v0 = vld [vmem:[#allocation3] sm:$0xff] }
  0xf7   :  { %758 = vst.msk [vmem:[#allocation3 + $0x20] sm:$0xff] %vm19_vm4, %v742_v25  ;;  %v745_v32 = vadd.f32 %v3093_v14, %v563_v29  ;;  %534 = vst.msk [vmem:[#allocation3 + $0x58] sm:$0xff] %vm19_vm4, %v518_v26  ;;  %v516_v33 = vadd.f32 %v479_v31, %v334_v30 }
  0xf8   :  { %v561_v34 = vld [vmem:[#allocation3 + $0x28] sm:$0xff]  ;;  %v3097_v39 = vpop.f32.mrf.mxu0  ;;  %v1152_v6 = vld [vmem:[#allocation3 + $0x18] sm:$0xff] }
  0xf9   :  { %761 = vst.msk [vmem:[#allocation3 + $0x38] sm:$0xff] %vm19_vm4, %v745_v32  ;;  %v743_v36 = vadd.f32 %v694_v20, %v561_v34  ;;  %532 = vst.msk [vmem:[#allocation3 + $0x48] sm:$0xff] %vm19_vm4, %v516_v33 }
  0xfa   :  { %v566_v37 = vld [vmem:[#allocation3 + $0x50] sm:$0xff]  ;;  %v710_v45 = vpop.f32.mrf.mxu0  ;;  %v1150_v12 = vld [vmem:[#allocation3 + $0x8] sm:$0xff] }
  0xfb   :  { %759 = vst.msk [vmem:[#allocation3 + $0x28] sm:$0xff] %vm19_vm4, %v743_v36  ;;  %v748_v38 = vadd.f32 %v3096_v27, %v566_v37 }
  0xfc   :  { %v564_v22 = vld [vmem:[#allocation3 + $0x40] sm:$0xff]  ;;  %v1155_v18 = vld [vmem:[#allocation3 + $0x30] sm:$0xff] }
  0xfd   :  { %764 = vst.msk [vmem:[#allocation3 + $0x50] sm:$0xff] %vm19_vm4, %v748_v38  ;;  %v746_v40 = vadd.f32 %v707_v35, %v564_v22  ;;  %v3082_v28 = vpop.f32.mrf.mxu1 }
  0xfe   :  { %v567_v41 = vld [vmem:[#allocation3 + $0x58] sm:$0xff]  ;;  %v521_v46 = vadd.f32 %v3082_v28, %v339_v43  ;;  %v1153_v25 = vld [vmem:[#allocation3 + $0x20] sm:$0xff] }
  0xff   :  { %762 = vst.msk [vmem:[#allocation3 + $0x40] sm:$0xff] %vm19_vm4, %v746_v40  ;;  %v749_v42 = vadd.f32 %v3097_v39, %v567_v41  ;;  %v492_v49 = vpop.f32.mrf.mxu1 }
 0x100   :  { %v565_v44 = vld [vmem:[#allocation3 + $0x48] sm:$0xff]  ;;  %537 = vst.msk [vmem:[#allocation3 + $0x70] sm:$0xff] %vm19_vm4, %v521_v46  ;;  %v519_v50 = vadd.f32 %v492_v49, %v337_v48  ;;  %v1156_v32 = vld [vmem:[#allocation3 + $0x38] sm:$0xff] }
 0x101   :  { %765 = vst.msk [vmem:[#allocation3 + $0x58] sm:$0xff] %vm19_vm4, %v749_v42  ;;  %v747_v47 = vadd.f32 %v710_v45, %v565_v44  ;;  %v3083_v52 = vpop.f32.mrf.mxu1 }
 0x102   :  { %535 = vst.msk [vmem:[#allocation3 + $0x60] sm:$0xff] %vm19_vm4, %v519_v50  ;;  %v522_v53 = vadd.f32 %v3083_v52, %v340_v51  ;;  %v3100_v54 = vpop.f32.mrf.mxu0  ;;  %v1154_v38 = vld [vmem:[#allocation3 + $0x28] sm:$0xff] }
 0x103   :  { %763 = vst.msk [vmem:[#allocation3 + $0x48] sm:$0xff] %vm19_vm4, %v747_v47  ;;  %v495_v56 = vpop.f32.mrf.mxu1 }
 0x104   :  { %538 = vst.msk [vmem:[#allocation3 + $0x78] sm:$0xff] %vm19_vm4, %v522_v53  ;;  %v520_v57 = vadd.f32 %v495_v56, %v338_v55  ;;  %v723_v58 = vpop.f32.mrf.mxu0  ;;  %v1159_v43 = vld [vmem:[#allocation3 + $0x50] sm:$0xff] }
 0x105   :  { %v3106_v60 = vpop.f32.mrf.mxu1 }
 0x106   :  { %536 = vst.msk [vmem:[#allocation3 + $0x68] sm:$0xff] %vm19_vm4, %v520_v57  ;;  %v3101_v61 = vpop.f32.mrf.mxu0  ;;  %v1333_v62 = vadd.f32 %v3106_v60, %v1151_v59  ;;  %v1157_v48 = vld [vmem:[#allocation3 + $0x40] sm:$0xff] }
 0x107   :  { %v570_v63 = vld [vmem:[#allocation3 + $0x70] sm:$0xff]  ;;  %v1268_v1 = vpop.f32.mrf.mxu1 }
 0x108   :  { %v752_v2 = vadd.f32 %v3100_v54, %v570_v63  ;;  %1349 = vst.msk [vmem:[#allocation3 + $0x10] sm:$0xff] %vm19_vm4, %v1333_v62  ;;  %v726_v3 = vpop.f32.mrf.mxu0  ;;  %v1331_v4 = vadd.f32 %v1268_v1, %v1149_v0  ;;  %v1160_v54 = vld [vmem:[#allocation3 + $0x58] sm:$0xff] }
 0x109   :  { %v568_v5 = vld [vmem:[#allocation3 + $0x60] sm:$0xff]  ;;  %v3107_v7 = vpop.f32.mrf.mxu1 }
 0x10a   :  { %768 = vst.msk [vmem:[#allocation3 + $0x70] sm:$0xff] %vm19_vm4, %v752_v2  ;;  %v750_v8 = vadd.f32 %v723_v58, %v568_v5  ;;  %1347 = vst.msk [vmem:[#allocation3] sm:$0xff] %vm19_vm4, %v1331_v4  ;;  %v1334_v9 = vadd.f32 %v3107_v7, %v1152_v6  ;;  %v3124_v10 = vpop.f32.mrf.mxu0  ;;  %v1158_v60 = vld [vmem:[#allocation3 + $0x48] sm:$0xff] }
 0x10b   :  { %v571_v11 = vld [vmem:[#allocation3 + $0x78] sm:$0xff]  ;;  %v1271_v13 = vpop.f32.mrf.mxu1 }
 0x10c   :  { %766 = vst.msk [vmem:[#allocation3 + $0x60] sm:$0xff] %vm19_vm4, %v750_v8  ;;  %v753_v14 = vadd.f32 %v3101_v61, %v571_v11  ;;  %1350 = vst.msk [vmem:[#allocation3 + $0x18] sm:$0xff] %vm19_vm4, %v1334_v9  ;;  %v1332_v15 = vadd.f32 %v1271_v13, %v1150_v12  ;;  %v1498_v16 = vpop.f32.mrf.mxu0 }
 0x10d   :  { %v569_v17 = vld [vmem:[#allocation3 + $0x68] sm:$0xff]  ;;  %v3110_v19 = vpop.f32.mrf.mxu1 }
 0x10e   :  { %769 = vst.msk [vmem:[#allocation3 + $0x78] sm:$0xff] %vm19_vm4, %v753_v14  ;;  %v751_v20 = vadd.f32 %v726_v3, %v569_v17  ;;  %1348 = vst.msk [vmem:[#allocation3 + $0x8] sm:$0xff] %vm19_vm4, %v1332_v15  ;;  %v1337_v21 = vadd.f32 %v3110_v19, %v1155_v18  ;;  %v3125_v23 = vpop.f32.mrf.mxu0 }
 0x10f   :  { %v1381_v24 = vld [vmem:[#allocation3 + $0x10] sm:$0xff]  ;;  %v1284_v26 = vpop.f32.mrf.mxu1 }
 0x110   :  { %767 = vst.msk [vmem:[#allocation3 + $0x68] sm:$0xff] %vm19_vm4, %v751_v20  ;;  %v1563_v27 = vadd.f32 %v3124_v10, %v1381_v24  ;;  %1353 = vst.msk [vmem:[#allocation3 + $0x30] sm:$0xff] %vm19_vm4, %v1337_v21  ;;  %v1335_v29 = vadd.f32 %v1284_v26, %v1153_v25  ;;  %v1501_v30 = vpop.f32.mrf.mxu0 }
 0x111   :  { %v1379_v31 = vld [vmem:[#allocation3] sm:$0xff]  ;;  %v3111_v33 = vpop.f32.mrf.mxu1  ;;  %v1163_v2 = vld [vmem:[#allocation3 + $0x70] sm:$0xff] }
 0x112   :  { %1579 = vst.msk [vmem:[#allocation3 + $0x10] sm:$0xff] %vm19_vm4, %v1563_v27  ;;  %v1561_v34 = vadd.f32 %v1498_v16, %v1379_v31  ;;  %1351 = vst.msk [vmem:[#allocation3 + $0x20] sm:$0xff] %vm19_vm4, %v1335_v29  ;;  %v1338_v35 = vadd.f32 %v3111_v33, %v1156_v32  ;;  %v3128_v36 = vpop.f32.mrf.mxu0 }
 0x113   :  { %v1382_v37 = vld [vmem:[#allocation3 + $0x18] sm:$0xff]  ;;  %v1287_v22 = vpop.f32.mrf.mxu1  ;;  %v1161_v8 = vld [vmem:[#allocation3 + $0x60] sm:$0xff] }
 0x114   :  { %1577 = vst.msk [vmem:[#allocation3] sm:$0xff] %vm19_vm4, %v1561_v34  ;;  %v1564_v39 = vadd.f32 %v3125_v23, %v1382_v37  ;;  %1354 = vst.msk [vmem:[#allocation3 + $0x38] sm:$0xff] %vm19_vm4, %v1338_v35  ;;  %v1336_v40 = vadd.f32 %v1287_v22, %v1154_v38  ;;  %v1514_v41 = vpop.f32.mrf.mxu0 }
 0x115   :  { %v1380_v42 = vld [vmem:[#allocation3 + $0x8] sm:$0xff]  ;;  %v3114_v28 = vpop.f32.mrf.mxu1  ;;  %v1164_v14 = vld [vmem:[#allocation3 + $0x78] sm:$0xff] }
 0x116   :  { %1580 = vst.msk [vmem:[#allocation3 + $0x18] sm:$0xff] %vm19_vm4, %v1564_v39  ;;  %v1562_v44 = vadd.f32 %v1501_v30, %v1380_v42  ;;  %1352 = vst.msk [vmem:[#allocation3 + $0x28] sm:$0xff] %vm19_vm4, %v1336_v40  ;;  %v1341_v45 = vadd.f32 %v3114_v28, %v1159_v43  ;;  %v3129_v46 = vpop.f32.mrf.mxu0 }
 0x117   :  { %v1385_v47 = vld [vmem:[#allocation3 + $0x30] sm:$0xff]  ;;  %v1300_v49 = vpop.f32.mrf.mxu1  ;;  %v1162_v20 = vld [vmem:[#allocation3 + $0x68] sm:$0xff] }
 0x118   :  { %1578 = vst.msk [vmem:[#allocation3 + $0x8] sm:$0xff] %vm19_vm4, %v1562_v44  ;;  %v1567_v50 = vadd.f32 %v3128_v36, %v1385_v47  ;;  %1357 = vst.msk [vmem:[#allocation3 + $0x50] sm:$0xff] %vm19_vm4, %v1341_v45  ;;  %v1339_v51 = vadd.f32 %v1300_v49, %v1157_v48  ;;  %v1517_v52 = vpop.f32.mrf.mxu0 }
 0x119   :  { %v1383_v53 = vld [vmem:[#allocation3 + $0x20] sm:$0xff]  ;;  %v3115_v55 = vpop.f32.mrf.mxu1  ;;  %v1611_v27 = vld [vmem:[#allocation3 + $0x10] sm:$0xff] }
 0x11a   :  { %1583 = vst.msk [vmem:[#allocation3 + $0x30] sm:$0xff] %vm19_vm4, %v1567_v50  ;;  %v1565_v56 = vadd.f32 %v1514_v41, %v1383_v53  ;;  %1355 = vst.msk [vmem:[#allocation3 + $0x40] sm:$0xff] %vm19_vm4, %v1339_v51  ;;  %v1342_v57 = vadd.f32 %v3115_v55, %v1160_v54  ;;  %v3132_v58 = vpop.f32.mrf.mxu0 }
 0x11b   :  { %v1386_v59 = vld [vmem:[#allocation3 + $0x38] sm:$0xff]  ;;  %v1303_v61 = vpop.f32.mrf.mxu1  ;;  %v1609_v34 = vld [vmem:[#allocation3] sm:$0xff] }
 0x11c   :  { %1581 = vst.msk [vmem:[#allocation3 + $0x20] sm:$0xff] %vm19_vm4, %v1565_v56  ;;  %v1568_v62 = vadd.f32 %v3129_v46, %v1386_v59  ;;  %1358 = vst.msk [vmem:[#allocation3 + $0x58] sm:$0xff] %vm19_vm4, %v1342_v57  ;;  %v1340_v63 = vadd.f32 %v1303_v61, %v1158_v60  ;;  %v1530_v0 = vpop.f32.mrf.mxu0 }
 0x11d   :  { %v1384_v1 = vld [vmem:[#allocation3 + $0x28] sm:$0xff]  ;;  %v3118_v3 = vpop.f32.mrf.mxu1  ;;  %v1612_v39 = vld [vmem:[#allocation3 + $0x18] sm:$0xff] }
 0x11e   :  { %1584 = vst.msk [vmem:[#allocation3 + $0x38] sm:$0xff] %vm19_vm4, %v1568_v62  ;;  %v1566_v4 = vadd.f32 %v1517_v52, %v1384_v1  ;;  %1356 = vst.msk [vmem:[#allocation3 + $0x48] sm:$0xff] %vm19_vm4, %v1340_v63  ;;  %v1345_v5 = vadd.f32 %v3118_v3, %v1163_v2  ;;  %v3133_v6 = vpop.f32.mrf.mxu0 }
 0x11f   :  { %v1389_v7 = vld [vmem:[#allocation3 + $0x50] sm:$0xff]  ;;  %v1316_v9 = vpop.f32.mrf.mxu1  ;;  %v1610_v44 = vld [vmem:[#allocation3 + $0x8] sm:$0xff] }
 0x120   :  { %1582 = vst.msk [vmem:[#allocation3 + $0x28] sm:$0xff] %vm19_vm4, %v1566_v4  ;;  %v1571_v10 = vadd.f32 %v3132_v58, %v1389_v7  ;;  %1361 = vst.msk [vmem:[#allocation3 + $0x70] sm:$0xff] %vm19_vm4, %v1345_v5  ;;  %v1343_v11 = vadd.f32 %v1316_v9, %v1161_v8  ;;  %v1533_v12 = vpop.f32.mrf.mxu0 }
 0x121   :  { %v1387_v13 = vld [vmem:[#allocation3 + $0x40] sm:$0xff]  ;;  %v3119_v15 = vpop.f32.mrf.mxu1  ;;  %v1615_v50 = vld [vmem:[#allocation3 + $0x30] sm:$0xff] }
 0x122   :  { %1587 = vst.msk [vmem:[#allocation3 + $0x50] sm:$0xff] %vm19_vm4, %v1571_v10  ;;  %v1569_v16 = vadd.f32 %v1530_v0, %v1387_v13  ;;  %1359 = vst.msk [vmem:[#allocation3 + $0x60] sm:$0xff] %vm19_vm4, %v1343_v11  ;;  %v1346_v17 = vadd.f32 %v3119_v15, %v1164_v14  ;;  %v3136_v18 = vpop.f32.mrf.mxu0 }
 0x123   :  { %v1390_v19 = vld [vmem:[#allocation3 + $0x58] sm:$0xff]  ;;  %v1319_v21 = vpop.f32.mrf.mxu1  ;;  %v1613_v56 = vld [vmem:[#allocation3 + $0x20] sm:$0xff] }
 0x124   :  { %1585 = vst.msk [vmem:[#allocation3 + $0x40] sm:$0xff] %vm19_vm4, %v1569_v16  ;;  %v1572_v23 = vadd.f32 %v3133_v6, %v1390_v19  ;;  %1362 = vst.msk [vmem:[#allocation3 + $0x78] sm:$0xff] %vm19_vm4, %v1346_v17  ;;  %v1344_v24 = vadd.f32 %v1319_v21, %v1162_v20  ;;  %v1546_v25 = vpop.f32.mrf.mxu0 }
 0x125   :  { %v1388_v26 = vld [vmem:[#allocation3 + $0x48] sm:$0xff]  ;;  %v3142_v29 = vpop.f32.mrf.mxu1  ;;  %v1616_v62 = vld [vmem:[#allocation3 + $0x38] sm:$0xff] }
 0x126   :  { %1588 = vst.msk [vmem:[#allocation3 + $0x58] sm:$0xff] %vm19_vm4, %v1572_v23  ;;  %v1570_v30 = vadd.f32 %v1533_v12, %v1388_v26  ;;  %1360 = vst.msk [vmem:[#allocation3 + $0x68] sm:$0xff] %vm19_vm4, %v1344_v24  ;;  %v3137_v31 = vpop.f32.mrf.mxu0  ;;  %v1793_v32 = vadd.f32 %v3142_v29, %v1611_v27 }
 0x127   :  { %v1393_v33 = vld [vmem:[#allocation3 + $0x70] sm:$0xff]  ;;  %v1728_v35 = vpop.f32.mrf.mxu1  ;;  %v1614_v4 = vld [vmem:[#allocation3 + $0x28] sm:$0xff] }
 0x128   :  { %1586 = vst.msk [vmem:[#allocation3 + $0x48] sm:$0xff] %vm19_vm4, %v1570_v30  ;;  %v1575_v36 = vadd.f32 %v3136_v18, %v1393_v33  ;;  %1809 = vst.msk [vmem:[#allocation3 + $0x10] sm:$0xff] %vm19_vm4, %v1793_v32  ;;  %v1549_v37 = vpop.f32.mrf.mxu0  ;;  %v1791_v38 = vadd.f32 %v1728_v35, %v1609_v34 }
 0x129   :  { %v1391_v22 = vld [vmem:[#allocation3 + $0x60] sm:$0xff]  ;;  %v3143_v40 = vpop.f32.mrf.mxu1  ;;  %v1619_v10 = vld [vmem:[#allocation3 + $0x50] sm:$0xff] }
 0x12a   :  { %1591 = vst.msk [vmem:[#allocation3 + $0x70] sm:$0xff] %vm19_vm4, %v1575_v36  ;;  %v1573_v41 = vadd.f32 %v1546_v25, %v1391_v22  ;;  %1807 = vst.msk [vmem:[#allocation3] sm:$0xff] %vm19_vm4, %v1791_v38  ;;  %v1794_v42 = vadd.f32 %v3143_v40, %v1612_v39  ;;  %v3160_v43 = vpop.f32.mrf.mxu0 }
 0x12b   :  { %v1394_v28 = vld [vmem:[#allocation3 + $0x78] sm:$0xff]  ;;  %v1731_v45 = vpop.f32.mrf.mxu1  ;;  %v1617_v16 = vld [vmem:[#allocation3 + $0x40] sm:$0xff] }
 0x12c   :  { %1589 = vst.msk [vmem:[#allocation3 + $0x60] sm:$0xff] %vm19_vm4, %v1573_v41  ;;  %v1576_v46 = vadd.f32 %v3137_v31, %v1394_v28  ;;  %1810 = vst.msk [vmem:[#allocation3 + $0x18] sm:$0xff] %vm19_vm4, %v1794_v42  ;;  %v1792_v47 = vadd.f32 %v1731_v45, %v1610_v44  ;;  %v2161_v48 = vpop.f32.mrf.mxu0 }
 0x12d   :  { %v1392_v49 = vld [vmem:[#allocation3 + $0x68] sm:$0xff]  ;;  %v3146_v51 = vpop.f32.mrf.mxu1  ;;  %v1620_v23 = vld [vmem:[#allocation3 + $0x58] sm:$0xff] }
 0x12e   :  { %1592 = vst.msk [vmem:[#allocation3 + $0x78] sm:$0xff] %vm19_vm4, %v1576_v46  ;;  %v1574_v52 = vadd.f32 %v1549_v37, %v1392_v49  ;;  %1808 = vst.msk [vmem:[#allocation3 + $0x8] sm:$0xff] %vm19_vm4, %v1792_v47  ;;  %v1797_v53 = vadd.f32 %v3146_v51, %v1615_v50  ;;  %v3161_v54 = vpop.f32.mrf.mxu0 }
 0x12f   :  { %v2044_v55 = vld [vmem:[#allocation3 + $0x10] sm:$0xff]  ;;  %v1744_v57 = vpop.f32.mrf.mxu1  ;;  %v1618_v30 = vld [vmem:[#allocation3 + $0x48] sm:$0xff] }
 0x130   :  { %1590 = vst.msk [vmem:[#allocation3 + $0x68] sm:$0xff] %vm19_vm4, %v1574_v52  ;;  %v2226_v58 = vadd.f32 %v3160_v43, %v2044_v55  ;;  %1813 = vst.msk [vmem:[#allocation3 + $0x30] sm:$0xff] %vm19_vm4, %v1797_v53  ;;  %v1795_v59 = vadd.f32 %v1744_v57, %v1613_v56  ;;  %v2164_v60 = vpop.f32.mrf.mxu0 }
 0x131   :  { %v2042_v61 = vld [vmem:[#allocation3] sm:$0xff]  ;;  %v3147_v63 = vpop.f32.mrf.mxu1  ;;  %v1623_v36 = vld [vmem:[#allocation3 + $0x70] sm:$0xff] }
 0x132   :  { %2242 = vst.msk [vmem:[#allocation3 + $0x10] sm:$0xff] %vm19_vm4, %v2226_v58  ;;  %v2224_v0 = vadd.f32 %v2161_v48, %v2042_v61  ;;  %1811 = vst.msk [vmem:[#allocation3 + $0x20] sm:$0xff] %vm19_vm4, %v1795_v59  ;;  %v1798_v1 = vadd.f32 %v3147_v63, %v1616_v62  ;;  %v3164_v2 = vpop.f32.mrf.mxu0 }
 0x133   :  { %v2045_v3 = vld [vmem:[#allocation3 + $0x18] sm:$0xff]  ;;  %v1747_v5 = vpop.f32.mrf.mxu1  ;;  %v1621_v41 = vld [vmem:[#allocation3 + $0x60] sm:$0xff] }
 0x134   :  { %2240 = vst.msk [vmem:[#allocation3] sm:$0xff] %vm19_vm4, %v2224_v0  ;;  %v2227_v6 = vadd.f32 %v3161_v54, %v2045_v3  ;;  %1814 = vst.msk [vmem:[#allocation3 + $0x38] sm:$0xff] %vm19_vm4, %v1798_v1  ;;  %v1796_v7 = vadd.f32 %v1747_v5, %v1614_v4  ;;  %v2177_v8 = vpop.f32.mrf.mxu0 }
 0x135   :  { %v2043_v9 = vld [vmem:[#allocation3 + $0x8] sm:$0xff]  ;;  %v3150_v11 = vpop.f32.mrf.mxu1  ;;  %v1624_v46 = vld [vmem:[#allocation3 + $0x78] sm:$0xff] }
 0x136   :  { %2243 = vst.msk [vmem:[#allocation3 + $0x18] sm:$0xff] %vm19_vm4, %v2227_v6  ;;  %v2225_v12 = vadd.f32 %v2164_v60, %v2043_v9  ;;  %1812 = vst.msk [vmem:[#allocation3 + $0x28] sm:$0xff] %vm19_vm4, %v1796_v7  ;;  %v1801_v13 = vadd.f32 %v3150_v11, %v1619_v10  ;;  %v3165_v14 = vpop.f32.mrf.mxu0 }
 0x137   :  { %v2048_v15 = vld [vmem:[#allocation3 + $0x30] sm:$0xff]  ;;  %v1760_v17 = vpop.f32.mrf.mxu1  ;;  %v1622_v52 = vld [vmem:[#allocation3 + $0x68] sm:$0xff] }
 0x138   :  { %2241 = vst.msk [vmem:[#allocation3 + $0x8] sm:$0xff] %vm19_vm4, %v2225_v12  ;;  %v2230_v18 = vadd.f32 %v3164_v2, %v2048_v15  ;;  %1817 = vst.msk [vmem:[#allocation3 + $0x50] sm:$0xff] %vm19_vm4, %v1801_v13  ;;  %v1799_v19 = vadd.f32 %v1760_v17, %v1617_v16  ;;  %v2180_v20 = vpop.f32.mrf.mxu0 }
 0x139   :  { %v2046_v21 = vld [vmem:[#allocation3 + $0x20] sm:$0xff]  ;;  %v3151_v24 = vpop.f32.mrf.mxu1  ;;  %v2274_v58 = vld [vmem:[#allocation3 + $0x10] sm:$0xff] }
 0x13a   :  { %2246 = vst.msk [vmem:[#allocation3 + $0x30] sm:$0xff] %vm19_vm4, %v2230_v18  ;;  %v2228_v25 = vadd.f32 %v2177_v8, %v2046_v21  ;;  %1815 = vst.msk [vmem:[#allocation3 + $0x40] sm:$0xff] %vm19_vm4, %v1799_v19  ;;  %v1802_v26 = vadd.f32 %v3151_v24, %v1620_v23  ;;  %v3168_v27 = vpop.f32.mrf.mxu0 }
 0x13b   :  { %v2049_v29 = vld [vmem:[#allocation3 + $0x38] sm:$0xff]  ;;  %v1763_v31 = vpop.f32.mrf.mxu1  ;;  %v2272_v0 = vld [vmem:[#allocation3] sm:$0xff] }
 0x13c   :  { %2244 = vst.msk [vmem:[#allocation3 + $0x20] sm:$0xff] %vm19_vm4, %v2228_v25  ;;  %v2231_v32 = vadd.f32 %v3165_v14, %v2049_v29  ;;  %1818 = vst.msk [vmem:[#allocation3 + $0x58] sm:$0xff] %vm19_vm4, %v1802_v26  ;;  %v1800_v33 = vadd.f32 %v1763_v31, %v1618_v30  ;;  %v2193_v34 = vpop.f32.mrf.mxu0 }
 0x13d   :  { %v2047_v35 = vld [vmem:[#allocation3 + $0x28] sm:$0xff]  ;;  %v3154_v37 = vpop.f32.mrf.mxu1  ;;  %v2275_v6 = vld [vmem:[#allocation3 + $0x18] sm:$0xff] }
 0x13e   :  { %2247 = vst.msk [vmem:[#allocation3 + $0x38] sm:$0xff] %vm19_vm4, %v2231_v32  ;;  %v2229_v38 = vadd.f32 %v2180_v20, %v2047_v35  ;;  %1816 = vst.msk [vmem:[#allocation3 + $0x48] sm:$0xff] %vm19_vm4, %v1800_v33  ;;  %v1805_v22 = vadd.f32 %v3154_v37, %v1623_v36  ;;  %v3169_v39 = vpop.f32.mrf.mxu0 }
 0x13f   :  { %v2052_v40 = vld [vmem:[#allocation3 + $0x50] sm:$0xff]  ;;  %v1776_v42 = vpop.f32.mrf.mxu1  ;;  %v2273_v12 = vld [vmem:[#allocation3 + $0x8] sm:$0xff] }
 0x140   :  { %2245 = vst.msk [vmem:[#allocation3 + $0x28] sm:$0xff] %vm19_vm4, %v2229_v38  ;;  %v2234_v43 = vadd.f32 %v3168_v27, %v2052_v40  ;;  %1821 = vst.msk [vmem:[#allocation3 + $0x70] sm:$0xff] %vm19_vm4, %v1805_v22  ;;  %v1803_v28 = vadd.f32 %v1776_v42, %v1621_v41  ;;  %v2196_v44 = vpop.f32.mrf.mxu0 }
 0x141   :  { %v2050_v45 = vld [vmem:[#allocation3 + $0x40] sm:$0xff]  ;;  %v3155_v47 = vpop.f32.mrf.mxu1  ;;  %v2278_v18 = vld [vmem:[#allocation3 + $0x30] sm:$0xff] }
 0x142   :  { %2250 = vst.msk [vmem:[#allocation3 + $0x50] sm:$0xff] %vm19_vm4, %v2234_v43  ;;  %v2232_v48 = vadd.f32 %v2193_v34, %v2050_v45  ;;  %1819 = vst.msk [vmem:[#allocation3 + $0x60] sm:$0xff] %vm19_vm4, %v1803_v28  ;;  %v1806_v49 = vadd.f32 %v3155_v47, %v1624_v46  ;;  %v3172_v50 = vpop.f32.mrf.mxu0  ;;  %v4028_v47 = vld [vmem:[%s4133_s2] ss:$0 sm:$0xff] }
 0x143   :  { %v2053_v51 = vld [vmem:[#allocation3 + $0x58] sm:$0xff]  ;;  %v1779_v53 = vpop.f32.mrf.mxu1  ;;  %v2276_v25 = vld [vmem:[#allocation3 + $0x20] sm:$0xff] }
 0x144   :  { %2248 = vst.msk [vmem:[#allocation3 + $0x40] sm:$0xff] %vm19_vm4, %v2232_v48  ;;  %v2235_v54 = vadd.f32 %v3169_v39, %v2053_v51  ;;  %1822 = vst.msk [vmem:[#allocation3 + $0x78] sm:$0xff] %vm19_vm4, %v1806_v49  ;;  %v1804_v55 = vadd.f32 %v1779_v53, %v1622_v52  ;;  %v2209_v56 = vpop.f32.mrf.mxu0 }
 0x145   :  { %v2051_v57 = vld [vmem:[#allocation3 + $0x48] sm:$0xff]  ;;  %v3178_v59 = vpop.f32.mrf.mxu1  ;;  %v2279_v32 = vld [vmem:[#allocation3 + $0x38] sm:$0xff] }
 0x146   :  { %2251 = vst.msk [vmem:[#allocation3 + $0x58] sm:$0xff] %vm19_vm4, %v2235_v54  ;;  %v2233_v60 = vadd.f32 %v2196_v44, %v2051_v57  ;;  %1820 = vst.msk [vmem:[#allocation3 + $0x68] sm:$0xff] %vm19_vm4, %v1804_v55  ;;  %v3173_v61 = vpop.f32.mrf.mxu0  ;;  %v2456_v62 = vadd.f32 %v3178_v59, %v2274_v58 }
 0x147   :  { %v2056_v63 = vld [vmem:[#allocation3 + $0x70] sm:$0xff]  ;;  %v2391_v1 = vpop.f32.mrf.mxu1  ;;  %v2277_v38 = vld [vmem:[#allocation3 + $0x28] sm:$0xff] }
 0x148   :  { %2249 = vst.msk [vmem:[#allocation3 + $0x48] sm:$0xff] %vm19_vm4, %v2233_v60  ;;  %v2238_v2 = vadd.f32 %v3172_v50, %v2056_v63  ;;  %2472 = vst.msk [vmem:[#allocation3 + $0x10] sm:$0xff] %vm19_vm4, %v2456_v62  ;;  %v2212_v3 = vpop.f32.mrf.mxu0  ;;  %v2454_v4 = vadd.f32 %v2391_v1, %v2272_v0 }
 0x149   :  { %v2054_v5 = vld [vmem:[#allocation3 + $0x60] sm:$0xff]  ;;  %v3179_v7 = vpop.f32.mrf.mxu1  ;;  %v2282_v43 = vld [vmem:[#allocation3 + $0x50] sm:$0xff] }
 0x14a   :  { %2254 = vst.msk [vmem:[#allocation3 + $0x70] sm:$0xff] %vm19_vm4, %v2238_v2  ;;  %v2236_v8 = vadd.f32 %v2209_v56, %v2054_v5  ;;  %2470 = vst.msk [vmem:[#allocation3] sm:$0xff] %vm19_vm4, %v2454_v4  ;;  %v2457_v9 = vadd.f32 %v3179_v7, %v2275_v6  ;;  %v3196_v10 = vpop.f32.mrf.mxu0 }
 0x14b   :  { %v2057_v11 = vld [vmem:[#allocation3 + $0x78] sm:$0xff]  ;;  %v2394_v13 = vpop.f32.mrf.mxu1  ;;  %v2280_v49 = vld [vmem:[#allocation3 + $0x40] sm:$0xff] }
 0x14c   :  { %2252 = vst.msk [vmem:[#allocation3 + $0x60] sm:$0xff] %vm19_vm4, %v2236_v8  ;;  %v2239_v14 = vadd.f32 %v3173_v61, %v2057_v11  ;;  %2473 = vst.msk [vmem:[#allocation3 + $0x18] sm:$0xff] %vm19_vm4, %v2457_v9  ;;  %v2455_v15 = vadd.f32 %v2394_v13, %v2273_v12  ;;  %v2621_v16 = vpop.f32.mrf.mxu0 }
 0x14d   :  { %v2055_v17 = vld [vmem:[#allocation3 + $0x68] sm:$0xff]  ;;  %v3182_v19 = vpop.f32.mrf.mxu1  ;;  %v2283_v56 = vld [vmem:[#allocation3 + $0x58] sm:$0xff] }
 0x14e   :  { %2255 = vst.msk [vmem:[#allocation3 + $0x78] sm:$0xff] %vm19_vm4, %v2239_v14  ;;  %v2237_v20 = vadd.f32 %v2212_v3, %v2055_v17  ;;  %2471 = vst.msk [vmem:[#allocation3 + $0x8] sm:$0xff] %vm19_vm4, %v2455_v15  ;;  %v2460_v21 = vadd.f32 %v3182_v19, %v2278_v18  ;;  %v3197_v23 = vpop.f32.mrf.mxu0 }
 0x14f   :  { %v2504_v24 = vld [vmem:[#allocation3 + $0x10] sm:$0xff]  ;;  %v2407_v26 = vpop.f32.mrf.mxu1  ;;  %v2281_v0 = vld [vmem:[#allocation3 + $0x48] sm:$0xff] }
 0x150   :  { %2253 = vst.msk [vmem:[#allocation3 + $0x68] sm:$0xff] %vm19_vm4, %v2237_v20  ;;  %v2686_v27 = vadd.f32 %v3196_v10, %v2504_v24  ;;  %2476 = vst.msk [vmem:[#allocation3 + $0x30] sm:$0xff] %vm19_vm4, %v2460_v21  ;;  %v2458_v29 = vadd.f32 %v2407_v26, %v2276_v25  ;;  %v2624_v30 = vpop.f32.mrf.mxu0 }
 0x151   :  { %v2502_v31 = vld [vmem:[#allocation3] sm:$0xff]  ;;  %v3183_v33 = vpop.f32.mrf.mxu1  ;;  %v2286_v9 = vld [vmem:[#allocation3 + $0x70] sm:$0xff] }
 0x152   :  { %2702 = vst.msk [vmem:[#allocation3 + $0x10] sm:$0xff] %vm19_vm4, %v2686_v27  ;;  %v2684_v34 = vadd.f32 %v2621_v16, %v2502_v31  ;;  %2474 = vst.msk [vmem:[#allocation3 + $0x20] sm:$0xff] %vm19_vm4, %v2458_v29  ;;  %v2461_v35 = vadd.f32 %v3183_v33, %v2279_v32  ;;  %v3200_v36 = vpop.f32.mrf.mxu0 }
 0x153   :  { %v2505_v37 = vld [vmem:[#allocation3 + $0x18] sm:$0xff]  ;;  %v2410_v22 = vpop.f32.mrf.mxu1  ;;  %v2284_v18 = vld [vmem:[#allocation3 + $0x60] sm:$0xff] }
 0x154   :  { %2700 = vst.msk [vmem:[#allocation3] sm:$0xff] %vm19_vm4, %v2684_v34  ;;  %v2687_v39 = vadd.f32 %v3197_v23, %v2505_v37  ;;  %2477 = vst.msk [vmem:[#allocation3 + $0x38] sm:$0xff] %vm19_vm4, %v2461_v35  ;;  %v2459_v40 = vadd.f32 %v2410_v22, %v2277_v38  ;;  %v2637_v41 = vpop.f32.mrf.mxu0 }
 0x155   :  { %v2503_v42 = vld [vmem:[#allocation3 + $0x8] sm:$0xff]  ;;  %v3186_v28 = vpop.f32.mrf.mxu1  ;;  %v2287_v29 = vld [vmem:[#allocation3 + $0x78] sm:$0xff] }
 0x156   :  { %2703 = vst.msk [vmem:[#allocation3 + $0x18] sm:$0xff] %vm19_vm4, %v2687_v39  ;;  %v2685_v44 = vadd.f32 %v2624_v30, %v2503_v42  ;;  %2475 = vst.msk [vmem:[#allocation3 + $0x28] sm:$0xff] %vm19_vm4, %v2459_v40  ;;  %v2464_v45 = vadd.f32 %v3186_v28, %v2282_v43  ;;  %v3201_v46 = vpop.f32.mrf.mxu0 }
 0x157   :  { %v2508_v48 = vld [vmem:[#allocation3 + $0x30] sm:$0xff]  ;;  %v2423_v50 = vpop.f32.mrf.mxu1  ;;  %v2285_v38 = vld [vmem:[#allocation3 + $0x68] sm:$0xff] }
 0x158   :  { %2701 = vst.msk [vmem:[#allocation3 + $0x8] sm:$0xff] %vm19_vm4, %v2685_v44  ;;  %v2690_v51 = vadd.f32 %v3200_v36, %v2508_v48  ;;  %2480 = vst.msk [vmem:[#allocation3 + $0x50] sm:$0xff] %vm19_vm4, %v2464_v45  ;;  %v2462_v52 = vadd.f32 %v2423_v50, %v2280_v49  ;;  %v2640_v53 = vpop.f32.mrf.mxu0 }
 0x159   :  { %v2721_v54 = vld [vmem:[#allocation3 + $0x10] sm:$0xff]  ;;  %v2506_v55 = vld [vmem:[#allocation3 + $0x20] sm:$0xff]  ;;  %v3187_v57 = vpop.f32.mrf.mxu1 }
 0x15a   :  { %v2744_v58 = vadd.f32 %v4028_v47, %v2721_v54  ;;  %2706 = vst.msk [vmem:[#allocation3 + $0x30] sm:$0xff] %vm19_vm4, %v2690_v51  ;;  %v2688_v59 = vadd.f32 %v2637_v41, %v2506_v55  ;;  %2478 = vst.msk [vmem:[#allocation3 + $0x40] sm:$0xff] %vm19_vm4, %v2462_v52  ;;  %v2465_v60 = vadd.f32 %v3187_v57, %v2283_v56  ;;  %v3204_v61 = vpop.f32.mrf.mxu0 }
 0x15b   :  { %v2719_v62 = vld [vmem:[#allocation3] sm:$0xff]  ;;  %v2509_v63 = vld [vmem:[#allocation3 + $0x38] sm:$0xff]  ;;  %v2426_v1 = vpop.f32.mrf.mxu1 }
 0x15c   :  { %v2760_v2 = vmax.f32 %v2744_v58, 0.0  ;;  %v2742_v3 = vadd.f32 %v4028_v47, %v2719_v62  ;;  %2704 = vst.msk [vmem:[#allocation3 + $0x20] sm:$0xff] %vm19_vm4, %v2688_v59  ;;  %v2691_v4 = vadd.f32 %v3201_v46, %v2509_v63  ;;  %2481 = vst.msk [vmem:[#allocation3 + $0x58] sm:$0xff] %vm19_vm4, %v2465_v60  ;;  %v2463_v5 = vadd.f32 %v2426_v1, %v2281_v0  ;;  %v2653_v6 = vpop.f32.mrf.mxu0 }
 0x15d   :  { %v2722_v7 = vld [vmem:[#allocation3 + $0x18] sm:$0xff]  ;;  %v2507_v8 = vld [vmem:[#allocation3 + $0x28] sm:$0xff]  ;;  %v3190_v10 = vpop.f32.mrf.mxu1 }
 0x15e   :  { %2776 = vst.msk [vmem:[%s4134_s3 + $0x10] sm:$0xff] %vm19_vm4, %v2760_v2  ;;  %v2758_v11 = vmax.f32 %v2742_v3, 0.0  ;;  %v2745_v12 = vadd.f32 %v4028_v47, %v2722_v7  ;;  %2707 = vst.msk [vmem:[#allocation3 + $0x38] sm:$0xff] %vm19_vm4, %v2691_v4  ;;  %v2689_v13 = vadd.f32 %v2640_v53, %v2507_v8  ;;  %v2468_v14 = vadd.f32 %v3190_v10, %v2286_v9  ;;  %v3205_v15 = vpop.f32.mrf.mxu0 }
 0x15f   :  { %2479 = vst.msk [vmem:[#allocation3 + $0x48] sm:$0xff] %vm19_vm4, %v2463_v5  ;;  %v2720_v16 = vld [vmem:[#allocation3 + $0x8] sm:$0xff]  ;;  %v2512_v17 = vld [vmem:[#allocation3 + $0x50] sm:$0xff]  ;;  %v2439_v19 = vpop.f32.mrf.mxu1 }
 0x160   :  { %2774 = vst.msk [vmem:[%s4134_s3] sm:$0xff] %vm19_vm4, %v2758_v11  ;;  %v2761_v20 = vmax.f32 %v2745_v12, 0.0  ;;  %v2743_v21 = vadd.f32 %v4028_v47, %v2720_v16  ;;  %2705 = vst.msk [vmem:[#allocation3 + $0x28] sm:$0xff] %vm19_vm4, %v2689_v13  ;;  %v2694_v23 = vadd.f32 %v3204_v61, %v2512_v17  ;;  %v2466_v24 = vadd.f32 %v2439_v19, %v2284_v18  ;;  %v2656_v25 = vpop.f32.mrf.mxu0 }
 0x161   :  { %2484 = vst.msk [vmem:[#allocation3 + $0x70] sm:$0xff] %vm19_vm4, %v2468_v14  ;;  %v2725_v26 = vld [vmem:[#allocation3 + $0x30] sm:$0xff]  ;;  %v2510_v27 = vld [vmem:[#allocation3 + $0x40] sm:$0xff]  ;;  %v3191_v30 = vpop.f32.mrf.mxu1 }
 0x162   :  { %2777 = vst.msk [vmem:[%s4134_s3 + $0x18] sm:$0xff] %vm19_vm4, %v2761_v20  ;;  %v2759_v31 = vmax.f32 %v2743_v21, 0.0  ;;  %v2748_v32 = vadd.f32 %v4028_v47, %v2725_v26  ;;  %2710 = vst.msk [vmem:[#allocation3 + $0x50] sm:$0xff] %vm19_vm4, %v2694_v23  ;;  %v2692_v33 = vadd.f32 %v2653_v6, %v2510_v27  ;;  %v2469_v34 = vadd.f32 %v3191_v30, %v2287_v29  ;;  %v3208_v35 = vpop.f32.mrf.mxu0 }
 0x163   :  { %2482 = vst.msk [vmem:[#allocation3 + $0x60] sm:$0xff] %vm19_vm4, %v2466_v24  ;;  %v2723_v36 = vld [vmem:[#allocation3 + $0x20] sm:$0xff]  ;;  %v2513_v37 = vld [vmem:[#allocation3 + $0x58] sm:$0xff]  ;;  %v2442_v22 = vpop.f32.mrf.mxu1 }
 0x164   :  { %2775 = vst.msk [vmem:[%s4134_s3 + $0x8] sm:$0xff] %vm19_vm4, %v2759_v31  ;;  %v2764_v39 = vmax.f32 %v2748_v32, 0.0  ;;  %v2746_v40 = vadd.f32 %v4028_v47, %v2723_v36  ;;  %2708 = vst.msk [vmem:[#allocation3 + $0x40] sm:$0xff] %vm19_vm4, %v2692_v33  ;;  %v2695_v41 = vadd.f32 %v3205_v15, %v2513_v37  ;;  %v2467_v42 = vadd.f32 %v2442_v22, %v2285_v38  ;;  %v2669_v44 = vpop.f32.mrf.mxu0 }
 0x165   :  { %2485 = vst.msk [vmem:[#allocation3 + $0x78] sm:$0xff] %vm19_vm4, %v2469_v34  ;;  %v2726_v43 = vld [vmem:[#allocation3 + $0x38] sm:$0xff] }
 0x166   :  { %v2511_v28 = vld [vmem:[#allocation3 + $0x48] sm:$0xff]  ;;  %2780 = vst.msk [vmem:[%s4134_s3 + $0x30] sm:$0xff] %vm19_vm4, %v2764_v39  ;;  %v2762_v45 = vmax.f32 %v2746_v40, 0.0  ;;  %v2749_v46 = vadd.f32 %v4028_v47, %v2726_v43  ;;  %2711 = vst.msk [vmem:[#allocation3 + $0x58] sm:$0xff] %vm19_vm4, %v2695_v41  ;;  %v3209_v56 = vpop.f32.mrf.mxu0 }
 0x167   :  { %v2693_v48 = vadd.f32 %v2656_v25, %v2511_v28  ;;  %2483 = vst.msk [vmem:[#allocation3 + $0x68] sm:$0xff] %vm19_vm4, %v2467_v42  ;;  %v2724_v49 = vld [vmem:[#allocation3 + $0x28] sm:$0xff] }
 0x168   :  { %v2516_v50 = vld [vmem:[#allocation3 + $0x70] sm:$0xff]  ;;  %2778 = vst.msk [vmem:[%s4134_s3 + $0x20] sm:$0xff] %vm19_vm4, %v2762_v45  ;;  %v2765_v51 = vmax.f32 %v2749_v46, 0.0  ;;  %v2747_v52 = vadd.f32 %v4028_v47, %v2724_v49  ;;  %v2672_v3 = vpop.f32.mrf.mxu0 }
 0x169   :  { %2709 = vst.msk [vmem:[#allocation3 + $0x48] sm:$0xff] %vm19_vm4, %v2693_v48  ;;  %v2698_v53 = vadd.f32 %v3208_v35, %v2516_v50  ;;  %v2729_v54 = vld [vmem:[#allocation3 + $0x50] sm:$0xff] }
 0x16a   :  { %v2514_v55 = vld [vmem:[#allocation3 + $0x60] sm:$0xff]  ;;  %2781 = vst.msk [vmem:[%s4134_s3 + $0x38] sm:$0xff] %vm19_vm4, %v2765_v51  ;;  %v2763_v57 = vmax.f32 %v2747_v52, 0.0  ;;  %v2752_v58 = vadd.f32 %v4028_v47, %v2729_v54 }
 0x16b   :  { %2714 = vst.msk [vmem:[#allocation3 + $0x70] sm:$0xff] %vm19_vm4, %v2698_v53  ;;  %v2696_v59 = vadd.f32 %v2669_v44, %v2514_v55  ;;  %v2727_v60 = vld [vmem:[#allocation3 + $0x40] sm:$0xff] }
 0x16c   :  { %v2517_v61 = vld [vmem:[#allocation3 + $0x78] sm:$0xff]  ;;  %2779 = vst.msk [vmem:[%s4134_s3 + $0x28] sm:$0xff] %vm19_vm4, %v2763_v57  ;;  %v2768_v62 = vmax.f32 %v2752_v58, 0.0  ;;  %v2750_v63 = vadd.f32 %v4028_v47, %v2727_v60 }
 0x16d   :  { %2712 = vst.msk [vmem:[#allocation3 + $0x60] sm:$0xff] %vm19_vm4, %v2696_v59  ;;  %v2699_v0 = vadd.f32 %v3209_v56, %v2517_v61  ;;  %v2730_v1 = vld [vmem:[#allocation3 + $0x58] sm:$0xff] }
 0x16e   :  { %v2515_v2 = vld [vmem:[#allocation3 + $0x68] sm:$0xff]  ;;  %2784 = vst.msk [vmem:[%s4134_s3 + $0x50] sm:$0xff] %vm19_vm4, %v2768_v62  ;;  %v2766_v4 = vmax.f32 %v2750_v63, 0.0  ;;  %v2753_v5 = vadd.f32 %v4028_v47, %v2730_v1 }
 0x16f   :  { %2715 = vst.msk [vmem:[#allocation3 + $0x78] sm:$0xff] %vm19_vm4, %v2699_v0  ;;  %v2697_v6 = vadd.f32 %v2672_v3, %v2515_v2 }
 0x170   :  { %v2728_v7 = vld [vmem:[#allocation3 + $0x48] sm:$0xff]  ;;  %2782 = vst.msk [vmem:[%s4134_s3 + $0x40] sm:$0xff] %vm19_vm4, %v2766_v4  ;;  %v2769_v8 = vmax.f32 %v2753_v5, 0.0 }
 0x171   :  { %v2751_v9 = vadd.f32 %v4028_v47, %v2728_v7  ;;  %2713 = vst.msk [vmem:[#allocation3 + $0x68] sm:$0xff] %vm19_vm4, %v2697_v6 }
 0x172   :  { %v2733_v10 = vld [vmem:[#allocation3 + $0x70] sm:$0xff]  ;;  %2785 = vst.msk [vmem:[%s4134_s3 + $0x58] sm:$0xff] %vm19_vm4, %v2769_v8 }
 0x173   :  { %v2767_v11 = vmax.f32 %v2751_v9, 0.0  ;;  %v2756_v12 = vadd.f32 %v4028_v47, %v2733_v10 }
 0x174   :  { %v2731_v13 = vld [vmem:[#allocation3 + $0x60] sm:$0xff] }
 0x175   :  { %2783 = vst.msk [vmem:[%s4134_s3 + $0x48] sm:$0xff] %vm19_vm4, %v2767_v11  ;;  %v2772_v14 = vmax.f32 %v2756_v12, 0.0  ;;  %v2754_v15 = vadd.f32 %v4028_v47, %v2731_v13 }
 0x176   :  { %v2734_v16 = vld [vmem:[#allocation3 + $0x78] sm:$0xff] }
 0x177   :  { %2788 = vst.msk [vmem:[%s4134_s3 + $0x70] sm:$0xff] %vm19_vm4, %v2772_v14  ;;  %v2770_v17 = vmax.f32 %v2754_v15, 0.0  ;;  %v2757_v18 = vadd.f32 %v4028_v47, %v2734_v16 }
 0x178   :  { %v2732_v19 = vld [vmem:[#allocation3 + $0x68] sm:$0xff] }
 0x179   :  { %2786 = vst.msk [vmem:[%s4134_s3 + $0x60] sm:$0xff] %vm19_vm4, %v2770_v17  ;;  %v2773_v20 = vmax.f32 %v2757_v18, 0.0  ;;  %v2755_v21 = vadd.f32 %v4028_v47, %v2732_v19 }
 0x17b   :  { %2789 = vst.msk [vmem:[%s4134_s3 + $0x78] sm:$0xff] %vm19_vm4, %v2773_v20  ;;  %v2771_v23 = vmax.f32 %v2755_v21, 0.0 }
 0x17d   :  { %2787 = vst.msk [vmem:[%s4134_s3 + $0x68] sm:$0xff] %vm19_vm4, %v2771_v23 }

// kernel: resnet_conv5_forward.5
= control target key start
LH: loop header
LB: loop body
LE: loop exit
PB: predicated region body
PF: predicated region fallthrough
CT: control target
= control target key end

     0   :  { %vm175_vm0 = vcmask 1041408   ;;  %vm56_vm1 = vcmask 27648   ;;  %vm810_vm2 = vsmask.f32 3328  ;;  %vm811_vm3 = vsmask.f32 7440  ;;  %s4147_s1 = inlined_call_operand.vmem [shape: bf16[3,3,4,4], index: 1, kind: input, shape index: {}]   ;;  %s4148_s0 = inlined_call_operand.vmem [shape: bf16[2,10,10,4], index: 0, kind: input, shape index: {}]   ;;  %s4149_s2 = inlined_call_operand.vmem [shape: f32[1,4], index: 2, kind: input, shape index: {}]   ;;  %s4150_s3 = inlined_call_operand.vmem [shape: bf16[2,8,8,4], index: 3, kind: output, shape index: {}]  }
   0x1   :  { %v109_v0 = vld [vmem:[%s4147_s1] sm:$0x3]  ;;  %v46_v1 = vld [vmem:[%s4148_s0 + $0x50] sm:$0xf]  ;;  %v47_v2 = vld [vmem:[%s4148_s0 + $0x58] sm:$0xf] }
   0x2   :  { %3229 = vmatprep.subr.msk.bf16.mxu1 %vm175_vm0, %v109_v0  ;;  %v177_v3 = vsel %vm175_vm0, %v109_v0, 0  ;;  %67 = vst.msk [vmem:[#allocation2 + $0x28] sm:$0xf] %vm56_vm1, %v46_v1  ;;  %68 = vst.msk [vmem:[#allocation2 + $0x2c] sm:$0xf] %vm56_vm1, %v47_v2  ;;  %3228 = vmatprep.subr.msk.bf16.mxu0 %vm175_vm0, %v109_v0  ;;  %vm19_vm4 = vcmask 31744  }
   0x3   :  { %v790_v4 = vld [vmem:[%s4148_s0 + $0x50] sm:$0xf]  ;;  %v791_v5 = vld [vmem:[%s4148_s0 + $0x54] sm:$0x1]  ;;  %3227 = vmatpush3.bf16.msra.mxu1 %v177_v3  ;;  %3065 = vmatpush3.bf16.msra.mxu0 %v177_v3  ;;  %v2826_v9 = vld [vmem:[%s4147_s1 + $0x6] sm:$0x3] }
   0x4   :  { %v954_v6 = vshrl.u32 %v790_v4, 16  ;;  %v957_v7 = vshll.u32 %v790_v4, 16  ;;  %v963_v8 = vshll.u32 %v791_v5, 16  ;;  %v48_v10 = vld [vmem:[%s4148_s0 + $0x60] sm:$0xf]  ;;  %3230 = vmatprep.subr.msk.bf16.mxu1 %vm175_vm0, %v2826_v9  ;;  %vm3392_vm5 = vmor %vm810_vm2, %vm811_vm3  ;;  %v408_v36 = vsel %vm175_vm0, %v2826_v9, 0 }
   0x5   :  { %v49_v14 = vld [vmem:[%s4148_s0 + $0x68] sm:$0xf]  ;;  %69 = vst.msk [vmem:[#allocation2 + $0x30] sm:$0xf] %vm56_vm1, %v48_v10  ;;  %v36_v15 = vld [vmem:[%s4148_s0] sm:$0xf] }
   0x6   :  { %v956_v11 = vrot.slane %v954_v6, 4  ;;  %v959_v12 = vrot.slane %v957_v7, 5  ;;  %v965_v13 = vrot.slane %v963_v8, 5  ;;  %70 = vst.msk [vmem:[#allocation2 + $0x34] sm:$0xf] %vm56_vm1, %v49_v14  ;;  %vm1903_vm6 = vcmask 1042432  }
   0x7   :  { %v37_v16 = vld [vmem:[%s4148_s0 + $0x8] sm:$0xf]  ;;  %v770_v17 = vld [vmem:[%s4148_s0] sm:$0xf]  ;;  %57 = vst.msk [vmem:[#allocation2] sm:$0xf] %vm56_vm1, %v36_v15 }
   0x8   :  { %v960_v18 = vor.u32 %v959_v12, %v956_v11  ;;  %58 = vst.msk [vmem:[#allocation2 + $0x4] sm:$0xf] %vm56_vm1, %v37_v16  ;;  %v771_v19 = vld [vmem:[%s4148_s0 + $0x4] sm:$0x1]  ;;  %v814_v20 = vshrl.u32 %v770_v17, 16  ;;  %v817_v21 = vshll.u32 %v770_v17, 16 }
   0x9   :  { %v38_v22 = vld [vmem:[%s4148_s0 + $0x10] sm:$0xf]  ;;  %v823_v23 = vshll.u32 %v771_v19, 16  ;;  %v39_v24 = vld [vmem:[%s4148_s0 + $0x18] sm:$0xf]  ;;  %v3239_v26 = vld [vmem:[#allocation2 + $0x28] sm:$0xff]  }
   0xa   :  { %59 = vst.msk [vmem:[#allocation2 + $0x8] sm:$0xf] %vm56_vm1, %v38_v22  ;;  %v50_v25 = vld [vmem:[%s4148_s0 + $0x70] sm:$0xf]  ;;  %v961_v27 = vrot.slane %v960_v18, 4  ;;  %v816_v29 = vrot.slane %v814_v20, 4  ;;  %3074 = vmatprep.mubr.msk.bf16.mxu1 %vm19_vm4, %v3239_v26 }
   0xb   :  { %60 = vst.msk [vmem:[#allocation2 + $0xc] sm:$0xf] %vm56_vm1, %v39_v24  ;;  %71 = vst.msk [vmem:[#allocation2 + $0x38] sm:$0xf] %vm56_vm1, %v50_v25  ;;  %v819_v30 = vrot.slane %v817_v21, 5  ;;  %v825_v38 = vrot.slane %v823_v23, 5 }
   0xc   :  { %v51_v31 = vld [vmem:[%s4148_s0 + $0x78] sm:$0xf]  ;;  %v966_v32 = vsel %vm3392_vm5, %v961_v27, %v965_v13  ;;  %v52_v33 = vld [vmem:[%s4148_s0 + $0x80] sm:$0xf]  ;;  %v53_v34 = vld [vmem:[%s4148_s0 + $0x88] sm:$0xf] }
   0xd   :  { %72 = vst.msk [vmem:[#allocation2 + $0x3c] sm:$0xf] %vm56_vm1, %v51_v31  ;;  %v2843_v35 = vld [vmem:[%s4147_s1 + $0xc] sm:$0x3]  ;;  %1123 = vst.msk [vmem:[#allocation2 + $0x28] sm:$0xf] %vm56_vm1, %v966_v32  ;;  %v820_v37 = vor.u32 %v819_v30, %v816_v29 }
   0xe   :  { %73 = vst.msk [vmem:[#allocation2 + $0x40] sm:$0xf] %vm56_vm1, %v52_v33  ;;  %74 = vst.msk [vmem:[#allocation2 + $0x44] sm:$0xf] %vm56_vm1, %v53_v34  ;;  %3231 = vmatprep.subr.msk.bf16.mxu0 %vm175_vm0, %v2843_v35  ;;  %v40_v39 = vld [vmem:[%s4148_s0 + $0x20] sm:$0xf] }
   0xf   :  { %v3240_v40 = vld [vmem:[#allocation2 + $0x30] sm:$0xff]   ;;  %v639_v41 = vsel %vm175_vm0, %v2843_v35, 0  ;;  %v41_v42 = vld [vmem:[%s4148_s0 + $0x28] sm:$0xf]  ;;  %61 = vst.msk [vmem:[#allocation2 + $0x10] sm:$0xf] %vm56_vm1, %v40_v39 }
  0x10   :  { %v3241_v43 = vld [vmem:[#allocation2] sm:$0xff]   ;;  %v821_v44 = vrot.slane %v820_v37, 4  ;;  %62 = vst.msk [vmem:[#allocation2 + $0x14] sm:$0xf] %vm56_vm1, %v41_v42  ;;  %3075 = vmatmul.mubr.msk.bf16.vlgmr.msra.gmra.mxu1 %vm19_vm4, %v3240_v40  ;;  %v42_v52 = vld [vmem:[%s4148_s0 + $0x30] sm:$0xf] }
  0x11   :  { %v778_v45 = vld [vmem:[%s4148_s0 + $0x20] sm:$0xf]  ;;  %v779_v46 = vld [vmem:[%s4148_s0 + $0x24] sm:$0x1]  ;;  %3083 = vmatpush3.bf16.msra.mxu1 %v408_v36  ;;  %3066 = vmatprep.mubr.msk.bf16.mxu0 %vm19_vm4, %v3241_v43  ;;  %v43_v53 = vld [vmem:[%s4148_s0 + $0x38] sm:$0xf] }
  0x12   :  { %v826_v47 = vsel %vm3392_vm5, %v821_v44, %v825_v38  ;;  %v3242_v48 = vld [vmem:[#allocation2 + $0x8] sm:$0xff]   ;;  %v870_v49 = vshrl.u32 %v778_v45, 16  ;;  %v873_v50 = vshll.u32 %v778_v45, 16  ;;  %v879_v51 = vshll.u32 %v779_v46, 16  ;;  %63 = vst.msk [vmem:[#allocation2 + $0x18] sm:$0xf] %vm56_vm1, %v42_v52 }
  0x13   :  { %1113 = vst.msk [vmem:[#allocation2] sm:$0xf] %vm56_vm1, %v826_v47  ;;  %3067 = vmatmul.mubr.msk.bf16.vlgmr.msra.gmra.mxu0 %vm19_vm4, %v3242_v48  ;;  %64 = vst.msk [vmem:[#allocation2 + $0x1c] sm:$0xf] %vm56_vm1, %v43_v53  ;;  %v3247_v62 = vld [vmem:[#allocation2 + $0x4] sm:$0xff]   ;;  %vm1904_vm7 = vcmask 1046532  }
  0x14   :  { %v3243_v54 = vld [vmem:[#allocation2 + $0x38] sm:$0xff]   ;;  %v872_v55 = vrot.slane %v870_v49, 4  ;;  %3101 = vmatpush3.bf16.msra.mxu0 %v639_v41  ;;  %v875_v57 = vrot.slane %v873_v50, 5  ;;  %v881_v60 = vrot.slane %v879_v51, 5  ;;  %v772_v63 = vld [vmem:[%s4148_s0 + $0x8] sm:$0xf]  ;;  %vm3649_vm8 = vmor %vm1903_vm6, %vm1904_vm7 }
  0x15   :  { %v3244_v56 = vld [vmem:[#allocation2 + $0x40] sm:$0xff]   ;;  %3078 = vmatprep.mubr.msk.bf16.mxu1 %vm19_vm4, %v3243_v54  ;;  %v773_v0 = vld [vmem:[%s4148_s0 + $0xc] sm:$0x1]  ;;  %v828_v3 = vshrl.u32 %v772_v63, 16  ;;  %v831_v4 = vshll.u32 %v772_v63, 16 }
  0x16   :  { %v876_v59 = vor.u32 %v875_v57, %v872_v55  ;;  %v312_v61 = vld [vmem:[#allocation2 + $0xc] sm:$0xff]   ;;  %v837_v5 = vshll.u32 %v773_v0, 16  ;;  %v2860_v6 = vld [vmem:[%s4147_s1 + $0x2] sm:$0x3]  ;;  %v775_v14 = vld [vmem:[%s4148_s0 + $0x14] sm:$0x1] }
  0x17   :  { %v3245_v58 = vld [vmem:[#allocation2 + $0x10] sm:$0xff]   ;;  %3232 = vmatprep.subr.msk.bf16.mxu1 %vm175_vm0, %v2860_v6  ;;  %v3248_v7 = vld [vmem:[#allocation2 + $0x8] sm:$0xff]   ;;  %v830_v10 = vrot.slane %v828_v3, 4  ;;  %v833_v11 = vrot.slane %v831_v4, 5  ;;  %v776_v15 = vld [vmem:[%s4148_s0 + $0x18] sm:$0xf] }
  0x18   :  { %3079 = vmatmul.mubr.msk.bf16.gmra.mxu1 %vm19_vm4, %v3244_v56  ;;  %3070 = vmatprep.mubr.msk.bf16.mxu0 %vm19_vm4, %v3245_v58  ;;  %v542_v1 = vld [vmem:[#allocation2 + $0x10] sm:$0xff]   ;;  %v877_v2 = vrot.slane %v876_v59, 4  ;;  %v839_v12 = vrot.slane %v837_v5, 5  ;;  %v777_v16 = vld [vmem:[%s4148_s0 + $0x1c] sm:$0x1]  ;;  %v851_v20 = vshll.u32 %v775_v14, 16 }
  0x19   :  { %3084 = vmatprep.mubr.msk.bf16.mxu1 %vm19_vm4, %v3247_v62  ;;  %v774_v13 = vld [vmem:[%s4148_s0 + $0x10] sm:$0xf]  ;;  %v834_v19 = vor.u32 %v833_v11, %v830_v10  ;;  %v856_v21 = vshrl.u32 %v776_v15, 16  ;;  %v859_v22 = vshll.u32 %v776_v15, 16  ;;  %v3249_v23 = vld [vmem:[#allocation2 + $0x14] sm:$0xff]   ;;  %v1232_v24 = vsel %vm175_vm0, %v2860_v6, 0 }
  0x1a   :  { %v882_v8 = vsel %vm3392_vm5, %v877_v2, %v881_v60  ;;  %v3246_v9 = vld [vmem:[#allocation2 + $0x18] sm:$0xff]   ;;  %v842_v17 = vshrl.u32 %v774_v13, 16  ;;  %v845_v18 = vshll.u32 %v774_v13, 16  ;;  %v865_v27 = vshll.u32 %v777_v16, 16  ;;  %v780_v32 = vld [vmem:[%s4148_s0 + $0x28] sm:$0xf] }
  0x1b   :  { %1117 = vst.msk [vmem:[#allocation2 + $0x10] sm:$0xf] %vm56_vm1, %v882_v8  ;;  %3071 = vmatmul.mubr.msk.bf16.gmra.mxu0 %vm19_vm4, %v3246_v9  ;;  %v835_v29 = vrot.slane %v834_v19, 4  ;;  %v858_v30 = vrot.slane %v856_v21, 4  ;;  %v861_v31 = vrot.slane %v859_v22, 5  ;;  %v853_v34 = vrot.slane %v851_v20, 5 }
  0x1c   :  { %3102 = vmatprep.mubr.msk.bf16.mxu0 %vm19_vm4, %v3248_v7  ;;  %v844_v25 = vrot.slane %v842_v17, 4  ;;  %v847_v26 = vrot.slane %v845_v18, 5  ;;  %v781_v35 = vld [vmem:[%s4148_s0 + $0x2c] sm:$0x1]  ;;  %v884_v36 = vshrl.u32 %v780_v32, 16  ;;  %v887_v37 = vshll.u32 %v780_v32, 16 }
  0x1d   :  { %v3251_v38 = vld [vmem:[#allocation2 + $0x18] sm:$0xff]   ;;  %v840_v39 = vsel %vm3392_vm5, %v835_v29, %v839_v12  ;;  %v862_v40 = vor.u32 %v861_v31, %v858_v30  ;;  %v867_v41 = vrot.slane %v865_v27, 5  ;;  %v893_v42 = vshll.u32 %v781_v35, 16  ;;  %v44_v43 = vld [vmem:[%s4148_s0 + $0x40] sm:$0xf]  ;;  %v3253_v10 = vld [vmem:[#allocation2 + $0x2c] sm:$0xff]  }
  0x1e   :  { %v848_v33 = vor.u32 %v847_v26, %v844_v25  ;;  %1114 = vst.msk [vmem:[#allocation2 + $0x4] sm:$0xf] %vm56_vm1, %v840_v39  ;;  %v886_v45 = vrot.slane %v884_v36, 4  ;;  %v889_v46 = vrot.slane %v887_v37, 5  ;;  %65 = vst.msk [vmem:[#allocation2 + $0x20] sm:$0xf] %vm56_vm1, %v44_v43 }
  0x1f   :  { %v2877_v47 = vld [vmem:[%s4147_s1 + $0x8] sm:$0x3]  ;;  %v863_v48 = vrot.slane %v862_v40, 4  ;;  %v895_v49 = vrot.slane %v893_v42, 5  ;;  %v782_v53 = vld [vmem:[%s4148_s0 + $0x30] sm:$0xf] }
  0x20   :  { %3085 = vmatmul.mubr.msk.bf16.vlgmr.msra.gmra.mxu1 %vm19_vm4, %v312_v61  ;;  %v849_v44 = vrot.slane %v848_v33, 4  ;;  %3233 = vmatprep.subr.msk.bf16.mxu0 %vm175_vm0, %v2877_v47  ;;  %v1462_v50 = vsel %vm175_vm0, %v2877_v47, 0  ;;  %v890_v52 = vor.u32 %v889_v46, %v886_v45  ;;  %v783_v54 = vld [vmem:[%s4148_s0 + $0x34] sm:$0x1]  ;;  %v784_v56 = vld [vmem:[%s4148_s0 + $0x38] sm:$0xf] }
  0x21   :  { %3119 = vmatpush3.bf16.msra.mxu1 %v1232_v24  ;;  %3088 = vmatprep.mubr.msk.bf16.mxu1 %vm19_vm4, %v3249_v23  ;;  %v868_v55 = vsel %vm3392_vm5, %v863_v48, %v867_v41  ;;  %v785_v57 = vld [vmem:[%s4148_s0 + $0x3c] sm:$0x1]  ;;  %v898_v58 = vshrl.u32 %v782_v53, 16  ;;  %v901_v59 = vshll.u32 %v782_v53, 16  ;;  %v907_v61 = vshll.u32 %v783_v54, 16  ;;  %v3255_v33 = vld [vmem:[#allocation2 + $0x30] sm:$0xff]  }
  0x22   :  { %v854_v51 = vsel %vm3392_vm5, %v849_v44, %v853_v34  ;;  %1116 = vst.msk [vmem:[#allocation2 + $0xc] sm:$0xf] %vm56_vm1, %v868_v55  ;;  %v891_v60 = vrot.slane %v890_v52, 4  ;;  %v912_v62 = vshrl.u32 %v784_v56, 16  ;;  %v915_v63 = vshll.u32 %v784_v56, 16  ;;  %v3254_v43 = vld [vmem:[#allocation2 + $0x34] sm:$0xff]  }
  0x23   :  { %3103 = vmatmul.mubr.msk.bf16.vlgmr.msra.gmra.mxu0 %vm19_vm4, %v542_v1  ;;  %1115 = vst.msk [vmem:[#allocation2 + $0x8] sm:$0xf] %vm56_vm1, %v854_v51  ;;  %v45_v0 = vld [vmem:[%s4148_s0 + $0x48] sm:$0xf]  ;;  %v900_v1 = vrot.slane %v898_v58, 4  ;;  %v903_v2 = vrot.slane %v901_v59, 5 }
  0x24   :  { %3137 = vmatpush3.bf16.msra.mxu0 %v1462_v50  ;;  %3106 = vmatprep.mubr.msk.bf16.mxu0 %vm19_vm4, %v3251_v38  ;;  %v921_v3 = vshll.u32 %v785_v57, 16  ;;  %66 = vst.msk [vmem:[#allocation2 + $0x24] sm:$0xf] %vm56_vm1, %v45_v0  ;;  %v786_v4 = vld [vmem:[%s4148_s0 + $0x40] sm:$0xf]  ;;  %v896_v5 = vsel %vm3392_vm5, %v891_v60, %v895_v49  ;;  %v909_v6 = vrot.slane %v907_v61, 5 }
  0x25   :  { %v914_v7 = vrot.slane %v912_v62, 4  ;;  %v917_v8 = vrot.slane %v915_v63, 5  ;;  %v787_v9 = vld [vmem:[%s4148_s0 + $0x44] sm:$0x1]  ;;  %1118 = vst.msk [vmem:[#allocation2 + $0x14] sm:$0xf] %vm56_vm1, %v896_v5  ;;  %v904_v12 = vor.u32 %v903_v2, %v900_v1 }
  0x26   :  { %v3250_v11 = vld [vmem:[#allocation2 + $0x1c] sm:$0xff]   ;;  %v923_v13 = vrot.slane %v921_v3, 5  ;;  %v788_v15 = vld [vmem:[%s4148_s0 + $0x48] sm:$0xf]  ;;  %v789_v16 = vld [vmem:[%s4148_s0 + $0x4c] sm:$0x1] }
  0x27   :  { %v918_v14 = vor.u32 %v917_v8, %v914_v7  ;;  %v926_v17 = vshrl.u32 %v786_v4, 16  ;;  %v929_v18 = vshll.u32 %v786_v4, 16  ;;  %v905_v19 = vrot.slane %v904_v12, 4  ;;  %v792_v32 = vld [vmem:[%s4148_s0 + $0x58] sm:$0xf]  ;;  %v3257_v45 = vld [vmem:[#allocation2 + $0x3c] sm:$0xff]  }
  0x28   :  { %3089 = vmatmul.mubr.msk.bf16.gmra.mxu1 %vm19_vm4, %v3250_v11  ;;  %v935_v20 = vshll.u32 %v787_v9, 16  ;;  %v940_v21 = vshrl.u32 %v788_v15, 16  ;;  %v943_v22 = vshll.u32 %v788_v15, 16  ;;  %v949_v26 = vshll.u32 %v789_v16, 16  ;;  %v793_v38 = vld [vmem:[%s4148_s0 + $0x5c] sm:$0x1] }
  0x29   :  { %v919_v23 = vrot.slane %v918_v14, 4  ;;  %v928_v24 = vrot.slane %v926_v17, 4  ;;  %v931_v25 = vrot.slane %v929_v18, 5  ;;  %3092 = vmatprep.mubr.msk.bf16.mxu1 %vm19_vm4, %v3253_v10  ;;  %v910_v27 = vsel %vm3392_vm5, %v905_v19, %v909_v6  ;;  %v794_v51 = vld [vmem:[%s4148_s0 + $0x60] sm:$0xf]  ;;  %v3256_v54 = vld [vmem:[#allocation2 + $0x38] sm:$0xff]  }
  0x2a   :  { %v937_v29 = vrot.slane %v935_v20, 5  ;;  %v942_v30 = vrot.slane %v940_v21, 4  ;;  %v945_v31 = vrot.slane %v943_v22, 5  ;;  %1119 = vst.msk [vmem:[#allocation2 + $0x18] sm:$0xf] %vm56_vm1, %v910_v27  ;;  %v951_v37 = vrot.slane %v949_v26, 5 }
  0x2b   :  { %v924_v34 = vsel %vm3392_vm5, %v919_v23, %v923_v13  ;;  %v3252_v35 = vld [vmem:[#allocation2 + $0x20] sm:$0xff]   ;;  %v932_v36 = vor.u32 %v931_v25, %v928_v24  ;;  %v968_v40 = vshrl.u32 %v792_v32, 16  ;;  %v971_v41 = vshll.u32 %v792_v32, 16  ;;  %v796_v53 = vld [vmem:[%s4148_s0 + $0x68] sm:$0xf] }
  0x2c   :  { %1120 = vst.msk [vmem:[#allocation2 + $0x1c] sm:$0xf] %vm56_vm1, %v924_v34  ;;  %v946_v39 = vor.u32 %v945_v31, %v942_v30  ;;  %v977_v42 = vshll.u32 %v793_v38, 16  ;;  %3107 = vmatmul.mubr.msk.bf16.gmra.mxu0 %vm19_vm4, %v3252_v35  ;;  %v795_v52 = vld [vmem:[%s4148_s0 + $0x64] sm:$0x1]  ;;  %v982_v58 = vshrl.u32 %v794_v51, 16 }
  0x2d   :  { %v933_v44 = vrot.slane %v932_v36, 4  ;;  %v970_v47 = vrot.slane %v968_v40, 4  ;;  %v973_v48 = vrot.slane %v971_v41, 5  ;;  %3110 = vmatprep.mubr.msk.bf16.mxu0 %vm19_vm4, %v3255_v33  ;;  %v797_v57 = vld [vmem:[%s4148_s0 + $0x6c] sm:$0x1]  ;;  %v985_v59 = vshll.u32 %v794_v51, 16 }
  0x2e   :  { %v947_v46 = vrot.slane %v946_v39, 4  ;;  %v979_v49 = vrot.slane %v977_v42, 5  ;;  %v991_v60 = vshll.u32 %v795_v52, 16  ;;  %v996_v61 = vshrl.u32 %v796_v53, 16  ;;  %v798_v3 = vld [vmem:[%s4148_s0 + $0x70] sm:$0xf] }
  0x2f   :  { %v938_v50 = vsel %vm3392_vm5, %v933_v44, %v937_v29  ;;  %v974_v56 = vor.u32 %v973_v48, %v970_v47  ;;  %v999_v62 = vshll.u32 %v796_v53, 16  ;;  %v1005_v63 = vshll.u32 %v797_v57, 16  ;;  %v3259_v4 = vld [vmem:[#allocation2 + $0x40] sm:$0xff]   ;;  %v799_v8 = vld [vmem:[%s4148_s0 + $0x74] sm:$0x1] }
  0x30   :  { %v952_v55 = vsel %vm3392_vm5, %v947_v46, %v951_v37  ;;  %1121 = vst.msk [vmem:[#allocation2 + $0x20] sm:$0xf] %vm56_vm1, %v938_v50  ;;  %3093 = vmatmul.mubr.msk.bf16.gmra.mxu1 %vm19_vm4, %v3254_v43  ;;  %v984_v1 = vrot.slane %v982_v58, 4  ;;  %v987_v2 = vrot.slane %v985_v59, 5  ;;  %v993_v5 = vrot.slane %v991_v60, 5  ;;  %v3261_v50 = vld [vmem:[#allocation2] sm:$0xff]  }
  0x31   :  { %1122 = vst.msk [vmem:[#allocation2 + $0x24] sm:$0xf] %vm56_vm1, %v952_v55  ;;  %3096 = vmatprep.mubr.msk.bf16.mxu1 %vm19_vm4, %v3257_v45  ;;  %v975_v0 = vrot.slane %v974_v56, 4  ;;  %v998_v6 = vrot.slane %v996_v61, 4  ;;  %v1001_v7 = vrot.slane %v999_v62, 5  ;;  %v1010_v11 = vshrl.u32 %v798_v3, 16 }
  0x32   :  { %v988_v10 = vor.u32 %v987_v2, %v984_v1  ;;  %v1013_v12 = vshll.u32 %v798_v3, 16  ;;  %v1007_v14 = vrot.slane %v1005_v63, 5  ;;  %v1019_v15 = vshll.u32 %v799_v8, 16  ;;  %v800_v16 = vld [vmem:[%s4148_s0 + $0x78] sm:$0xf] }
  0x33   :  { %v980_v9 = vsel %vm3392_vm5, %v975_v0, %v979_v49  ;;  %v1002_v13 = vor.u32 %v1001_v7, %v998_v6  ;;  %v801_v17 = vld [vmem:[%s4148_s0 + $0x7c] sm:$0x1]  ;;  %v1012_v19 = vrot.slane %v1010_v11, 4  ;;  %v1024_v21 = vshrl.u32 %v800_v16, 16  ;;  %v54_v22 = vld [vmem:[%s4148_s0 + $0x90] sm:$0xf] }
  0x34   :  { %1124 = vst.msk [vmem:[#allocation2 + $0x2c] sm:$0xf] %vm56_vm1, %v980_v9  ;;  %3111 = vmatmul.mubr.msk.bf16.gmra.mxu0 %vm19_vm4, %v3256_v54  ;;  %v989_v18 = vrot.slane %v988_v10, 4  ;;  %v1015_v20 = vrot.slane %v1013_v12, 5  ;;  %v1027_v24 = vshll.u32 %v800_v16, 16  ;;  %v1033_v25 = vshll.u32 %v801_v17, 16 }
  0x35   :  { %3114 = vmatprep.mubr.msk.bf16.mxu0 %vm19_vm4, %v3259_v4  ;;  %v1003_v23 = vrot.slane %v1002_v13, 4  ;;  %75 = vst.msk [vmem:[#allocation2 + $0x48] sm:$0xf] %vm56_vm1, %v54_v22  ;;  %v1021_v29 = vrot.slane %v1019_v15, 5  ;;  %v1026_v30 = vrot.slane %v1024_v21, 4  ;;  %v3262_v11 = vld [vmem:[#allocation2 + $0x8] sm:$0xff]  }
  0x36   :  { %v994_v26 = vsel %vm3392_vm5, %v989_v18, %v993_v5  ;;  %v1016_v27 = vor.u32 %v1015_v20, %v1012_v19  ;;  %v1029_v32 = vrot.slane %v1027_v24, 5  ;;  %v1035_v33 = vrot.slane %v1033_v25, 5  ;;  %v802_v34 = vld [vmem:[%s4148_s0 + $0x80] sm:$0xf]  ;;  %v803_v35 = vld [vmem:[%s4148_s0 + $0x84] sm:$0x1] }
  0x37   :  { %v1008_v31 = vsel %vm3392_vm5, %v1003_v23, %v1007_v14  ;;  %1125 = vst.msk [vmem:[#allocation2 + $0x30] sm:$0xf] %vm56_vm1, %v994_v26  ;;  %v804_v37 = vld [vmem:[%s4148_s0 + $0x88] sm:$0xf]  ;;  %v805_v38 = vld [vmem:[%s4148_s0 + $0x8c] sm:$0x1] }
  0x38   :  { %1126 = vst.msk [vmem:[#allocation2 + $0x34] sm:$0xf] %vm56_vm1, %v1008_v31  ;;  %v1017_v36 = vrot.slane %v1016_v27, 4  ;;  %v1038_v39 = vshrl.u32 %v802_v34, 16  ;;  %v1030_v40 = vor.u32 %v1029_v32, %v1026_v30  ;;  %v1041_v41 = vshll.u32 %v802_v34, 16  ;;  %v3263_v12 = vld [vmem:[#allocation2 + $0x4] sm:$0xff]  }
  0x39   :  { %v1047_v42 = vshll.u32 %v803_v35, 16  ;;  %v1052_v43 = vshrl.u32 %v804_v37, 16  ;;  %v55_v44 = vld [vmem:[%s4148_s0 + $0x98] sm:$0xf]  ;;  %v1055_v47 = vshll.u32 %v804_v37, 16  ;;  %v1061_v48 = vshll.u32 %v805_v38, 16 }
  0x3a   :  { %v1022_v45 = vsel %vm3392_vm5, %v1017_v36, %v1021_v29  ;;  %v1040_v46 = vrot.slane %v1038_v39, 4  ;;  %76 = vst.msk [vmem:[#allocation2 + $0x4c] sm:$0xf] %vm56_vm1, %v55_v44  ;;  %v806_v49 = vld [vmem:[%s4148_s0 + $0x90] sm:$0xf]  ;;  %v1031_v51 = vrot.slane %v1030_v40, 4 }
  0x3b   :  { %1127 = vst.msk [vmem:[#allocation2 + $0x38] sm:$0xf] %vm56_vm1, %v1022_v45  ;;  %v1043_v52 = vrot.slane %v1041_v41, 5  ;;  %v1049_v53 = vrot.slane %v1047_v42, 5  ;;  %v1054_v54 = vrot.slane %v1052_v43, 4  ;;  %v1057_v57 = vrot.slane %v1055_v47, 5 }
  0x3c   :  { %v807_v55 = vld [vmem:[%s4148_s0 + $0x94] sm:$0x1]  ;;  %v3258_v56 = vld [vmem:[#allocation2 + $0x44] sm:$0xff]   ;;  %v1063_v58 = vrot.slane %v1061_v48, 5  ;;  %v1066_v59 = vshrl.u32 %v806_v49, 16  ;;  %v1036_v60 = vsel %vm3392_vm5, %v1031_v51, %v1035_v33  ;;  %v1069_v2 = vshll.u32 %v806_v49, 16 }
  0x3d   :  { %v1044_v61 = vor.u32 %v1043_v52, %v1040_v46  ;;  %v808_v62 = vld [vmem:[%s4148_s0 + $0x98] sm:$0xf]  ;;  %v809_v63 = vld [vmem:[%s4148_s0 + $0x9c] sm:$0x1]  ;;  %1128 = vst.msk [vmem:[#allocation2 + $0x3c] sm:$0xf] %vm56_vm1, %v1036_v60  ;;  %3097 = vmatmul.mubr.msk.bf16.gmra.mxu1 %vm19_vm4, %v3258_v56  ;;  %v1058_v0 = vor.u32 %v1057_v57, %v1054_v54 }
  0x3e   :  { %v1068_v1 = vrot.slane %v1066_v59, 4  ;;  %v1075_v3 = vshll.u32 %v807_v55, 16  ;;  %v1080_v5 = vshrl.u32 %v808_v62, 16  ;;  %v1083_v6 = vshll.u32 %v808_v62, 16  ;;  %3120 = vmatprep.mubr.msk.bf16.mxu1 %vm19_vm4, %v3261_v50  ;;  %v1823_v10 = vld [vmem:[%s4148_s0] sm:$0xe] }
  0x3f   :  { %v1045_v4 = vrot.slane %v1044_v61, 4  ;;  %v1089_v7 = vshll.u32 %v809_v63, 16  ;;  %v1059_v8 = vrot.slane %v1058_v0, 4  ;;  %v1071_v9 = vrot.slane %v1069_v2, 5  ;;  %v3265_v17 = vld [vmem:[#allocation2 + $0x10] sm:$0xff]   ;;  %v3266_v42 = vld [vmem:[#allocation2 + $0x18] sm:$0xff]  }
  0x40   :  { %v1082_v15 = vrot.slane %v1080_v5, 4  ;;  %v1085_v16 = vrot.slane %v1083_v6, 5  ;;  %v1077_v20 = vrot.slane %v1075_v3, 5  ;;  %v1824_v21 = vld [vmem:[%s4148_s0 + $0x4] sm:$0x1]  ;;  %v2911_v23 = vrot.slane %v1823_v10, 9 }
  0x41   :  { %v1050_v13 = vsel %vm3392_vm5, %v1045_v4, %v1049_v53  ;;  %v3260_v14 = vld [vmem:[#allocation2 + $0x48] sm:$0xff]   ;;  %v1064_v18 = vsel %vm3392_vm5, %v1059_v8, %v1063_v58  ;;  %v1072_v19 = vor.u32 %v1071_v9, %v1068_v1  ;;  %v1091_v26 = vrot.slane %v1089_v7, 5  ;;  %v3267_v39 = vld [vmem:[#allocation2 + $0x14] sm:$0xff]   ;;  %v2931_v43 = vld [vmem:[%s4147_s1 + $0x4] sm:$0x3] }
  0x42   :  { %1129 = vst.msk [vmem:[#allocation2 + $0x40] sm:$0xf] %vm56_vm1, %v1050_v13  ;;  %v2894_v24 = vld [vmem:[%s4147_s1 + $0xe] sm:$0x3]  ;;  %1130 = vst.msk [vmem:[#allocation2 + $0x44] sm:$0xf] %vm56_vm1, %v1064_v18  ;;  %3115 = vmatmul.mubr.msk.bf16.gmra.mxu0 %vm19_vm4, %v3260_v14  ;;  %v1086_v25 = vor.u32 %v1085_v16, %v1082_v15  ;;  %3235 = vmatprep.subr.msk.bf16.mxu0 %vm175_vm0, %v2931_v43 }
  0x43   :  { %v1908_v27 = vrot.slane %v1824_v21, 5  ;;  %3234 = vmatprep.subr.msk.bf16.mxu1 %vm175_vm0, %v2894_v24  ;;  %v1073_v29 = vrot.slane %v1072_v19, 4  ;;  %v1692_v30 = vsel %vm175_vm0, %v2894_v24, 0  ;;  %3138 = vmatprep.mubr.msk.bf16.mxu0 %vm19_vm4, %v3263_v12  ;;  %v1825_v33 = vld [vmem:[%s4148_s0 + $0x8] sm:$0xe]  ;;  %v3264_v35 = vld [vmem:[#allocation2 + $0xc] sm:$0xff]  }
  0x44   :  { %v1087_v31 = vrot.slane %v1086_v25, 4  ;;  %v1826_v34 = vld [vmem:[%s4148_s0 + $0xc] sm:$0x1]  ;;  %v2912_v37 = vrot.slane %v1825_v33, 9  ;;  %v2125_v28 = vsel %vm175_vm0, %v2931_v43, 0  ;;  %v3268_v49 = vld [vmem:[#allocation2 + $0x1c] sm:$0xff]  }
  0x45   :  { %v1909_v32 = vsel %vm3649_vm8, %v2911_v23, %v1908_v27  ;;  %v1078_v36 = vsel %vm3392_vm5, %v1073_v29, %v1077_v20  ;;  %3121 = vmatmul.mubr.msk.bf16.vlgmr.msra.gmra.mxu1 %vm19_vm4, %v3262_v11  ;;  %v1912_v38 = vrot.slane %v1826_v34, 5  ;;  %v3269_v44 = vld [vmem:[#allocation2 + $0x28] sm:$0xff]   ;;  %v1843_v45 = vld [vmem:[%s4148_s0 + $0x50] sm:$0xe]  ;;  %v1844_v46 = vld [vmem:[%s4148_s0 + $0x54] sm:$0x1] }
  0x46   :  { %2006 = vst.msk [vmem:[#allocation2] sm:$0xf] %vm56_vm1, %v1909_v32  ;;  %v1092_v40 = vsel %vm3392_vm5, %v1087_v31, %v1091_v26  ;;  %1131 = vst.msk [vmem:[#allocation2 + $0x48] sm:$0xf] %vm56_vm1, %v1078_v36  ;;  %3155 = vmatpush3.bf16.msra.mxu1 %v1692_v30  ;;  %3124 = vmatprep.mubr.msk.bf16.mxu1 %vm19_vm4, %v3265_v17  ;;  %v2921_v47 = vrot.slane %v1843_v45, 9  ;;  %v1948_v48 = vrot.slane %v1844_v46, 5 }
  0x47   :  { %1132 = vst.msk [vmem:[#allocation2 + $0x4c] sm:$0xf] %vm56_vm1, %v1092_v40  ;;  %v1913_v41 = vsel %vm3649_vm8, %v2912_v37, %v1912_v38  ;;  %v1845_v50 = vld [vmem:[%s4148_s0 + $0x58] sm:$0xe]  ;;  %v1846_v51 = vld [vmem:[%s4148_s0 + $0x5c] sm:$0x1] }
  0x48   :  { %2007 = vst.msk [vmem:[#allocation2 + $0x4] sm:$0xf] %vm56_vm1, %v1913_v41  ;;  %v1949_v52 = vsel %vm3649_vm8, %v2921_v47, %v1948_v48  ;;  %v2922_v53 = vrot.slane %v1845_v50, 9  ;;  %v1952_v54 = vrot.slane %v1846_v51, 5  ;;  %v3270_v55 = vld [vmem:[#allocation2 + $0x30] sm:$0xff]   ;;  %v3311_v58 = vmov 0.0  }
  0x49   :  { %2016 = vst.msk [vmem:[#allocation2 + $0x28] sm:$0xf] %vm56_vm1, %v1949_v52  ;;  %v3271_v56 = vld [vmem:[#allocation2 + $0x2c] sm:$0xff]   ;;  %v3273_v59 = vld [vmem:[#allocation2 + $0x38] sm:$0xff]   ;;  %v1828_v62 = vld [vmem:[%s4148_s0 + $0x14] sm:$0x1] }
  0x4a   :  { %3139 = vmatmul.mubr.msk.bf16.vlgmr.msra.gmra.mxu0 %vm19_vm4, %v3264_v35  ;;  %v1953_v57 = vsel %vm3649_vm8, %v2922_v53, %v1952_v54  ;;  %30 = vst.msk [vmem:[#allocation3 + $0x50] sm:$0xff] %vm19_vm4, %v3311_v58  ;;  %20 = vst.msk [vmem:[#allocation3] sm:$0xff] %vm19_vm4, %v3311_v58  ;;  %v3277_v60 = vld [vmem:[#allocation2 + $0x8] sm:$0xff]   ;;  %v1827_v61 = vld [vmem:[%s4148_s0 + $0x10] sm:$0xe]  ;;  %v1916_v2 = vrot.slane %v1828_v62, 5 }
  0x4b   :  { %3173 = vmatpush3.bf16.msra.mxu0 %v2125_v28  ;;  %3142 = vmatprep.mubr.msk.bf16.mxu0 %vm19_vm4, %v3267_v39  ;;  %2017 = vst.msk [vmem:[#allocation2 + $0x2c] sm:$0xf] %vm56_vm1, %v1953_v57  ;;  %v1829_v63 = vld [vmem:[%s4148_s0 + $0x18] sm:$0xe]  ;;  %v1830_v0 = vld [vmem:[%s4148_s0 + $0x1c] sm:$0x1] }
  0x4c   :  { %21 = vst.msk [vmem:[#allocation3 + $0x8] sm:$0xff] %vm19_vm4, %v3311_v58  ;;  %22 = vst.msk [vmem:[#allocation3 + $0x10] sm:$0xff] %vm19_vm4, %v3311_v58  ;;  %v2913_v1 = vrot.slane %v1827_v61, 9  ;;  %v3272_v3 = vld [vmem:[#allocation2 + $0x34] sm:$0xff]   ;;  %v2914_v4 = vrot.slane %v1829_v63, 9  ;;  %v1920_v5 = vrot.slane %v1830_v0, 5 }
  0x4d   :  { %3125 = vmatmul.mubr.msk.bf16.gmra.mxu1 %vm19_vm4, %v3266_v42  ;;  %23 = vst.msk [vmem:[#allocation3 + $0x18] sm:$0xff] %vm19_vm4, %v3311_v58  ;;  %24 = vst.msk [vmem:[#allocation3 + $0x20] sm:$0xff] %vm19_vm4, %v3311_v58  ;;  %v2948_v6 = vld [vmem:[%s4147_s1 + $0xa] sm:$0x3]  ;;  %v3275_v7 = vld [vmem:[#allocation2 + $0x3c] sm:$0xff]  }
  0x4e   :  { %3128 = vmatprep.mubr.msk.bf16.mxu1 %vm19_vm4, %v3269_v44  ;;  %25 = vst.msk [vmem:[#allocation3 + $0x28] sm:$0xff] %vm19_vm4, %v3311_v58  ;;  %26 = vst.msk [vmem:[#allocation3 + $0x30] sm:$0xff] %vm19_vm4, %v3311_v58  ;;  %v1917_v8 = vsel %vm3649_vm8, %v2913_v1, %v1916_v2  ;;  %3236 = vmatprep.subr.msk.bf16.mxu1 %vm175_vm0, %v2948_v6  ;;  %v1831_v9 = vld [vmem:[%s4148_s0 + $0x20] sm:$0xe]  ;;  %v1921_v10 = vsel %vm3649_vm8, %v2914_v4, %v1920_v5  ;;  %v1832_v11 = vld [vmem:[%s4148_s0 + $0x24] sm:$0x1] }
  0x4f   :  { %27 = vst.msk [vmem:[#allocation3 + $0x38] sm:$0xff] %vm19_vm4, %v3311_v58  ;;  %28 = vst.msk [vmem:[#allocation3 + $0x40] sm:$0xff] %vm19_vm4, %v3311_v58  ;;  %v1833_v12 = vld [vmem:[%s4148_s0 + $0x28] sm:$0xe]  ;;  %v1834_v13 = vld [vmem:[%s4148_s0 + $0x2c] sm:$0x1] }
  0x50   :  { %29 = vst.msk [vmem:[#allocation3 + $0x48] sm:$0xff] %vm19_vm4, %v3311_v58  ;;  %31 = vst.msk [vmem:[#allocation3 + $0x58] sm:$0xff] %vm19_vm4, %v3311_v58  ;;  %v3274_v14 = vld [vmem:[#allocation2 + $0x40] sm:$0xff]   ;;  %v2915_v15 = vrot.slane %v1831_v9, 9  ;;  %v1924_v16 = vrot.slane %v1832_v11, 5  ;;  %v2916_v17 = vrot.slane %v1833_v12, 9 }
  0x51   :  { %32 = vst.msk [vmem:[#allocation3 + $0x60] sm:$0xff] %vm19_vm4, %v3311_v58  ;;  %33 = vst.msk [vmem:[#allocation3 + $0x68] sm:$0xff] %vm19_vm4, %v3311_v58  ;;  %v1928_v18 = vrot.slane %v1834_v13, 5  ;;  %v3278_v19 = vld [vmem:[#allocation2 + $0x10] sm:$0xff]   ;;  %v3281_v23 = vld [vmem:[#allocation2 + $0x18] sm:$0xff]   ;;  %v2355_v45 = vsel %vm175_vm0, %v2948_v6, 0 }
  0x52   :  { %34 = vst.msk [vmem:[#allocation3 + $0x70] sm:$0xff] %vm19_vm4, %v3311_v58  ;;  %35 = vst.msk [vmem:[#allocation3 + $0x78] sm:$0xff] %vm19_vm4, %v3311_v58  ;;  %3143 = vmatmul.mubr.msk.bf16.gmra.mxu0 %vm19_vm4, %v3268_v49  ;;  %v1925_v20 = vsel %vm3649_vm8, %v2915_v15, %v1924_v16  ;;  %v1835_v24 = vld [vmem:[%s4148_s0 + $0x30] sm:$0xe]  ;;  %v1836_v25 = vld [vmem:[%s4148_s0 + $0x34] sm:$0x1] }
  0x53   :  { %3146 = vmatprep.mubr.msk.bf16.mxu0 %vm19_vm4, %v3271_v56  ;;  %2008 = vst.msk [vmem:[#allocation2 + $0x8] sm:$0xf] %vm56_vm1, %v1917_v8  ;;  %2009 = vst.msk [vmem:[#allocation2 + $0xc] sm:$0xf] %vm56_vm1, %v1921_v10  ;;  %v1929_v21 = vsel %vm3649_vm8, %v2916_v17, %v1928_v18  ;;  %v1837_v26 = vld [vmem:[%s4148_s0 + $0x38] sm:$0xe] }
  0x54   :  { %2010 = vst.msk [vmem:[#allocation2 + $0x10] sm:$0xf] %vm56_vm1, %v1925_v20  ;;  %2011 = vst.msk [vmem:[#allocation2 + $0x14] sm:$0xf] %vm56_vm1, %v1929_v21  ;;  %v1838_v27 = vld [vmem:[%s4148_s0 + $0x3c] sm:$0x1] }
  0x55   :  { %3129 = vmatmul.mubr.msk.bf16.gmra.mxu1 %vm19_vm4, %v3270_v55  ;;  %v2917_v29 = vrot.slane %v1835_v24, 9  ;;  %v1932_v30 = vrot.slane %v1836_v25, 5  ;;  %v2918_v31 = vrot.slane %v1837_v26, 9  ;;  %v1936_v32 = vrot.slane %v1838_v27, 5  ;;  %v1839_v33 = vld [vmem:[%s4148_s0 + $0x40] sm:$0xe] }
  0x56   :  { %3132 = vmatprep.mubr.msk.bf16.mxu1 %vm19_vm4, %v3273_v59  ;;  %v1840_v36 = vld [vmem:[%s4148_s0 + $0x44] sm:$0x1]  ;;  %v1841_v37 = vld [vmem:[%s4148_s0 + $0x48] sm:$0xe]  ;;  %v1842_v39 = vld [vmem:[%s4148_s0 + $0x4c] sm:$0x1] }
  0x57   :  { %v1933_v34 = vsel %vm3649_vm8, %v2917_v29, %v1932_v30  ;;  %v1937_v35 = vsel %vm3649_vm8, %v2918_v31, %v1936_v32  ;;  %v3276_v38 = vld [vmem:[#allocation2 + $0x44] sm:$0xff]   ;;  %v2919_v40 = vrot.slane %v1839_v33, 9  ;;  %v1940_v42 = vrot.slane %v1840_v36, 5  ;;  %v2965_v44 = vld [vmem:[%s4147_s1 + $0x10] sm:$0x3]  ;;  %v3286_v6 = vld [vmem:[#allocation2 + $0x38] sm:$0xff]  }
  0x58   :  { %2012 = vst.msk [vmem:[#allocation2 + $0x18] sm:$0xf] %vm56_vm1, %v1933_v34  ;;  %2013 = vst.msk [vmem:[#allocation2 + $0x1c] sm:$0xf] %vm56_vm1, %v1937_v35  ;;  %v3279_v41 = vld [vmem:[#allocation2] sm:$0xff]   ;;  %v2920_v43 = vrot.slane %v1841_v37, 9  ;;  %3237 = vmatprep.subr.msk.bf16.mxu0 %vm175_vm0, %v2965_v44 }
  0x59   :  { %v1944_v28 = vrot.slane %v1842_v39, 5  ;;  %v3282_v46 = vld [vmem:[#allocation2 + $0x20] sm:$0xff]   ;;  %v1941_v47 = vsel %vm3649_vm8, %v2919_v40, %v1940_v42  ;;  %v1849_v51 = vld [vmem:[%s4148_s0 + $0x68] sm:$0xe]  ;;  %v3285_v52 = vld [vmem:[#allocation2 + $0x30] sm:$0xff]   ;;  %v2585_v59 = vsel %vm175_vm0, %v2965_v44, 0 }
  0x5a   :  { %3147 = vmatmul.mubr.msk.bf16.gmra.mxu0 %vm19_vm4, %v3272_v3  ;;  %2014 = vst.msk [vmem:[#allocation2 + $0x20] sm:$0xf] %vm56_vm1, %v1941_v47  ;;  %v1847_v49 = vld [vmem:[%s4148_s0 + $0x60] sm:$0xe]  ;;  %v1848_v50 = vld [vmem:[%s4148_s0 + $0x64] sm:$0x1] }
  0x5b   :  { %3150 = vmatprep.mubr.msk.bf16.mxu0 %vm19_vm4, %v3275_v7  ;;  %v1945_v48 = vsel %vm3649_vm8, %v2920_v43, %v1944_v28  ;;  %v1850_v53 = vld [vmem:[%s4148_s0 + $0x6c] sm:$0x1]  ;;  %v2923_v54 = vrot.slane %v1847_v49, 9  ;;  %v1956_v55 = vrot.slane %v1848_v50, 5  ;;  %v2924_v56 = vrot.slane %v1849_v51, 9  ;;  %v3283_v1 = vld [vmem:[#allocation2 + $0x10] sm:$0xff]  }
  0x5c   :  { %2015 = vst.msk [vmem:[#allocation2 + $0x24] sm:$0xf] %vm56_vm1, %v1945_v48  ;;  %v1960_v57 = vrot.slane %v1850_v53, 5  ;;  %v3280_v58 = vld [vmem:[#allocation2 + $0x8] sm:$0xff]   ;;  %v1851_v62 = vld [vmem:[%s4148_s0 + $0x70] sm:$0xe] }
  0x5d   :  { %3133 = vmatmul.mubr.msk.bf16.gmra.mxu1 %vm19_vm4, %v3274_v14  ;;  %v1852_v63 = vld [vmem:[%s4148_s0 + $0x74] sm:$0x1]  ;;  %v1853_v0 = vld [vmem:[%s4148_s0 + $0x78] sm:$0xe]  ;;  %v1854_v2 = vld [vmem:[%s4148_s0 + $0x7c] sm:$0x1] }
  0x5e   :  { %3156 = vmatprep.mubr.msk.bf16.mxu1 %vm19_vm4, %v3277_v60  ;;  %v1957_v60 = vsel %vm3649_vm8, %v2923_v54, %v1956_v55  ;;  %v1961_v61 = vsel %vm3649_vm8, %v2924_v56, %v1960_v57  ;;  %v2925_v3 = vrot.slane %v1851_v62, 9  ;;  %v1964_v4 = vrot.slane %v1852_v63, 5  ;;  %v3289_v9 = vld [vmem:[#allocation2 + $0x40] sm:$0xff]   ;;  %v1857_v13 = vld [vmem:[%s4148_s0 + $0x88] sm:$0xe]  ;;  %v3294_v40 = vld [vmem:[#allocation2 + $0xc] sm:$0xff]  }
  0x5f   :  { %2018 = vst.msk [vmem:[#allocation2 + $0x30] sm:$0xf] %vm56_vm1, %v1957_v60  ;;  %2019 = vst.msk [vmem:[#allocation2 + $0x34] sm:$0xf] %vm56_vm1, %v1961_v61  ;;  %v2926_v5 = vrot.slane %v1853_v0, 9  ;;  %v1968_v7 = vrot.slane %v1854_v2, 5 }
  0x60   :  { %v1965_v8 = vsel %vm3649_vm8, %v2925_v3, %v1964_v4  ;;  %v1855_v10 = vld [vmem:[%s4148_s0 + $0x80] sm:$0xe]  ;;  %v1856_v12 = vld [vmem:[%s4148_s0 + $0x84] sm:$0x1]  ;;  %v1858_v14 = vld [vmem:[%s4148_s0 + $0x8c] sm:$0x1] }
  0x61   :  { %v1969_v11 = vsel %vm3649_vm8, %v2926_v5, %v1968_v7  ;;  %2020 = vst.msk [vmem:[#allocation2 + $0x38] sm:$0xf] %vm56_vm1, %v1965_v8  ;;  %v2927_v15 = vrot.slane %v1855_v10, 9  ;;  %v1972_v16 = vrot.slane %v1856_v12, 5  ;;  %v2928_v17 = vrot.slane %v1857_v13, 9  ;;  %v3287_v21 = vld [vmem:[#allocation2 + $0x28] sm:$0xff]  }
  0x62   :  { %3151 = vmatmul.mubr.msk.bf16.gmra.mxu0 %vm19_vm4, %v3276_v38  ;;  %2021 = vst.msk [vmem:[#allocation2 + $0x3c] sm:$0xf] %vm56_vm1, %v1969_v11  ;;  %v1976_v18 = vrot.slane %v1858_v14, 5  ;;  %v1860_v20 = vld [vmem:[%s4148_s0 + $0x94] sm:$0x1]  ;;  %v3284_v27 = vld [vmem:[#allocation2 + $0x18] sm:$0xff]  }
  0x63   :  { %3174 = vmatprep.mubr.msk.bf16.mxu0 %vm19_vm4, %v3279_v41  ;;  %v1861_v25 = vld [vmem:[%s4148_s0 + $0x98] sm:$0xe]  ;;  %v1862_v26 = vld [vmem:[%s4148_s0 + $0x9c] sm:$0x1]  ;;  %v1980_v30 = vrot.slane %v1860_v20, 5  ;;  %v3290_v32 = vld [vmem:[#allocation2 + $0x48] sm:$0xff]  }
  0x64   :  { %v1977_v24 = vsel %vm3649_vm8, %v2928_v17, %v1976_v18  ;;  %v2930_v31 = vrot.slane %v1861_v25, 9  ;;  %v1984_v33 = vrot.slane %v1862_v26, 5  ;;  %v3293_v38 = vld [vmem:[#allocation2 + $0x4] sm:$0xff]   ;;  %v3297_v41 = vld [vmem:[#allocation2 + $0x14] sm:$0xff]   ;;  %v3298_v28 = vld [vmem:[#allocation2 + $0x1c] sm:$0xff]  }
  0x65   :  { %3157 = vmatmul.mubr.msk.bf16.vlgmr.msra.gmra.mxu1 %vm19_vm4, %v3278_v19  ;;  %v1859_v19 = vld [vmem:[%s4148_s0 + $0x90] sm:$0xe]  ;;  %2023 = vst.msk [vmem:[#allocation2 + $0x44] sm:$0xf] %vm56_vm1, %v1977_v24  ;;  %v3295_v39 = vld [vmem:[#allocation2 + $0x8] sm:$0xff]   ;;  %v3299_v43 = vld [vmem:[#allocation2 + $0x18] sm:$0xff]  }
  0x66   :  { %3191 = vmatpush3.bf16.msra.mxu1 %v2355_v45  ;;  %3160 = vmatprep.mubr.msk.bf16.mxu1 %vm19_vm4, %v3281_v23  ;;  %v1973_v23 = vsel %vm3649_vm8, %v2927_v15, %v1972_v16  ;;  %v2929_v29 = vrot.slane %v1859_v19, 9  ;;  %v1985_v35 = vsel %vm3649_vm8, %v2930_v31, %v1984_v33  ;;  %v3288_v36 = vld [vmem:[#allocation2 + $0x30] sm:$0xff]   ;;  %v3300_v45 = vld [vmem:[#allocation2 + $0x20] sm:$0xff]   ;;  %v96_v4 = vld [vmem:[#allocation3 + $0x18] sm:$0xff] }
  0x67   :  { %2022 = vst.msk [vmem:[#allocation2 + $0x40] sm:$0xf] %vm56_vm1, %v1973_v23  ;;  %2025 = vst.msk [vmem:[#allocation2 + $0x4c] sm:$0xf] %vm56_vm1, %v1985_v35  ;;  %v3296_v42 = vld [vmem:[#allocation2 + $0x10] sm:$0xff]   ;;  %v103_v53 = vld [vmem:[#allocation3 + $0x50] sm:$0xff] }
  0x68   :  { %v1981_v34 = vsel %vm3649_vm8, %v2929_v29, %v1980_v30  ;;  %v3301_v44 = vld [vmem:[#allocation2 + $0x2c] sm:$0xff]   ;;  %v3302_v47 = vld [vmem:[#allocation2 + $0x34] sm:$0xff]   ;;  %v95_v57 = vld [vmem:[#allocation3 + $0x10] sm:$0xff] }
  0x69   :  { %2024 = vst.msk [vmem:[#allocation2 + $0x48] sm:$0xf] %vm56_vm1, %v1981_v34  ;;  %v3291_v37 = vld [vmem:[#allocation2 + $0x38] sm:$0xff]   ;;  %v101_v55 = vld [vmem:[#allocation3 + $0x40] sm:$0xff]  ;;  %v107_v7 = vld [vmem:[#allocation3 + $0x70] sm:$0xff] }
  0x6a   :  { %3175 = vmatmul.mubr.msk.bf16.vlgmr.msra.gmra.mxu0 %vm19_vm4, %v3280_v58  ;;  %v3304_v49 = vld [vmem:[#allocation2 + $0x38] sm:$0xff]   ;;  %v93_v62 = vld [vmem:[#allocation3] sm:$0xff]  ;;  %v99_v18 = vld [vmem:[#allocation3 + $0x30] sm:$0xff] }
  0x6b   :  { %3209 = vmatpush3.bf16.msra.mxu0 %v2585_v59  ;;  %3178 = vmatprep.mubr.msk.bf16.mxu0 %vm19_vm4, %v3283_v1  ;;  %v104_v59 = vld [vmem:[#allocation3 + $0x58] sm:$0xff]  ;;  %v102_v1 = vld [vmem:[#allocation3 + $0x48] sm:$0xff]  ;;  %v105_v13 = vld [vmem:[#allocation3 + $0x60] sm:$0xff] }
  0x6c   :  { %v94_v10 = vld [vmem:[#allocation3 + $0x8] sm:$0xff]  ;;  %v108_v19 = vld [vmem:[#allocation3 + $0x78] sm:$0xff]  ;;  %v97_v24 = vld [vmem:[#allocation3 + $0x20] sm:$0xff] }
  0x6d   :  { %3161 = vmatmul.mubr.msk.bf16.gmra.mxu1 %vm19_vm4, %v3282_v46  ;;  %v3303_v46 = vld [vmem:[#allocation2 + $0x30] sm:$0xff]   ;;  %v106_v25 = vld [vmem:[#allocation3 + $0x68] sm:$0xff]  ;;  %v100_v31 = vld [vmem:[#allocation3 + $0x38] sm:$0xff] }
  0x6e   :  { %3164 = vmatprep.mubr.msk.bf16.mxu1 %vm19_vm4, %v3285_v52  ;;  %v3292_v22 = vld [vmem:[#allocation2 + $0x40] sm:$0xff]  }
  0x6f   :  { %v3305_v48 = vld [vmem:[#allocation2 + $0x3c] sm:$0xff]  }
  0x70   :  { %v3307_v50 = vld [vmem:[#allocation2 + $0x40] sm:$0xff]   ;;  %v3308_v52 = vld [vmem:[#allocation2 + $0x48] sm:$0xff]  }
  0x71   :  { %v3306_v51 = vld [vmem:[#allocation2 + $0x44] sm:$0xff]  }
  0x72   :  { %3179 = vmatmul.mubr.msk.bf16.gmra.mxu0 %vm19_vm4, %v3284_v27 }
  0x73   :  { %3182 = vmatprep.mubr.msk.bf16.mxu0 %vm19_vm4, %v3287_v21 }
  0x75   :  { %3165 = vmatmul.mubr.msk.bf16.gmra.mxu1 %vm19_vm4, %v3286_v6 }
  0x76   :  { %3168 = vmatprep.mubr.msk.bf16.mxu1 %vm19_vm4, %v3289_v9 }
  0x7a   :  { %3183 = vmatmul.mubr.msk.bf16.gmra.mxu0 %vm19_vm4, %v3288_v36 }
  0x7b   :  { %3186 = vmatprep.mubr.msk.bf16.mxu0 %vm19_vm4, %v3291_v37  ;;  %v98_v37 = vld [vmem:[#allocation3 + $0x28] sm:$0xff] }
  0x7d   :  { %3169 = vmatmul.mubr.msk.bf16.gmra.mxu1 %vm19_vm4, %v3290_v32 }
  0x7e   :  { %3192 = vmatprep.mubr.msk.bf16.mxu1 %vm19_vm4, %v3293_v38 }
  0x82   :  { %3187 = vmatmul.mubr.msk.bf16.gmra.mxu0 %vm19_vm4, %v3292_v22 }
  0x83   :  { %3210 = vmatprep.mubr.msk.bf16.mxu0 %vm19_vm4, %v3295_v39 }
  0x85   :  { %3193 = vmatmul.mubr.msk.bf16.vlgmr.msra.gmra.mxu1 %vm19_vm4, %v3294_v40 }
  0x86   :  { %3196 = vmatprep.mubr.msk.bf16.mxu1 %vm19_vm4, %v3297_v41 }
  0x8a   :  { %3211 = vmatmul.mubr.msk.bf16.vlgmr.msra.gmra.mxu0 %vm19_vm4, %v3296_v42 }
  0x8b   :  { %3214 = vmatprep.mubr.msk.bf16.mxu0 %vm19_vm4, %v3299_v43 }
  0x8d   :  { %3197 = vmatmul.mubr.msk.bf16.gmra.mxu1 %vm19_vm4, %v3298_v28 }
  0x8e   :  { %3200 = vmatprep.mubr.msk.bf16.mxu1 %vm19_vm4, %v3301_v44 }
  0x92   :  { %3215 = vmatmul.mubr.msk.bf16.gmra.mxu0 %vm19_vm4, %v3300_v45 }
  0x93   :  { %3218 = vmatprep.mubr.msk.bf16.mxu0 %vm19_vm4, %v3303_v46 }
  0x95   :  { %3201 = vmatmul.mubr.msk.bf16.gmra.mxu1 %vm19_vm4, %v3302_v47 }
  0x96   :  { %3204 = vmatprep.mubr.msk.bf16.mxu1 %vm19_vm4, %v3305_v48 }
  0x9a   :  { %3219 = vmatmul.mubr.msk.bf16.gmra.mxu0 %vm19_vm4, %v3304_v49 }
  0x9b   :  { %3222 = vmatprep.mubr.msk.bf16.mxu0 %vm19_vm4, %v3307_v50 }
  0x9d   :  { %3205 = vmatmul.mubr.msk.bf16.gmra.mxu1 %vm19_vm4, %v3306_v51 }
  0xa2   :  { %3223 = vmatmul.mubr.msk.bf16.gmra.mxu0 %vm19_vm4, %v3308_v52 }
  0xd0   :  { %v3076_v54 = vpop.f32.mrf.mxu1 }
  0xd1   :  { %v286_v56 = vadd.f32 %v3076_v54, %v103_v53 }
  0xd2   :  { %v245_v58 = vpop.f32.mrf.mxu1 }
  0xd3   :  { %302 = vst.msk [vmem:[#allocation3 + $0x50] sm:$0xff] %vm19_vm4, %v286_v56  ;;  %v284_v60 = vadd.f32 %v245_v58, %v101_v55  ;;  %v3068_v61 = vpop.f32.mrf.mxu0 }
  0xd4   :  { %v278_v63 = vadd.f32 %v3068_v61, %v95_v57  ;;  %v3077_v0 = vpop.f32.mrf.mxu1 }
  0xd5   :  { %300 = vst.msk [vmem:[#allocation3 + $0x40] sm:$0xff] %vm19_vm4, %v284_v60  ;;  %v287_v2 = vadd.f32 %v3077_v0, %v104_v59  ;;  %v213_v3 = vpop.f32.mrf.mxu0 }
  0xd6   :  { %294 = vst.msk [vmem:[#allocation3 + $0x10] sm:$0xff] %vm19_vm4, %v278_v63  ;;  %v276_v5 = vadd.f32 %v213_v3, %v93_v62  ;;  %v248_v6 = vpop.f32.mrf.mxu1 }
  0xd7   :  { %303 = vst.msk [vmem:[#allocation3 + $0x58] sm:$0xff] %vm19_vm4, %v287_v2  ;;  %v285_v8 = vadd.f32 %v248_v6, %v102_v1  ;;  %v3069_v9 = vpop.f32.mrf.mxu0 }
  0xd8   :  { %292 = vst.msk [vmem:[#allocation3] sm:$0xff] %vm19_vm4, %v276_v5  ;;  %v279_v11 = vadd.f32 %v3069_v9, %v96_v4  ;;  %v3080_v12 = vpop.f32.mrf.mxu1 }
  0xd9   :  { %301 = vst.msk [vmem:[#allocation3 + $0x48] sm:$0xff] %vm19_vm4, %v285_v8  ;;  %v290_v14 = vadd.f32 %v3080_v12, %v107_v7  ;;  %v216_v15 = vpop.f32.mrf.mxu0 }
  0xda   :  { %295 = vst.msk [vmem:[#allocation3 + $0x18] sm:$0xff] %vm19_vm4, %v279_v11  ;;  %v277_v16 = vadd.f32 %v216_v15, %v94_v10  ;;  %v261_v17 = vpop.f32.mrf.mxu1  ;;  %v335_v11 = vld [vmem:[#allocation3 + $0x50] sm:$0xff] }
  0xdb   :  { %306 = vst.msk [vmem:[#allocation3 + $0x70] sm:$0xff] %vm19_vm4, %v290_v14  ;;  %v288_v20 = vadd.f32 %v261_v17, %v105_v13  ;;  %v3072_v21 = vpop.f32.mrf.mxu0 }
  0xdc   :  { %293 = vst.msk [vmem:[#allocation3 + $0x8] sm:$0xff] %vm19_vm4, %v277_v16  ;;  %v3081_v23 = vpop.f32.mrf.mxu1  ;;  %v282_v26 = vadd.f32 %v3072_v21, %v99_v18  ;;  %v333_v16 = vld [vmem:[#allocation3 + $0x40] sm:$0xff] }
  0xdd   :  { %304 = vst.msk [vmem:[#allocation3 + $0x60] sm:$0xff] %vm19_vm4, %v288_v20  ;;  %v291_v27 = vadd.f32 %v3081_v23, %v108_v19  ;;  %v229_v29 = vpop.f32.mrf.mxu0  ;;  %v327_v32 = vld [vmem:[#allocation3 + $0x10] sm:$0xff] }
  0xde   :  { %v264_v30 = vpop.f32.mrf.mxu1  ;;  %298 = vst.msk [vmem:[#allocation3 + $0x30] sm:$0xff] %vm19_vm4, %v282_v26  ;;  %v280_v33 = vadd.f32 %v229_v29, %v97_v24  ;;  %v336_v23 = vld [vmem:[#allocation3 + $0x58] sm:$0xff] }
  0xdf   :  { %307 = vst.msk [vmem:[#allocation3 + $0x78] sm:$0xff] %vm19_vm4, %v291_v27  ;;  %v289_v34 = vadd.f32 %v264_v30, %v106_v25  ;;  %v3073_v35 = vpop.f32.mrf.mxu0  ;;  %v325_v38 = vld [vmem:[#allocation3] sm:$0xff] }
  0xe0   :  { %v3086_v36 = vpop.f32.mrf.mxu1  ;;  %296 = vst.msk [vmem:[#allocation3 + $0x20] sm:$0xff] %vm19_vm4, %v280_v33  ;;  %v283_v22 = vadd.f32 %v3073_v35, %v100_v31  ;;  %v334_v30 = vld [vmem:[#allocation3 + $0x48] sm:$0xff] }
  0xe1   :  { %305 = vst.msk [vmem:[#allocation3 + $0x68] sm:$0xff] %vm19_vm4, %v289_v34  ;;  %v509_v39 = vadd.f32 %v3086_v36, %v327_v32  ;;  %v232_v40 = vpop.f32.mrf.mxu0  ;;  %v328_v42 = vld [vmem:[#allocation3 + $0x18] sm:$0xff] }
  0xe2   :  { %v444_v41 = vpop.f32.mrf.mxu1  ;;  %299 = vst.msk [vmem:[#allocation3 + $0x38] sm:$0xff] %vm19_vm4, %v283_v22  ;;  %v281_v43 = vadd.f32 %v232_v40, %v98_v37 }
  0xe3   :  { %525 = vst.msk [vmem:[#allocation3 + $0x10] sm:$0xff] %vm19_vm4, %v509_v39  ;;  %v507_v28 = vadd.f32 %v444_v41, %v325_v38  ;;  %v3104_v45 = vpop.f32.mrf.mxu0  ;;  %v326_v47 = vld [vmem:[#allocation3 + $0x8] sm:$0xff] }
  0xe4   :  { %v3087_v44 = vpop.f32.mrf.mxu1  ;;  %297 = vst.msk [vmem:[#allocation3 + $0x28] sm:$0xff] %vm19_vm4, %v281_v43  ;;  %v339_v43 = vld [vmem:[#allocation3 + $0x70] sm:$0xff] }
  0xe5   :  { %523 = vst.msk [vmem:[#allocation3] sm:$0xff] %vm19_vm4, %v507_v28  ;;  %v510_v46 = vadd.f32 %v3087_v44, %v328_v42  ;;  %v675_v49 = vpop.f32.mrf.mxu0  ;;  %v331_v52 = vld [vmem:[#allocation3 + $0x30] sm:$0xff] }
  0xe6   :  { %v447_v48 = vpop.f32.mrf.mxu1 }
  0xe7   :  { %526 = vst.msk [vmem:[#allocation3 + $0x18] sm:$0xff] %vm19_vm4, %v510_v46  ;;  %v508_v50 = vadd.f32 %v447_v48, %v326_v47  ;;  %v3105_v51 = vpop.f32.mrf.mxu0  ;;  %v329_v56 = vld [vmem:[#allocation3 + $0x20] sm:$0xff] }
  0xe8   :  { %v3090_v55 = vpop.f32.mrf.mxu1  ;;  %v337_v48 = vld [vmem:[#allocation3 + $0x60] sm:$0xff] }
  0xe9   :  { %524 = vst.msk [vmem:[#allocation3 + $0x8] sm:$0xff] %vm19_vm4, %v508_v50  ;;  %v513_v58 = vadd.f32 %v3090_v55, %v331_v52  ;;  %v678_v59 = vpop.f32.mrf.mxu0  ;;  %v332_v62 = vld [vmem:[#allocation3 + $0x38] sm:$0xff]  ;;  %v338_v55 = vld [vmem:[#allocation3 + $0x68] sm:$0xff] }
  0xea   :  { %v558_v53 = vld [vmem:[#allocation3 + $0x10] sm:$0xff]  ;;  %v460_v61 = vpop.f32.mrf.mxu1 }
  0xeb   :  { %v740_v54 = vadd.f32 %v3104_v45, %v558_v53  ;;  %529 = vst.msk [vmem:[#allocation3 + $0x30] sm:$0xff] %vm19_vm4, %v513_v58  ;;  %v511_v0 = vadd.f32 %v460_v61, %v329_v56  ;;  %v330_v7 = vld [vmem:[#allocation3 + $0x28] sm:$0xff] }
  0xec   :  { %v556_v57 = vld [vmem:[#allocation3] sm:$0xff]  ;;  %v3091_v2 = vpop.f32.mrf.mxu1  ;;  %v3108_v5 = vpop.f32.mrf.mxu0 }
  0xed   :  { %756 = vst.msk [vmem:[#allocation3 + $0x10] sm:$0xff] %vm19_vm4, %v740_v54  ;;  %v738_v60 = vadd.f32 %v675_v49, %v556_v57  ;;  %527 = vst.msk [vmem:[#allocation3 + $0x20] sm:$0xff] %vm19_vm4, %v511_v0  ;;  %v514_v4 = vadd.f32 %v3091_v2, %v332_v62 }
  0xee   :  { %v559_v63 = vld [vmem:[#allocation3 + $0x18] sm:$0xff]  ;;  %v463_v8 = vpop.f32.mrf.mxu1  ;;  %v691_v10 = vpop.f32.mrf.mxu0 }
  0xef   :  { %754 = vst.msk [vmem:[#allocation3] sm:$0xff] %vm19_vm4, %v738_v60  ;;  %v741_v1 = vadd.f32 %v3105_v51, %v559_v63  ;;  %530 = vst.msk [vmem:[#allocation3 + $0x38] sm:$0xff] %vm19_vm4, %v514_v4  ;;  %v512_v9 = vadd.f32 %v463_v8, %v330_v7  ;;  %v340_v51 = vld [vmem:[#allocation3 + $0x78] sm:$0xff] }
  0xf0   :  { %v557_v3 = vld [vmem:[#allocation3 + $0x8] sm:$0xff]  ;;  %v3094_v12 = vpop.f32.mrf.mxu1  ;;  %v3109_v14 = vpop.f32.mrf.mxu0 }
  0xf1   :  { %757 = vst.msk [vmem:[#allocation3 + $0x18] sm:$0xff] %vm19_vm4, %v741_v1  ;;  %v739_v6 = vadd.f32 %v678_v59, %v557_v3  ;;  %528 = vst.msk [vmem:[#allocation3 + $0x28] sm:$0xff] %vm19_vm4, %v512_v9  ;;  %v517_v13 = vadd.f32 %v3094_v12, %v335_v11 }
  0xf2   :  { %v562_v15 = vld [vmem:[#allocation3 + $0x30] sm:$0xff]  ;;  %v476_v17 = vpop.f32.mrf.mxu1  ;;  %v694_v20 = vpop.f32.mrf.mxu0 }
  0xf3   :  { %755 = vst.msk [vmem:[#allocation3 + $0x8] sm:$0xff] %vm19_vm4, %v739_v6  ;;  %v744_v18 = vadd.f32 %v3108_v5, %v562_v15  ;;  %533 = vst.msk [vmem:[#allocation3 + $0x50] sm:$0xff] %vm19_vm4, %v517_v13  ;;  %v515_v19 = vadd.f32 %v476_v17, %v333_v16 }
  0xf4   :  { %v560_v21 = vld [vmem:[#allocation3 + $0x20] sm:$0xff]  ;;  %v3095_v24 = vpop.f32.mrf.mxu1  ;;  %v3112_v27 = vpop.f32.mrf.mxu0  ;;  %v1151_v59 = vld [vmem:[#allocation3 + $0x10] sm:$0xff] }
  0xf5   :  { %760 = vst.msk [vmem:[#allocation3 + $0x30] sm:$0xff] %vm19_vm4, %v744_v18  ;;  %v742_v25 = vadd.f32 %v691_v10, %v560_v21  ;;  %531 = vst.msk [vmem:[#allocation3 + $0x40] sm:$0xff] %vm19_vm4, %v515_v19  ;;  %v518_v26 = vadd.f32 %v3095_v24, %v336_v23 }
  0xf6   :  { %v563_v29 = vld [vmem:[#allocation3 + $0x38] sm:$0xff]  ;;  %v479_v31 = vpop.f32.mrf.mxu1  ;;  %v707_v35 = vpop.f32.mrf.mxu0  ;;  %v1149_v0 = vld [vmem:[#allocation3] sm:$0xff] }
  0xf7   :  { %758 = vst.msk [vmem:[#allocation3 + $0x20] sm:$0xff] %vm19_vm4, %v742_v25  ;;  %v745_v32 = vadd.f32 %v3109_v14, %v563_v29  ;;  %534 = vst.msk [vmem:[#allocation3 + $0x58] sm:$0xff] %vm19_vm4, %v518_v26  ;;  %v516_v33 = vadd.f32 %v479_v31, %v334_v30 }
  0xf8   :  { %v561_v34 = vld [vmem:[#allocation3 + $0x28] sm:$0xff]  ;;  %v3113_v39 = vpop.f32.mrf.mxu0  ;;  %v1152_v6 = vld [vmem:[#allocation3 + $0x18] sm:$0xff] }
  0xf9   :  { %761 = vst.msk [vmem:[#allocation3 + $0x38] sm:$0xff] %vm19_vm4, %v745_v32  ;;  %v743_v36 = vadd.f32 %v694_v20, %v561_v34  ;;  %532 = vst.msk [vmem:[#allocation3 + $0x48] sm:$0xff] %vm19_vm4, %v516_v33 }
  0xfa   :  { %v566_v37 = vld [vmem:[#allocation3 + $0x50] sm:$0xff]  ;;  %v710_v45 = vpop.f32.mrf.mxu0  ;;  %v1150_v12 = vld [vmem:[#allocation3 + $0x8] sm:$0xff] }
  0xfb   :  { %759 = vst.msk [vmem:[#allocation3 + $0x28] sm:$0xff] %vm19_vm4, %v743_v36  ;;  %v748_v38 = vadd.f32 %v3112_v27, %v566_v37 }
  0xfc   :  { %v564_v22 = vld [vmem:[#allocation3 + $0x40] sm:$0xff]  ;;  %v1155_v18 = vld [vmem:[#allocation3 + $0x30] sm:$0xff] }
  0xfd   :  { %764 = vst.msk [vmem:[#allocation3 + $0x50] sm:$0xff] %vm19_vm4, %v748_v38  ;;  %v746_v40 = vadd.f32 %v707_v35, %v564_v22  ;;  %v3098_v28 = vpop.f32.mrf.mxu1 }
  0xfe   :  { %v567_v41 = vld [vmem:[#allocation3 + $0x58] sm:$0xff]  ;;  %v521_v46 = vadd.f32 %v3098_v28, %v339_v43  ;;  %v1153_v25 = vld [vmem:[#allocation3 + $0x20] sm:$0xff] }
  0xff   :  { %762 = vst.msk [vmem:[#allocation3 + $0x40] sm:$0xff] %vm19_vm4, %v746_v40  ;;  %v749_v42 = vadd.f32 %v3113_v39, %v567_v41  ;;  %v492_v49 = vpop.f32.mrf.mxu1 }
 0x100   :  { %v565_v44 = vld [vmem:[#allocation3 + $0x48] sm:$0xff]  ;;  %537 = vst.msk [vmem:[#allocation3 + $0x70] sm:$0xff] %vm19_vm4, %v521_v46  ;;  %v519_v50 = vadd.f32 %v492_v49, %v337_v48  ;;  %v1156_v32 = vld [vmem:[#allocation3 + $0x38] sm:$0xff] }
 0x101   :  { %765 = vst.msk [vmem:[#allocation3 + $0x58] sm:$0xff] %vm19_vm4, %v749_v42  ;;  %v747_v47 = vadd.f32 %v710_v45, %v565_v44  ;;  %v3099_v52 = vpop.f32.mrf.mxu1 }
 0x102   :  { %535 = vst.msk [vmem:[#allocation3 + $0x60] sm:$0xff] %vm19_vm4, %v519_v50  ;;  %v522_v53 = vadd.f32 %v3099_v52, %v340_v51  ;;  %v3116_v54 = vpop.f32.mrf.mxu0  ;;  %v1154_v38 = vld [vmem:[#allocation3 + $0x28] sm:$0xff] }
 0x103   :  { %763 = vst.msk [vmem:[#allocation3 + $0x48] sm:$0xff] %vm19_vm4, %v747_v47  ;;  %v495_v56 = vpop.f32.mrf.mxu1 }
 0x104   :  { %538 = vst.msk [vmem:[#allocation3 + $0x78] sm:$0xff] %vm19_vm4, %v522_v53  ;;  %v520_v57 = vadd.f32 %v495_v56, %v338_v55  ;;  %v723_v58 = vpop.f32.mrf.mxu0  ;;  %v1159_v43 = vld [vmem:[#allocation3 + $0x50] sm:$0xff] }
 0x105   :  { %v3122_v60 = vpop.f32.mrf.mxu1 }
 0x106   :  { %536 = vst.msk [vmem:[#allocation3 + $0x68] sm:$0xff] %vm19_vm4, %v520_v57  ;;  %v3117_v61 = vpop.f32.mrf.mxu0  ;;  %v1333_v62 = vadd.f32 %v3122_v60, %v1151_v59  ;;  %v1157_v48 = vld [vmem:[#allocation3 + $0x40] sm:$0xff] }
 0x107   :  { %v570_v63 = vld [vmem:[#allocation3 + $0x70] sm:$0xff]  ;;  %v1268_v1 = vpop.f32.mrf.mxu1 }
 0x108   :  { %v752_v2 = vadd.f32 %v3116_v54, %v570_v63  ;;  %1349 = vst.msk [vmem:[#allocation3 + $0x10] sm:$0xff] %vm19_vm4, %v1333_v62  ;;  %v726_v3 = vpop.f32.mrf.mxu0  ;;  %v1331_v4 = vadd.f32 %v1268_v1, %v1149_v0  ;;  %v1160_v54 = vld [vmem:[#allocation3 + $0x58] sm:$0xff] }
 0x109   :  { %v568_v5 = vld [vmem:[#allocation3 + $0x60] sm:$0xff]  ;;  %v3123_v7 = vpop.f32.mrf.mxu1 }
 0x10a   :  { %768 = vst.msk [vmem:[#allocation3 + $0x70] sm:$0xff] %vm19_vm4, %v752_v2  ;;  %v750_v8 = vadd.f32 %v723_v58, %v568_v5  ;;  %1347 = vst.msk [vmem:[#allocation3] sm:$0xff] %vm19_vm4, %v1331_v4  ;;  %v1334_v9 = vadd.f32 %v3123_v7, %v1152_v6  ;;  %v3140_v10 = vpop.f32.mrf.mxu0  ;;  %v1158_v60 = vld [vmem:[#allocation3 + $0x48] sm:$0xff] }
 0x10b   :  { %v571_v11 = vld [vmem:[#allocation3 + $0x78] sm:$0xff]  ;;  %v1271_v13 = vpop.f32.mrf.mxu1 }
 0x10c   :  { %766 = vst.msk [vmem:[#allocation3 + $0x60] sm:$0xff] %vm19_vm4, %v750_v8  ;;  %v753_v14 = vadd.f32 %v3117_v61, %v571_v11  ;;  %1350 = vst.msk [vmem:[#allocation3 + $0x18] sm:$0xff] %vm19_vm4, %v1334_v9  ;;  %v1332_v15 = vadd.f32 %v1271_v13, %v1150_v12  ;;  %v1498_v16 = vpop.f32.mrf.mxu0 }
 0x10d   :  { %v569_v17 = vld [vmem:[#allocation3 + $0x68] sm:$0xff]  ;;  %v3126_v19 = vpop.f32.mrf.mxu1 }
 0x10e   :  { %769 = vst.msk [vmem:[#allocation3 + $0x78] sm:$0xff] %vm19_vm4, %v753_v14  ;;  %v751_v20 = vadd.f32 %v726_v3, %v569_v17  ;;  %1348 = vst.msk [vmem:[#allocation3 + $0x8] sm:$0xff] %vm19_vm4, %v1332_v15  ;;  %v1337_v21 = vadd.f32 %v3126_v19, %v1155_v18  ;;  %v3141_v23 = vpop.f32.mrf.mxu0 }
 0x10f   :  { %v1381_v24 = vld [vmem:[#allocation3 + $0x10] sm:$0xff]  ;;  %v1284_v26 = vpop.f32.mrf.mxu1 }
 0x110   :  { %767 = vst.msk [vmem:[#allocation3 + $0x68] sm:$0xff] %vm19_vm4, %v751_v20  ;;  %v1563_v27 = vadd.f32 %v3140_v10, %v1381_v24  ;;  %1353 = vst.msk [vmem:[#allocation3 + $0x30] sm:$0xff] %vm19_vm4, %v1337_v21  ;;  %v1335_v29 = vadd.f32 %v1284_v26, %v1153_v25  ;;  %v1501_v30 = vpop.f32.mrf.mxu0 }
 0x111   :  { %v1379_v31 = vld [vmem:[#allocation3] sm:$0xff]  ;;  %v3127_v33 = vpop.f32.mrf.mxu1  ;;  %v1163_v2 = vld [vmem:[#allocation3 + $0x70] sm:$0xff] }
 0x112   :  { %1579 = vst.msk [vmem:[#allocation3 + $0x10] sm:$0xff] %vm19_vm4, %v1563_v27  ;;  %v1561_v34 = vadd.f32 %v1498_v16, %v1379_v31  ;;  %1351 = vst.msk [vmem:[#allocation3 + $0x20] sm:$0xff] %vm19_vm4, %v1335_v29  ;;  %v1338_v35 = vadd.f32 %v3127_v33, %v1156_v32  ;;  %v3144_v36 = vpop.f32.mrf.mxu0 }
 0x113   :  { %v1382_v37 = vld [vmem:[#allocation3 + $0x18] sm:$0xff]  ;;  %v1287_v22 = vpop.f32.mrf.mxu1  ;;  %v1161_v8 = vld [vmem:[#allocation3 + $0x60] sm:$0xff] }
 0x114   :  { %1577 = vst.msk [vmem:[#allocation3] sm:$0xff] %vm19_vm4, %v1561_v34  ;;  %v1564_v39 = vadd.f32 %v3141_v23, %v1382_v37  ;;  %1354 = vst.msk [vmem:[#allocation3 + $0x38] sm:$0xff] %vm19_vm4, %v1338_v35  ;;  %v1336_v40 = vadd.f32 %v1287_v22, %v1154_v38  ;;  %v1514_v41 = vpop.f32.mrf.mxu0 }
 0x115   :  { %v1380_v42 = vld [vmem:[#allocation3 + $0x8] sm:$0xff]  ;;  %v3130_v28 = vpop.f32.mrf.mxu1  ;;  %v1164_v14 = vld [vmem:[#allocation3 + $0x78] sm:$0xff] }
 0x116   :  { %1580 = vst.msk [vmem:[#allocation3 + $0x18] sm:$0xff] %vm19_vm4, %v1564_v39  ;;  %v1562_v44 = vadd.f32 %v1501_v30, %v1380_v42  ;;  %1352 = vst.msk [vmem:[#allocation3 + $0x28] sm:$0xff] %vm19_vm4, %v1336_v40  ;;  %v1341_v45 = vadd.f32 %v3130_v28, %v1159_v43  ;;  %v3145_v46 = vpop.f32.mrf.mxu0 }
 0x117   :  { %v1385_v47 = vld [vmem:[#allocation3 + $0x30] sm:$0xff]  ;;  %v1300_v49 = vpop.f32.mrf.mxu1  ;;  %v1162_v20 = vld [vmem:[#allocation3 + $0x68] sm:$0xff] }
 0x118   :  { %1578 = vst.msk [vmem:[#allocation3 + $0x8] sm:$0xff] %vm19_vm4, %v1562_v44  ;;  %v1567_v50 = vadd.f32 %v3144_v36, %v1385_v47  ;;  %1357 = vst.msk [vmem:[#allocation3 + $0x50] sm:$0xff] %vm19_vm4, %v1341_v45  ;;  %v1339_v51 = vadd.f32 %v1300_v49, %v1157_v48  ;;  %v1517_v52 = vpop.f32.mrf.mxu0 }
 0x119   :  { %v1383_v53 = vld [vmem:[#allocation3 + $0x20] sm:$0xff]  ;;  %v3131_v55 = vpop.f32.mrf.mxu1  ;;  %v1611_v27 = vld [vmem:[#allocation3 + $0x10] sm:$0xff] }
 0x11a   :  { %1583 = vst.msk [vmem:[#allocation3 + $0x30] sm:$0xff] %vm19_vm4, %v1567_v50  ;;  %v1565_v56 = vadd.f32 %v1514_v41, %v1383_v53  ;;  %1355 = vst.msk [vmem:[#allocation3 + $0x40] sm:$0xff] %vm19_vm4, %v1339_v51  ;;  %v1342_v57 = vadd.f32 %v3131_v55, %v1160_v54  ;;  %v3148_v58 = vpop.f32.mrf.mxu0 }
 0x11b   :  { %v1386_v59 = vld [vmem:[#allocation3 + $0x38] sm:$0xff]  ;;  %v1303_v61 = vpop.f32.mrf.mxu1  ;;  %v1609_v34 = vld [vmem:[#allocation3] sm:$0xff] }
 0x11c   :  { %1581 = vst.msk [vmem:[#allocation3 + $0x20] sm:$0xff] %vm19_vm4, %v1565_v56  ;;  %v1568_v62 = vadd.f32 %v3145_v46, %v1386_v59  ;;  %1358 = vst.msk [vmem:[#allocation3 + $0x58] sm:$0xff] %vm19_vm4, %v1342_v57  ;;  %v1340_v63 = vadd.f32 %v1303_v61, %v1158_v60  ;;  %v1530_v0 = vpop.f32.mrf.mxu0 }
 0x11d   :  { %v1384_v1 = vld [vmem:[#allocation3 + $0x28] sm:$0xff]  ;;  %v3134_v3 = vpop.f32.mrf.mxu1  ;;  %v1612_v39 = vld [vmem:[#allocation3 + $0x18] sm:$0xff] }
 0x11e   :  { %1584 = vst.msk [vmem:[#allocation3 + $0x38] sm:$0xff] %vm19_vm4, %v1568_v62  ;;  %v1566_v4 = vadd.f32 %v1517_v52, %v1384_v1  ;;  %1356 = vst.msk [vmem:[#allocation3 + $0x48] sm:$0xff] %vm19_vm4, %v1340_v63  ;;  %v1345_v5 = vadd.f32 %v3134_v3, %v1163_v2  ;;  %v3149_v6 = vpop.f32.mrf.mxu0 }
 0x11f   :  { %v1389_v7 = vld [vmem:[#allocation3 + $0x50] sm:$0xff]  ;;  %v1316_v9 = vpop.f32.mrf.mxu1  ;;  %v1610_v44 = vld [vmem:[#allocation3 + $0x8] sm:$0xff] }
 0x120   :  { %1582 = vst.msk [vmem:[#allocation3 + $0x28] sm:$0xff] %vm19_vm4, %v1566_v4  ;;  %v1571_v10 = vadd.f32 %v3148_v58, %v1389_v7  ;;  %1361 = vst.msk [vmem:[#allocation3 + $0x70] sm:$0xff] %vm19_vm4, %v1345_v5  ;;  %v1343_v11 = vadd.f32 %v1316_v9, %v1161_v8  ;;  %v1533_v12 = vpop.f32.mrf.mxu0 }
 0x121   :  { %v1387_v13 = vld [vmem:[#allocation3 + $0x40] sm:$0xff]  ;;  %v3135_v15 = vpop.f32.mrf.mxu1  ;;  %v1615_v50 = vld [vmem:[#allocation3 + $0x30] sm:$0xff] }
 0x122   :  { %1587 = vst.msk [vmem:[#allocation3 + $0x50] sm:$0xff] %vm19_vm4, %v1571_v10  ;;  %v1569_v16 = vadd.f32 %v1530_v0, %v1387_v13  ;;  %1359 = vst.msk [vmem:[#allocation3 + $0x60] sm:$0xff] %vm19_vm4, %v1343_v11  ;;  %v1346_v17 = vadd.f32 %v3135_v15, %v1164_v14  ;;  %v3152_v18 = vpop.f32.mrf.mxu0 }
 0x123   :  { %v1390_v19 = vld [vmem:[#allocation3 + $0x58] sm:$0xff]  ;;  %v1319_v21 = vpop.f32.mrf.mxu1  ;;  %v1613_v56 = vld [vmem:[#allocation3 + $0x20] sm:$0xff] }
 0x124   :  { %1585 = vst.msk [vmem:[#allocation3 + $0x40] sm:$0xff] %vm19_vm4, %v1569_v16  ;;  %v1572_v23 = vadd.f32 %v3149_v6, %v1390_v19  ;;  %1362 = vst.msk [vmem:[#allocation3 + $0x78] sm:$0xff] %vm19_vm4, %v1346_v17  ;;  %v1344_v24 = vadd.f32 %v1319_v21, %v1162_v20  ;;  %v1546_v25 = vpop.f32.mrf.mxu0 }
 0x125   :  { %v1388_v26 = vld [vmem:[#allocation3 + $0x48] sm:$0xff]  ;;  %v3158_v29 = vpop.f32.mrf.mxu1  ;;  %v1616_v62 = vld [vmem:[#allocation3 + $0x38] sm:$0xff] }
 0x126   :  { %1588 = vst.msk [vmem:[#allocation3 + $0x58] sm:$0xff] %vm19_vm4, %v1572_v23  ;;  %v1570_v30 = vadd.f32 %v1533_v12, %v1388_v26  ;;  %1360 = vst.msk [vmem:[#allocation3 + $0x68] sm:$0xff] %vm19_vm4, %v1344_v24  ;;  %v3153_v31 = vpop.f32.mrf.mxu0  ;;  %v1793_v32 = vadd.f32 %v3158_v29, %v1611_v27 }
 0x127   :  { %v1393_v33 = vld [vmem:[#allocation3 + $0x70] sm:$0xff]  ;;  %v1728_v35 = vpop.f32.mrf.mxu1  ;;  %v1614_v4 = vld [vmem:[#allocation3 + $0x28] sm:$0xff] }
 0x128   :  { %1586 = vst.msk [vmem:[#allocation3 + $0x48] sm:$0xff] %vm19_vm4, %v1570_v30  ;;  %v1575_v36 = vadd.f32 %v3152_v18, %v1393_v33  ;;  %1809 = vst.msk [vmem:[#allocation3 + $0x10] sm:$0xff] %vm19_vm4, %v1793_v32  ;;  %v1549_v37 = vpop.f32.mrf.mxu0  ;;  %v1791_v38 = vadd.f32 %v1728_v35, %v1609_v34 }
 0x129   :  { %v1391_v22 = vld [vmem:[#allocation3 + $0x60] sm:$0xff]  ;;  %v3159_v40 = vpop.f32.mrf.mxu1  ;;  %v1619_v10 = vld [vmem:[#allocation3 + $0x50] sm:$0xff] }
 0x12a   :  { %1591 = vst.msk [vmem:[#allocation3 + $0x70] sm:$0xff] %vm19_vm4, %v1575_v36  ;;  %v1573_v41 = vadd.f32 %v1546_v25, %v1391_v22  ;;  %1807 = vst.msk [vmem:[#allocation3] sm:$0xff] %vm19_vm4, %v1791_v38  ;;  %v1794_v42 = vadd.f32 %v3159_v40, %v1612_v39  ;;  %v3176_v43 = vpop.f32.mrf.mxu0 }
 0x12b   :  { %v1394_v28 = vld [vmem:[#allocation3 + $0x78] sm:$0xff]  ;;  %v1731_v45 = vpop.f32.mrf.mxu1  ;;  %v1617_v16 = vld [vmem:[#allocation3 + $0x40] sm:$0xff] }
 0x12c   :  { %1589 = vst.msk [vmem:[#allocation3 + $0x60] sm:$0xff] %vm19_vm4, %v1573_v41  ;;  %v1576_v46 = vadd.f32 %v3153_v31, %v1394_v28  ;;  %1810 = vst.msk [vmem:[#allocation3 + $0x18] sm:$0xff] %vm19_vm4, %v1794_v42  ;;  %v1792_v47 = vadd.f32 %v1731_v45, %v1610_v44  ;;  %v2161_v48 = vpop.f32.mrf.mxu0 }
 0x12d   :  { %v1392_v49 = vld [vmem:[#allocation3 + $0x68] sm:$0xff]  ;;  %v3162_v51 = vpop.f32.mrf.mxu1  ;;  %v1620_v23 = vld [vmem:[#allocation3 + $0x58] sm:$0xff] }
 0x12e   :  { %1592 = vst.msk [vmem:[#allocation3 + $0x78] sm:$0xff] %vm19_vm4, %v1576_v46  ;;  %v1574_v52 = vadd.f32 %v1549_v37, %v1392_v49  ;;  %1808 = vst.msk [vmem:[#allocation3 + $0x8] sm:$0xff] %vm19_vm4, %v1792_v47  ;;  %v1797_v53 = vadd.f32 %v3162_v51, %v1615_v50  ;;  %v3177_v54 = vpop.f32.mrf.mxu0 }
 0x12f   :  { %v2044_v55 = vld [vmem:[#allocation3 + $0x10] sm:$0xff]  ;;  %v1744_v57 = vpop.f32.mrf.mxu1  ;;  %v1618_v30 = vld [vmem:[#allocation3 + $0x48] sm:$0xff] }
 0x130   :  { %1590 = vst.msk [vmem:[#allocation3 + $0x68] sm:$0xff] %vm19_vm4, %v1574_v52  ;;  %v2226_v58 = vadd.f32 %v3176_v43, %v2044_v55  ;;  %1813 = vst.msk [vmem:[#allocation3 + $0x30] sm:$0xff] %vm19_vm4, %v1797_v53  ;;  %v1795_v59 = vadd.f32 %v1744_v57, %v1613_v56  ;;  %v2164_v60 = vpop.f32.mrf.mxu0 }
 0x131   :  { %v2042_v61 = vld [vmem:[#allocation3] sm:$0xff]  ;;  %v3163_v63 = vpop.f32.mrf.mxu1  ;;  %v1623_v36 = vld [vmem:[#allocation3 + $0x70] sm:$0xff] }
 0x132   :  { %2242 = vst.msk [vmem:[#allocation3 + $0x10] sm:$0xff] %vm19_vm4, %v2226_v58  ;;  %v2224_v0 = vadd.f32 %v2161_v48, %v2042_v61  ;;  %1811 = vst.msk [vmem:[#allocation3 + $0x20] sm:$0xff] %vm19_vm4, %v1795_v59  ;;  %v1798_v1 = vadd.f32 %v3163_v63, %v1616_v62  ;;  %v3180_v2 = vpop.f32.mrf.mxu0 }
 0x133   :  { %v2045_v3 = vld [vmem:[#allocation3 + $0x18] sm:$0xff]  ;;  %v1747_v5 = vpop.f32.mrf.mxu1  ;;  %v1621_v41 = vld [vmem:[#allocation3 + $0x60] sm:$0xff] }
 0x134   :  { %2240 = vst.msk [vmem:[#allocation3] sm:$0xff] %vm19_vm4, %v2224_v0  ;;  %v2227_v6 = vadd.f32 %v3177_v54, %v2045_v3  ;;  %1814 = vst.msk [vmem:[#allocation3 + $0x38] sm:$0xff] %vm19_vm4, %v1798_v1  ;;  %v1796_v7 = vadd.f32 %v1747_v5, %v1614_v4  ;;  %v2177_v8 = vpop.f32.mrf.mxu0 }
 0x135   :  { %v2043_v9 = vld [vmem:[#allocation3 + $0x8] sm:$0xff]  ;;  %v3166_v11 = vpop.f32.mrf.mxu1  ;;  %v1624_v46 = vld [vmem:[#allocation3 + $0x78] sm:$0xff] }
 0x136   :  { %2243 = vst.msk [vmem:[#allocation3 + $0x18] sm:$0xff] %vm19_vm4, %v2227_v6  ;;  %v2225_v12 = vadd.f32 %v2164_v60, %v2043_v9  ;;  %1812 = vst.msk [vmem:[#allocation3 + $0x28] sm:$0xff] %vm19_vm4, %v1796_v7  ;;  %v1801_v13 = vadd.f32 %v3166_v11, %v1619_v10  ;;  %v3181_v14 = vpop.f32.mrf.mxu0 }
 0x137   :  { %v2048_v15 = vld [vmem:[#allocation3 + $0x30] sm:$0xff]  ;;  %v1760_v17 = vpop.f32.mrf.mxu1  ;;  %v1622_v52 = vld [vmem:[#allocation3 + $0x68] sm:$0xff] }
 0x138   :  { %2241 = vst.msk [vmem:[#allocation3 + $0x8] sm:$0xff] %vm19_vm4, %v2225_v12  ;;  %v2230_v18 = vadd.f32 %v3180_v2, %v2048_v15  ;;  %1817 = vst.msk [vmem:[#allocation3 + $0x50] sm:$0xff] %vm19_vm4, %v1801_v13  ;;  %v1799_v19 = vadd.f32 %v1760_v17, %v1617_v16  ;;  %v2180_v20 = vpop.f32.mrf.mxu0 }
 0x139   :  { %v2046_v21 = vld [vmem:[#allocation3 + $0x20] sm:$0xff]  ;;  %v3167_v24 = vpop.f32.mrf.mxu1  ;;  %v2274_v58 = vld [vmem:[#allocation3 + $0x10] sm:$0xff] }
 0x13a   :  { %2246 = vst.msk [vmem:[#allocation3 + $0x30] sm:$0xff] %vm19_vm4, %v2230_v18  ;;  %v2228_v25 = vadd.f32 %v2177_v8, %v2046_v21  ;;  %1815 = vst.msk [vmem:[#allocation3 + $0x40] sm:$0xff] %vm19_vm4, %v1799_v19  ;;  %v1802_v26 = vadd.f32 %v3167_v24, %v1620_v23  ;;  %v3184_v27 = vpop.f32.mrf.mxu0 }
 0x13b   :  { %v2049_v29 = vld [vmem:[#allocation3 + $0x38] sm:$0xff]  ;;  %v1763_v31 = vpop.f32.mrf.mxu1  ;;  %v2272_v0 = vld [vmem:[#allocation3] sm:$0xff] }
 0x13c   :  { %2244 = vst.msk [vmem:[#allocation3 + $0x20] sm:$0xff] %vm19_vm4, %v2228_v25  ;;  %v2231_v32 = vadd.f32 %v3181_v14, %v2049_v29  ;;  %1818 = vst.msk [vmem:[#allocation3 + $0x58] sm:$0xff] %vm19_vm4, %v1802_v26  ;;  %v1800_v33 = vadd.f32 %v1763_v31, %v1618_v30  ;;  %v2193_v34 = vpop.f32.mrf.mxu0 }
 0x13d   :  { %v2047_v35 = vld [vmem:[#allocation3 + $0x28] sm:$0xff]  ;;  %v3170_v37 = vpop.f32.mrf.mxu1  ;;  %v2275_v6 = vld [vmem:[#allocation3 + $0x18] sm:$0xff] }
 0x13e   :  { %2247 = vst.msk [vmem:[#allocation3 + $0x38] sm:$0xff] %vm19_vm4, %v2231_v32  ;;  %v2229_v38 = vadd.f32 %v2180_v20, %v2047_v35  ;;  %1816 = vst.msk [vmem:[#allocation3 + $0x48] sm:$0xff] %vm19_vm4, %v1800_v33  ;;  %v1805_v22 = vadd.f32 %v3170_v37, %v1623_v36  ;;  %v3185_v39 = vpop.f32.mrf.mxu0 }
 0x13f   :  { %v2052_v40 = vld [vmem:[#allocation3 + $0x50] sm:$0xff]  ;;  %v1776_v42 = vpop.f32.mrf.mxu1  ;;  %v2273_v12 = vld [vmem:[#allocation3 + $0x8] sm:$0xff] }
 0x140   :  { %2245 = vst.msk [vmem:[#allocation3 + $0x28] sm:$0xff] %vm19_vm4, %v2229_v38  ;;  %v2234_v43 = vadd.f32 %v3184_v27, %v2052_v40  ;;  %1821 = vst.msk [vmem:[#allocation3 + $0x70] sm:$0xff] %vm19_vm4, %v1805_v22  ;;  %v1803_v28 = vadd.f32 %v1776_v42, %v1621_v41  ;;  %v2196_v44 = vpop.f32.mrf.mxu0 }
 0x141   :  { %v2050_v45 = vld [vmem:[#allocation3 + $0x40] sm:$0xff]  ;;  %v3171_v47 = vpop.f32.mrf.mxu1  ;;  %v2278_v18 = vld [vmem:[#allocation3 + $0x30] sm:$0xff] }
 0x142   :  { %2250 = vst.msk [vmem:[#allocation3 + $0x50] sm:$0xff] %vm19_vm4, %v2234_v43  ;;  %v2232_v48 = vadd.f32 %v2193_v34, %v2050_v45  ;;  %1819 = vst.msk [vmem:[#allocation3 + $0x60] sm:$0xff] %vm19_vm4, %v1803_v28  ;;  %v1806_v49 = vadd.f32 %v3171_v47, %v1624_v46  ;;  %v3188_v50 = vpop.f32.mrf.mxu0  ;;  %v4044_v47 = vld [vmem:[%s4149_s2] ss:$0 sm:$0xff] }
 0x143   :  { %v2053_v51 = vld [vmem:[#allocation3 + $0x58] sm:$0xff]  ;;  %v1779_v53 = vpop.f32.mrf.mxu1  ;;  %v2276_v25 = vld [vmem:[#allocation3 + $0x20] sm:$0xff] }
 0x144   :  { %2248 = vst.msk [vmem:[#allocation3 + $0x40] sm:$0xff] %vm19_vm4, %v2232_v48  ;;  %v2235_v54 = vadd.f32 %v3185_v39, %v2053_v51  ;;  %1822 = vst.msk [vmem:[#allocation3 + $0x78] sm:$0xff] %vm19_vm4, %v1806_v49  ;;  %v1804_v55 = vadd.f32 %v1779_v53, %v1622_v52  ;;  %v2209_v56 = vpop.f32.mrf.mxu0 }
 0x145   :  { %v2051_v57 = vld [vmem:[#allocation3 + $0x48] sm:$0xff]  ;;  %v3194_v59 = vpop.f32.mrf.mxu1  ;;  %v2279_v32 = vld [vmem:[#allocation3 + $0x38] sm:$0xff] }
 0x146   :  { %2251 = vst.msk [vmem:[#allocation3 + $0x58] sm:$0xff] %vm19_vm4, %v2235_v54  ;;  %v2233_v60 = vadd.f32 %v2196_v44, %v2051_v57  ;;  %1820 = vst.msk [vmem:[#allocation3 + $0x68] sm:$0xff] %vm19_vm4, %v1804_v55  ;;  %v3189_v61 = vpop.f32.mrf.mxu0  ;;  %v2456_v62 = vadd.f32 %v3194_v59, %v2274_v58 }
 0x147   :  { %v2056_v63 = vld [vmem:[#allocation3 + $0x70] sm:$0xff]  ;;  %v2391_v1 = vpop.f32.mrf.mxu1  ;;  %v2277_v38 = vld [vmem:[#allocation3 + $0x28] sm:$0xff] }
 0x148   :  { %2249 = vst.msk [vmem:[#allocation3 + $0x48] sm:$0xff] %vm19_vm4, %v2233_v60  ;;  %v2238_v2 = vadd.f32 %v3188_v50, %v2056_v63  ;;  %2472 = vst.msk [vmem:[#allocation3 + $0x10] sm:$0xff] %vm19_vm4, %v2456_v62  ;;  %v2212_v3 = vpop.f32.mrf.mxu0  ;;  %v2454_v4 = vadd.f32 %v2391_v1, %v2272_v0 }
 0x149   :  { %v2054_v5 = vld [vmem:[#allocation3 + $0x60] sm:$0xff]  ;;  %v3195_v7 = vpop.f32.mrf.mxu1  ;;  %v2282_v43 = vld [vmem:[#allocation3 + $0x50] sm:$0xff] }
 0x14a   :  { %2254 = vst.msk [vmem:[#allocation3 + $0x70] sm:$0xff] %vm19_vm4, %v2238_v2  ;;  %v2236_v8 = vadd.f32 %v2209_v56, %v2054_v5  ;;  %2470 = vst.msk [vmem:[#allocation3] sm:$0xff] %vm19_vm4, %v2454_v4  ;;  %v2457_v9 = vadd.f32 %v3195_v7, %v2275_v6  ;;  %v3212_v10 = vpop.f32.mrf.mxu0 }
 0x14b   :  { %v2057_v11 = vld [vmem:[#allocation3 + $0x78] sm:$0xff]  ;;  %v2394_v13 = vpop.f32.mrf.mxu1  ;;  %v2280_v49 = vld [vmem:[#allocation3 + $0x40] sm:$0xff] }
 0x14c   :  { %2252 = vst.msk [vmem:[#allocation3 + $0x60] sm:$0xff] %vm19_vm4, %v2236_v8  ;;  %v2239_v14 = vadd.f32 %v3189_v61, %v2057_v11  ;;  %2473 = vst.msk [vmem:[#allocation3 + $0x18] sm:$0xff] %vm19_vm4, %v2457_v9  ;;  %v2455_v15 = vadd.f32 %v2394_v13, %v2273_v12  ;;  %v2621_v16 = vpop.f32.mrf.mxu0 }
 0x14d   :  { %v2055_v17 = vld [vmem:[#allocation3 + $0x68] sm:$0xff]  ;;  %v3198_v19 = vpop.f32.mrf.mxu1  ;;  %v2283_v56 = vld [vmem:[#allocation3 + $0x58] sm:$0xff] }
 0x14e   :  { %2255 = vst.msk [vmem:[#allocation3 + $0x78] sm:$0xff] %vm19_vm4, %v2239_v14  ;;  %v2237_v20 = vadd.f32 %v2212_v3, %v2055_v17  ;;  %2471 = vst.msk [vmem:[#allocation3 + $0x8] sm:$0xff] %vm19_vm4, %v2455_v15  ;;  %v2460_v21 = vadd.f32 %v3198_v19, %v2278_v18  ;;  %v3213_v23 = vpop.f32.mrf.mxu0 }
 0x14f   :  { %v2504_v24 = vld [vmem:[#allocation3 + $0x10] sm:$0xff]  ;;  %v2407_v26 = vpop.f32.mrf.mxu1  ;;  %v2281_v0 = vld [vmem:[#allocation3 + $0x48] sm:$0xff] }
 0x150   :  { %2253 = vst.msk [vmem:[#allocation3 + $0x68] sm:$0xff] %vm19_vm4, %v2237_v20  ;;  %v2686_v27 = vadd.f32 %v3212_v10, %v2504_v24  ;;  %2476 = vst.msk [vmem:[#allocation3 + $0x30] sm:$0xff] %vm19_vm4, %v2460_v21  ;;  %v2458_v29 = vadd.f32 %v2407_v26, %v2276_v25  ;;  %v2624_v30 = vpop.f32.mrf.mxu0 }
 0x151   :  { %v2502_v31 = vld [vmem:[#allocation3] sm:$0xff]  ;;  %v3199_v33 = vpop.f32.mrf.mxu1  ;;  %v2286_v14 = vld [vmem:[#allocation3 + $0x70] sm:$0xff] }
 0x152   :  { %2702 = vst.msk [vmem:[#allocation3 + $0x10] sm:$0xff] %vm19_vm4, %v2686_v27  ;;  %v2684_v34 = vadd.f32 %v2621_v16, %v2502_v31  ;;  %2474 = vst.msk [vmem:[#allocation3 + $0x20] sm:$0xff] %vm19_vm4, %v2458_v29  ;;  %v2461_v35 = vadd.f32 %v3199_v33, %v2279_v32  ;;  %v3216_v36 = vpop.f32.mrf.mxu0 }
 0x153   :  { %v2505_v37 = vld [vmem:[#allocation3 + $0x18] sm:$0xff]  ;;  %v2410_v22 = vpop.f32.mrf.mxu1  ;;  %v2284_v25 = vld [vmem:[#allocation3 + $0x60] sm:$0xff] }
 0x154   :  { %2700 = vst.msk [vmem:[#allocation3] sm:$0xff] %vm19_vm4, %v2684_v34  ;;  %v2687_v39 = vadd.f32 %v3213_v23, %v2505_v37  ;;  %2477 = vst.msk [vmem:[#allocation3 + $0x38] sm:$0xff] %vm19_vm4, %v2461_v35  ;;  %v2459_v40 = vadd.f32 %v2410_v22, %v2277_v38  ;;  %v2637_v41 = vpop.f32.mrf.mxu0 }
 0x155   :  { %v2503_v42 = vld [vmem:[#allocation3 + $0x8] sm:$0xff]  ;;  %v3202_v28 = vpop.f32.mrf.mxu1 }
 0x156   :  { %2703 = vst.msk [vmem:[#allocation3 + $0x18] sm:$0xff] %vm19_vm4, %v2687_v39  ;;  %v2685_v44 = vadd.f32 %v2624_v30, %v2503_v42  ;;  %2475 = vst.msk [vmem:[#allocation3 + $0x28] sm:$0xff] %vm19_vm4, %v2459_v40  ;;  %v2464_v45 = vadd.f32 %v3202_v28, %v2282_v43  ;;  %v3217_v46 = vpop.f32.mrf.mxu0 }
 0x157   :  { %v2508_v48 = vld [vmem:[#allocation3 + $0x30] sm:$0xff]  ;;  %v2423_v50 = vpop.f32.mrf.mxu1 }
 0x158   :  { %2701 = vst.msk [vmem:[#allocation3 + $0x8] sm:$0xff] %vm19_vm4, %v2685_v44  ;;  %v2690_v51 = vadd.f32 %v3216_v36, %v2508_v48  ;;  %2480 = vst.msk [vmem:[#allocation3 + $0x50] sm:$0xff] %vm19_vm4, %v2464_v45  ;;  %v2462_v52 = vadd.f32 %v2423_v50, %v2280_v49  ;;  %v2640_v53 = vpop.f32.mrf.mxu0  ;;  %v2287_v36 = vld [vmem:[#allocation3 + $0x78] sm:$0xff]  ;;  %v2285_v44 = vld [vmem:[#allocation3 + $0x68] sm:$0xff] }
 0x159   :  { %v2721_v54 = vld [vmem:[#allocation3 + $0x10] sm:$0xff]  ;;  %v2506_v55 = vld [vmem:[#allocation3 + $0x20] sm:$0xff]  ;;  %v3203_v57 = vpop.f32.mrf.mxu1 }
 0x15a   :  { %v2744_v58 = vadd.f32 %v4044_v47, %v2721_v54  ;;  %2706 = vst.msk [vmem:[#allocation3 + $0x30] sm:$0xff] %vm19_vm4, %v2690_v51  ;;  %v2688_v59 = vadd.f32 %v2637_v41, %v2506_v55  ;;  %2478 = vst.msk [vmem:[#allocation3 + $0x40] sm:$0xff] %vm19_vm4, %v2462_v52  ;;  %v2465_v60 = vadd.f32 %v3203_v57, %v2283_v56  ;;  %v3220_v61 = vpop.f32.mrf.mxu0 }
 0x15b   :  { %v2719_v62 = vld [vmem:[#allocation3] sm:$0xff]  ;;  %v2509_v63 = vld [vmem:[#allocation3 + $0x38] sm:$0xff]  ;;  %v2426_v1 = vpop.f32.mrf.mxu1 }
 0x15c   :  { %v2760_v2 = vmax.f32 %v2744_v58, 0.0  ;;  %v2742_v3 = vadd.f32 %v4044_v47, %v2719_v62  ;;  %2704 = vst.msk [vmem:[#allocation3 + $0x20] sm:$0xff] %vm19_vm4, %v2688_v59  ;;  %v2691_v4 = vadd.f32 %v3217_v46, %v2509_v63  ;;  %2481 = vst.msk [vmem:[#allocation3 + $0x58] sm:$0xff] %vm19_vm4, %v2465_v60  ;;  %v2463_v5 = vadd.f32 %v2426_v1, %v2281_v0  ;;  %v2653_v6 = vpop.f32.mrf.mxu0 }
 0x15d   :  { %v2722_v7 = vld [vmem:[#allocation3 + $0x18] sm:$0xff]  ;;  %v2507_v8 = vld [vmem:[#allocation3 + $0x28] sm:$0xff]  ;;  %v3206_v9 = vpop.f32.mrf.mxu1 }
 0x15e   :  { %v2776_v10 = vpack.c.bf16 %v2760_v2, %v2760_v2  ;;  %v2758_v11 = vmax.f32 %v2742_v3, 0.0  ;;  %v2745_v12 = vadd.f32 %v4044_v47, %v2722_v7  ;;  %2707 = vst.msk [vmem:[#allocation3 + $0x38] sm:$0xff] %vm19_vm4, %v2691_v4  ;;  %v2689_v13 = vadd.f32 %v2640_v53, %v2507_v8  ;;  %2479 = vst.msk [vmem:[#allocation3 + $0x48] sm:$0xff] %vm19_vm4, %v2463_v5  ;;  %v3221_v15 = vpop.f32.mrf.mxu0 }
 0x15f   :  { %v2720_v16 = vld [vmem:[#allocation3 + $0x8] sm:$0xff]  ;;  %v2512_v17 = vld [vmem:[#allocation3 + $0x50] sm:$0xff]  ;;  %v2468_v18 = vadd.f32 %v3206_v9, %v2286_v14  ;;  %v2439_v19 = vpop.f32.mrf.mxu1 }
 0x160   :  { %2792 = vst.msk [vmem:[%s4150_s3 + $0x8] sm:$0xf] %vm56_vm1, %v2776_v10  ;;  %v2774_v20 = vpack.c.bf16 %v2758_v11, %v2758_v11  ;;  %v2761_v21 = vmax.f32 %v2745_v12, 0.0  ;;  %v2743_v23 = vadd.f32 %v4044_v47, %v2720_v16  ;;  %v2694_v24 = vadd.f32 %v3220_v61, %v2512_v17  ;;  %v2656_v26 = vpop.f32.mrf.mxu0 }
 0x161   :  { %2705 = vst.msk [vmem:[#allocation3 + $0x28] sm:$0xff] %vm19_vm4, %v2689_v13  ;;  %v2725_v27 = vld [vmem:[#allocation3 + $0x30] sm:$0xff]  ;;  %v2510_v29 = vld [vmem:[#allocation3 + $0x40] sm:$0xff]  ;;  %2484 = vst.msk [vmem:[#allocation3 + $0x70] sm:$0xff] %vm19_vm4, %v2468_v18  ;;  %v2466_v30 = vadd.f32 %v2439_v19, %v2284_v25  ;;  %v3207_v31 = vpop.f32.mrf.mxu1 }
 0x162   :  { %2790 = vst.msk [vmem:[%s4150_s3] sm:$0xf] %vm56_vm1, %v2774_v20  ;;  %v2777_v32 = vpack.c.bf16 %v2761_v21, %v2761_v21  ;;  %v2759_v33 = vmax.f32 %v2743_v23, 0.0  ;;  %v2748_v34 = vadd.f32 %v4044_v47, %v2725_v27  ;;  %v2692_v35 = vadd.f32 %v2653_v6, %v2510_v29  ;;  %v3224_v37 = vpop.f32.mrf.mxu0 }
 0x163   :  { %2710 = vst.msk [vmem:[#allocation3 + $0x50] sm:$0xff] %vm19_vm4, %v2694_v24  ;;  %v2723_v38 = vld [vmem:[#allocation3 + $0x20] sm:$0xff]  ;;  %v2513_v22 = vld [vmem:[#allocation3 + $0x58] sm:$0xff]  ;;  %2482 = vst.msk [vmem:[#allocation3 + $0x60] sm:$0xff] %vm19_vm4, %v2466_v30  ;;  %v2469_v39 = vadd.f32 %v3207_v31, %v2287_v36  ;;  %v2442_v40 = vpop.f32.mrf.mxu1 }
 0x164   :  { %2793 = vst.msk [vmem:[%s4150_s3 + $0xc] sm:$0xf] %vm56_vm1, %v2777_v32  ;;  %v2775_v41 = vpack.c.bf16 %v2759_v33, %v2759_v33  ;;  %v2764_v42 = vmax.f32 %v2748_v34, 0.0  ;;  %v2746_v43 = vadd.f32 %v4044_v47, %v2723_v38  ;;  %v2695_v28 = vadd.f32 %v3221_v15, %v2513_v22  ;;  %v2669_v53 = vpop.f32.mrf.mxu0 }
 0x165   :  { %2708 = vst.msk [vmem:[#allocation3 + $0x40] sm:$0xff] %vm19_vm4, %v2692_v35  ;;  %v2726_v45 = vld [vmem:[#allocation3 + $0x38] sm:$0xff]  ;;  %v2511_v46 = vld [vmem:[#allocation3 + $0x48] sm:$0xff]  ;;  %2485 = vst.msk [vmem:[#allocation3 + $0x78] sm:$0xff] %vm19_vm4, %v2469_v39  ;;  %v2467_v48 = vadd.f32 %v2442_v40, %v2285_v44 }
 0x166   :  { %2791 = vst.msk [vmem:[%s4150_s3 + $0x4] sm:$0xf] %vm56_vm1, %v2775_v41  ;;  %v2780_v49 = vpack.c.bf16 %v2764_v42, %v2764_v42  ;;  %v2762_v50 = vmax.f32 %v2746_v43, 0.0  ;;  %v2749_v51 = vadd.f32 %v4044_v47, %v2726_v45  ;;  %v2693_v52 = vadd.f32 %v2656_v26, %v2511_v46  ;;  %v3225_v1 = vpop.f32.mrf.mxu0 }
 0x167   :  { %2711 = vst.msk [vmem:[#allocation3 + $0x58] sm:$0xff] %vm19_vm4, %v2695_v28  ;;  %2483 = vst.msk [vmem:[#allocation3 + $0x68] sm:$0xff] %vm19_vm4, %v2467_v48 }
 0x168   :  { %v2724_v54 = vld [vmem:[#allocation3 + $0x28] sm:$0xff]  ;;  %2796 = vst.msk [vmem:[%s4150_s3 + $0x18] sm:$0xf] %vm56_vm1, %v2780_v49  ;;  %v2778_v55 = vpack.c.bf16 %v2762_v50, %v2762_v50  ;;  %v2765_v56 = vmax.f32 %v2749_v51, 0.0  ;;  %v2516_v58 = vld [vmem:[#allocation3 + $0x70] sm:$0xff]  ;;  %v2672_v14 = vpop.f32.mrf.mxu0 }
 0x169   :  { %v2747_v57 = vadd.f32 %v4044_v47, %v2724_v54  ;;  %2709 = vst.msk [vmem:[#allocation3 + $0x48] sm:$0xff] %vm19_vm4, %v2693_v52  ;;  %v2698_v60 = vadd.f32 %v3224_v37, %v2516_v58 }
 0x16a   :  { %v2729_v59 = vld [vmem:[#allocation3 + $0x50] sm:$0xff]  ;;  %2794 = vst.msk [vmem:[%s4150_s3 + $0x10] sm:$0xf] %vm56_vm1, %v2778_v55  ;;  %v2781_v61 = vpack.c.bf16 %v2765_v56, %v2765_v56  ;;  %v2514_v0 = vld [vmem:[#allocation3 + $0x60] sm:$0xff] }
 0x16b   :  { %v2763_v62 = vmax.f32 %v2747_v57, 0.0  ;;  %v2752_v63 = vadd.f32 %v4044_v47, %v2729_v59  ;;  %2714 = vst.msk [vmem:[#allocation3 + $0x70] sm:$0xff] %vm19_vm4, %v2698_v60  ;;  %v2696_v3 = vadd.f32 %v2669_v53, %v2514_v0 }
 0x16c   :  { %v2727_v2 = vld [vmem:[#allocation3 + $0x40] sm:$0xff]  ;;  %2797 = vst.msk [vmem:[%s4150_s3 + $0x1c] sm:$0xf] %vm56_vm1, %v2781_v61  ;;  %v2517_v7 = vld [vmem:[#allocation3 + $0x78] sm:$0xff] }
 0x16d   :  { %v2779_v4 = vpack.c.bf16 %v2763_v62, %v2763_v62  ;;  %v2768_v5 = vmax.f32 %v2752_v63, 0.0  ;;  %v2750_v6 = vadd.f32 %v4044_v47, %v2727_v2  ;;  %2712 = vst.msk [vmem:[#allocation3 + $0x60] sm:$0xff] %vm19_vm4, %v2696_v3  ;;  %v2699_v9 = vadd.f32 %v3225_v1, %v2517_v7 }
 0x16e   :  { %v2730_v8 = vld [vmem:[#allocation3 + $0x58] sm:$0xff]  ;;  %v2515_v13 = vld [vmem:[#allocation3 + $0x68] sm:$0xff] }
 0x16f   :  { %2795 = vst.msk [vmem:[%s4150_s3 + $0x14] sm:$0xf] %vm56_vm1, %v2779_v4  ;;  %v2784_v10 = vpack.c.bf16 %v2768_v5, %v2768_v5  ;;  %v2766_v11 = vmax.f32 %v2750_v6, 0.0  ;;  %v2753_v12 = vadd.f32 %v4044_v47, %v2730_v8  ;;  %v2697_v16 = vadd.f32 %v2672_v14, %v2515_v13 }
 0x170   :  { %v2728_v15 = vld [vmem:[#allocation3 + $0x48] sm:$0xff]  ;;  %2715 = vst.msk [vmem:[#allocation3 + $0x78] sm:$0xff] %vm19_vm4, %v2699_v9 }
 0x171   :  { %2800 = vst.msk [vmem:[%s4150_s3 + $0x28] sm:$0xf] %vm56_vm1, %v2784_v10  ;;  %v2782_v17 = vpack.c.bf16 %v2766_v11, %v2766_v11  ;;  %v2769_v18 = vmax.f32 %v2753_v12, 0.0  ;;  %v2751_v19 = vadd.f32 %v4044_v47, %v2728_v15 }
 0x172   :  { %2713 = vst.msk [vmem:[#allocation3 + $0x68] sm:$0xff] %vm19_vm4, %v2697_v16  ;;  %v2733_v23 = vld [vmem:[#allocation3 + $0x70] sm:$0xff] }
 0x173   :  { %2798 = vst.msk [vmem:[%s4150_s3 + $0x20] sm:$0xf] %vm56_vm1, %v2782_v17  ;;  %v2785_v20 = vpack.c.bf16 %v2769_v18, %v2769_v18  ;;  %v2767_v21 = vmax.f32 %v2751_v19, 0.0  ;;  %v2756_v24 = vadd.f32 %v4044_v47, %v2733_v23 }
 0x174   :  { %v2731_v26 = vld [vmem:[#allocation3 + $0x60] sm:$0xff] }
 0x175   :  { %2801 = vst.msk [vmem:[%s4150_s3 + $0x2c] sm:$0xf] %vm56_vm1, %v2785_v20  ;;  %v2783_v25 = vpack.c.bf16 %v2767_v21, %v2767_v21  ;;  %v2772_v27 = vmax.f32 %v2756_v24, 0.0  ;;  %v2754_v29 = vadd.f32 %v4044_v47, %v2731_v26 }
 0x177   :  { %2799 = vst.msk [vmem:[%s4150_s3 + $0x24] sm:$0xf] %vm56_vm1, %v2783_v25  ;;  %v2734_v30 = vld [vmem:[#allocation3 + $0x78] sm:$0xff]  ;;  %v2788_v31 = vpack.c.bf16 %v2772_v27, %v2772_v27  ;;  %v2770_v32 = vmax.f32 %v2754_v29, 0.0 }
 0x178   :  { %v2757_v33 = vadd.f32 %v4044_v47, %v2734_v30 }
 0x179   :  { %v2732_v34 = vld [vmem:[#allocation3 + $0x68] sm:$0xff]  ;;  %2804 = vst.msk [vmem:[%s4150_s3 + $0x38] sm:$0xf] %vm56_vm1, %v2788_v31  ;;  %v2786_v35 = vpack.c.bf16 %v2770_v32, %v2770_v32 }
 0x17a   :  { %v2773_v36 = vmax.f32 %v2757_v33, 0.0  ;;  %v2755_v37 = vadd.f32 %v4044_v47, %v2732_v34 }
 0x17b   :  { %2802 = vst.msk [vmem:[%s4150_s3 + $0x30] sm:$0xf] %vm56_vm1, %v2786_v35 }
 0x17c   :  { %v2789_v38 = vpack.c.bf16 %v2773_v36, %v2773_v36  ;;  %v2771_v22 = vmax.f32 %v2755_v37, 0.0 }
 0x17e   :  { %2805 = vst.msk [vmem:[%s4150_s3 + $0x3c] sm:$0xf] %vm56_vm1, %v2789_v38  ;;  %v2787_v39 = vpack.c.bf16 %v2771_v22, %v2771_v22 }
 0x180   :  { %2803 = vst.msk [vmem:[%s4150_s3 + $0x34] sm:$0xf] %vm56_vm1, %v2787_v39 }

</bundles_post_ra>
